<compile_context>
chip_gen: v7x
topology: tpu7x:2x2x1
jax: 0.10.0
libtpu: 0.0.40
codegen_flags: <defaults>
</compile_context>

<pallas_src>
import jax
import jax.numpy as jnp
from jax.experimental import pallas as pl
from jax.experimental.pallas import tpu as pltpu

D_IN = 5888     # 46 * 128
H1 = 1024
H2 = 512
D_OUT = 4

TK = 2944       # 23 * 128 -> 2 K-chunks of the fc1 reduction


# --------------------------- fused forward kernel ----------------------------
def net_kernel(x_ref, w1_ref, b1_ref, w2_ref, b2_ref, w3_ref, b3_ref,
               out_ref, h1_acc):
    k = pl.program_id(0)

    @pl.when(k == 0)
    def _():
        h1_acc[...] = jnp.zeros_like(h1_acc)

    # fc1 partial product: bf16 x bf16 MXU matmul, f32 accumulation.
    h1_acc[...] += jnp.dot(x_ref[...], w1_ref[...],
                           preferred_element_type=jnp.float32)

    @pl.when(k == pl.num_programs(0) - 1)
    def _():
        # fc1 bias + ReLU, hand off to fc2 in bf16 (next dot re-casts anyway).
        h1 = jnp.maximum(h1_acc[...] + b1_ref[...], 0.0).astype(jnp.bfloat16)
        # fc2 + ReLU (bf16 inputs, f32 accumulation).
        h2 = jnp.dot(h1, w2_ref[...], preferred_element_type=jnp.float32)
        h2 = jnp.maximum(h2 + b2_ref[...], 0.0)
        # fc3 (tiny, f32).
        logits = jnp.dot(h2, w3_ref[...],
                         preferred_element_type=jnp.float32) + b3_ref[...]
        # softmax over dim=1 (numerically stable).
        m = jnp.max(logits, axis=1, keepdims=True)
        e = jnp.exp(logits - m)
        out_ref[...] = (e / jnp.sum(e, axis=1, keepdims=True)).astype(out_ref.dtype)


def net_forward(x, w1_bf16, b1, w2_bf16, b2, w3, b3):
    B = x.shape[0]
    n_k = D_IN // TK
    cost = pl.CostEstimate(
        flops=2 * B * (D_IN * H1 + H1 * H2 + H2 * D_OUT),
        transcendentals=B * D_OUT,
        bytes_accessed=(B * D_IN * 2          # x (bf16)
                        + D_IN * H1 * 2       # W1 (bf16)
                        + H1 * 4              # b1
                        + H1 * H2 * 2         # W2 (bf16)
                        + H2 * 4              # b2
                        + H2 * D_OUT * 4      # W3
                        + D_OUT * 4           # b3
                        + B * D_OUT * 4),     # out
    )
    return pl.pallas_call(
        net_kernel,
        out_shape=jax.ShapeDtypeStruct((B, D_OUT), jnp.float32),
        grid_spec=pltpu.PrefetchScalarGridSpec(
            num_scalar_prefetch=0,
            grid=(n_k,),
            in_specs=[
                pl.BlockSpec((B, TK), lambda k: (0, k)),       # x K-chunk (bf16)
                pl.BlockSpec((TK, H1), lambda k: (k, 0)),      # W1 slab (bf16, contiguous)
                pl.BlockSpec((1, H1), lambda k: (0, 0)),       # b1
                pl.BlockSpec((H1, H2), lambda k: (0, 0)),      # W2 (bf16, resident)
                pl.BlockSpec((1, H2), lambda k: (0, 0)),       # b2
                pl.BlockSpec((H2, D_OUT), lambda k: (0, 0)),   # W3 (full-array block)
                pl.BlockSpec((1, D_OUT), lambda k: (0, 0)),    # b3
            ],
            out_specs=pl.BlockSpec((B, D_OUT), lambda k: (0, 0)),
            scratch_shapes=[pltpu.VMEM((B, H1), jnp.float32)],  # fc1 accumulator
        ),
        compiler_params=pltpu.CompilerParams(
            dimension_semantics=("arbitrary",),         # K is a reduction axis
            vmem_limit_bytes=32 * 1024 * 1024,          # headroom over v5e's 16 MiB default
        ),
        cost_estimate=cost,
    )(x.astype(jnp.bfloat16), w1_bf16, b1, w2_bf16, b2, w3, b3)


# ------------------------------- test setup ----------------------------------
def init_params(key):
    # Deterministic synthetic init (mimics torch's uniform(-1/sqrt(fan_in), .)).
    ks = jax.random.split(key, 6)

    def uni(k, shape, fan_in):
        bound = 1.0 / jnp.sqrt(fan_in)
        return jax.random.uniform(k, shape, jnp.float32, -bound, bound)

    # Big weight matrices streamed from HBM are stored in bf16 (2x fewer bytes).
    w1 = uni(ks[0], (D_IN, H1), D_IN).astype(jnp.bfloat16)
    b1 = uni(ks[1], (1, H1), D_IN)
    w2 = uni(ks[2], (H1, H2), H1).astype(jnp.bfloat16)
    b2 = uni(ks[3], (1, H2), H1)
    w3 = uni(ks[4], (H2, D_OUT), H2)
    b3 = uni(ks[5], (1, D_OUT), H2)
    return w1, b1, w2, b2, w3, b3


def reference_forward(x, w1, b1, w2, b2, w3, b3):
    # Full-f32 reference using the same (bf16) weight values.
    h1 = jnp.maximum(x @ w1.astype(jnp.float32) + b1, 0.0)
    h2 = jnp.maximum(h1 @ w2.astype(jnp.float32) + b2, 0.0)
    logits = h2 @ w3 + b3
    return jax.nn.softmax(logits, axis=1)


if __name__ == "__main__":
    key = jax.random.PRNGKey(0)
    k_x, k_p = jax.random.split(key)

    B = 8
    x = jax.random.normal(k_x, (B, D_IN), jnp.float32)
    params = init_params(k_p)

    out = jax.block_until_ready(net_forward(x, *params))
    ref = reference_forward(x, *params)

    assert out.shape == (B, D_OUT)
    assert bool(jnp.all(jnp.isfinite(out)))
    # Tolerance loosened because activations/weights run in bf16 (f32 accum).
    assert jnp.allclose(out, ref, atol=2e-2, rtol=2e-2), "mismatch vs JAX reference"

    print("KERNEL_OK")
</pallas_src>

<mosaic_0001>
module attributes {stable_mosaic.version = 11 : i64} {
  func.func @net_kernel(%arg0: i32, %arg1: memref<8x2944xbf16, #tpu.memory_space<vmem>>, %arg2: memref<2944x1024xbf16, #tpu.memory_space<vmem>>, %arg3: memref<1x1024xf32, #tpu.memory_space<vmem>>, %arg4: memref<1024x512xbf16, #tpu.memory_space<vmem>>, %arg5: memref<1x512xf32, #tpu.memory_space<vmem>>, %arg6: memref<512x4xf32, #tpu.memory_space<vmem>>, %arg7: memref<1x4xf32, #tpu.memory_space<vmem>>, %arg8: memref<8x4xf32, #tpu.memory_space<vmem>>, %arg9: memref<8x1024xf32, #tpu.memory_space<vmem>>) attributes {dimension_semantics = [#tpu.dimension_semantics<arbitrary>], iteration_bounds = array<i64: 2>, scalar_prefetch = 0 : i64, scratch_operands = 1 : i64, tpu.core_type = #tpu.core_type<tc>, window_params = [{transform_indices = @transform_0, window_bounds = array<i64: 8, 2944>}, {transform_indices = @transform_1, window_bounds = array<i64: 2944, 1024>}, {pipeline_mode = #tpu.pipeline_mode<synchronous>, transform_indices = @transform_2, window_bounds = array<i64: 1, 1024>}, {pipeline_mode = #tpu.pipeline_mode<synchronous>, transform_indices = @transform_3, window_bounds = array<i64: 1024, 512>}, {pipeline_mode = #tpu.pipeline_mode<synchronous>, transform_indices = @transform_4, window_bounds = array<i64: 1, 512>}, {pipeline_mode = #tpu.pipeline_mode<synchronous>, transform_indices = @transform_5, window_bounds = array<i64: 512, 4>}, {pipeline_mode = #tpu.pipeline_mode<synchronous>, transform_indices = @transform_6, window_bounds = array<i64: 1, 4>}, {pipeline_mode = #tpu.pipeline_mode<synchronous>, transform_indices = @transform_7, window_bounds = array<i64: 8, 4>}]} {
    %c0_i32 = arith.constant 0 : i32
    %0 = arith.cmpi eq, %arg0, %c0_i32 : i32
    %1 = arith.extui %0 : i1 to i32
    %c0_i32_0 = arith.constant 0 : i32
    %2 = arith.cmpi ne, %1, %c0_i32_0 : i32
    scf.if %2 {
      %cst_9 = arith.constant 0.000000e+00 : f32
      %12 = vector.broadcast %cst_9 : f32 to vector<8x1024xf32>
      %c0_10 = arith.constant 0 : index
      %c0_11 = arith.constant 0 : index
      %13 = vector.load %arg9[%c0_10, %c0_11] : memref<8x1024xf32, #tpu.memory_space<vmem>>, vector<8x1024xf32>
      tpu.vector_store %arg9[%c0_10, %c0_11], %12 {strides = array<i32>} : memref<8x1024xf32, #tpu.memory_space<vmem>>, vector<8x1024xf32>,
    } else {
    }
    %c0 = arith.constant 0 : index
    %c0_1 = arith.constant 0 : index
    %3 = vector.load %arg9[%c0, %c0_1] : memref<8x1024xf32, #tpu.memory_space<vmem>>, vector<8x1024xf32>
    %c0_2 = arith.constant 0 : index
    %c0_3 = arith.constant 0 : index
    %4 = vector.load %arg1[%c0_2, %c0_3] : memref<8x2944xbf16, #tpu.memory_space<vmem>>, vector<8x2944xbf16>
    %c0_4 = arith.constant 0 : index
    %c0_5 = arith.constant 0 : index
    %5 = vector.load %arg2[%c0_4, %c0_5] : memref<2944x1024xbf16, #tpu.memory_space<vmem>>, vector<2944x1024xbf16>
    %cst = arith.constant dense<0.000000e+00> : vector<8x1024xf32>
    %6 = tpu.matmul %4, %5, %cst {dimension_numbers = #tpu.dot_dimension_numbers<[1], [0], [0], [1], [0, 0, 1, 1], [], []>} : vector<8x2944xbf16>, vector<2944x1024xbf16>, vector<8x1024xf32> -> vector<8x1024xf32>
    %7 = arith.addf %3, %6 : vector<8x1024xf32>
    %c0_6 = arith.constant 0 : index
    %c0_7 = arith.constant 0 : index
    %8 = vector.load %arg9[%c0_6, %c0_7] : memref<8x1024xf32, #tpu.memory_space<vmem>>, vector<8x1024xf32>
    tpu.vector_store %arg9[%c0_6, %c0_7], %7 {strides = array<i32>} : memref<8x1024xf32, #tpu.memory_space<vmem>>, vector<8x1024xf32>,
    %c1_i32 = arith.constant 1 : i32
    %9 = arith.cmpi eq, %arg0, %c1_i32 : i32
    %10 = arith.extui %9 : i1 to i32
    %c0_i32_8 = arith.constant 0 : i32
    %11 = arith.cmpi ne, %10, %c0_i32_8 : i32
    scf.if %11 {
      %c0_9 = arith.constant 0 : index
      %c0_10 = arith.constant 0 : index
      %12 = vector.load %arg9[%c0_9, %c0_10] : memref<8x1024xf32, #tpu.memory_space<vmem>>, vector<8x1024xf32>
      %c0_11 = arith.constant 0 : index
      %c0_12 = arith.constant 0 : index
      %13 = vector.load %arg3[%c0_11, %c0_12] : memref<1x1024xf32, #tpu.memory_space<vmem>>, vector<1x1024xf32>
      %14 = vector.broadcast %13 : vector<1x1024xf32> to vector<8x1024xf32>
      %15 = arith.addf %12, %14 : vector<8x1024xf32>
      %cst_13 = arith.constant 0.000000e+00 : f32
      %16 = vector.broadcast %cst_13 : f32 to vector<8x1024xf32>
      %17 = arith.maximumf %15, %16 : vector<8x1024xf32>
      %18 = arith.truncf %17 : vector<8x1024xf32> to vector<8x1024xbf16>
      %c0_14 = arith.constant 0 : index
      %c0_15 = arith.constant 0 : index
      %19 = vector.load %arg4[%c0_14, %c0_15] : memref<1024x512xbf16, #tpu.memory_space<vmem>>, vector<1024x512xbf16>
      %cst_16 = arith.constant dense<0.000000e+00> : vector<8x512xf32>
      %20 = tpu.matmul %18, %19, %cst_16 {dimension_numbers = #tpu.dot_dimension_numbers<[1], [0], [0], [1], [0, 0, 1, 1], [], []>} : vector<8x1024xbf16>, vector<1024x512xbf16>, vector<8x512xf32> -> vector<8x512xf32>
      %c0_17 = arith.constant 0 : index
      %c0_18 = arith.constant 0 : index
      %21 = vector.load %arg5[%c0_17, %c0_18] : memref<1x512xf32, #tpu.memory_space<vmem>>, vector<1x512xf32>
      %22 = vector.broadcast %21 : vector<1x512xf32> to vector<8x512xf32>
      %23 = arith.addf %20, %22 : vector<8x512xf32>
      %cst_19 = arith.constant 0.000000e+00 : f32
      %24 = vector.broadcast %cst_19 : f32 to vector<8x512xf32>
      %25 = arith.maximumf %23, %24 : vector<8x512xf32>
      %c0_20 = arith.constant 0 : index
      %c0_21 = arith.constant 0 : index
      %26 = vector.load %arg6[%c0_20, %c0_21] : memref<512x4xf32, #tpu.memory_space<vmem>>, vector<512x4xf32>
      %cst_22 = arith.constant dense<0.000000e+00> : vector<8x4xf32>
      %27 = tpu.matmul %25, %26, %cst_22 {dimension_numbers = #tpu.dot_dimension_numbers<[1], [0], [0], [1], [0, 0, 1, 1], [], []>} : vector<8x512xf32>, vector<512x4xf32>, vector<8x4xf32> -> vector<8x4xf32>
      %c0_23 = arith.constant 0 : index
      %c0_24 = arith.constant 0 : index
      %28 = vector.load %arg7[%c0_23, %c0_24] : memref<1x4xf32, #tpu.memory_space<vmem>>, vector<1x4xf32>
      %29 = vector.broadcast %28 : vector<1x4xf32> to vector<8x4xf32>
      %30 = arith.addf %27, %29 : vector<8x4xf32>
      %cst_25 = arith.constant dense<0xFF800000> : vector<8xf32>
      %31 = vector.multi_reduction <maximumf>, %30, %cst_25 [1] : vector<8x4xf32> to vector<8xf32>
      %32 = vector.shape_cast %31 : vector<8xf32> to vector<8x1xf32>
      %33 = vector.broadcast %32 : vector<8x1xf32> to vector<8x4xf32>
      %34 = arith.subf %30, %33 : vector<8x4xf32>
      %35 = math.exp %34 : vector<8x4xf32>
      %cst_26 = arith.constant dense<0.000000e+00> : vector<8xf32>
      %36 = vector.multi_reduction <add>, %35, %cst_26 [1] : vector<8x4xf32> to vector<8xf32>
      %37 = vector.shape_cast %36 : vector<8xf32> to vector<8x1xf32>
      %38 = vector.broadcast %37 : vector<8x1xf32> to vector<8x4xf32>
      %39 = arith.divf %35, %38 : vector<8x4xf32>
      %c0_27 = arith.constant 0 : index
      %c0_28 = arith.constant 0 : index
      %40 = vector.load %arg8[%c0_27, %c0_28] : memref<8x4xf32, #tpu.memory_space<vmem>>, vector<8x4xf32>
      tpu.vector_store %arg8[%c0_27, %c0_28], %39 {strides = array<i32>} : memref<8x4xf32, #tpu.memory_space<vmem>>, vector<8x4xf32>,
    } else {
    }
    return
  }
  func.func @transform_0(%arg0: i32) -> (i32, i32) {
    %c0_i32 = arith.constant 0 : i32
    %c0_i32_0 = arith.constant 0 : i32
    return %c0_i32, %arg0 : i32, i32
  }
  func.func @transform_1(%arg0: i32) -> (i32, i32) {
    %c0_i32 = arith.constant 0 : i32
    %c0_i32_0 = arith.constant 0 : i32
    return %arg0, %c0_i32 : i32, i32
  }
  func.func @transform_2(%arg0: i32) -> (i32, i32) {
    %c0_i32 = arith.constant 0 : i32
    %c0_i32_0 = arith.constant 0 : i32
    %c0_i32_1 = arith.constant 0 : i32
    return %c0_i32, %c0_i32_0 : i32, i32
  }
  func.func @transform_3(%arg0: i32) -> (i32, i32) {
    %c0_i32 = arith.constant 0 : i32
    %c0_i32_0 = arith.constant 0 : i32
    %c0_i32_1 = arith.constant 0 : i32
    return %c0_i32, %c0_i32_0 : i32, i32
  }
  func.func @transform_4(%arg0: i32) -> (i32, i32) {
    %c0_i32 = arith.constant 0 : i32
    %c0_i32_0 = arith.constant 0 : i32
    %c0_i32_1 = arith.constant 0 : i32
    return %c0_i32, %c0_i32_0 : i32, i32
  }
  func.func @transform_5(%arg0: i32) -> (i32, i32) {
    %c0_i32 = arith.constant 0 : i32
    %c0_i32_0 = arith.constant 0 : i32
    %c0_i32_1 = arith.constant 0 : i32
    return %c0_i32, %c0_i32_0 : i32, i32
  }
  func.func @transform_6(%arg0: i32) -> (i32, i32) {
    %c0_i32 = arith.constant 0 : i32
    %c0_i32_0 = arith.constant 0 : i32
    %c0_i32_1 = arith.constant 0 : i32
    return %c0_i32, %c0_i32_0 : i32, i32
  }
  func.func @transform_7(%arg0: i32) -> (i32, i32) {
    %c0_i32 = arith.constant 0 : i32
    %c0_i32_0 = arith.constant 0 : i32
    %c0_i32_1 = arith.constant 0 : i32
    return %c0_i32, %c0_i32_0 : i32, i32
  }
}

</mosaic_0001>

<bundles_post_ra>
// kernel: tpu_custom_call.1
= control target key start
LH: loop header
LB: loop body
LE: loop exit
PB: predicated region body
PF: predicated region fallthrough
CT: control target
= control target key end

     0   :  { %12 = vsyncpa [#allocation4], 0  ;;  %s18670_s0 = inlined_call_operand.hbm [shape: bf16[8,5888], index: 0, kind: input, shape index: {}]   ;;  %s18671_s1 = inlined_call_operand.hbm [shape: bf16[5888,1024], index: 1, kind: input, shape index: {}]   ;;  %s18672_s2 = inlined_call_operand.hbm [shape: f32[1,1024], index: 2, kind: input, shape index: {}]   ;;  %s18673_s3 = inlined_call_operand.hbm [shape: bf16[1024,512], index: 3, kind: input, shape index: {}]   ;;  %s18674_s4 = inlined_call_operand.hbm [shape: f32[1,512], index: 4, kind: input, shape index: {}]   ;;  %s18675_s5 = inlined_call_operand.vmem [shape: f32[512,4], index: 5, kind: input, shape index: {}]   ;;  %s18676_s6 = inlined_call_operand.hbm [shape: f32[1,4], index: 6, kind: input, shape index: {}]   ;;  %s18677_s7 = inlined_call_operand.vmem [shape: f32[8,4], index: 7, kind: output, shape index: {}]  }
   0x1   :  { %14 = vsyncpa [#allocation4 + $0x1], 0 }
   0x2   :  { %15 = vsyncpa [#allocation6], 0 }
   0x3   :  { %17 = vsyncpa [#allocation6 + $0x1], 0 }
   0x4   :  { %18 = vsyncpa [#allocation9], 0 }
   0x5   :  { %19 = vsyncpa [#allocation12], 0  ;;  %s16322_s24 = smov 0   ;;  %s16324_s25 = smov 0  }
   0x6   :  { %s16326_s26 = smov 0   ;;  %s16328_s27 = smov 0  }
   0x7 LB: > { %s16270_s28 = smov [#allocation7]   ;;  %s16343_s30 = sadd.s32 4294967295, %s16268_s27   ;;  %s16268_s27 = sphi %s16328_s27, %s18697_s27   ;;  %s16264_s26 = sphi %s16326_s26, %s18696_s26   ;;  %s16260_s25 = sphi %s16324_s25, %s18695_s25   ;;  %s16256_s24 = sphi %s16322_s24, %s18694_s24  }
   0x8   : > { %s221_s29 = sshll.u32 %s16270_s28, 4  ;;  %p13600_p0 = scmp.ge.s32.totalorder %s16268_s27, 1  ;;  %s222_s29 = int_to_ptr.vmem [resolvable:$true] %s221_s29 }
   0x9   : > { %p18678_p1 = scmp.eq.s32.totalorder %s16343_s30, 0  ;;  %p208_p2 = scmp.lt.s32.totalorder %s16268_s27, 3 }
   0xa   : > { %s16271_s9 = smov [#allocation8]   ;;  %s16272_s12 = smov [#allocation10]  }
   0xb   : > { %p16349_p4 = pnand %p13600_p0, %p208_p2  ;;  %s231_s10 = sshll.u32 %s16271_s9, 4  ;;  %s16355_s10 = int_to_ptr.vmem [resolvable:$true] %s231_s10 }
   0xc   : > { %s245_s13 = sshll.u32 %s16272_s12, 4  ;;  %s16046_s16 = scalar_lea.hbm %s18672_s2, 128  ;;  %s16363_s13 = int_to_ptr.vmem [resolvable:$true] %s245_s13 }
   0xd   : > { %s18680_s8 = scalar_select %p16349_p4, 1, 0 }
   0xe   : > { %p15560_p5 = pneg %p16349_p4  ;;  %p16047_p7 = scmp.ne.s32.totalorder %s18672_s2, %s16046_s16 }
   0xf   : > { %p16053_p11 = scmp.lt.u32.totalorder %s16046_s16, %s18672_s2 }
  0x10   : > { %p16359_p6 = pnand %p15560_p5, %p18678_p1 }
  0x12   : > { %p16373_p8 = pneg %p16359_p6 }
  0x14   : > { %p16049_p9 = pnand %p16373_p8, %p16047_p7 }
  0x16   : > { %p16050_p10 = pneg %p16049_p9 }
  0x18   : > { %p16055_p12 = pnand %p16053_p11, %p16050_p10 }
  0x1a   : > { %16058 = shalt.err (!%p16055_p12)
}
  0x1b   : > { %s16059_s22 = scalar_lea.vmem %s222_s29, 128  ;;  %p16067_p5 = scmp.lt.s32.totalorder %s222_s29, %s222_s29 }
  0x1c   : > { %p16060_p13 = scmp.ne.s32.totalorder %s222_s29, %s16059_s22  ;;  %p16068_p3 = scmp.lt.s32.totalorder %s16059_s22, %s16059_s22 }
  0x1e   : > { %p16062_p0 = pnand %p16060_p13, %p16373_p8  ;;  %p16069_p1 = por %p16068_p3, %p16067_p5 }
  0x20   : > { %p16063_p2 = pneg %p16062_p0 }
  0x22   : > { %p16070_p4 = pnand %p16069_p1, %p16063_p2 }
  0x24   : > { %16073 = shalt.err (!%p16070_p4)
}
  0x25   : > { %15563 = dma.hbm_to_vmem [thread:$0]  (!%p16359_p6), %s18672_s2, 128, %s222_s29, [#allocation6]  }
  0x26   : > { %s16074_s14 = scalar_lea.hbm %s18673_s3, 32768 }
  0x27   : > { %p16075_p7 = scmp.ne.s32.totalorder %s18673_s3, %s16074_s14  ;;  %p16081_p1 = scmp.lt.u32.totalorder %s16074_s14, %s18673_s3 }
  0x29   : > { %p16077_p9 = pnand %p16075_p7, %p16373_p8 }
  0x2b   : > { %p16078_p3 = pneg %p16077_p9 }
  0x2d   : > { %p16083_p4 = pnand %p16081_p1, %p16078_p3 }
  0x2f   : > { %16086 = shalt.err (!%p16083_p4)
}
  0x30   : > { %s16087_s29 = scalar_lea.vmem %s16355_s10, 32768  ;;  %p16095_p13 = scmp.lt.s32.totalorder %s16355_s10, %s16355_s10 }
  0x31   : > { %p16088_p10 = scmp.ne.s32.totalorder %s16355_s10, %s16087_s29  ;;  %p16096_p0 = scmp.lt.s32.totalorder %s16087_s29, %s16087_s29 }
  0x33   : > { %p16090_p11 = pnand %p16088_p10, %p16373_p8  ;;  %p16097_p2 = por %p16096_p0, %p16095_p13 }
  0x35   : > { %p16091_p12 = pneg %p16090_p11 }
  0x37   : > { %p16098_p5 = pnand %p16097_p2, %p16091_p12 }
  0x39   : > { %16101 = shalt.err (!%p16098_p5)
}
  0x3a   : > { %s16273_s20 = smov 256   ;;  %s16274_s21 = smov 16  }
  0x3b   : > { %15566 = dma.hbm_to_vmem [thread:$0]  (!%p16359_p6), %s18673_s3, 32768, %s16355_s10, [#allocation9], %s16273_s20, %s16273_s20, %s16274_s21  }
  0x3c   : > { %s16102_s12 = scalar_lea.hbm %s18674_s4, 64 }
  0x3d   : > { %p16103_p7 = scmp.ne.s32.totalorder %s18674_s4, %s16102_s12  ;;  %p16109_p1 = scmp.lt.u32.totalorder %s16102_s12, %s18674_s4 }
  0x3f   : > { %p16105_p9 = pnand %p16103_p7, %p16373_p8 }
  0x41   : > { %p16106_p3 = pneg %p16105_p9 }
  0x43   : > { %p16111_p4 = pnand %p16109_p1, %p16106_p3 }
  0x45   : > { %16114 = shalt.err (!%p16111_p4)
}
  0x46   : > { %s16115_s10 = scalar_lea.vmem %s16363_s13, 64  ;;  %p16123_p13 = scmp.lt.s32.totalorder %s16363_s13, %s16363_s13 }
  0x47   : > { %p16116_p10 = scmp.ne.s32.totalorder %s16363_s13, %s16115_s10  ;;  %p16124_p0 = scmp.lt.s32.totalorder %s16115_s10, %s16115_s10 }
  0x49   : > { %p16118_p11 = pnand %p16116_p10, %p16373_p8  ;;  %p16125_p2 = por %p16124_p0, %p16123_p13 }
  0x4b   : > { %p16119_p12 = pneg %p16118_p11 }
  0x4d   : > { %p16126_p5 = pnand %p16125_p2, %p16119_p12 }
  0x4f   : > { %16129 = shalt.err (!%p16126_p5)
}
  0x50   : > { %15569 = dma.hbm_to_vmem [thread:$0]  (!%p16359_p6), %s18674_s4, 64, %s16363_s13, [#allocation9]  }
  0x51   : > { %s16275_s20 = smov [#allocation11]   ;;  %s16130_s28 = scalar_lea.hbm %s18676_s6, 16 }
  0x52   : > { %s259_s21 = sshll.u32 %s16275_s20, 4  ;;  %p16131_p7 = scmp.ne.s32.totalorder %s18676_s6, %s16130_s28  ;;  %s260_s21 = int_to_ptr.vmem [resolvable:$true] %s259_s21 }
  0x53   : > { %p16137_p1 = scmp.lt.u32.totalorder %s16130_s28, %s18676_s6 }
  0x54   : > { %p16133_p9 = pnand %p16131_p7, %p16373_p8 }
  0x56   : > { %p16134_p3 = pneg %p16133_p9 }
  0x58   : > { %p16139_p4 = pnand %p16137_p1, %p16134_p3 }
  0x5a   : > { %16142 = shalt.err (!%p16139_p4)
}
  0x5b   : > { %s16143_s13 = scalar_lea.vmem %s260_s21, 16  ;;  %s16150_s16 = scalar_lea.vmem %s260_s21, 32 }
  0x5c   : > { %p16144_p10 = scmp.ne.s32.totalorder %s260_s21, %s16143_s13  ;;  %p16151_p13 = scmp.lt.s32.totalorder %s260_s21, %s260_s21 }
  0x5d   : > { %p16152_p0 = scmp.lt.s32.totalorder %s16150_s16, %s16143_s13 }
  0x5e   : > { %p16146_p11 = pnand %p16144_p10, %p16373_p8 }
  0x5f   : > { %p16153_p2 = por %p16152_p0, %p16151_p13 }
  0x60   : > { %p16147_p12 = pneg %p16146_p11 }
  0x62   : > { %p16154_p5 = pnand %p16153_p2, %p16147_p12 }
  0x64   : > { %16157 = shalt.err (!%p16154_p5)
}
  0x65   : > { %15572 = dma.hbm_to_vmem [thread:$0]  (!%p16359_p6), %s18676_s6, 16, %s260_s21, [#allocation12]  }
  0x66   : > { %s16454_s19 = sadd.s32 1, %s16268_s27   ;;  %s32_s11 = sadd.s32 1, %s16264_s26 }
  0x67   : > { %s29_s18 = ssub.s32 %s16268_s27, %s16454_s19  ;;  %p39_p8 = scmp.ne.s32.totalorder %s16264_s26, %s16260_s25 }
  0x68   : > { %p30_p7 = scmp.eq.s32.totalorder %s29_s18, 0  ;;  %p40_p9 = scmp.eq.s32.totalorder %s16268_s27, 0 }
  0x69   : > { %p45_p3 = scmp.ne.s32.totalorder %s16260_s25, %s16256_s24  ;;  %p15584_p1 = scmp.lt.s32.totalorder %s16268_s27, 2 }
  0x6a   : > { %s16466_s29 = scalar_select %p30_p7, %s16264_s26, %s32_s11  }
  0x6b   : > { %p41_p4 = por %p40_p9, %p39_p8  ;;  %p18683_p10 = scmp.eq.s32.totalorder %s16343_s30, 0 }
  0x6c   : > { %s16475_s22 = sand.u32 1, %s16264_s26   ;;  %s15370_s21 = smul.u32 1472, %s16268_s27 }
  0x6d   : > { %p16470_p11 = por %p18683_p10, %p45_p3  ;;  %s15536_s23 = smul.u32 92, %s16475_s22 }
  0x6e   : > { %s16482_s24 = scalar_lea.hbm %s18670_s0, %s15370_s21  ;;  %p16484_p6 = pnand %p15584_p1, %p41_p4 }
  0x6f   : > { %s15537_s14 = smul.u32 11776, %s16475_s22  ;;  %s274_s15 = scalar_lea.vmem [#allocation3], %s15536_s23 }
  0x70   : > { %s282_s13 = sshll.u32 %s274_s15, 4  ;;  %s271_s16 = scalar_lea.sflag [#allocation4], %s16475_s22  ;;  %s16489_s13 = int_to_ptr.vmem [resolvable:$true] %s282_s13 }
  0x71   : > { %s16158_s17 = scalar_lea.hbm %s16482_s24, 1472  ;;  %p16160_p13 = pneg %p16484_p6 }
  0x72   : > { %p16159_p12 = scmp.ne.s32.totalorder %s16482_s24, %s16158_s17  ;;  %s16163_s18 = scalar_lea.hbm %s18670_s0, 2944 }
  0x73   : > { %p16164_p5 = scmp.lt.u32.totalorder %s16482_s24, %s18670_s0  ;;  %p16165_p8 = scmp.lt.u32.totalorder %s16163_s18, %s16158_s17 }
  0x74   : > { %p16161_p0 = pnand %p16160_p13, %p16159_p12  ;;  %p16167_p9 = scmp.lt.u32.totalorder %s16158_s17, %s16482_s24 }
  0x75   : > { %p16166_p7 = por %p16165_p8, %p16164_p5 }
  0x76   : > { %p16162_p2 = pneg %p16161_p0 }
  0x77   : > { %p16168_p3 = por %p16167_p9, %p16166_p7 }
  0x79   : > { %p16169_p1 = pnand %p16168_p3, %p16162_p2 }
  0x7b   : > { %16172 = shalt.err (!%p16169_p1)
}
  0x7c   : > { %s16173_s23 = scalar_lea.vmem %s16489_s13, 1472  ;;  %s16276_s9 = smov [#allocation3]  }
  0x7d   : > { %p16174_p4 = scmp.ne.s32.totalorder %s16489_s13, %s16173_s23  ;;  %s16178_s15 = sshll.u32 %s16276_s9, 4  ;;  %s16179_s15 = int_to_ptr.vmem [resolvable:$false] %s16178_s15 }
  0x7e   : > { %s16180_s10 = scalar_lea.vmem %s16179_s15, 2944  ;;  %p16181_p0 = scmp.lt.s32.totalorder %s16489_s13, %s16179_s15 }
  0x7f   : > { %p16176_p10 = pnand %p16174_p4, %p16160_p13  ;;  %p16182_p5 = scmp.lt.s32.totalorder %s16180_s10, %s16173_s23 }
  0x81   : > { %p16177_p12 = pneg %p16176_p10  ;;  %p16183_p8 = por %p16182_p5, %p16181_p0 }
  0x83   : > { %p16184_p7 = pnand %p16183_p8, %p16177_p12 }
  0x85   : > { %16187 = shalt.err (!%p16184_p7)
}
  0x86   : > { %15576 = dma.hbm_to_vmem [thread:$0]  (!%p16484_p6), %s16482_s24, 1472, %s16489_s13, %s271_s16  }
  0x87   : > { %s293_s17 = scalar_lea.vmem [#allocation5], %s15537_s14  ;;  %s289_s18 = sand.u32 1, %s16268_s27  }
  0x88   : > { %s301_s11 = sshll.u32 %s293_s17, 4  ;;  %s15373_s21 = smul.u32 188416, %s16268_s27  ;;  %s16520_s11 = int_to_ptr.vmem [resolvable:$true] %s301_s11 }
  0x89   : > { %s16528_s15 = scalar_lea.sflag [#allocation6], %s289_s18  ;;  %s16193_s27 = scalar_lea.hbm %s18671_s1, 376832 }
  0x8a   : > { %s16526_s9 = scalar_lea.hbm %s18671_s1, %s15373_s21 }
  0x8b   : > { %s16188_s10 = scalar_lea.hbm %s16526_s9, 188416  ;;  %p16194_p1 = scmp.lt.u32.totalorder %s16526_s9, %s18671_s1 }
  0x8c   : > { %p16189_p2 = scmp.ne.s32.totalorder %s16526_s9, %s16188_s10  ;;  %p16195_p4 = scmp.lt.u32.totalorder %s16193_s27, %s16188_s10 }
  0x8d   : > { %p16197_p12 = scmp.lt.u32.totalorder %s16188_s10, %s16526_s9 }
  0x8e   : > { %p16191_p9 = pnand %p16189_p2, %p16160_p13  ;;  %p16196_p10 = por %p16195_p4, %p16194_p1 }
  0x90   : > { %p16192_p3 = pneg %p16191_p9  ;;  %p16198_p0 = por %p16197_p12, %p16196_p10 }
  0x92   : > { %p16199_p5 = pnand %p16198_p0, %p16192_p3 }
  0x94   : > { %16202 = shalt.err (!%p16199_p5)
}
  0x95   : > { %s16203_s16 = scalar_lea.vmem %s16520_s11, 188416  ;;  %s16277_s17 = smov [#allocation5]  }
  0x96   : > { %p16204_p8 = scmp.ne.s32.totalorder %s16520_s11, %s16203_s16  ;;  %s16208_s18 = sshll.u32 %s16277_s17, 4  ;;  %s16209_s18 = int_to_ptr.vmem [resolvable:$false] %s16208_s18 }
  0x97   : > { %s16210_s21 = scalar_lea.vmem %s16209_s18, 376832  ;;  %p16211_p9 = scmp.lt.s32.totalorder %s16520_s11, %s16209_s18 }
  0x98   : > { %p16206_p7 = pnand %p16204_p8, %p16160_p13  ;;  %p16212_p1 = scmp.lt.s32.totalorder %s16210_s21, %s16203_s16 }
  0x9a   : > { %p16207_p2 = pneg %p16206_p7  ;;  %p16213_p4 = por %p16212_p1, %p16211_p9 }
  0x9c   : > { %p16214_p10 = pnand %p16213_p4, %p16207_p2 }
  0x9e   : > { %16217 = shalt.err (!%p16214_p10)
}
  0x9f   : > { %s16278_s28 = smov 512   ;;  %s16279_s23 = smov 32  }
  0xa0   : > { %15579 = dma.hbm_to_vmem [thread:$0]  (!%p16484_p6), %s16526_s9, 188416, %s16520_s11, %s16528_s15, %s16278_s28, %s16278_s28, %s16279_s23  }
  0xa1   : > { %p18686_p13 = scmp.ne.s32.totalorder %s18680_s8, 0 }
  0xa2   : > { %s315_s10 = sand.u32 (!%p18686_p13), 1, %s16260_s25  }
  0xa3   : > { %313 = sbr.rel (%p18686_p13) target bundleno = 2856 (0xb28), region = 48  ;;  %s316_s24 = scalar_lea.sflag (!%p18686_p13), [#allocation4], %s315_s10 }
  0xa4   : > { %s15538_s22 = smul.u32 (!%p18686_p13), 92, %s315_s10 }
  0xa6   : > { %s16557_s27 = scalar_lea.vmem (!%p18686_p13), [#allocation3], %s15538_s22 }
  0xaa   : > { %16235 = dma.done.wait (%p16470_p11), %s316_s24, 1472  }
  0xab   : > { %16237 = vsyncadd (%p16470_p11), %s316_s24, 4294965824  ;;  %s324_s14 = sand.u32 1, %s16343_s30   ;;  %s15539_s12 = smul.u32 11776, %s315_s10 }
  0xac   : > { %s325_s11 = scalar_lea.sflag [#allocation6], %s324_s14 }
  0xad   : > { %s16564_s9 = scalar_lea.vmem [#allocation5], %s15539_s12 }
  0xae   : > { %16239 = dma.done.wait (%p16470_p11), %s325_s11, 188416  }
  0xaf   : > { %16241 = vsyncadd (%p16470_p11), %s325_s11, 4294778880  ;;  %p18687_p6 = scmp.eq.s32.totalorder %s16343_s30, 0 }
  0xb1   : > { %16243 = dma.done.wait (%p18687_p6), [#allocation6], 128   ;;  %p18688_p3 = pmov %p18687_p6 }
  0xb3   : > { %16245 = vsyncadd (%p18688_p3), [#allocation6], 4294967168  ;;  %p18689_p12 = pmov %p18688_p3 }
  0xb4   : > { %p18690_p0 = pmov %p18688_p3 }
  0xb5   : > { %16247 = dma.done.wait (%p18689_p12), [#allocation9], 32832  }
  0xb6   : > { %16249 = vsyncadd (%p18690_p0), [#allocation9], 4294934464  ;;  %p18691_p5 = pmov %p18690_p0 }
  0xb7   : > { %p18692_p8 = pmov %p18690_p0 }
  0xb8   : > { %16251 = dma.done.wait (%p18691_p5), [#allocation12], 16  }
  0xb9   : > { %16253 = vsyncadd (%p18692_p8), [#allocation12], 4294967280  ;;  %p18693_p11 = scmp.ne.s32.totalorder %s16343_s30, 0 }
  0xba   : > { %v16280_v0 = vmov (!%p18693_p11), 0.0  }
  0xbb   : > { %381 = sbr.rel (%p18693_p11) target bundleno = 194 (0xc2), region = 76  ;;  %382 = vst [vmem:[#allocation2] sm:$0xff] (!%p18693_p11), %v16280_v0  ;;  %383 = vst [vmem:[#allocation2 + $0x8] sm:$0xff] (!%p18693_p11), %v16280_v0 }
  0xbc   : > { %384 = vst [vmem:[#allocation2 + $0x10] sm:$0xff] (!%p18693_p11), %v16280_v0  ;;  %385 = vst [vmem:[#allocation2 + $0x18] sm:$0xff] (!%p18693_p11), %v16280_v0 }
  0xbd   : > { %386 = vst [vmem:[#allocation2 + $0x20] sm:$0xff] (!%p18693_p11), %v16280_v0  ;;  %387 = vst [vmem:[#allocation2 + $0x28] sm:$0xff] (!%p18693_p11), %v16280_v0 }
  0xbe   : > { %388 = vst [vmem:[#allocation2 + $0x30] sm:$0xff] (!%p18693_p11), %v16280_v0  ;;  %389 = vst [vmem:[#allocation2 + $0x38] sm:$0xff] (!%p18693_p11), %v16280_v0 }
  0xc2 PF: > { %v410_v1 = vld [vmem:[%s16564_s9] sm:$0xff]  ;;  %v16616_v55 = vld [vmem:[%s16557_s27 + $0x8] sm:$0xff]  ;;  %p15110_p7 = scmp.ne.s32.totalorder %s16343_s30, 1 }
  0xc3   : > { %v414_v2 = vld [vmem:[%s16564_s9 + $0x20] sm:$0xff]  ;;  %v16626_v60 = vcombine.high %v16616_v55, %v16616_v55  ;;  %vm13486_vm0 = vcmask (!%p15110_p7), 31744  }
  0xc4   : > { %v538_v3 = vld [vmem:[%s16564_s9 + $0x400] sm:$0xff]  ;;  %v13639_v4 = vcombine.high %v410_v1, %v414_v2  ;;  %v13638_v6 = vcombine.low %v410_v1, %v414_v2 }
  0xc5   : > { %v542_v5 = vld [vmem:[%s16564_s9 + $0x420] sm:$0xff]  ;;  %9396 = vmatprep.mubr.bf16.mxu1 %v16626_v60 }
  0xc6   : > { %v418_v7 = vld [vmem:[%s16564_s9 + $0x40] sm:$0xff]  ;;  %v13767_v9 = vcombine.high %v538_v3, %v542_v5  ;;  %v13766_v10 = vcombine.low %v538_v3, %v542_v5  ;;  %9323 = vmatprep.subr.bf16.mxu0 %v13639_v4 }
  0xc7   : > { %v422_v8 = vld [vmem:[%s16564_s9 + $0x60] sm:$0xff]  ;;  %9324 = vmatpush1.bf16.msra.mxu0 %v13638_v6 }
  0xc8   : > { %v13647_v11 = vcombine.high %v418_v7, %v422_v8  ;;  %v546_v12 = vld [vmem:[%s16564_s9 + $0x440] sm:$0xff]  ;;  %9364 = vmatprep.subr.bf16.mxu1 %v13767_v9  ;;  %v13646_v19 = vcombine.low %v418_v7, %v422_v8 }
  0xc9   : > { %v550_v13 = vld [vmem:[%s16564_s9 + $0x460] sm:$0xff]  ;;  %9365 = vmatpush1.bf16.msra.mxu1 %v13766_v10 }
  0xca   : > { %v426_v14 = vld [vmem:[%s16564_s9 + $0x80] sm:$0xff]  ;;  %v13775_v15 = vcombine.high %v546_v12, %v550_v13  ;;  %9325 = vmatprep.subr.bf16.mxu0 %v13647_v11  ;;  %v13774_v20 = vcombine.low %v546_v12, %v550_v13 }
  0xcb   : > { %v430_v16 = vld [vmem:[%s16564_s9 + $0xa0] sm:$0xff]  ;;  %9326 = vmatpush1.bf16.msra.mxu0 %v13646_v19 }
  0xcc   : > { %v554_v17 = vld [vmem:[%s16564_s9 + $0x480] sm:$0xff]  ;;  %v13655_v21 = vcombine.high %v426_v14, %v430_v16  ;;  %9366 = vmatprep.subr.bf16.mxu1 %v13775_v15  ;;  %v13654_v27 = vcombine.low %v426_v14, %v430_v16 }
  0xcd   : > { %v558_v18 = vld [vmem:[%s16564_s9 + $0x4a0] sm:$0xff]  ;;  %9367 = vmatpush1.bf16.msra.mxu1 %v13774_v20 }
  0xce   : > { %v13783_v22 = vcombine.high %v554_v17, %v558_v18  ;;  %v434_v23 = vld [vmem:[%s16564_s9 + $0xc0] sm:$0xff]  ;;  %9327 = vmatprep.subr.bf16.mxu0 %v13655_v21  ;;  %v13782_v28 = vcombine.low %v554_v17, %v558_v18 }
  0xcf   : > { %v438_v24 = vld [vmem:[%s16564_s9 + $0xe0] sm:$0xff]  ;;  %9328 = vmatpush1.bf16.msra.mxu0 %v13654_v27 }
  0xd0   : > { %v562_v25 = vld [vmem:[%s16564_s9 + $0x4c0] sm:$0xff]  ;;  %v13663_v29 = vcombine.high %v434_v23, %v438_v24  ;;  %9368 = vmatprep.subr.bf16.mxu1 %v13783_v22  ;;  %v13662_v35 = vcombine.low %v434_v23, %v438_v24 }
  0xd1   : > { %v566_v26 = vld [vmem:[%s16564_s9 + $0x4e0] sm:$0xff]  ;;  %9369 = vmatpush1.bf16.msra.mxu1 %v13782_v28 }
  0xd2   : > { %v13791_v30 = vcombine.high %v562_v25, %v566_v26  ;;  %v442_v31 = vld [vmem:[%s16564_s9 + $0x100] sm:$0xff]  ;;  %9329 = vmatprep.subr.bf16.mxu0 %v13663_v29  ;;  %v13790_v36 = vcombine.low %v562_v25, %v566_v26 }
  0xd3   : > { %v446_v32 = vld [vmem:[%s16564_s9 + $0x120] sm:$0xff]  ;;  %9330 = vmatpush1.bf16.msra.mxu0 %v13662_v35 }
  0xd4   : > { %v570_v33 = vld [vmem:[%s16564_s9 + $0x500] sm:$0xff]  ;;  %v13671_v37 = vcombine.high %v442_v31, %v446_v32  ;;  %9370 = vmatprep.subr.bf16.mxu1 %v13791_v30  ;;  %v13670_v43 = vcombine.low %v442_v31, %v446_v32 }
  0xd5   : > { %v574_v34 = vld [vmem:[%s16564_s9 + $0x520] sm:$0xff]  ;;  %9371 = vmatpush1.bf16.msra.mxu1 %v13790_v36 }
  0xd6   : > { %v13799_v38 = vcombine.high %v570_v33, %v574_v34  ;;  %v450_v39 = vld [vmem:[%s16564_s9 + $0x140] sm:$0xff]  ;;  %9331 = vmatprep.subr.bf16.mxu0 %v13671_v37  ;;  %v13798_v44 = vcombine.low %v570_v33, %v574_v34 }
  0xd7   : > { %v454_v40 = vld [vmem:[%s16564_s9 + $0x160] sm:$0xff]  ;;  %9332 = vmatpush1.bf16.msra.mxu0 %v13670_v43 }
  0xd8   : > { %v578_v41 = vld [vmem:[%s16564_s9 + $0x540] sm:$0xff]  ;;  %v13679_v45 = vcombine.high %v450_v39, %v454_v40  ;;  %9372 = vmatprep.subr.bf16.mxu1 %v13799_v38  ;;  %v13678_v51 = vcombine.low %v450_v39, %v454_v40 }
  0xd9   : > { %v582_v42 = vld [vmem:[%s16564_s9 + $0x560] sm:$0xff]  ;;  %9373 = vmatpush1.bf16.msra.mxu1 %v13798_v44 }
  0xda   : > { %v13807_v46 = vcombine.high %v578_v41, %v582_v42  ;;  %v458_v47 = vld [vmem:[%s16564_s9 + $0x180] sm:$0xff]  ;;  %9333 = vmatprep.subr.bf16.mxu0 %v13679_v45  ;;  %v13806_v52 = vcombine.low %v578_v41, %v582_v42 }
  0xdb   : > { %v462_v48 = vld [vmem:[%s16564_s9 + $0x1a0] sm:$0xff]  ;;  %9334 = vmatpush1.bf16.msra.mxu0 %v13678_v51 }
  0xdc   : > { %v586_v49 = vld [vmem:[%s16564_s9 + $0x580] sm:$0xff]  ;;  %v13687_v53 = vcombine.high %v458_v47, %v462_v48  ;;  %9374 = vmatprep.subr.bf16.mxu1 %v13807_v46  ;;  %v13686_v63 = vcombine.low %v458_v47, %v462_v48 }
  0xdd   : > { %v590_v50 = vld [vmem:[%s16564_s9 + $0x5a0] sm:$0xff]  ;;  %9375 = vmatpush1.bf16.msra.mxu1 %v13806_v52 }
  0xde   : > { %v16613_v54 = vld [vmem:[%s16557_s27] sm:$0xff]  ;;  %v13815_v56 = vcombine.high %v586_v49, %v590_v50  ;;  %9335 = vmatprep.subr.bf16.mxu0 %v13687_v53  ;;  %v13814_v0 = vcombine.low %v586_v49, %v590_v50 }
  0xdf   : > { %v466_v57 = vld [vmem:[%s16564_s9 + $0x1c0] sm:$0xff]  ;;  %v16622_v59 = vcombine.high %v16613_v54, %v16613_v54  ;;  %9336 = vmatpush1.bf16.msra.mxu0 %v13686_v63 }
  0xe0   : > { %v470_v58 = vld [vmem:[%s16564_s9 + $0x1e0] sm:$0xff]  ;;  %9376 = vmatprep.subr.bf16.mxu1 %v13815_v56 }
  0xe1   : > { %v594_v61 = vld [vmem:[%s16564_s9 + $0x5c0] sm:$0xff]  ;;  %9355 = vmatprep.mubr.bf16.mxu0 %v16622_v59  ;;  %v13695_v1 = vcombine.high %v466_v57, %v470_v58  ;;  %v13694_v7 = vcombine.low %v466_v57, %v470_v58  ;;  %9377 = vmatpush1.bf16.msra.mxu1 %v13814_v0 }
  0xe2   : > { %v598_v62 = vld [vmem:[%s16564_s9 + $0x5e0] sm:$0xff] }
  0xe3   : > { %v13823_v2 = vcombine.high %v594_v61, %v598_v62  ;;  %v474_v3 = vld [vmem:[%s16564_s9 + $0x200] sm:$0xff]  ;;  %9337 = vmatprep.subr.bf16.mxu0 %v13695_v1  ;;  %v13822_v8 = vcombine.low %v594_v61, %v598_v62 }
  0xe4   : > { %v478_v4 = vld [vmem:[%s16564_s9 + $0x220] sm:$0xff]  ;;  %9338 = vmatpush1.bf16.msra.mxu0 %v13694_v7 }
  0xe5   : > { %v602_v5 = vld [vmem:[%s16564_s9 + $0x600] sm:$0xff]  ;;  %v13703_v9 = vcombine.high %v474_v3, %v478_v4  ;;  %9378 = vmatprep.subr.bf16.mxu1 %v13823_v2  ;;  %v13702_v15 = vcombine.low %v474_v3, %v478_v4 }
  0xe6   : > { %v606_v6 = vld [vmem:[%s16564_s9 + $0x620] sm:$0xff]  ;;  %9379 = vmatpush1.bf16.msra.mxu1 %v13822_v8 }
  0xe7   : > { %v13831_v10 = vcombine.high %v602_v5, %v606_v6  ;;  %v482_v11 = vld [vmem:[%s16564_s9 + $0x240] sm:$0xff]  ;;  %9339 = vmatprep.subr.bf16.mxu0 %v13703_v9  ;;  %v13830_v16 = vcombine.low %v602_v5, %v606_v6 }
  0xe8   : > { %v486_v12 = vld [vmem:[%s16564_s9 + $0x260] sm:$0xff]  ;;  %9340 = vmatpush1.bf16.msra.mxu0 %v13702_v15 }
  0xe9   : > { %v610_v13 = vld [vmem:[%s16564_s9 + $0x640] sm:$0xff]  ;;  %v13711_v17 = vcombine.high %v482_v11, %v486_v12  ;;  %9380 = vmatprep.subr.bf16.mxu1 %v13831_v10  ;;  %v13710_v23 = vcombine.low %v482_v11, %v486_v12 }
  0xea   : > { %v614_v14 = vld [vmem:[%s16564_s9 + $0x660] sm:$0xff]  ;;  %9381 = vmatpush1.bf16.msra.mxu1 %v13830_v16 }
  0xeb   : > { %v13839_v18 = vcombine.high %v610_v13, %v614_v14  ;;  %v490_v19 = vld [vmem:[%s16564_s9 + $0x280] sm:$0xff]  ;;  %9341 = vmatprep.subr.bf16.mxu0 %v13711_v17  ;;  %v13838_v24 = vcombine.low %v610_v13, %v614_v14  ;;  %v16672_v17 = vcombine.low %v16613_v54, %v16613_v54 }
  0xec   : > { %v494_v20 = vld [vmem:[%s16564_s9 + $0x2a0] sm:$0xff]  ;;  %9342 = vmatpush1.bf16.msra.mxu0 %v13710_v23 }
  0xed   : > { %v618_v21 = vld [vmem:[%s16564_s9 + $0x680] sm:$0xff]  ;;  %v13719_v25 = vcombine.high %v490_v19, %v494_v20  ;;  %9382 = vmatprep.subr.bf16.mxu1 %v13839_v18  ;;  %v13718_v31 = vcombine.low %v490_v19, %v494_v20  ;;  %v16677_v20 = vld [vmem:[%s16557_s27 + $0x10] sm:$0xff] }
  0xee   : > { %v622_v22 = vld [vmem:[%s16564_s9 + $0x6a0] sm:$0xff]  ;;  %9383 = vmatpush1.bf16.msra.mxu1 %v13838_v24 }
  0xef   : > { %v13847_v26 = vcombine.high %v618_v21, %v622_v22  ;;  %v498_v27 = vld [vmem:[%s16564_s9 + $0x2c0] sm:$0xff]  ;;  %9343 = vmatprep.subr.bf16.mxu0 %v13719_v25  ;;  %v13846_v32 = vcombine.low %v618_v21, %v622_v22  ;;  %v16681_v21 = vcombine.low %v16616_v55, %v16616_v55 }
  0xf0   : > { %v502_v28 = vld [vmem:[%s16564_s9 + $0x2e0] sm:$0xff]  ;;  %9344 = vmatpush1.bf16.msra.mxu0 %v13718_v31 }
  0xf1   : > { %v626_v29 = vld [vmem:[%s16564_s9 + $0x6c0] sm:$0xff]  ;;  %v13727_v33 = vcombine.high %v498_v27, %v502_v28  ;;  %9384 = vmatprep.subr.bf16.mxu1 %v13847_v26  ;;  %v13726_v39 = vcombine.low %v498_v27, %v502_v28  ;;  %v16690_v28 = vcombine.high %v16677_v20, %v16677_v20 }
  0xf2   : > { %v630_v30 = vld [vmem:[%s16564_s9 + $0x6e0] sm:$0xff]  ;;  %9385 = vmatpush1.bf16.msra.mxu1 %v13846_v32 }
  0xf3   : > { %v13855_v34 = vcombine.high %v626_v29, %v630_v30  ;;  %v506_v35 = vld [vmem:[%s16564_s9 + $0x300] sm:$0xff]  ;;  %9345 = vmatprep.subr.bf16.mxu0 %v13727_v33  ;;  %v13854_v40 = vcombine.low %v626_v29, %v630_v30 }
  0xf4   : > { %v510_v36 = vld [vmem:[%s16564_s9 + $0x320] sm:$0xff]  ;;  %9346 = vmatpush1.bf16.msra.mxu0 %v13726_v39 }
  0xf5   : > { %v634_v37 = vld [vmem:[%s16564_s9 + $0x700] sm:$0xff]  ;;  %v13735_v41 = vcombine.high %v506_v35, %v510_v36  ;;  %9386 = vmatprep.subr.bf16.mxu1 %v13855_v34  ;;  %v13734_v47 = vcombine.low %v506_v35, %v510_v36 }
  0xf6   : > { %v638_v38 = vld [vmem:[%s16564_s9 + $0x720] sm:$0xff]  ;;  %9387 = vmatpush1.bf16.msra.mxu1 %v13854_v40 }
  0xf7   : > { %v13863_v42 = vcombine.high %v634_v37, %v638_v38  ;;  %v514_v43 = vld [vmem:[%s16564_s9 + $0x340] sm:$0xff]  ;;  %9347 = vmatprep.subr.bf16.mxu0 %v13735_v41  ;;  %v13862_v48 = vcombine.low %v634_v37, %v638_v38 }
  0xf8   : > { %v518_v44 = vld [vmem:[%s16564_s9 + $0x360] sm:$0xff]  ;;  %9348 = vmatpush1.bf16.msra.mxu0 %v13734_v47 }
  0xf9   : > { %v642_v45 = vld [vmem:[%s16564_s9 + $0x740] sm:$0xff]  ;;  %v13743_v49 = vcombine.high %v514_v43, %v518_v44  ;;  %9388 = vmatprep.subr.bf16.mxu1 %v13863_v42  ;;  %v13742_v57 = vcombine.low %v514_v43, %v518_v44 }
  0xfa   : > { %v646_v46 = vld [vmem:[%s16564_s9 + $0x760] sm:$0xff]  ;;  %9389 = vmatpush1.bf16.msra.mxu1 %v13862_v48 }
  0xfb   : > { %v13871_v50 = vcombine.high %v642_v45, %v646_v46  ;;  %v522_v51 = vld [vmem:[%s16564_s9 + $0x380] sm:$0xff]  ;;  %9349 = vmatprep.subr.bf16.mxu0 %v13743_v49  ;;  %v13870_v58 = vcombine.low %v642_v45, %v646_v46 }
  0xfc   : > { %v526_v52 = vld [vmem:[%s16564_s9 + $0x3a0] sm:$0xff]  ;;  %9350 = vmatpush1.bf16.msra.mxu0 %v13742_v57 }
  0xfd   : > { %v650_v53 = vld [vmem:[%s16564_s9 + $0x780] sm:$0xff]  ;;  %v13751_v61 = vcombine.high %v522_v51, %v526_v52  ;;  %9390 = vmatprep.subr.bf16.mxu1 %v13871_v50  ;;  %v13750_v3 = vcombine.low %v522_v51, %v526_v52 }
  0xfe   : > { %v654_v56 = vld [vmem:[%s16564_s9 + $0x7a0] sm:$0xff]  ;;  %9391 = vmatpush1.bf16.msra.mxu1 %v13870_v58 }
  0xff   : > { %v13879_v62 = vcombine.high %v650_v53, %v654_v56  ;;  %v530_v63 = vld [vmem:[%s16564_s9 + $0x3c0] sm:$0xff]  ;;  %9351 = vmatprep.subr.bf16.mxu0 %v13751_v61  ;;  %v13878_v4 = vcombine.low %v650_v53, %v654_v56 }
 0x100   : > { %v534_v0 = vld [vmem:[%s16564_s9 + $0x3e0] sm:$0xff]  ;;  %9352 = vmatpush1.bf16.msra.mxu0 %v13750_v3 }
 0x101   : > { %v658_v1 = vld [vmem:[%s16564_s9 + $0x7c0] sm:$0xff]  ;;  %v13759_v5 = vcombine.high %v530_v63, %v534_v0  ;;  %9392 = vmatprep.subr.bf16.mxu1 %v13879_v62  ;;  %v13758_v11 = vcombine.low %v530_v63, %v534_v0 }
 0x102   : > { %v662_v2 = vld [vmem:[%s16564_s9 + $0x7e0] sm:$0xff]  ;;  %9393 = vmatpush1.bf16.msra.mxu1 %v13878_v4 }
 0x103   : > { %v13887_v6 = vcombine.high %v658_v1, %v662_v2  ;;  %v666_v7 = vld [vmem:[%s16564_s9 + $0x800] sm:$0xff]  ;;  %9353 = vmatprep.subr.bf16.mxu0 %v13759_v5  ;;  %v13886_v12 = vcombine.low %v658_v1, %v662_v2 }
 0x104   : > { %v670_v8 = vld [vmem:[%s16564_s9 + $0x820] sm:$0xff]  ;;  %9354 = vmatpush1.bf16.msra.mxu0 %v13758_v11 }
 0x105   : > { %v794_v9 = vld [vmem:[%s16564_s9 + $0xc00] sm:$0xff]  ;;  %v13895_v13 = vcombine.high %v666_v7, %v670_v8  ;;  %9394 = vmatprep.subr.bf16.mxu1 %v13887_v6  ;;  %v13894_v22 = vcombine.low %v666_v7, %v670_v8 }
 0x106   : > { %v798_v10 = vld [vmem:[%s16564_s9 + $0xc20] sm:$0xff]  ;;  %9395 = vmatpush1.bf16.msra.mxu1 %v13886_v12 }
 0x107   : > { %v14023_v14 = vcombine.high %v794_v9, %v798_v10  ;;  %v674_v15 = vld [vmem:[%s16564_s9 + $0x840] sm:$0xff]  ;;  %9405 = vmatprep.subr.bf16.mxu0 %v13895_v13  ;;  %v14022_v24 = vcombine.low %v794_v9, %v798_v10  ;;  %9356 = vmatmul.mubr.bf16.vlgmr.msra.gmra.mrb[0].mxu0 %v16672_v17 }
 0x108   : > { %v678_v16 = vld [vmem:[%s16564_s9 + $0x860] sm:$0xff]  ;;  %9406 = vmatpush1.bf16.msra.mxu0 %v13894_v22  ;;  %9437 = vmatprep.mubr.bf16.mxu0 %v16690_v28 }
 0x109   : > { %v802_v18 = vld [vmem:[%s16564_s9 + $0xc40] sm:$0xff]  ;;  %v13903_v25 = vcombine.high %v674_v15, %v678_v16  ;;  %9446 = vmatprep.subr.bf16.mxu1 %v14023_v14  ;;  %9397 = vmatmul.mubr.bf16.vlgmr.msra.gmra.mrb[0].mxu1 %v16681_v21  ;;  %v13902_v31 = vcombine.low %v674_v15, %v678_v16 }
 0x10a   : > { %v806_v19 = vld [vmem:[%s16564_s9 + $0xc60] sm:$0xff]  ;;  %9447 = vmatpush1.bf16.msra.mxu1 %v14022_v24 }
 0x10b   : > { %v16684_v23 = vld [vmem:[%s16557_s27 + $0x18] sm:$0xff]  ;;  %v14031_v54 = vcombine.high %v802_v18, %v806_v19  ;;  %9407 = vmatprep.subr.bf16.mxu0 %v13903_v25  ;;  %v14030_v32 = vcombine.low %v802_v18, %v806_v19 }
 0x10c   : > { %v682_v26 = vld [vmem:[%s16564_s9 + $0x880] sm:$0xff]  ;;  %v16697_v30 = vcombine.high %v16684_v23, %v16684_v23  ;;  %9408 = vmatpush1.bf16.msra.mxu0 %v13902_v31 }
 0x10d   : > { %v686_v27 = vld [vmem:[%s16564_s9 + $0x8a0] sm:$0xff]  ;;  %9448 = vmatprep.subr.bf16.mxu1 %v14031_v54 }
 0x10e   : > { %v810_v55 = vld [vmem:[%s16564_s9 + $0xc80] sm:$0xff]  ;;  %v13911_v33 = vcombine.high %v682_v26, %v686_v27  ;;  %9478 = vmatprep.mubr.bf16.mxu1 %v16697_v30  ;;  %v13910_v39 = vcombine.low %v682_v26, %v686_v27  ;;  %9449 = vmatpush1.bf16.msra.mxu1 %v14030_v32 }
 0x10f   : > { %v814_v29 = vld [vmem:[%s16564_s9 + $0xca0] sm:$0xff] }
 0x110   : > { %v14039_v34 = vcombine.high %v810_v55, %v814_v29  ;;  %v690_v35 = vld [vmem:[%s16564_s9 + $0x8c0] sm:$0xff]  ;;  %9409 = vmatprep.subr.bf16.mxu0 %v13911_v33  ;;  %v14038_v40 = vcombine.low %v810_v55, %v814_v29 }
 0x111   : > { %v694_v36 = vld [vmem:[%s16564_s9 + $0x8e0] sm:$0xff]  ;;  %9410 = vmatpush1.bf16.msra.mxu0 %v13910_v39 }
 0x112   : > { %v818_v37 = vld [vmem:[%s16564_s9 + $0xcc0] sm:$0xff]  ;;  %v13919_v41 = vcombine.high %v690_v35, %v694_v36  ;;  %9450 = vmatprep.subr.bf16.mxu1 %v14039_v34  ;;  %v13918_v47 = vcombine.low %v690_v35, %v694_v36 }
 0x113   : > { %v822_v38 = vld [vmem:[%s16564_s9 + $0xce0] sm:$0xff]  ;;  %9451 = vmatpush1.bf16.msra.mxu1 %v14038_v40 }
 0x114   : > { %v14047_v42 = vcombine.high %v818_v37, %v822_v38  ;;  %v698_v43 = vld [vmem:[%s16564_s9 + $0x900] sm:$0xff]  ;;  %9411 = vmatprep.subr.bf16.mxu0 %v13919_v41  ;;  %v14046_v48 = vcombine.low %v818_v37, %v822_v38 }
 0x115   : > { %v702_v44 = vld [vmem:[%s16564_s9 + $0x920] sm:$0xff]  ;;  %9412 = vmatpush1.bf16.msra.mxu0 %v13918_v47 }
 0x116   : > { %v826_v45 = vld [vmem:[%s16564_s9 + $0xd00] sm:$0xff]  ;;  %v13927_v49 = vcombine.high %v698_v43, %v702_v44  ;;  %9452 = vmatprep.subr.bf16.mxu1 %v14047_v42  ;;  %v13926_v57 = vcombine.low %v698_v43, %v702_v44 }
 0x117   : > { %v830_v46 = vld [vmem:[%s16564_s9 + $0xd20] sm:$0xff]  ;;  %9453 = vmatpush1.bf16.msra.mxu1 %v14046_v48 }
 0x118   : > { %v14055_v50 = vcombine.high %v826_v45, %v830_v46  ;;  %v706_v51 = vld [vmem:[%s16564_s9 + $0x940] sm:$0xff]  ;;  %9413 = vmatprep.subr.bf16.mxu0 %v13927_v49  ;;  %v14054_v58 = vcombine.low %v826_v45, %v830_v46 }
 0x119   : > { %v710_v52 = vld [vmem:[%s16564_s9 + $0x960] sm:$0xff]  ;;  %9414 = vmatpush1.bf16.msra.mxu0 %v13926_v57 }
 0x11a   : > { %v834_v53 = vld [vmem:[%s16564_s9 + $0xd40] sm:$0xff]  ;;  %v13935_v61 = vcombine.high %v706_v51, %v710_v52  ;;  %9454 = vmatprep.subr.bf16.mxu1 %v14055_v50  ;;  %v13934_v3 = vcombine.low %v706_v51, %v710_v52 }
 0x11b   : > { %v838_v56 = vld [vmem:[%s16564_s9 + $0xd60] sm:$0xff]  ;;  %9455 = vmatpush1.bf16.msra.mxu1 %v14054_v58 }
 0x11c   : > { %v14063_v62 = vcombine.high %v834_v53, %v838_v56  ;;  %v714_v63 = vld [vmem:[%s16564_s9 + $0x980] sm:$0xff]  ;;  %9415 = vmatprep.subr.bf16.mxu0 %v13935_v61  ;;  %v14062_v4 = vcombine.low %v834_v53, %v838_v56 }
 0x11d   : > { %v718_v0 = vld [vmem:[%s16564_s9 + $0x9a0] sm:$0xff]  ;;  %9416 = vmatpush1.bf16.msra.mxu0 %v13934_v3 }
 0x11e   : > { %v842_v1 = vld [vmem:[%s16564_s9 + $0xd80] sm:$0xff]  ;;  %v13943_v5 = vcombine.high %v714_v63, %v718_v0  ;;  %9456 = vmatprep.subr.bf16.mxu1 %v14063_v62  ;;  %v13942_v11 = vcombine.low %v714_v63, %v718_v0 }
 0x11f   : > { %v846_v2 = vld [vmem:[%s16564_s9 + $0xda0] sm:$0xff]  ;;  %9457 = vmatpush1.bf16.msra.mxu1 %v14062_v4 }
 0x120   : > { %v14071_v6 = vcombine.high %v842_v1, %v846_v2  ;;  %v722_v7 = vld [vmem:[%s16564_s9 + $0x9c0] sm:$0xff]  ;;  %9417 = vmatprep.subr.bf16.mxu0 %v13943_v5  ;;  %v14070_v12 = vcombine.low %v842_v1, %v846_v2 }
 0x121   : > { %v726_v8 = vld [vmem:[%s16564_s9 + $0x9e0] sm:$0xff]  ;;  %9418 = vmatpush1.bf16.msra.mxu0 %v13942_v11 }
 0x122   : > { %v850_v9 = vld [vmem:[%s16564_s9 + $0xdc0] sm:$0xff]  ;;  %v13951_v13 = vcombine.high %v722_v7, %v726_v8  ;;  %9458 = vmatprep.subr.bf16.mxu1 %v14071_v6  ;;  %v13950_v22 = vcombine.low %v722_v7, %v726_v8 }
 0x123   : > { %v854_v10 = vld [vmem:[%s16564_s9 + $0xde0] sm:$0xff]  ;;  %9459 = vmatpush1.bf16.msra.mxu1 %v14070_v12 }
 0x124   : > { %v14079_v14 = vcombine.high %v850_v9, %v854_v10  ;;  %v730_v15 = vld [vmem:[%s16564_s9 + $0xa00] sm:$0xff]  ;;  %9419 = vmatprep.subr.bf16.mxu0 %v13951_v13  ;;  %v14078_v24 = vcombine.low %v850_v9, %v854_v10 }
 0x125   : > { %v734_v16 = vld [vmem:[%s16564_s9 + $0xa20] sm:$0xff]  ;;  %9420 = vmatpush1.bf16.msra.mxu0 %v13950_v22 }
 0x126   : > { %v858_v18 = vld [vmem:[%s16564_s9 + $0xe00] sm:$0xff]  ;;  %v13959_v25 = vcombine.high %v730_v15, %v734_v16  ;;  %9460 = vmatprep.subr.bf16.mxu1 %v14079_v14  ;;  %v13958_v31 = vcombine.low %v730_v15, %v734_v16 }
 0x127   : > { %v862_v19 = vld [vmem:[%s16564_s9 + $0xe20] sm:$0xff]  ;;  %9461 = vmatpush1.bf16.msra.mxu1 %v14078_v24 }
 0x128   : > { %v14087_v54 = vcombine.high %v858_v18, %v862_v19  ;;  %v738_v26 = vld [vmem:[%s16564_s9 + $0xa40] sm:$0xff]  ;;  %9421 = vmatprep.subr.bf16.mxu0 %v13959_v25  ;;  %v14086_v32 = vcombine.low %v858_v18, %v862_v19 }
 0x129   : > { %v742_v27 = vld [vmem:[%s16564_s9 + $0xa60] sm:$0xff]  ;;  %9422 = vmatpush1.bf16.msra.mxu0 %v13958_v31 }
 0x12a   : > { %v866_v55 = vld [vmem:[%s16564_s9 + $0xe40] sm:$0xff]  ;;  %v13967_v33 = vcombine.high %v738_v26, %v742_v27  ;;  %9462 = vmatprep.subr.bf16.mxu1 %v14087_v54  ;;  %v13966_v39 = vcombine.low %v738_v26, %v742_v27 }
 0x12b   : > { %v870_v29 = vld [vmem:[%s16564_s9 + $0xe60] sm:$0xff]  ;;  %9463 = vmatpush1.bf16.msra.mxu1 %v14086_v32 }
 0x12c   : > { %v14095_v34 = vcombine.high %v866_v55, %v870_v29  ;;  %v746_v35 = vld [vmem:[%s16564_s9 + $0xa80] sm:$0xff]  ;;  %9423 = vmatprep.subr.bf16.mxu0 %v13967_v33  ;;  %v14094_v40 = vcombine.low %v866_v55, %v870_v29 }
 0x12d   : > { %v750_v36 = vld [vmem:[%s16564_s9 + $0xaa0] sm:$0xff]  ;;  %9424 = vmatpush1.bf16.msra.mxu0 %v13966_v39 }
 0x12e   : > { %v874_v37 = vld [vmem:[%s16564_s9 + $0xe80] sm:$0xff]  ;;  %v13975_v41 = vcombine.high %v746_v35, %v750_v36  ;;  %9464 = vmatprep.subr.bf16.mxu1 %v14095_v34  ;;  %v13974_v47 = vcombine.low %v746_v35, %v750_v36 }
 0x12f   : > { %v878_v38 = vld [vmem:[%s16564_s9 + $0xea0] sm:$0xff]  ;;  %9465 = vmatpush1.bf16.msra.mxu1 %v14094_v40 }
 0x130   : > { %v14103_v42 = vcombine.high %v874_v37, %v878_v38  ;;  %v754_v43 = vld [vmem:[%s16564_s9 + $0xac0] sm:$0xff]  ;;  %9425 = vmatprep.subr.bf16.mxu0 %v13975_v41  ;;  %v14102_v48 = vcombine.low %v874_v37, %v878_v38  ;;  %v16762_v37 = vcombine.low %v16677_v20, %v16677_v20  ;;  %v16771_v41 = vcombine.low %v16684_v23, %v16684_v23 }
 0x131   : > { %v758_v44 = vld [vmem:[%s16564_s9 + $0xae0] sm:$0xff]  ;;  %9426 = vmatpush1.bf16.msra.mxu0 %v13974_v47 }
 0x132   : > { %v882_v45 = vld [vmem:[%s16564_s9 + $0xec0] sm:$0xff]  ;;  %v13983_v49 = vcombine.high %v754_v43, %v758_v44  ;;  %9466 = vmatprep.subr.bf16.mxu1 %v14103_v42  ;;  %v13982_v57 = vcombine.low %v754_v43, %v758_v44  ;;  %v16774_v43 = vld [vmem:[%s16557_s27 + $0x28] sm:$0xff] }
 0x133   : > { %v886_v46 = vld [vmem:[%s16564_s9 + $0xee0] sm:$0xff]  ;;  %9467 = vmatpush1.bf16.msra.mxu1 %v14102_v48 }
 0x134   : > { %v14111_v50 = vcombine.high %v882_v45, %v886_v46  ;;  %v762_v51 = vld [vmem:[%s16564_s9 + $0xb00] sm:$0xff]  ;;  %9427 = vmatprep.subr.bf16.mxu0 %v13983_v49  ;;  %v14110_v58 = vcombine.low %v882_v45, %v886_v46 }
 0x135   : > { %v766_v52 = vld [vmem:[%s16564_s9 + $0xb20] sm:$0xff]  ;;  %9428 = vmatpush1.bf16.msra.mxu0 %v13982_v57 }
 0x136   : > { %v890_v53 = vld [vmem:[%s16564_s9 + $0xf00] sm:$0xff]  ;;  %v13991_v61 = vcombine.high %v762_v51, %v766_v52  ;;  %9468 = vmatprep.subr.bf16.mxu1 %v14111_v50  ;;  %v13990_v3 = vcombine.low %v762_v51, %v766_v52  ;;  %v16787_v50 = vcombine.high %v16774_v43, %v16774_v43 }
 0x137   : > { %v894_v56 = vld [vmem:[%s16564_s9 + $0xf20] sm:$0xff]  ;;  %9469 = vmatpush1.bf16.msra.mxu1 %v14110_v58 }
 0x138   : > { %v14119_v62 = vcombine.high %v890_v53, %v894_v56  ;;  %v770_v63 = vld [vmem:[%s16564_s9 + $0xb40] sm:$0xff]  ;;  %9429 = vmatprep.subr.bf16.mxu0 %v13991_v61  ;;  %v14118_v4 = vcombine.low %v890_v53, %v894_v56 }
 0x139   : > { %v774_v0 = vld [vmem:[%s16564_s9 + $0xb60] sm:$0xff]  ;;  %9430 = vmatpush1.bf16.msra.mxu0 %v13990_v3 }
 0x13a   : > { %v898_v1 = vld [vmem:[%s16564_s9 + $0xf40] sm:$0xff]  ;;  %v13999_v5 = vcombine.high %v770_v63, %v774_v0  ;;  %9470 = vmatprep.subr.bf16.mxu1 %v14119_v62  ;;  %v13998_v11 = vcombine.low %v770_v63, %v774_v0 }
 0x13b   : > { %v902_v2 = vld [vmem:[%s16564_s9 + $0xf60] sm:$0xff]  ;;  %9471 = vmatpush1.bf16.msra.mxu1 %v14118_v4 }
 0x13c   : > { %v14127_v6 = vcombine.high %v898_v1, %v902_v2  ;;  %v778_v7 = vld [vmem:[%s16564_s9 + $0xb80] sm:$0xff]  ;;  %9431 = vmatprep.subr.bf16.mxu0 %v13999_v5  ;;  %v14126_v12 = vcombine.low %v898_v1, %v902_v2 }
 0x13d   : > { %v782_v8 = vld [vmem:[%s16564_s9 + $0xba0] sm:$0xff]  ;;  %9432 = vmatpush1.bf16.msra.mxu0 %v13998_v11 }
 0x13e   : > { %v906_v9 = vld [vmem:[%s16564_s9 + $0xf80] sm:$0xff]  ;;  %v14007_v13 = vcombine.high %v778_v7, %v782_v8  ;;  %9472 = vmatprep.subr.bf16.mxu1 %v14127_v6  ;;  %v14006_v22 = vcombine.low %v778_v7, %v782_v8 }
 0x13f   : > { %v910_v10 = vld [vmem:[%s16564_s9 + $0xfa0] sm:$0xff]  ;;  %9473 = vmatpush1.bf16.msra.mxu1 %v14126_v12 }
 0x140   : > { %v14135_v14 = vcombine.high %v906_v9, %v910_v10  ;;  %v786_v15 = vld [vmem:[%s16564_s9 + $0xbc0] sm:$0xff]  ;;  %9433 = vmatprep.subr.bf16.mxu0 %v14007_v13  ;;  %v14134_v24 = vcombine.low %v906_v9, %v910_v10 }
 0x141   : > { %v790_v16 = vld [vmem:[%s16564_s9 + $0xbe0] sm:$0xff]  ;;  %9434 = vmatpush1.bf16.msra.mxu0 %v14006_v22 }
 0x142   : > { %v914_v18 = vld [vmem:[%s16564_s9 + $0xfc0] sm:$0xff]  ;;  %v14015_v25 = vcombine.high %v786_v15, %v790_v16  ;;  %9474 = vmatprep.subr.bf16.mxu1 %v14135_v14  ;;  %v14014_v31 = vcombine.low %v786_v15, %v790_v16 }
 0x143   : > { %v918_v19 = vld [vmem:[%s16564_s9 + $0xfe0] sm:$0xff]  ;;  %9475 = vmatpush1.bf16.msra.mxu1 %v14134_v24 }
 0x144   : > { %v14143_v54 = vcombine.high %v914_v18, %v918_v19  ;;  %v922_v26 = vld [vmem:[%s16564_s9 + $0x1000] sm:$0xff]  ;;  %9435 = vmatprep.subr.bf16.mxu0 %v14015_v25  ;;  %v14142_v32 = vcombine.low %v914_v18, %v918_v19 }
 0x145   : > { %v926_v27 = vld [vmem:[%s16564_s9 + $0x1020] sm:$0xff]  ;;  %9436 = vmatpush1.bf16.msra.mxu0 %v14014_v31 }
 0x146   : > { %v1050_v55 = vld [vmem:[%s16564_s9 + $0x1400] sm:$0xff]  ;;  %v14151_v33 = vcombine.high %v922_v26, %v926_v27  ;;  %9476 = vmatprep.subr.bf16.mxu1 %v14143_v54  ;;  %v14150_v42 = vcombine.low %v922_v26, %v926_v27 }
 0x147   : > { %v1054_v29 = vld [vmem:[%s16564_s9 + $0x1420] sm:$0xff]  ;;  %9477 = vmatpush1.bf16.msra.mxu1 %v14142_v32 }
 0x148   : > { %v14279_v34 = vcombine.high %v1050_v55, %v1054_v29  ;;  %v930_v35 = vld [vmem:[%s16564_s9 + $0x1040] sm:$0xff]  ;;  %9487 = vmatprep.subr.bf16.mxu0 %v14151_v33  ;;  %v14278_v44 = vcombine.low %v1050_v55, %v1054_v29  ;;  %9438 = vmatmul.mubr.bf16.vlgmr.msra.gmra.mrb[4].mxu0 %v16762_v37 }
 0x149   : > { %v934_v36 = vld [vmem:[%s16564_s9 + $0x1060] sm:$0xff]  ;;  %9488 = vmatpush1.bf16.msra.mxu0 %v14150_v42 }
 0x14a   : > { %v1058_v38 = vld [vmem:[%s16564_s9 + $0x1440] sm:$0xff]  ;;  %v14159_v45 = vcombine.high %v930_v35, %v934_v36  ;;  %9528 = vmatprep.subr.bf16.mxu1 %v14279_v34  ;;  %9479 = vmatmul.mubr.bf16.vlgmr.msra.gmra.mrb[4].mxu1 %v16771_v41  ;;  %v14158_v51 = vcombine.low %v930_v35, %v934_v36 }
 0x14b   : > { %v1062_v39 = vld [vmem:[%s16564_s9 + $0x1460] sm:$0xff]  ;;  %9529 = vmatpush1.bf16.msra.mxu1 %v14278_v44  ;;  %9560 = vmatprep.mubr.bf16.mxu1 %v16787_v50 }
 0x14c   : > { %v16767_v40 = vld [vmem:[%s16557_s27 + $0x20] sm:$0xff]  ;;  %v14287_v20 = vcombine.high %v1058_v38, %v1062_v39  ;;  %9489 = vmatprep.subr.bf16.mxu0 %v14159_v45  ;;  %v14286_v52 = vcombine.low %v1058_v38, %v1062_v39 }
 0x14d   : > { %v938_v46 = vld [vmem:[%s16564_s9 + $0x1080] sm:$0xff]  ;;  %v16780_v48 = vcombine.high %v16767_v40, %v16767_v40  ;;  %9490 = vmatpush1.bf16.msra.mxu0 %v14158_v51 }
 0x14e   : > { %v942_v47 = vld [vmem:[%s16564_s9 + $0x10a0] sm:$0xff]  ;;  %9530 = vmatprep.subr.bf16.mxu1 %v14287_v20 }
 0x14f   : > { %v1066_v23 = vld [vmem:[%s16564_s9 + $0x1480] sm:$0xff]  ;;  %v14167_v53 = vcombine.high %v938_v46, %v942_v47  ;;  %9519 = vmatprep.mubr.bf16.mxu0 %v16780_v48  ;;  %v14166_v63 = vcombine.low %v938_v46, %v942_v47  ;;  %9531 = vmatpush1.bf16.msra.mxu1 %v14286_v52 }
 0x150   : > { %v1070_v49 = vld [vmem:[%s16564_s9 + $0x14a0] sm:$0xff] }
 0x151   : > { %v14295_v56 = vcombine.high %v1066_v23, %v1070_v49  ;;  %v946_v57 = vld [vmem:[%s16564_s9 + $0x10c0] sm:$0xff]  ;;  %9491 = vmatprep.subr.bf16.mxu0 %v14167_v53  ;;  %v14294_v0 = vcombine.low %v1066_v23, %v1070_v49 }
 0x152   : > { %v950_v58 = vld [vmem:[%s16564_s9 + $0x10e0] sm:$0xff]  ;;  %9492 = vmatpush1.bf16.msra.mxu0 %v14166_v63 }
 0x153   : > { %v1074_v61 = vld [vmem:[%s16564_s9 + $0x14c0] sm:$0xff]  ;;  %v14175_v1 = vcombine.high %v946_v57, %v950_v58  ;;  %9532 = vmatprep.subr.bf16.mxu1 %v14295_v56  ;;  %v14174_v7 = vcombine.low %v946_v57, %v950_v58 }
 0x154   : > { %v1078_v62 = vld [vmem:[%s16564_s9 + $0x14e0] sm:$0xff]  ;;  %9533 = vmatpush1.bf16.msra.mxu1 %v14294_v0 }
 0x155   : > { %v14303_v2 = vcombine.high %v1074_v61, %v1078_v62  ;;  %v954_v3 = vld [vmem:[%s16564_s9 + $0x1100] sm:$0xff]  ;;  %9493 = vmatprep.subr.bf16.mxu0 %v14175_v1  ;;  %v14302_v8 = vcombine.low %v1074_v61, %v1078_v62 }
 0x156   : > { %v958_v4 = vld [vmem:[%s16564_s9 + $0x1120] sm:$0xff]  ;;  %9494 = vmatpush1.bf16.msra.mxu0 %v14174_v7 }
 0x157   : > { %v1082_v5 = vld [vmem:[%s16564_s9 + $0x1500] sm:$0xff]  ;;  %v14183_v9 = vcombine.high %v954_v3, %v958_v4  ;;  %9534 = vmatprep.subr.bf16.mxu1 %v14303_v2  ;;  %v14182_v15 = vcombine.low %v954_v3, %v958_v4 }
 0x158   : > { %v1086_v6 = vld [vmem:[%s16564_s9 + $0x1520] sm:$0xff]  ;;  %9535 = vmatpush1.bf16.msra.mxu1 %v14302_v8 }
 0x159   : > { %v14311_v10 = vcombine.high %v1082_v5, %v1086_v6  ;;  %v962_v11 = vld [vmem:[%s16564_s9 + $0x1140] sm:$0xff]  ;;  %9495 = vmatprep.subr.bf16.mxu0 %v14183_v9  ;;  %v14310_v16 = vcombine.low %v1082_v5, %v1086_v6 }
 0x15a   : > { %v966_v12 = vld [vmem:[%s16564_s9 + $0x1160] sm:$0xff]  ;;  %9496 = vmatpush1.bf16.msra.mxu0 %v14182_v15 }
 0x15b   : > { %v1090_v13 = vld [vmem:[%s16564_s9 + $0x1540] sm:$0xff]  ;;  %v14191_v18 = vcombine.high %v962_v11, %v966_v12  ;;  %9536 = vmatprep.subr.bf16.mxu1 %v14311_v10  ;;  %v14190_v26 = vcombine.low %v962_v11, %v966_v12 }
 0x15c   : > { %v1094_v14 = vld [vmem:[%s16564_s9 + $0x1560] sm:$0xff]  ;;  %9537 = vmatpush1.bf16.msra.mxu1 %v14310_v16 }
 0x15d   : > { %v14319_v19 = vcombine.high %v1090_v13, %v1094_v14  ;;  %v970_v22 = vld [vmem:[%s16564_s9 + $0x1180] sm:$0xff]  ;;  %9497 = vmatprep.subr.bf16.mxu0 %v14191_v18  ;;  %v14318_v27 = vcombine.low %v1090_v13, %v1094_v14 }
 0x15e   : > { %v974_v24 = vld [vmem:[%s16564_s9 + $0x11a0] sm:$0xff]  ;;  %9498 = vmatpush1.bf16.msra.mxu0 %v14190_v26 }
 0x15f   : > { %v1098_v25 = vld [vmem:[%s16564_s9 + $0x1580] sm:$0xff]  ;;  %v14199_v55 = vcombine.high %v970_v22, %v974_v24  ;;  %9538 = vmatprep.subr.bf16.mxu1 %v14319_v19  ;;  %v14198_v35 = vcombine.low %v970_v22, %v974_v24 }
 0x160   : > { %v1102_v54 = vld [vmem:[%s16564_s9 + $0x15a0] sm:$0xff]  ;;  %9539 = vmatpush1.bf16.msra.mxu1 %v14318_v27 }
 0x161   : > { %v14327_v29 = vcombine.high %v1098_v25, %v1102_v54  ;;  %v978_v31 = vld [vmem:[%s16564_s9 + $0x11c0] sm:$0xff]  ;;  %9499 = vmatprep.subr.bf16.mxu0 %v14199_v55  ;;  %v14326_v36 = vcombine.low %v1098_v25, %v1102_v54 }
 0x162   : > { %v982_v32 = vld [vmem:[%s16564_s9 + $0x11e0] sm:$0xff]  ;;  %9500 = vmatpush1.bf16.msra.mxu0 %v14198_v35 }
 0x163   : > { %v1106_v33 = vld [vmem:[%s16564_s9 + $0x15c0] sm:$0xff]  ;;  %v14207_v38 = vcombine.high %v978_v31, %v982_v32  ;;  %9540 = vmatprep.subr.bf16.mxu1 %v14327_v29  ;;  %v14206_v46 = vcombine.low %v978_v31, %v982_v32 }
 0x164   : > { %v1110_v34 = vld [vmem:[%s16564_s9 + $0x15e0] sm:$0xff]  ;;  %9541 = vmatpush1.bf16.msra.mxu1 %v14326_v36 }
 0x165   : > { %v14335_v39 = vcombine.high %v1106_v33, %v1110_v34  ;;  %v986_v42 = vld [vmem:[%s16564_s9 + $0x1200] sm:$0xff]  ;;  %9501 = vmatprep.subr.bf16.mxu0 %v14207_v38  ;;  %v14334_v47 = vcombine.low %v1106_v33, %v1110_v34 }
 0x166   : > { %v990_v44 = vld [vmem:[%s16564_s9 + $0x1220] sm:$0xff]  ;;  %9502 = vmatpush1.bf16.msra.mxu0 %v14206_v46 }
 0x167   : > { %v1114_v45 = vld [vmem:[%s16564_s9 + $0x1600] sm:$0xff]  ;;  %v14215_v23 = vcombine.high %v986_v42, %v990_v44  ;;  %9542 = vmatprep.subr.bf16.mxu1 %v14335_v39  ;;  %v14214_v57 = vcombine.low %v986_v42, %v990_v44 }
 0x168   : > { %v1118_v20 = vld [vmem:[%s16564_s9 + $0x1620] sm:$0xff]  ;;  %9543 = vmatpush1.bf16.msra.mxu1 %v14334_v47 }
 0x169   : > { %v14343_v49 = vcombine.high %v1114_v45, %v1118_v20  ;;  %v994_v51 = vld [vmem:[%s16564_s9 + $0x1240] sm:$0xff]  ;;  %9503 = vmatprep.subr.bf16.mxu0 %v14215_v23  ;;  %v14342_v58 = vcombine.low %v1114_v45, %v1118_v20 }
 0x16a   : > { %v998_v52 = vld [vmem:[%s16564_s9 + $0x1260] sm:$0xff]  ;;  %9504 = vmatpush1.bf16.msra.mxu0 %v14214_v57 }
 0x16b   : > { %v1122_v53 = vld [vmem:[%s16564_s9 + $0x1640] sm:$0xff]  ;;  %v14223_v61 = vcombine.high %v994_v51, %v998_v52  ;;  %9544 = vmatprep.subr.bf16.mxu1 %v14343_v49  ;;  %v14222_v3 = vcombine.low %v994_v51, %v998_v52 }
 0x16c   : > { %v1126_v56 = vld [vmem:[%s16564_s9 + $0x1660] sm:$0xff]  ;;  %9545 = vmatpush1.bf16.msra.mxu1 %v14342_v58 }
 0x16d   : > { %v14351_v62 = vcombine.high %v1122_v53, %v1126_v56  ;;  %v1002_v63 = vld [vmem:[%s16564_s9 + $0x1280] sm:$0xff]  ;;  %9505 = vmatprep.subr.bf16.mxu0 %v14223_v61  ;;  %v14350_v4 = vcombine.low %v1122_v53, %v1126_v56 }
 0x16e   : > { %v1006_v0 = vld [vmem:[%s16564_s9 + $0x12a0] sm:$0xff]  ;;  %9506 = vmatpush1.bf16.msra.mxu0 %v14222_v3 }
 0x16f   : > { %v1130_v1 = vld [vmem:[%s16564_s9 + $0x1680] sm:$0xff]  ;;  %v14231_v5 = vcombine.high %v1002_v63, %v1006_v0  ;;  %9546 = vmatprep.subr.bf16.mxu1 %v14351_v62  ;;  %v14230_v11 = vcombine.low %v1002_v63, %v1006_v0 }
 0x170   : > { %v1134_v2 = vld [vmem:[%s16564_s9 + $0x16a0] sm:$0xff]  ;;  %9547 = vmatpush1.bf16.msra.mxu1 %v14350_v4 }
 0x171   : > { %v14359_v6 = vcombine.high %v1130_v1, %v1134_v2  ;;  %v1010_v7 = vld [vmem:[%s16564_s9 + $0x12c0] sm:$0xff]  ;;  %9507 = vmatprep.subr.bf16.mxu0 %v14231_v5  ;;  %v14358_v12 = vcombine.low %v1130_v1, %v1134_v2  ;;  %v16852_v5 = vcombine.low %v16767_v40, %v16767_v40 }
 0x172   : > { %v1014_v8 = vld [vmem:[%s16564_s9 + $0x12e0] sm:$0xff]  ;;  %9508 = vmatpush1.bf16.msra.mxu0 %v14230_v11 }
 0x173   : > { %v1138_v9 = vld [vmem:[%s16564_s9 + $0x16c0] sm:$0xff]  ;;  %v14239_v13 = vcombine.high %v1010_v7, %v1014_v8  ;;  %9548 = vmatprep.subr.bf16.mxu1 %v14359_v6  ;;  %v14238_v22 = vcombine.low %v1010_v7, %v1014_v8  ;;  %v16857_v8 = vld [vmem:[%s16557_s27 + $0x30] sm:$0xff] }
 0x174   : > { %v1142_v10 = vld [vmem:[%s16564_s9 + $0x16e0] sm:$0xff]  ;;  %9549 = vmatpush1.bf16.msra.mxu1 %v14358_v12 }
 0x175   : > { %v14367_v14 = vcombine.high %v1138_v9, %v1142_v10  ;;  %v1018_v15 = vld [vmem:[%s16564_s9 + $0x1300] sm:$0xff]  ;;  %9509 = vmatprep.subr.bf16.mxu0 %v14239_v13  ;;  %v14366_v24 = vcombine.low %v1138_v9, %v1142_v10  ;;  %v16861_v9 = vcombine.low %v16774_v43, %v16774_v43 }
 0x176   : > { %v1022_v16 = vld [vmem:[%s16564_s9 + $0x1320] sm:$0xff]  ;;  %9510 = vmatpush1.bf16.msra.mxu0 %v14238_v22 }
 0x177   : > { %v1146_v18 = vld [vmem:[%s16564_s9 + $0x1700] sm:$0xff]  ;;  %v14247_v25 = vcombine.high %v1018_v15, %v1022_v16  ;;  %9550 = vmatprep.subr.bf16.mxu1 %v14367_v14  ;;  %v14246_v31 = vcombine.low %v1018_v15, %v1022_v16  ;;  %v16870_v16 = vcombine.high %v16857_v8, %v16857_v8 }
 0x178   : > { %v1150_v19 = vld [vmem:[%s16564_s9 + $0x1720] sm:$0xff]  ;;  %9551 = vmatpush1.bf16.msra.mxu1 %v14366_v24 }
 0x179   : > { %v14375_v54 = vcombine.high %v1146_v18, %v1150_v19  ;;  %v1026_v26 = vld [vmem:[%s16564_s9 + $0x1340] sm:$0xff]  ;;  %9511 = vmatprep.subr.bf16.mxu0 %v14247_v25  ;;  %v14374_v32 = vcombine.low %v1146_v18, %v1150_v19 }
 0x17a   : > { %v1030_v27 = vld [vmem:[%s16564_s9 + $0x1360] sm:$0xff]  ;;  %9512 = vmatpush1.bf16.msra.mxu0 %v14246_v31 }
 0x17b   : > { %v1154_v55 = vld [vmem:[%s16564_s9 + $0x1740] sm:$0xff]  ;;  %v14255_v33 = vcombine.high %v1026_v26, %v1030_v27  ;;  %9552 = vmatprep.subr.bf16.mxu1 %v14375_v54  ;;  %v14254_v42 = vcombine.low %v1026_v26, %v1030_v27 }
 0x17c   : > { %v1158_v29 = vld [vmem:[%s16564_s9 + $0x1760] sm:$0xff]  ;;  %9553 = vmatpush1.bf16.msra.mxu1 %v14374_v32 }
 0x17d   : > { %v14383_v34 = vcombine.high %v1154_v55, %v1158_v29  ;;  %v1034_v35 = vld [vmem:[%s16564_s9 + $0x1380] sm:$0xff]  ;;  %9513 = vmatprep.subr.bf16.mxu0 %v14255_v33  ;;  %v14382_v44 = vcombine.low %v1154_v55, %v1158_v29 }
 0x17e   : > { %v1038_v36 = vld [vmem:[%s16564_s9 + $0x13a0] sm:$0xff]  ;;  %9514 = vmatpush1.bf16.msra.mxu0 %v14254_v42 }
 0x17f   : > { %v1162_v38 = vld [vmem:[%s16564_s9 + $0x1780] sm:$0xff]  ;;  %v14263_v45 = vcombine.high %v1034_v35, %v1038_v36  ;;  %9554 = vmatprep.subr.bf16.mxu1 %v14383_v34  ;;  %v14262_v51 = vcombine.low %v1034_v35, %v1038_v36 }
 0x180   : > { %v1166_v39 = vld [vmem:[%s16564_s9 + $0x17a0] sm:$0xff]  ;;  %9555 = vmatpush1.bf16.msra.mxu1 %v14382_v44 }
 0x181   : > { %v14391_v20 = vcombine.high %v1162_v38, %v1166_v39  ;;  %v1042_v46 = vld [vmem:[%s16564_s9 + $0x13c0] sm:$0xff]  ;;  %9515 = vmatprep.subr.bf16.mxu0 %v14263_v45  ;;  %v14390_v52 = vcombine.low %v1162_v38, %v1166_v39 }
 0x182   : > { %v1046_v47 = vld [vmem:[%s16564_s9 + $0x13e0] sm:$0xff]  ;;  %9516 = vmatpush1.bf16.msra.mxu0 %v14262_v51 }
 0x183   : > { %v1170_v23 = vld [vmem:[%s16564_s9 + $0x17c0] sm:$0xff]  ;;  %v14271_v53 = vcombine.high %v1042_v46, %v1046_v47  ;;  %9556 = vmatprep.subr.bf16.mxu1 %v14391_v20  ;;  %v14270_v63 = vcombine.low %v1042_v46, %v1046_v47 }
 0x184   : > { %v1174_v49 = vld [vmem:[%s16564_s9 + $0x17e0] sm:$0xff]  ;;  %9557 = vmatpush1.bf16.msra.mxu1 %v14390_v52 }
 0x185   : > { %v14399_v56 = vcombine.high %v1170_v23, %v1174_v49  ;;  %v1178_v57 = vld [vmem:[%s16564_s9 + $0x1800] sm:$0xff]  ;;  %9517 = vmatprep.subr.bf16.mxu0 %v14271_v53  ;;  %v14398_v0 = vcombine.low %v1170_v23, %v1174_v49 }
 0x186   : > { %v1182_v58 = vld [vmem:[%s16564_s9 + $0x1820] sm:$0xff]  ;;  %9518 = vmatpush1.bf16.msra.mxu0 %v14270_v63 }
 0x187   : > { %v1306_v61 = vld [vmem:[%s16564_s9 + $0x1c00] sm:$0xff]  ;;  %v14407_v1 = vcombine.high %v1178_v57, %v1182_v58  ;;  %9558 = vmatprep.subr.bf16.mxu1 %v14399_v56  ;;  %v14406_v10 = vcombine.low %v1178_v57, %v1182_v58 }
 0x188   : > { %v1310_v62 = vld [vmem:[%s16564_s9 + $0x1c20] sm:$0xff]  ;;  %9559 = vmatpush1.bf16.msra.mxu1 %v14398_v0 }
 0x189   : > { %v14535_v2 = vcombine.high %v1306_v61, %v1310_v62  ;;  %v1186_v3 = vld [vmem:[%s16564_s9 + $0x1840] sm:$0xff]  ;;  %9569 = vmatprep.subr.bf16.mxu0 %v14407_v1  ;;  %v14534_v12 = vcombine.low %v1306_v61, %v1310_v62  ;;  %9520 = vmatmul.mubr.bf16.vlgmr.msra.gmra.mrb[8].mxu0 %v16852_v5 }
 0x18a   : > { %v1190_v4 = vld [vmem:[%s16564_s9 + $0x1860] sm:$0xff]  ;;  %9570 = vmatpush1.bf16.msra.mxu0 %v14406_v10  ;;  %9601 = vmatprep.mubr.bf16.mxu0 %v16870_v16 }
 0x18b   : > { %v1314_v6 = vld [vmem:[%s16564_s9 + $0x1c40] sm:$0xff]  ;;  %v14415_v13 = vcombine.high %v1186_v3, %v1190_v4  ;;  %9610 = vmatprep.subr.bf16.mxu1 %v14535_v2  ;;  %9561 = vmatmul.mubr.bf16.vlgmr.msra.gmra.mrb[8].mxu1 %v16861_v9  ;;  %v14414_v22 = vcombine.low %v1186_v3, %v1190_v4 }
 0x18c   : > { %v1318_v7 = vld [vmem:[%s16564_s9 + $0x1c60] sm:$0xff]  ;;  %9611 = vmatpush1.bf16.msra.mxu1 %v14534_v12 }
 0x18d   : > { %v16864_v11 = vld [vmem:[%s16557_s27 + $0x38] sm:$0xff]  ;;  %v14543_v40 = vcombine.high %v1314_v6, %v1318_v7  ;;  %9571 = vmatprep.subr.bf16.mxu0 %v14415_v13  ;;  %v14542_v24 = vcombine.low %v1314_v6, %v1318_v7 }
 0x18e   : > { %v1194_v14 = vld [vmem:[%s16564_s9 + $0x1880] sm:$0xff]  ;;  %v16877_v19 = vcombine.high %v16864_v11, %v16864_v11  ;;  %9572 = vmatpush1.bf16.msra.mxu0 %v14414_v22 }
 0x18f   : > { %v1198_v15 = vld [vmem:[%s16564_s9 + $0x18a0] sm:$0xff]  ;;  %9612 = vmatprep.subr.bf16.mxu1 %v14543_v40 }
 0x190   : > { %v1322_v43 = vld [vmem:[%s16564_s9 + $0x1c80] sm:$0xff]  ;;  %v14423_v25 = vcombine.high %v1194_v14, %v1198_v15  ;;  %9642 = vmatprep.mubr.bf16.mxu1 %v16877_v19  ;;  %v14422_v31 = vcombine.low %v1194_v14, %v1198_v15  ;;  %9613 = vmatpush1.bf16.msra.mxu1 %v14542_v24 }
 0x191   : > { %v1326_v18 = vld [vmem:[%s16564_s9 + $0x1ca0] sm:$0xff] }
 0x192   : > { %v14551_v54 = vcombine.high %v1322_v43, %v1326_v18  ;;  %v1202_v26 = vld [vmem:[%s16564_s9 + $0x18c0] sm:$0xff]  ;;  %9573 = vmatprep.subr.bf16.mxu0 %v14423_v25  ;;  %v14550_v32 = vcombine.low %v1322_v43, %v1326_v18 }
 0x193   : > { %v1206_v27 = vld [vmem:[%s16564_s9 + $0x18e0] sm:$0xff]  ;;  %9574 = vmatpush1.bf16.msra.mxu0 %v14422_v31 }
 0x194   : > { %v1330_v55 = vld [vmem:[%s16564_s9 + $0x1cc0] sm:$0xff]  ;;  %v14431_v33 = vcombine.high %v1202_v26, %v1206_v27  ;;  %9614 = vmatprep.subr.bf16.mxu1 %v14551_v54  ;;  %v14430_v42 = vcombine.low %v1202_v26, %v1206_v27 }
 0x195   : > { %v1334_v29 = vld [vmem:[%s16564_s9 + $0x1ce0] sm:$0xff]  ;;  %9615 = vmatpush1.bf16.msra.mxu1 %v14550_v32 }
 0x196   : > { %v14559_v34 = vcombine.high %v1330_v55, %v1334_v29  ;;  %v1210_v35 = vld [vmem:[%s16564_s9 + $0x1900] sm:$0xff]  ;;  %9575 = vmatprep.subr.bf16.mxu0 %v14431_v33  ;;  %v14558_v44 = vcombine.low %v1330_v55, %v1334_v29 }
 0x197   : > { %v1214_v36 = vld [vmem:[%s16564_s9 + $0x1920] sm:$0xff]  ;;  %9576 = vmatpush1.bf16.msra.mxu0 %v14430_v42 }
 0x198   : > { %v1338_v38 = vld [vmem:[%s16564_s9 + $0x1d00] sm:$0xff]  ;;  %v14439_v45 = vcombine.high %v1210_v35, %v1214_v36  ;;  %9616 = vmatprep.subr.bf16.mxu1 %v14559_v34  ;;  %v14438_v51 = vcombine.low %v1210_v35, %v1214_v36 }
 0x199   : > { %v1342_v39 = vld [vmem:[%s16564_s9 + $0x1d20] sm:$0xff]  ;;  %9617 = vmatpush1.bf16.msra.mxu1 %v14558_v44 }
 0x19a   : > { %v14567_v20 = vcombine.high %v1338_v38, %v1342_v39  ;;  %v1218_v46 = vld [vmem:[%s16564_s9 + $0x1940] sm:$0xff]  ;;  %9577 = vmatprep.subr.bf16.mxu0 %v14439_v45  ;;  %v14566_v52 = vcombine.low %v1338_v38, %v1342_v39 }
 0x19b   : > { %v1222_v47 = vld [vmem:[%s16564_s9 + $0x1960] sm:$0xff]  ;;  %9578 = vmatpush1.bf16.msra.mxu0 %v14438_v51 }
 0x19c   : > { %v1346_v23 = vld [vmem:[%s16564_s9 + $0x1d40] sm:$0xff]  ;;  %v14447_v53 = vcombine.high %v1218_v46, %v1222_v47  ;;  %9618 = vmatprep.subr.bf16.mxu1 %v14567_v20  ;;  %v14446_v63 = vcombine.low %v1218_v46, %v1222_v47 }
 0x19d   : > { %v1350_v49 = vld [vmem:[%s16564_s9 + $0x1d60] sm:$0xff]  ;;  %9619 = vmatpush1.bf16.msra.mxu1 %v14566_v52 }
 0x19e   : > { %v14575_v56 = vcombine.high %v1346_v23, %v1350_v49  ;;  %v1226_v57 = vld [vmem:[%s16564_s9 + $0x1980] sm:$0xff]  ;;  %9579 = vmatprep.subr.bf16.mxu0 %v14447_v53  ;;  %v14574_v0 = vcombine.low %v1346_v23, %v1350_v49 }
 0x19f   : > { %v1230_v58 = vld [vmem:[%s16564_s9 + $0x19a0] sm:$0xff]  ;;  %9580 = vmatpush1.bf16.msra.mxu0 %v14446_v63 }
 0x1a0   : > { %v1354_v61 = vld [vmem:[%s16564_s9 + $0x1d80] sm:$0xff]  ;;  %v14455_v1 = vcombine.high %v1226_v57, %v1230_v58  ;;  %9620 = vmatprep.subr.bf16.mxu1 %v14575_v56  ;;  %v14454_v10 = vcombine.low %v1226_v57, %v1230_v58 }
 0x1a1   : > { %v1358_v62 = vld [vmem:[%s16564_s9 + $0x1da0] sm:$0xff]  ;;  %9621 = vmatpush1.bf16.msra.mxu1 %v14574_v0 }
 0x1a2   : > { %v14583_v2 = vcombine.high %v1354_v61, %v1358_v62  ;;  %v1234_v3 = vld [vmem:[%s16564_s9 + $0x19c0] sm:$0xff]  ;;  %9581 = vmatprep.subr.bf16.mxu0 %v14455_v1  ;;  %v14582_v12 = vcombine.low %v1354_v61, %v1358_v62 }
 0x1a3   : > { %v1238_v4 = vld [vmem:[%s16564_s9 + $0x19e0] sm:$0xff]  ;;  %9582 = vmatpush1.bf16.msra.mxu0 %v14454_v10 }
 0x1a4   : > { %v1362_v6 = vld [vmem:[%s16564_s9 + $0x1dc0] sm:$0xff]  ;;  %v14463_v13 = vcombine.high %v1234_v3, %v1238_v4  ;;  %9622 = vmatprep.subr.bf16.mxu1 %v14583_v2  ;;  %v14462_v22 = vcombine.low %v1234_v3, %v1238_v4 }
 0x1a5   : > { %v1366_v7 = vld [vmem:[%s16564_s9 + $0x1de0] sm:$0xff]  ;;  %9623 = vmatpush1.bf16.msra.mxu1 %v14582_v12 }
 0x1a6   : > { %v14591_v40 = vcombine.high %v1362_v6, %v1366_v7  ;;  %v1242_v14 = vld [vmem:[%s16564_s9 + $0x1a00] sm:$0xff]  ;;  %9583 = vmatprep.subr.bf16.mxu0 %v14463_v13  ;;  %v14590_v24 = vcombine.low %v1362_v6, %v1366_v7 }
 0x1a7   : > { %v1246_v15 = vld [vmem:[%s16564_s9 + $0x1a20] sm:$0xff]  ;;  %9584 = vmatpush1.bf16.msra.mxu0 %v14462_v22 }
 0x1a8   : > { %v1370_v43 = vld [vmem:[%s16564_s9 + $0x1e00] sm:$0xff]  ;;  %v14471_v25 = vcombine.high %v1242_v14, %v1246_v15  ;;  %9624 = vmatprep.subr.bf16.mxu1 %v14591_v40  ;;  %v14470_v31 = vcombine.low %v1242_v14, %v1246_v15 }
 0x1a9   : > { %v1374_v18 = vld [vmem:[%s16564_s9 + $0x1e20] sm:$0xff]  ;;  %9625 = vmatpush1.bf16.msra.mxu1 %v14590_v24 }
 0x1aa   : > { %v14599_v54 = vcombine.high %v1370_v43, %v1374_v18  ;;  %v1250_v26 = vld [vmem:[%s16564_s9 + $0x1a40] sm:$0xff]  ;;  %9585 = vmatprep.subr.bf16.mxu0 %v14471_v25  ;;  %v14598_v32 = vcombine.low %v1370_v43, %v1374_v18 }
 0x1ab   : > { %v1254_v27 = vld [vmem:[%s16564_s9 + $0x1a60] sm:$0xff]  ;;  %9586 = vmatpush1.bf16.msra.mxu0 %v14470_v31 }
 0x1ac   : > { %v1378_v55 = vld [vmem:[%s16564_s9 + $0x1e40] sm:$0xff]  ;;  %v14479_v33 = vcombine.high %v1250_v26, %v1254_v27  ;;  %9626 = vmatprep.subr.bf16.mxu1 %v14599_v54  ;;  %v14478_v42 = vcombine.low %v1250_v26, %v1254_v27 }
 0x1ad   : > { %v1382_v29 = vld [vmem:[%s16564_s9 + $0x1e60] sm:$0xff]  ;;  %9627 = vmatpush1.bf16.msra.mxu1 %v14598_v32 }
 0x1ae   : > { %v14607_v34 = vcombine.high %v1378_v55, %v1382_v29  ;;  %v1258_v35 = vld [vmem:[%s16564_s9 + $0x1a80] sm:$0xff]  ;;  %9587 = vmatprep.subr.bf16.mxu0 %v14479_v33  ;;  %v14606_v44 = vcombine.low %v1378_v55, %v1382_v29 }
 0x1af   : > { %v1262_v36 = vld [vmem:[%s16564_s9 + $0x1aa0] sm:$0xff]  ;;  %9588 = vmatpush1.bf16.msra.mxu0 %v14478_v42 }
 0x1b0   : > { %v1386_v38 = vld [vmem:[%s16564_s9 + $0x1e80] sm:$0xff]  ;;  %v14487_v45 = vcombine.high %v1258_v35, %v1262_v36  ;;  %9628 = vmatprep.subr.bf16.mxu1 %v14607_v34  ;;  %v14486_v51 = vcombine.low %v1258_v35, %v1262_v36 }
 0x1b1   : > { %v1390_v39 = vld [vmem:[%s16564_s9 + $0x1ea0] sm:$0xff]  ;;  %9629 = vmatpush1.bf16.msra.mxu1 %v14606_v44 }
 0x1b2   : > { %v14615_v20 = vcombine.high %v1386_v38, %v1390_v39  ;;  %v1266_v46 = vld [vmem:[%s16564_s9 + $0x1ac0] sm:$0xff]  ;;  %9589 = vmatprep.subr.bf16.mxu0 %v14487_v45  ;;  %v14614_v52 = vcombine.low %v1386_v38, %v1390_v39 }
 0x1b3   : > { %v1270_v47 = vld [vmem:[%s16564_s9 + $0x1ae0] sm:$0xff]  ;;  %9590 = vmatpush1.bf16.msra.mxu0 %v14486_v51 }
 0x1b4   : > { %v1394_v23 = vld [vmem:[%s16564_s9 + $0x1ec0] sm:$0xff]  ;;  %v14495_v53 = vcombine.high %v1266_v46, %v1270_v47  ;;  %9630 = vmatprep.subr.bf16.mxu1 %v14615_v20  ;;  %v14494_v63 = vcombine.low %v1266_v46, %v1270_v47 }
 0x1b5   : > { %v1398_v49 = vld [vmem:[%s16564_s9 + $0x1ee0] sm:$0xff]  ;;  %9631 = vmatpush1.bf16.msra.mxu1 %v14614_v52 }
 0x1b6   : > { %v14623_v56 = vcombine.high %v1394_v23, %v1398_v49  ;;  %v1274_v57 = vld [vmem:[%s16564_s9 + $0x1b00] sm:$0xff]  ;;  %9591 = vmatprep.subr.bf16.mxu0 %v14495_v53  ;;  %v14622_v0 = vcombine.low %v1394_v23, %v1398_v49  ;;  %v16942_v23 = vcombine.low %v16857_v8, %v16857_v8  ;;  %v16951_v53 = vcombine.low %v16864_v11, %v16864_v11 }
 0x1b7   : > { %v1278_v58 = vld [vmem:[%s16564_s9 + $0x1b20] sm:$0xff]  ;;  %9592 = vmatpush1.bf16.msra.mxu0 %v14494_v63 }
 0x1b8   : > { %v1402_v61 = vld [vmem:[%s16564_s9 + $0x1f00] sm:$0xff]  ;;  %v14503_v1 = vcombine.high %v1274_v57, %v1278_v58  ;;  %9632 = vmatprep.subr.bf16.mxu1 %v14623_v56  ;;  %v14502_v10 = vcombine.low %v1274_v57, %v1278_v58  ;;  %v16954_v57 = vld [vmem:[%s16557_s27 + $0x48] sm:$0xff] }
 0x1b9   : > { %v1406_v62 = vld [vmem:[%s16564_s9 + $0x1f20] sm:$0xff]  ;;  %9633 = vmatpush1.bf16.msra.mxu1 %v14622_v0 }
 0x1ba   : > { %v14631_v2 = vcombine.high %v1402_v61, %v1406_v62  ;;  %v1282_v3 = vld [vmem:[%s16564_s9 + $0x1b40] sm:$0xff]  ;;  %9593 = vmatprep.subr.bf16.mxu0 %v14503_v1  ;;  %v14630_v12 = vcombine.low %v1402_v61, %v1406_v62 }
 0x1bb   : > { %v1286_v4 = vld [vmem:[%s16564_s9 + $0x1b60] sm:$0xff]  ;;  %9594 = vmatpush1.bf16.msra.mxu0 %v14502_v10 }
 0x1bc   : > { %v1410_v6 = vld [vmem:[%s16564_s9 + $0x1f40] sm:$0xff]  ;;  %v14511_v13 = vcombine.high %v1282_v3, %v1286_v4  ;;  %9634 = vmatprep.subr.bf16.mxu1 %v14631_v2  ;;  %v14510_v22 = vcombine.low %v1282_v3, %v1286_v4  ;;  %v16967_v2 = vcombine.high %v16954_v57, %v16954_v57 }
 0x1bd   : > { %v1414_v7 = vld [vmem:[%s16564_s9 + $0x1f60] sm:$0xff]  ;;  %9635 = vmatpush1.bf16.msra.mxu1 %v14630_v12 }
 0x1be   : > { %v14639_v40 = vcombine.high %v1410_v6, %v1414_v7  ;;  %v1290_v14 = vld [vmem:[%s16564_s9 + $0x1b80] sm:$0xff]  ;;  %9595 = vmatprep.subr.bf16.mxu0 %v14511_v13  ;;  %v14638_v24 = vcombine.low %v1410_v6, %v1414_v7 }
 0x1bf   : > { %v1294_v15 = vld [vmem:[%s16564_s9 + $0x1ba0] sm:$0xff]  ;;  %9596 = vmatpush1.bf16.msra.mxu0 %v14510_v22 }
 0x1c0   : > { %v1418_v43 = vld [vmem:[%s16564_s9 + $0x1f80] sm:$0xff]  ;;  %v14519_v25 = vcombine.high %v1290_v14, %v1294_v15  ;;  %9636 = vmatprep.subr.bf16.mxu1 %v14639_v40  ;;  %v14518_v31 = vcombine.low %v1290_v14, %v1294_v15 }
 0x1c1   : > { %v1422_v18 = vld [vmem:[%s16564_s9 + $0x1fa0] sm:$0xff]  ;;  %9637 = vmatpush1.bf16.msra.mxu1 %v14638_v24 }
 0x1c2   : > { %v14647_v54 = vcombine.high %v1418_v43, %v1422_v18  ;;  %v1298_v26 = vld [vmem:[%s16564_s9 + $0x1bc0] sm:$0xff]  ;;  %9597 = vmatprep.subr.bf16.mxu0 %v14519_v25  ;;  %v14646_v32 = vcombine.low %v1418_v43, %v1422_v18 }
 0x1c3   : > { %v1302_v27 = vld [vmem:[%s16564_s9 + $0x1be0] sm:$0xff]  ;;  %9598 = vmatpush1.bf16.msra.mxu0 %v14518_v31 }
 0x1c4   : > { %v1426_v55 = vld [vmem:[%s16564_s9 + $0x1fc0] sm:$0xff]  ;;  %v14527_v33 = vcombine.high %v1298_v26, %v1302_v27  ;;  %9638 = vmatprep.subr.bf16.mxu1 %v14647_v54  ;;  %v14526_v42 = vcombine.low %v1298_v26, %v1302_v27 }
 0x1c5   : > { %v1430_v29 = vld [vmem:[%s16564_s9 + $0x1fe0] sm:$0xff]  ;;  %9639 = vmatpush1.bf16.msra.mxu1 %v14646_v32 }
 0x1c6   : > { %v14655_v34 = vcombine.high %v1426_v55, %v1430_v29  ;;  %v1434_v35 = vld [vmem:[%s16564_s9 + $0x2000] sm:$0xff]  ;;  %9599 = vmatprep.subr.bf16.mxu0 %v14527_v33  ;;  %v14654_v44 = vcombine.low %v1426_v55, %v1430_v29 }
 0x1c7   : > { %v1438_v36 = vld [vmem:[%s16564_s9 + $0x2020] sm:$0xff]  ;;  %9600 = vmatpush1.bf16.msra.mxu0 %v14526_v42 }
 0x1c8   : > { %v1562_v38 = vld [vmem:[%s16564_s9 + $0x2400] sm:$0xff]  ;;  %v14663_v45 = vcombine.high %v1434_v35, %v1438_v36  ;;  %9640 = vmatprep.subr.bf16.mxu1 %v14655_v34  ;;  %v14662_v56 = vcombine.low %v1434_v35, %v1438_v36 }
 0x1c9   : > { %v1566_v39 = vld [vmem:[%s16564_s9 + $0x2420] sm:$0xff]  ;;  %9641 = vmatpush1.bf16.msra.mxu1 %v14654_v44 }
 0x1ca   : > { %v14791_v20 = vcombine.high %v1562_v38, %v1566_v39  ;;  %v1442_v46 = vld [vmem:[%s16564_s9 + $0x2040] sm:$0xff]  ;;  %9651 = vmatprep.subr.bf16.mxu0 %v14663_v45  ;;  %v14790_v58 = vcombine.low %v1562_v38, %v1566_v39  ;;  %9602 = vmatmul.mubr.bf16.vlgmr.msra.gmra.mrb[12].mxu0 %v16942_v23 }
 0x1cb   : > { %v1446_v47 = vld [vmem:[%s16564_s9 + $0x2060] sm:$0xff]  ;;  %9652 = vmatpush1.bf16.msra.mxu0 %v14662_v56 }
 0x1cc   : > { %v1570_v49 = vld [vmem:[%s16564_s9 + $0x2440] sm:$0xff]  ;;  %v14671_v61 = vcombine.high %v1442_v46, %v1446_v47  ;;  %9692 = vmatprep.subr.bf16.mxu1 %v14791_v20  ;;  %9643 = vmatmul.mubr.bf16.vlgmr.msra.gmra.mrb[12].mxu1 %v16951_v53  ;;  %v14670_v3 = vcombine.low %v1442_v46, %v1446_v47 }
 0x1cd   : > { %v1574_v51 = vld [vmem:[%s16564_s9 + $0x2460] sm:$0xff]  ;;  %9693 = vmatpush1.bf16.msra.mxu1 %v14790_v58  ;;  %9724 = vmatprep.mubr.bf16.mxu1 %v16967_v2 }
 0x1ce   : > { %v16947_v52 = vld [vmem:[%s16557_s27 + $0x40] sm:$0xff]  ;;  %v14799_v8 = vcombine.high %v1570_v49, %v1574_v51  ;;  %9653 = vmatprep.subr.bf16.mxu0 %v14671_v61  ;;  %v14798_v4 = vcombine.low %v1570_v49, %v1574_v51 }
 0x1cf   : > { %v1450_v62 = vld [vmem:[%s16564_s9 + $0x2080] sm:$0xff]  ;;  %v16960_v0 = vcombine.high %v16947_v52, %v16947_v52  ;;  %9654 = vmatpush1.bf16.msra.mxu0 %v14670_v3 }
 0x1d0   : > { %v1454_v63 = vld [vmem:[%s16564_s9 + $0x20a0] sm:$0xff]  ;;  %9694 = vmatprep.subr.bf16.mxu1 %v14799_v8 }
 0x1d1   : > { %v1578_v11 = vld [vmem:[%s16564_s9 + $0x2480] sm:$0xff]  ;;  %v14679_v6 = vcombine.high %v1450_v62, %v1454_v63  ;;  %9683 = vmatprep.mubr.bf16.mxu0 %v16960_v0  ;;  %v14678_v14 = vcombine.low %v1450_v62, %v1454_v63  ;;  %9695 = vmatpush1.bf16.msra.mxu1 %v14798_v4 }
 0x1d2   : > { %v1582_v1 = vld [vmem:[%s16564_s9 + $0x24a0] sm:$0xff] }
 0x1d3   : > { %v14807_v7 = vcombine.high %v1578_v11, %v1582_v1  ;;  %v1458_v10 = vld [vmem:[%s16564_s9 + $0x20c0] sm:$0xff]  ;;  %9655 = vmatprep.subr.bf16.mxu0 %v14679_v6  ;;  %v14806_v15 = vcombine.low %v1578_v11, %v1582_v1 }
 0x1d4   : > { %v1462_v12 = vld [vmem:[%s16564_s9 + $0x20e0] sm:$0xff]  ;;  %9656 = vmatpush1.bf16.msra.mxu0 %v14678_v14 }
 0x1d5   : > { %v1586_v13 = vld [vmem:[%s16564_s9 + $0x24c0] sm:$0xff]  ;;  %v14687_v43 = vcombine.high %v1458_v10, %v1462_v12  ;;  %9696 = vmatprep.subr.bf16.mxu1 %v14807_v7  ;;  %v14686_v26 = vcombine.low %v1458_v10, %v1462_v12 }
 0x1d6   : > { %v1590_v40 = vld [vmem:[%s16564_s9 + $0x24e0] sm:$0xff]  ;;  %9697 = vmatpush1.bf16.msra.mxu1 %v14806_v15 }
 0x1d7   : > { %v14815_v18 = vcombine.high %v1586_v13, %v1590_v40  ;;  %v1466_v22 = vld [vmem:[%s16564_s9 + $0x2100] sm:$0xff]  ;;  %9657 = vmatprep.subr.bf16.mxu0 %v14687_v43  ;;  %v14814_v27 = vcombine.low %v1586_v13, %v1590_v40 }
 0x1d8   : > { %v1470_v24 = vld [vmem:[%s16564_s9 + $0x2120] sm:$0xff]  ;;  %9658 = vmatpush1.bf16.msra.mxu0 %v14686_v26 }
 0x1d9   : > { %v1594_v25 = vld [vmem:[%s16564_s9 + $0x2500] sm:$0xff]  ;;  %v14695_v55 = vcombine.high %v1466_v22, %v1470_v24  ;;  %9698 = vmatprep.subr.bf16.mxu1 %v14815_v18  ;;  %v14694_v35 = vcombine.low %v1466_v22, %v1470_v24 }
 0x1da   : > { %v1598_v54 = vld [vmem:[%s16564_s9 + $0x2520] sm:$0xff]  ;;  %9699 = vmatpush1.bf16.msra.mxu1 %v14814_v27  ;;  %v9357_v51 = vpop.f32.mrb[0].mxu0 }
 0x1db   : > { %v14823_v29 = vcombine.high %v1594_v25, %v1598_v54  ;;  %v1474_v31 = vld [vmem:[%s16564_s9 + $0x2140] sm:$0xff]  ;;  %9659 = vmatprep.subr.bf16.mxu0 %v14695_v55  ;;  %v14822_v36 = vcombine.low %v1594_v25, %v1598_v54  ;;  %v9359_v62 = vpop.f32.mrb[1].mxu0 }
 0x1dc   : > { %v1478_v32 = vld [vmem:[%s16564_s9 + $0x2160] sm:$0xff]  ;;  %9660 = vmatpush1.bf16.msra.mxu0 %v14694_v35  ;;  %v9398_v8 = vpop.f32.mrb[0].mxu1  ;;  %v9361_v4 = vpop.f32.mrb[2].mxu0 }
 0x1dd   : > { %v1602_v33 = vld [vmem:[%s16564_s9 + $0x2540] sm:$0xff]  ;;  %v14703_v38 = vcombine.high %v1474_v31, %v1478_v32  ;;  %9700 = vmatprep.subr.bf16.mxu1 %v14823_v29  ;;  %v14702_v46 = vcombine.low %v1474_v31, %v1478_v32  ;;  %v16992_v1 = vadd.f32 %v9398_v8, %v9357_v51  ;;  %v9400_v3 = vpop.f32.mrb[1].mxu1  ;;  %v9362_v12 = vpop.f32.mrb[3].mxu0 }
 0x1de   : > { %v1606_v34 = vld [vmem:[%s16564_s9 + $0x2560] sm:$0xff]  ;;  %9701 = vmatpush1.bf16.msra.mxu1 %v14822_v36  ;;  %v16994_v7 = vadd.f32 %v9400_v3, %v9359_v62  ;;  %v9402_v10 = vpop.f32.mrb[2].mxu1 }
 0x1df   : > { %v14831_v39 = vcombine.high %v1602_v33, %v1606_v34  ;;  %v1482_v42 = vld [vmem:[%s16564_s9 + $0x2180] sm:$0xff]  ;;  %9661 = vmatprep.subr.bf16.mxu0 %v14703_v38  ;;  %v14830_v47 = vcombine.low %v1602_v33, %v1606_v34  ;;  %v9403_v14 = vpop.f32.mrb[3].mxu1 }
 0x1e0   : > { %v1486_v44 = vld [vmem:[%s16564_s9 + $0x21a0] sm:$0xff]  ;;  %9662 = vmatpush1.bf16.msra.mxu0 %v14702_v46 }
 0x1e1   : > { %v1610_v45 = vld [vmem:[%s16564_s9 + $0x2580] sm:$0xff]  ;;  %v14711_v49 = vcombine.high %v1482_v42, %v1486_v44  ;;  %9702 = vmatprep.subr.bf16.mxu1 %v14831_v39  ;;  %v14710_v6 = vcombine.low %v1482_v42, %v1486_v44 }
 0x1e2   : > { %v1614_v20 = vld [vmem:[%s16564_s9 + $0x25a0] sm:$0xff]  ;;  %9703 = vmatpush1.bf16.msra.mxu1 %v14830_v47 }
 0x1e3   : > { %v14839_v56 = vcombine.high %v1610_v45, %v1614_v20  ;;  %v1490_v58 = vld [vmem:[%s16564_s9 + $0x21c0] sm:$0xff]  ;;  %9663 = vmatprep.subr.bf16.mxu0 %v14711_v49  ;;  %v14838_v13 = vcombine.low %v1610_v45, %v1614_v20 }
 0x1e4   : > { %v1494_v61 = vld [vmem:[%s16564_s9 + $0x21e0] sm:$0xff]  ;;  %9664 = vmatpush1.bf16.msra.mxu0 %v14710_v6 }
 0x1e5   : > { %v1618_v63 = vld [vmem:[%s16564_s9 + $0x25c0] sm:$0xff]  ;;  %v14719_v40 = vcombine.high %v1490_v58, %v1494_v61  ;;  %9704 = vmatprep.subr.bf16.mxu1 %v14839_v56  ;;  %v14718_v25 = vcombine.low %v1490_v58, %v1494_v61 }
 0x1e6   : > { %v1622_v11 = vld [vmem:[%s16564_s9 + $0x25e0] sm:$0xff]  ;;  %9705 = vmatpush1.bf16.msra.mxu1 %v14838_v13 }
 0x1e7   : > { %v14847_v15 = vcombine.high %v1618_v63, %v1622_v11  ;;  %v1498_v43 = vld [vmem:[%s16564_s9 + $0x2200] sm:$0xff]  ;;  %9665 = vmatprep.subr.bf16.mxu0 %v14719_v40  ;;  %v14846_v54 = vcombine.low %v1618_v63, %v1622_v11 }
 0x1e8   : > { %v1502_v18 = vld [vmem:[%s16564_s9 + $0x2220] sm:$0xff]  ;;  %9666 = vmatpush1.bf16.msra.mxu0 %v14718_v25 }
 0x1e9   : > { %v1626_v22 = vld [vmem:[%s16564_s9 + $0x2600] sm:$0xff]  ;;  %v14727_v26 = vcombine.high %v1498_v43, %v1502_v18  ;;  %9706 = vmatprep.subr.bf16.mxu1 %v14847_v15  ;;  %v14726_v33 = vcombine.low %v1498_v43, %v1502_v18 }
 0x1ea   : > { %v1630_v24 = vld [vmem:[%s16564_s9 + $0x2620] sm:$0xff]  ;;  %9707 = vmatpush1.bf16.msra.mxu1 %v14846_v54 }
 0x1eb   : > { %v14855_v27 = vcombine.high %v1626_v22, %v1630_v24  ;;  %v1506_v55 = vld [vmem:[%s16564_s9 + $0x2240] sm:$0xff]  ;;  %9667 = vmatprep.subr.bf16.mxu0 %v14727_v26  ;;  %v14854_v34 = vcombine.low %v1626_v22, %v1630_v24 }
 0x1ec   : > { %v1510_v29 = vld [vmem:[%s16564_s9 + $0x2260] sm:$0xff]  ;;  %9668 = vmatpush1.bf16.msra.mxu0 %v14726_v33 }
 0x1ed   : > { %v1634_v31 = vld [vmem:[%s16564_s9 + $0x2640] sm:$0xff]  ;;  %v14735_v35 = vcombine.high %v1506_v55, %v1510_v29  ;;  %9708 = vmatprep.subr.bf16.mxu1 %v14855_v27  ;;  %v14734_v45 = vcombine.low %v1506_v55, %v1510_v29 }
 0x1ee   : > { %v1638_v32 = vld [vmem:[%s16564_s9 + $0x2660] sm:$0xff]  ;;  %9709 = vmatpush1.bf16.msra.mxu1 %v14854_v34 }
 0x1ef   : > { %v14863_v36 = vcombine.high %v1634_v31, %v1638_v32  ;;  %v1514_v38 = vld [vmem:[%s16564_s9 + $0x2280] sm:$0xff]  ;;  %9669 = vmatprep.subr.bf16.mxu0 %v14735_v35  ;;  %v14862_v20 = vcombine.low %v1634_v31, %v1638_v32 }
 0x1f0   : > { %v1518_v39 = vld [vmem:[%s16564_s9 + $0x22a0] sm:$0xff]  ;;  %9670 = vmatpush1.bf16.msra.mxu0 %v14734_v45 }
 0x1f1   : > { %v1642_v42 = vld [vmem:[%s16564_s9 + $0x2680] sm:$0xff]  ;;  %v14743_v46 = vcombine.high %v1514_v38, %v1518_v39  ;;  %9710 = vmatprep.subr.bf16.mxu1 %v14863_v36  ;;  %v14742_v61 = vcombine.low %v1514_v38, %v1518_v39 }
 0x1f2   : > { %v1646_v44 = vld [vmem:[%s16564_s9 + $0x26a0] sm:$0xff]  ;;  %9711 = vmatpush1.bf16.msra.mxu1 %v14862_v20 }
 0x1f3   : > { %v14871_v47 = vcombine.high %v1642_v42, %v1646_v44  ;;  %v1522_v49 = vld [vmem:[%s16564_s9 + $0x22c0] sm:$0xff]  ;;  %9671 = vmatprep.subr.bf16.mxu0 %v14743_v46  ;;  %v14870_v8 = vcombine.low %v1642_v42, %v1646_v44 }
 0x1f4   : > { %v1526_v51 = vld [vmem:[%s16564_s9 + $0x22e0] sm:$0xff]  ;;  %9672 = vmatpush1.bf16.msra.mxu0 %v14742_v61 }
 0x1f5   : > { %v1650_v56 = vld [vmem:[%s16564_s9 + $0x26c0] sm:$0xff]  ;;  %v14751_v62 = vcombine.high %v1522_v49, %v1526_v51  ;;  %9712 = vmatprep.subr.bf16.mxu1 %v14871_v47  ;;  %v14750_v10 = vcombine.low %v1522_v49, %v1526_v51 }
 0x1f6   : > { %v1654_v58 = vld [vmem:[%s16564_s9 + $0x26e0] sm:$0xff]  ;;  %9713 = vmatpush1.bf16.msra.mxu1 %v14870_v8 }
 0x1f7   : > { %v14879_v63 = vcombine.high %v1650_v56, %v1654_v58  ;;  %v1530_v11 = vld [vmem:[%s16564_s9 + $0x2300] sm:$0xff]  ;;  %9673 = vmatprep.subr.bf16.mxu0 %v14751_v62  ;;  %v14878_v12 = vcombine.low %v1650_v56, %v1654_v58 }
 0x1f8   : > { %v1534_v3 = vld [vmem:[%s16564_s9 + $0x2320] sm:$0xff]  ;;  %9674 = vmatpush1.bf16.msra.mxu0 %v14750_v10 }
 0x1f9   : > { %v1658_v4 = vld [vmem:[%s16564_s9 + $0x2700] sm:$0xff]  ;;  %v14759_v13 = vcombine.high %v1530_v11, %v1534_v3  ;;  %9714 = vmatprep.subr.bf16.mxu1 %v14879_v63  ;;  %v14758_v22 = vcombine.low %v1530_v11, %v1534_v3  ;;  %v17036_v11 = vcombine.low %v16947_v52, %v16947_v52 }
 0x1fa   : > { %v1662_v6 = vld [vmem:[%s16564_s9 + $0x2720] sm:$0xff]  ;;  %9715 = vmatpush1.bf16.msra.mxu1 %v14878_v12  ;;  %v17045_v12 = vld [vmem:[%s16557_s27 + $0x50] sm:$0xff] }
 0x1fb   : > { %v14887_v40 = vcombine.high %v1658_v4, %v1662_v6  ;;  %v1538_v14 = vld [vmem:[%s16564_s9 + $0x2340] sm:$0xff]  ;;  %9675 = vmatprep.subr.bf16.mxu0 %v14759_v13  ;;  %v14886_v24 = vcombine.low %v1658_v4, %v1662_v6  ;;  %v17042_v6 = vcombine.low %v16954_v57, %v16954_v57  ;;  %v17054_v57 = vcombine.high %v17045_v12, %v17045_v12 }
 0x1fc   : > { %v1542_v15 = vld [vmem:[%s16564_s9 + $0x2360] sm:$0xff]  ;;  %9676 = vmatpush1.bf16.msra.mxu0 %v14758_v22 }
 0x1fd   : > { %v1666_v43 = vld [vmem:[%s16564_s9 + $0x2740] sm:$0xff]  ;;  %v14767_v25 = vcombine.high %v1538_v14, %v1542_v15  ;;  %9716 = vmatprep.subr.bf16.mxu1 %v14887_v40  ;;  %v14766_v31 = vcombine.low %v1538_v14, %v1542_v15 }
 0x1fe   : > { %v1670_v18 = vld [vmem:[%s16564_s9 + $0x2760] sm:$0xff]  ;;  %9717 = vmatpush1.bf16.msra.mxu1 %v14886_v24 }
 0x1ff   : > { %v14895_v54 = vcombine.high %v1666_v43, %v1670_v18  ;;  %v1546_v26 = vld [vmem:[%s16564_s9 + $0x2380] sm:$0xff]  ;;  %9677 = vmatprep.subr.bf16.mxu0 %v14767_v25  ;;  %v14894_v32 = vcombine.low %v1666_v43, %v1670_v18 }
 0x200   : > { %v1550_v27 = vld [vmem:[%s16564_s9 + $0x23a0] sm:$0xff]  ;;  %9678 = vmatpush1.bf16.msra.mxu0 %v14766_v31 }
 0x201   : > { %v1674_v55 = vld [vmem:[%s16564_s9 + $0x2780] sm:$0xff]  ;;  %v14775_v33 = vcombine.high %v1546_v26, %v1550_v27  ;;  %9718 = vmatprep.subr.bf16.mxu1 %v14895_v54  ;;  %v14774_v42 = vcombine.low %v1546_v26, %v1550_v27 }
 0x202   : > { %v1678_v29 = vld [vmem:[%s16564_s9 + $0x27a0] sm:$0xff]  ;;  %9719 = vmatpush1.bf16.msra.mxu1 %v14894_v32 }
 0x203   : > { %v14903_v34 = vcombine.high %v1674_v55, %v1678_v29  ;;  %v1554_v35 = vld [vmem:[%s16564_s9 + $0x23c0] sm:$0xff]  ;;  %9679 = vmatprep.subr.bf16.mxu0 %v14775_v33  ;;  %v14902_v44 = vcombine.low %v1674_v55, %v1678_v29  ;;  %v16281_v55 = vmov 0  }
 0x204   : > { %v1558_v36 = vld [vmem:[%s16564_s9 + $0x23e0] sm:$0xff]  ;;  %9680 = vmatpush1.bf16.msra.mxu0 %v14774_v42 }
 0x205   : > { %v1682_v38 = vld [vmem:[%s16564_s9 + $0x27c0] sm:$0xff]  ;;  %v14783_v45 = vcombine.high %v1554_v35, %v1558_v36  ;;  %9720 = vmatprep.subr.bf16.mxu1 %v14903_v34  ;;  %v14782_v56 = vcombine.low %v1554_v35, %v1558_v36 }
 0x206   : > { %v1686_v39 = vld [vmem:[%s16564_s9 + $0x27e0] sm:$0xff]  ;;  %9721 = vmatpush1.bf16.msra.mxu1 %v14902_v44 }
 0x207   : > { %v14911_v20 = vcombine.high %v1682_v38, %v1686_v39  ;;  %v1690_v46 = vld [vmem:[%s16564_s9 + $0x2800] sm:$0xff]  ;;  %9681 = vmatprep.subr.bf16.mxu0 %v14783_v45  ;;  %v14910_v58 = vcombine.low %v1682_v38, %v1686_v39 }
 0x208   : > { %v1694_v47 = vld [vmem:[%s16564_s9 + $0x2820] sm:$0xff]  ;;  %9682 = vmatpush1.bf16.msra.mxu0 %v14782_v56 }
 0x209   : > { %v1818_v49 = vld [vmem:[%s16564_s9 + $0x2c00] sm:$0xff]  ;;  %v14919_v61 = vcombine.high %v1690_v46, %v1694_v47  ;;  %9722 = vmatprep.subr.bf16.mxu1 %v14911_v20  ;;  %v14918_v10 = vcombine.low %v1690_v46, %v1694_v47 }
 0x20a   : > { %v1822_v51 = vld [vmem:[%s16564_s9 + $0x2c20] sm:$0xff]  ;;  %9723 = vmatpush1.bf16.msra.mxu1 %v14910_v58 }
 0x20b   : > { %v15047_v8 = vcombine.high %v1818_v49, %v1822_v51  ;;  %v1698_v62 = vld [vmem:[%s16564_s9 + $0x2840] sm:$0xff]  ;;  %9733 = vmatprep.subr.bf16.mxu0 %v14919_v61  ;;  %v15046_v13 = vcombine.low %v1818_v49, %v1822_v51  ;;  %9684 = vmatmul.mubr.bf16.vlgmr.msra.gmra.mrb[16].mxu0 %v17036_v11 }
 0x20c   : > { %v1702_v63 = vld [vmem:[%s16564_s9 + $0x2860] sm:$0xff]  ;;  %9734 = vmatpush1.bf16.msra.mxu0 %v14918_v10  ;;  %9765 = vmatprep.mubr.bf16.mxu0 %v17054_v57 }
 0x20d   : > { %v1826_v3 = vld [vmem:[%s16564_s9 + $0x2c40] sm:$0xff]  ;;  %v14927_v40 = vcombine.high %v1698_v62, %v1702_v63  ;;  %9774 = vmatprep.subr.bf16.mxu1 %v15047_v8  ;;  %9725 = vmatmul.mubr.bf16.vlgmr.msra.gmra.mrb[16].mxu1 %v17042_v6  ;;  %v14926_v22 = vcombine.low %v1698_v62, %v1702_v63 }
 0x20e   : > { %v1830_v4 = vld [vmem:[%s16564_s9 + $0x2c60] sm:$0xff]  ;;  %9775 = vmatpush1.bf16.msra.mxu1 %v15046_v13  ;;  %9806 = vmatprep.mubr.bf16.mxu1 %v16281_v55 }
 0x20f   : > { %v15055_v14 = vcombine.high %v1826_v3, %v1830_v4  ;;  %v1706_v52 = vld [vmem:[%s16564_s9 + $0x2880] sm:$0xff]  ;;  %9735 = vmatprep.subr.bf16.mxu0 %v14927_v40  ;;  %v15054_v24 = vcombine.low %v1826_v3, %v1830_v4 }
 0x210   : > { %v1710_v15 = vld [vmem:[%s16564_s9 + $0x28a0] sm:$0xff]  ;;  %9736 = vmatpush1.bf16.msra.mxu0 %v14926_v22 }
 0x211   : > { %v1834_v43 = vld [vmem:[%s16564_s9 + $0x2c80] sm:$0xff]  ;;  %v14935_v25 = vcombine.high %v1706_v52, %v1710_v15  ;;  %9776 = vmatprep.subr.bf16.mxu1 %v15055_v14  ;;  %v14934_v32 = vcombine.low %v1706_v52, %v1710_v15 }
 0x212   : > { %v1838_v18 = vld [vmem:[%s16564_s9 + $0x2ca0] sm:$0xff]  ;;  %9777 = vmatpush1.bf16.msra.mxu1 %v15054_v24 }
 0x213   : > { %v15063_v54 = vcombine.high %v1834_v43, %v1838_v18  ;;  %v1714_v26 = vld [vmem:[%s16564_s9 + $0x28c0] sm:$0xff]  ;;  %9737 = vmatprep.subr.bf16.mxu0 %v14935_v25  ;;  %v15062_v33 = vcombine.low %v1834_v43, %v1838_v18 }
 0x214   : > { %v1718_v27 = vld [vmem:[%s16564_s9 + $0x28e0] sm:$0xff]  ;;  %9738 = vmatpush1.bf16.msra.mxu0 %v14934_v32 }
 0x215   : > { %v1842_v29 = vld [vmem:[%s16564_s9 + $0x2cc0] sm:$0xff]  ;;  %v14943_v34 = vcombine.high %v1714_v26, %v1718_v27  ;;  %9778 = vmatprep.subr.bf16.mxu1 %v15063_v54  ;;  %v14942_v44 = vcombine.low %v1714_v26, %v1718_v27 }
 0x216   : > { %v1846_v31 = vld [vmem:[%s16564_s9 + $0x2ce0] sm:$0xff]  ;;  %9779 = vmatpush1.bf16.msra.mxu1 %v15062_v33 }
 0x217   : > { %v15071_v35 = vcombine.high %v1842_v29, %v1846_v31  ;;  %v1722_v36 = vld [vmem:[%s16564_s9 + $0x2900] sm:$0xff]  ;;  %9739 = vmatprep.subr.bf16.mxu0 %v14943_v34  ;;  %v15070_v45 = vcombine.low %v1842_v29, %v1846_v31 }
 0x218   : > { %v1726_v38 = vld [vmem:[%s16564_s9 + $0x2920] sm:$0xff]  ;;  %9740 = vmatpush1.bf16.msra.mxu0 %v14942_v44 }
 0x219   : > { %v1850_v39 = vld [vmem:[%s16564_s9 + $0x2d00] sm:$0xff]  ;;  %v14951_v20 = vcombine.high %v1722_v36, %v1726_v38  ;;  %9780 = vmatprep.subr.bf16.mxu1 %v15071_v35  ;;  %v14950_v58 = vcombine.low %v1722_v36, %v1726_v38 }
 0x21a   : > { %v1854_v42 = vld [vmem:[%s16564_s9 + $0x2d20] sm:$0xff]  ;;  %9781 = vmatpush1.bf16.msra.mxu1 %v15070_v45  ;;  %v411_v45 = vld [vmem:[%s16564_s9 + $0x8] sm:$0xff] }
 0x21b   : > { %v15079_v46 = vcombine.high %v1850_v39, %v1854_v42  ;;  %v1730_v47 = vld [vmem:[%s16564_s9 + $0x2940] sm:$0xff]  ;;  %9741 = vmatprep.subr.bf16.mxu0 %v14951_v20  ;;  %v15078_v61 = vcombine.low %v1850_v39, %v1854_v42  ;;  %v9439_v52 = vpop.f32.mrb[4].mxu0  ;;  %v415_v20 = vld [vmem:[%s16564_s9 + $0x28] sm:$0xff] }
 0x21c   : > { %v1734_v49 = vld [vmem:[%s16564_s9 + $0x2960] sm:$0xff]  ;;  %9742 = vmatpush1.bf16.msra.mxu0 %v14950_v58  ;;  %v9440_v22 = vadd.f32 %v9439_v52, %v16992_v1  ;;  %v9441_v25 = vpop.f32.mrb[5].mxu0  ;;  %v431_v52 = vld [vmem:[%s16564_s9 + $0xa8] sm:$0xff] }
 0x21d   : > { %v1858_v51 = vld [vmem:[%s16564_s9 + $0x2d40] sm:$0xff]  ;;  %v14959_v8 = vcombine.high %v1730_v47, %v1734_v49  ;;  %9782 = vmatprep.subr.bf16.mxu1 %v15079_v46  ;;  %v14958_v13 = vcombine.low %v1730_v47, %v1734_v49  ;;  %v9480_v24 = vpop.f32.mrb[4].mxu1  ;;  %v9442_v27 = vadd.f32 %v9441_v25, %v16994_v7  ;;  %v9443_v31 = vpop.f32.mrb[6].mxu0 }
 0x21e   : > { %v1862_v56 = vld [vmem:[%s16564_s9 + $0x2d60] sm:$0xff]  ;;  %9783 = vmatpush1.bf16.msra.mxu1 %v15078_v61  ;;  %v9482_v29 = vpop.f32.mrb[5].mxu1  ;;  %v17081_v33 = vadd.f32 %v9480_v24, %v9440_v22  ;;  %v9444_v35 = vpop.f32.mrb[7].mxu0  ;;  %v419_v61 = vld [vmem:[%s16564_s9 + $0x48] sm:$0xff] }
 0x21f   : > { %v15087_v62 = vcombine.high %v1858_v51, %v1862_v56  ;;  %v1738_v63 = vld [vmem:[%s16564_s9 + $0x2980] sm:$0xff]  ;;  %9743 = vmatprep.subr.bf16.mxu0 %v14959_v8  ;;  %v15086_v40 = vcombine.low %v1858_v51, %v1862_v56  ;;  %v9484_v34 = vpop.f32.mrb[6].mxu1  ;;  %v17083_v38 = vadd.f32 %v9482_v29, %v9442_v27  ;;  %v13641_v51 = vcombine.high %v411_v45, %v415_v20  ;;  %v423_v8 = vld [vmem:[%s16564_s9 + $0x68] sm:$0xff] }
 0x220   : > { %v1742_v3 = vld [vmem:[%s16564_s9 + $0x29a0] sm:$0xff]  ;;  %9744 = vmatpush1.bf16.msra.mxu0 %v14958_v13  ;;  %v9485_v7 = vpop.f32.mrb[7].mxu1 }
 0x221   : > { %v1866_v4 = vld [vmem:[%s16564_s9 + $0x2d80] sm:$0xff]  ;;  %v14967_v14 = vcombine.high %v1738_v63, %v1742_v3  ;;  %9784 = vmatprep.subr.bf16.mxu1 %v15087_v62  ;;  %v14966_v32 = vcombine.low %v1738_v63, %v1742_v3  ;;  %v13640_v3 = vcombine.low %v411_v45, %v415_v20 }
 0x222   : > { %v1870_v10 = vld [vmem:[%s16564_s9 + $0x2da0] sm:$0xff]  ;;  %9785 = vmatpush1.bf16.msra.mxu1 %v15086_v40 }
 0x223   : > { %v15095_v15 = vcombine.high %v1866_v4, %v1870_v10  ;;  %v1746_v43 = vld [vmem:[%s16564_s9 + $0x29c0] sm:$0xff]  ;;  %9745 = vmatprep.subr.bf16.mxu0 %v14967_v14  ;;  %v15094_v1 = vcombine.low %v1866_v4, %v1870_v10  ;;  %v13649_v10 = vcombine.high %v419_v61, %v423_v8  ;;  %v427_v14 = vld [vmem:[%s16564_s9 + $0x88] sm:$0xff] }
 0x224   : > { %v1750_v18 = vld [vmem:[%s16564_s9 + $0x29e0] sm:$0xff]  ;;  %9746 = vmatpush1.bf16.msra.mxu0 %v14966_v32  ;;  %v13657_v22 = vcombine.high %v427_v14, %v431_v52  ;;  %v13656_v29 = vcombine.low %v427_v14, %v431_v52  ;;  %v467_v52 = vld [vmem:[%s16564_s9 + $0x1c8] sm:$0xff] }
 0x225   : > { %v1874_v54 = vld [vmem:[%s16564_s9 + $0x2dc0] sm:$0xff]  ;;  %v14975_v36 = vcombine.high %v1746_v43, %v1750_v18  ;;  %9786 = vmatprep.subr.bf16.mxu1 %v15095_v15  ;;  %v14974_v46 = vcombine.low %v1746_v43, %v1750_v18  ;;  %v13648_v43 = vcombine.low %v419_v61, %v423_v8 }
 0x226   : > { %v1878_v26 = vld [vmem:[%s16564_s9 + $0x2de0] sm:$0xff]  ;;  %9787 = vmatpush1.bf16.msra.mxu1 %v15094_v1  ;;  %v443_v1 = vld [vmem:[%s16564_s9 + $0x108] sm:$0xff] }
 0x227   : > { %v15103_v39 = vcombine.high %v1874_v54, %v1878_v26  ;;  %v1754_v42 = vld [vmem:[%s16564_s9 + $0x2a00] sm:$0xff]  ;;  %9747 = vmatprep.subr.bf16.mxu0 %v14975_v36  ;;  %v15102_v47 = vcombine.low %v1874_v54, %v1878_v26  ;;  %v435_v54 = vld [vmem:[%s16564_s9 + $0xc8] sm:$0xff] }
 0x228   : > { %v1758_v44 = vld [vmem:[%s16564_s9 + $0x2a20] sm:$0xff]  ;;  %9748 = vmatpush1.bf16.msra.mxu0 %v14974_v46  ;;  %v439_v26 = vld [vmem:[%s16564_s9 + $0xe8] sm:$0xff] }
 0x229   : > { %v14983_v49 = vcombine.high %v1754_v42, %v1758_v44  ;;  %9788 = vmatprep.subr.bf16.mxu1 %v15103_v39  ;;  %v1762_v56 = vld [vmem:[%s16564_s9 + $0x2a40] sm:$0xff]  ;;  %v14982_v62 = vcombine.low %v1754_v42, %v1758_v44  ;;  %v13665_v32 = vcombine.high %v435_v54, %v439_v26  ;;  %v447_v36 = vld [vmem:[%s16564_s9 + $0x128] sm:$0xff]  ;;  %v13664_v39 = vcombine.low %v435_v54, %v439_v26 }
 0x22a   : > { %v1766_v58 = vld [vmem:[%s16564_s9 + $0x2a60] sm:$0xff]  ;;  %9789 = vmatpush1.bf16.msra.mxu1 %v15102_v47  ;;  %v13673_v44 = vcombine.high %v443_v1, %v447_v36  ;;  %v451_v46 = vld [vmem:[%s16564_s9 + $0x148] sm:$0xff] }
 0x22b   : > { %v15651_v63 = vld [vmem:[%s16557_s27 + $0x58] ss:$0 sps:$4 sm:$0xff]   ;;  %9749 = vmatprep.subr.bf16.mxu0 %v14983_v49  ;;  %v14991_v4 = vcombine.high %v1762_v56, %v1766_v58  ;;  %9815 = vmatprep.subr.bf16.mxu1 %v13641_v51  ;;  %v14990_v15 = vcombine.low %v1762_v56, %v1766_v58  ;;  %v455_v47 = vld [vmem:[%s16564_s9 + $0x168] sm:$0xff]  ;;  %v13672_v51 = vcombine.low %v443_v1, %v447_v36 }
 0x22c   : > { %v1770_v13 = vld [vmem:[%s16564_s9 + $0x2a80] sm:$0xff]  ;;  %9750 = vmatpush1.bf16.msra.mxu0 %v14982_v62  ;;  %v13681_v58 = vcombine.high %v451_v46, %v455_v47  ;;  %v459_v62 = vld [vmem:[%s16564_s9 + $0x188] sm:$0xff]  ;;  %v17127_v36 = vcombine.low %v17045_v12, %v17045_v12 }
 0x22d   : > { %v1774_v40 = vld [vmem:[%s16564_s9 + $0x2aa0] sm:$0xff]  ;;  %9807 = vmatmul.mubr.bf16.vlgmr.msra.gmra.mrb[20].mxu1 %v15651_v63  ;;  %9751 = vmatprep.subr.bf16.mxu0 %v14991_v4  ;;  %v463_v63 = vld [vmem:[%s16564_s9 + $0x1a8] sm:$0xff]  ;;  %v13680_v4 = vcombine.low %v451_v46, %v455_v47 }
 0x22e   : > { %9816 = vmatpush1.bf16.msra.mxu1 %v13640_v3  ;;  %v14999_v18 = vcombine.high %v1770_v13, %v1774_v40  ;;  %v1778_v24 = vld [vmem:[%s16564_s9 + $0x2ac0] sm:$0xff]  ;;  %9847 = vmatprep.mubr.bf16.mxu1 %v16622_v59  ;;  %v14998_v27 = vcombine.low %v1770_v13, %v1774_v40  ;;  %v13689_v13 = vcombine.high %v459_v62, %v463_v63  ;;  %v543_v54 = vld [vmem:[%s16564_s9 + $0x428] sm:$0xff] }
 0x22f   : > { %9817 = vmatprep.subr.bf16.mxu1 %v13649_v10  ;;  %v1782_v25 = vld [vmem:[%s16564_s9 + $0x2ae0] sm:$0xff]  ;;  %v475_v26 = vld [vmem:[%s16564_s9 + $0x208] sm:$0xff] }
 0x230   : > { %9752 = vmatpush1.bf16.msra.mxu0 %v14990_v15  ;;  %v15007_v31 = vcombine.high %v1778_v24, %v1782_v25  ;;  %v1786_v34 = vld [vmem:[%s16564_s9 + $0x2b00] sm:$0xff]  ;;  %v15006_v7 = vcombine.low %v1778_v24, %v1782_v25  ;;  %v471_v15 = vld [vmem:[%s16564_s9 + $0x1e8] sm:$0xff] }
 0x231   : > { %9753 = vmatprep.subr.bf16.mxu0 %v14999_v18  ;;  %v1790_v35 = vld [vmem:[%s16564_s9 + $0x2b20] sm:$0xff]  ;;  %v13688_v18 = vcombine.low %v459_v62, %v463_v63  ;;  %v13697_v24 = vcombine.high %v467_v52, %v471_v15  ;;  %v539_v25 = vld [vmem:[%s16564_s9 + $0x408] sm:$0xff] }
 0x232   : > { %9818 = vmatpush1.bf16.msra.mxu1 %v13648_v43  ;;  %v15015_v42 = vcombine.high %v1786_v34, %v1790_v35  ;;  %v1794_v45 = vld [vmem:[%s16564_s9 + $0x2b40] sm:$0xff]  ;;  %v15014_v49 = vcombine.low %v1786_v34, %v1790_v35  ;;  %v547_v35 = vld [vmem:[%s16564_s9 + $0x448] sm:$0xff] }
 0x233   : > { %9819 = vmatprep.subr.bf16.mxu1 %v13657_v22  ;;  %v1798_v20 = vld [vmem:[%s16564_s9 + $0x2b60] sm:$0xff]  ;;  %v551_v1 = vld [vmem:[%s16564_s9 + $0x468] sm:$0xff] }
 0x234   : > { %9754 = vmatpush1.bf16.msra.mxu0 %v14998_v27  ;;  %v15023_v56 = vcombine.high %v1794_v45, %v1798_v20  ;;  %v1802_v61 = vld [vmem:[%s16564_s9 + $0x2b80] sm:$0xff]  ;;  %v15022_v3 = vcombine.low %v1794_v45, %v1798_v20  ;;  %v479_v27 = vld [vmem:[%s16564_s9 + $0x228] sm:$0xff]  ;;  %v13777_v45 = vcombine.high %v547_v35, %v551_v1 }
 0x235   : > { %9755 = vmatprep.subr.bf16.mxu0 %v15007_v31  ;;  %v1806_v8 = vld [vmem:[%s16564_s9 + $0x2ba0] sm:$0xff]  ;;  %v13696_v31 = vcombine.low %v467_v52, %v471_v15  ;;  %v13705_v34 = vcombine.high %v475_v26, %v479_v27  ;;  %v555_v46 = vld [vmem:[%s16564_s9 + $0x488] sm:$0xff] }
 0x236   : > { %9820 = vmatpush1.bf16.msra.mxu1 %v13656_v29  ;;  %v15031_v10 = vcombine.high %v1802_v61, %v1806_v8  ;;  %v1810_v40 = vld [vmem:[%s16564_s9 + $0x2bc0] sm:$0xff]  ;;  %v15030_v43 = vcombine.low %v1802_v61, %v1806_v8  ;;  %v559_v47 = vld [vmem:[%s16564_s9 + $0x4a8] sm:$0xff] }
 0x237   : > { %9821 = vmatprep.subr.bf16.mxu1 %v13665_v32  ;;  %v1814_v14 = vld [vmem:[%s16564_s9 + $0x2be0] sm:$0xff]  ;;  %v13769_v32 = vcombine.high %v539_v25, %v543_v54  ;;  %v491_v12 = vld [vmem:[%s16564_s9 + $0x288] sm:$0xff] }
 0x238   : > { %9756 = vmatpush1.bf16.msra.mxu0 %v15006_v7  ;;  %v15039_v22 = vcombine.high %v1810_v40, %v1814_v14  ;;  %v15038_v29 = vcombine.low %v1810_v40, %v1814_v14  ;;  %v483_v7 = vld [vmem:[%s16564_s9 + $0x248] sm:$0xff] }
 0x239   : > { %9757 = vmatprep.subr.bf16.mxu0 %v15015_v42  ;;  %v13768_v42 = vcombine.low %v539_v25, %v543_v54  ;;  %v563_v8 = vld [vmem:[%s16564_s9 + $0x4c8] sm:$0xff] }
 0x23a   : > { %9822 = vmatpush1.bf16.msra.mxu1 %v13664_v39  ;;  %v487_v39 = vld [vmem:[%s16564_s9 + $0x268] sm:$0xff] }
 0x23b   : > { %9823 = vmatprep.subr.bf16.mxu1 %v13673_v44  ;;  %v13704_v44 = vcombine.low %v475_v26, %v479_v27  ;;  %v13713_v20 = vcombine.high %v483_v7, %v487_v39  ;;  %v567_v62 = vld [vmem:[%s16564_s9 + $0x4e8] sm:$0xff] }
 0x23c   : > { %9758 = vmatpush1.bf16.msra.mxu0 %v15014_v49  ;;  %v495_v49 = vld [vmem:[%s16564_s9 + $0x2a8] sm:$0xff] }
 0x23d   : > { %9759 = vmatprep.subr.bf16.mxu0 %v15023_v56  ;;  %v13712_v56 = vcombine.low %v483_v7, %v487_v39  ;;  %v13721_v61 = vcombine.high %v491_v12, %v495_v49  ;;  %v499_v63 = vld [vmem:[%s16564_s9 + $0x2c8] sm:$0xff] }
 0x23e   : > { %9824 = vmatpush1.bf16.msra.mxu1 %v13672_v51  ;;  %v13776_v51 = vcombine.low %v547_v35, %v551_v1  ;;  %v571_v14 = vld [vmem:[%s16564_s9 + $0x508] sm:$0xff] }
 0x23f   : > { %9825 = vmatprep.subr.bf16.mxu1 %v13681_v58  ;;  %v13785_v58 = vcombine.high %v555_v46, %v559_v47  ;;  %v575_v52 = vld [vmem:[%s16564_s9 + $0x528] sm:$0xff] }
 0x240   : > { %9760 = vmatpush1.bf16.msra.mxu0 %v15022_v3  ;;  %v503_v3 = vld [vmem:[%s16564_s9 + $0x2e8] sm:$0xff] }
 0x241   : > { %9761 = vmatprep.subr.bf16.mxu0 %v15031_v10  ;;  %v13720_v10 = vcombine.low %v491_v12, %v495_v49  ;;  %v13729_v40 = vcombine.high %v499_v63, %v503_v3  ;;  %v507_v15 = vld [vmem:[%s16564_s9 + $0x308] sm:$0xff] }
 0x242   : > { %9826 = vmatpush1.bf16.msra.mxu1 %v13680_v4  ;;  %v13784_v4 = vcombine.low %v555_v46, %v559_v47  ;;  %v579_v54 = vld [vmem:[%s16564_s9 + $0x548] sm:$0xff] }
 0x243   : > { %9827 = vmatprep.subr.bf16.mxu1 %v13689_v13  ;;  %v13793_v13 = vcombine.high %v563_v8, %v567_v62  ;;  %v583_v26 = vld [vmem:[%s16564_s9 + $0x568] sm:$0xff] }
 0x244   : > { %9762 = vmatpush1.bf16.msra.mxu0 %v15030_v43  ;;  %v511_v43 = vld [vmem:[%s16564_s9 + $0x328] sm:$0xff] }
 0x245   : > { %9763 = vmatprep.subr.bf16.mxu0 %v15039_v22  ;;  %v13728_v22 = vcombine.low %v499_v63, %v503_v3  ;;  %v13737_v25 = vcombine.high %v507_v15, %v511_v43  ;;  %v515_v27 = vld [vmem:[%s16564_s9 + $0x348] sm:$0xff] }
 0x246   : > { %9828 = vmatpush1.bf16.msra.mxu1 %v13688_v18  ;;  %v13792_v18 = vcombine.low %v563_v8, %v567_v62  ;;  %v587_v1 = vld [vmem:[%s16564_s9 + $0x588] sm:$0xff] }
 0x247   : > { %9829 = vmatprep.subr.bf16.mxu1 %v13697_v24  ;;  %v13801_v24 = vcombine.high %v571_v14, %v575_v52  ;;  %v591_v7 = vld [vmem:[%s16564_s9 + $0x5a8] sm:$0xff] }
 0x248   : > { %9764 = vmatpush1.bf16.msra.mxu0 %v15038_v29  ;;  %v519_v29 = vld [vmem:[%s16564_s9 + $0x368] sm:$0xff] }
 0x249   : > { %9856 = vmatprep.subr.bf16.mxu0 %v13769_v32  ;;  %v13736_v32 = vcombine.low %v507_v15, %v511_v43  ;;  %v13745_v35 = vcombine.high %v515_v27, %v519_v29  ;;  %v523_v39 = vld [vmem:[%s16564_s9 + $0x388] sm:$0xff] }
 0x24a   : > { %9830 = vmatpush1.bf16.msra.mxu1 %v13696_v31  ;;  %v13800_v31 = vcombine.low %v571_v14, %v575_v52  ;;  %v595_v12 = vld [vmem:[%s16564_s9 + $0x5c8] sm:$0xff] }
 0x24b   : > { %9831 = vmatprep.subr.bf16.mxu1 %v13705_v34  ;;  %9766 = vmatmul.mubr.bf16.vlgmr.msra.gmra.mrb[20].mxu0 %v17127_v36  ;;  %v13809_v34 = vcombine.high %v579_v54, %v583_v26  ;;  %v599_v49 = vld [vmem:[%s16564_s9 + $0x5e8] sm:$0xff] }
 0x24c   : > { %9857 = vmatpush1.bf16.msra.mxu0 %v13768_v42  ;;  %9888 = vmatprep.mubr.bf16.mxu0 %v16626_v60  ;;  %v527_v42 = vld [vmem:[%s16564_s9 + $0x3a8] sm:$0xff]  ;;  %v13825_v14 = vcombine.high %v595_v12, %v599_v49 }
 0x24d   : > { %9858 = vmatprep.subr.bf16.mxu0 %v13777_v45  ;;  %v13744_v45 = vcombine.low %v515_v27, %v519_v29  ;;  %v13753_v47 = vcombine.high %v523_v39, %v527_v42  ;;  %v535_v8 = vld [vmem:[%s16564_s9 + $0x3e8] sm:$0xff] }
 0x24e   : > { %9832 = vmatpush1.bf16.msra.mxu1 %v13704_v44  ;;  %v13808_v44 = vcombine.low %v579_v54, %v583_v26  ;;  %v603_v43 = vld [vmem:[%s16564_s9 + $0x608] sm:$0xff] }
 0x24f   : > { %9833 = vmatprep.subr.bf16.mxu1 %v13713_v20  ;;  %v13817_v20 = vcombine.high %v587_v1, %v591_v7  ;;  %v611_v29 = vld [vmem:[%s16564_s9 + $0x648] sm:$0xff] }
 0x250   : > { %9859 = vmatpush1.bf16.msra.mxu0 %v13776_v51 }
 0x251   : > { %9860 = vmatprep.subr.bf16.mxu0 %v13785_v58 }
 0x252   : > { %9834 = vmatpush1.bf16.msra.mxu1 %v13712_v56 }
 0x253   : > { %9835 = vmatprep.subr.bf16.mxu1 %v13721_v61  ;;  %v531_v61 = vld [vmem:[%s16564_s9 + $0x3c8] sm:$0xff] }
 0x254   : > { %9861 = vmatpush1.bf16.msra.mxu0 %v13784_v4  ;;  %v13816_v4 = vcombine.low %v587_v1, %v591_v7  ;;  %v13761_v15 = vcombine.high %v531_v61, %v535_v8  ;;  %v13760_v54 = vcombine.low %v531_v61, %v535_v8  ;;  %v695_v61 = vld [vmem:[%s16564_s9 + $0x8e8] sm:$0xff] }
 0x255   : > { %9862 = vmatprep.subr.bf16.mxu0 %v13793_v13 }
 0x256   : > { %9836 = vmatpush1.bf16.msra.mxu1 %v13720_v10 }
 0x257   : > { %9837 = vmatprep.subr.bf16.mxu1 %v13729_v40 }
 0x258   : > { %9863 = vmatpush1.bf16.msra.mxu0 %v13792_v18  ;;  %v607_v18 = vld [vmem:[%s16564_s9 + $0x628] sm:$0xff] }
 0x259   : > { %9864 = vmatprep.subr.bf16.mxu0 %v13801_v24  ;;  %v671_v24 = vld [vmem:[%s16564_s9 + $0x828] sm:$0xff]  ;;  %v13833_v26 = vcombine.high %v603_v43, %v607_v18 }
 0x25a   : > { %9838 = vmatpush1.bf16.msra.mxu1 %v13728_v22  ;;  %v667_v22 = vld [vmem:[%s16564_s9 + $0x808] sm:$0xff] }
 0x25b   : > { %9839 = vmatprep.subr.bf16.mxu1 %v13737_v25  ;;  %v13824_v25 = vcombine.low %v595_v12, %v599_v49  ;;  %v13897_v27 = vcombine.high %v667_v22, %v671_v24  ;;  %v13896_v1 = vcombine.low %v667_v22, %v671_v24  ;;  %v647_v22 = vld [vmem:[%s16564_s9 + $0x768] sm:$0xff] }
 0x25c   : > { %9865 = vmatpush1.bf16.msra.mxu0 %v13800_v31  ;;  %v9521_v46 = vpop.f32.mrb[8].mxu0  ;;  %v615_v31 = vld [vmem:[%s16564_s9 + $0x668] sm:$0xff] }
 0x25d   : > { %9866 = vmatprep.subr.bf16.mxu0 %v13809_v34  ;;  %v9522_v51 = vadd.f32 %v9521_v46, %v17081_v33  ;;  %v9523_v58 = vpop.f32.mrb[9].mxu0  ;;  %v13752_v33 = vcombine.low %v523_v39, %v527_v42  ;;  %v679_v34 = vld [vmem:[%s16564_s9 + $0x868] sm:$0xff]  ;;  %v13841_v7 = vcombine.high %v611_v29, %v615_v31  ;;  %v13840_v46 = vcombine.low %v611_v29, %v615_v31 }
 0x25e   : > { %9840 = vmatpush1.bf16.msra.mxu1 %v13736_v32  ;;  %v9562_v56 = vpop.f32.mrb[8].mxu1  ;;  %v9524_v62 = vadd.f32 %v9523_v58, %v17083_v38  ;;  %v9525_v3 = vpop.f32.mrb[10].mxu0  ;;  %v675_v32 = vld [vmem:[%s16564_s9 + $0x848] sm:$0xff] }
 0x25f   : > { %9841 = vmatprep.subr.bf16.mxu1 %v13745_v35  ;;  %v9564_v63 = vpop.f32.mrb[9].mxu1  ;;  %v17159_v10 = vadd.f32 %v9562_v56, %v9522_v51  ;;  %v9526_v40 = vpop.f32.mrb[11].mxu0  ;;  %v13832_v35 = vcombine.low %v603_v43, %v607_v18  ;;  %v13905_v39 = vcombine.high %v675_v32, %v679_v34  ;;  %v619_v42 = vld [vmem:[%s16564_s9 + $0x688] sm:$0xff] }
 0x260   : > { %9867 = vmatpush1.bf16.msra.mxu0 %v13808_v44  ;;  %v9566_v13 = vpop.f32.mrb[10].mxu1  ;;  %v17161_v52 = vadd.f32 %v9564_v63, %v9524_v62  ;;  %v623_v44 = vld [vmem:[%s16564_s9 + $0x6a8] sm:$0xff] }
 0x261   : > { %9868 = vmatprep.subr.bf16.mxu0 %v13817_v20  ;;  %v9567_v38 = vpop.f32.mrb[11].mxu1  ;;  %v687_v20 = vld [vmem:[%s16564_s9 + $0x8a8] sm:$0xff]  ;;  %v13849_v12 = vcombine.high %v619_v42, %v623_v44  ;;  %v13848_v8 = vcombine.low %v619_v42, %v623_v44 }
 0x262   : > { %9842 = vmatpush1.bf16.msra.mxu1 %v13744_v45  ;;  %v683_v45 = vld [vmem:[%s16564_s9 + $0x888] sm:$0xff] }
 0x263   : > { %9843 = vmatprep.subr.bf16.mxu1 %v13753_v47  ;;  %v13904_v47 = vcombine.low %v675_v32, %v679_v34  ;;  %v13913_v49 = vcombine.high %v683_v45, %v687_v20  ;;  %v627_v51 = vld [vmem:[%s16564_s9 + $0x6c8] sm:$0xff]  ;;  %v13912_v62 = vcombine.low %v683_v45, %v687_v20 }
 0x264   : > { %9869 = vmatpush1.bf16.msra.mxu0 %v13816_v4  ;;  %v631_v56 = vld [vmem:[%s16564_s9 + $0x6e8] sm:$0xff] }
 0x265   : > { %9870 = vmatprep.subr.bf16.mxu0 %v13825_v14  ;;  %v691_v58 = vld [vmem:[%s16564_s9 + $0x8c8] sm:$0xff]  ;;  %v13857_v63 = vcombine.high %v627_v51, %v631_v56  ;;  %v13856_v14 = vcombine.low %v627_v51, %v631_v56 }
 0x266   : > { %9844 = vmatpush1.bf16.msra.mxu1 %v13752_v33  ;;  %v13921_v3 = vcombine.high %v691_v58, %v695_v61  ;;  %v635_v4 = vld [vmem:[%s16564_s9 + $0x708] sm:$0xff]  ;;  %v13920_v38 = vcombine.low %v691_v58, %v695_v61 }
 0x267   : > { %9845 = vmatprep.subr.bf16.mxu1 %v13761_v15  ;;  %v639_v13 = vld [vmem:[%s16564_s9 + $0x728] sm:$0xff] }
 0x268   : > { %9871 = vmatpush1.bf16.msra.mxu0 %v13824_v25  ;;  %v699_v40 = vld [vmem:[%s16564_s9 + $0x908] sm:$0xff]  ;;  %v13865_v15 = vcombine.high %v635_v4, %v639_v13 }
 0x269   : > { %9872 = vmatprep.subr.bf16.mxu0 %v13833_v26  ;;  %v703_v33 = vld [vmem:[%s16564_s9 + $0x928] sm:$0xff] }
 0x26a   : > { %9846 = vmatpush1.bf16.msra.mxu1 %v13760_v54  ;;  %v13929_v43 = vcombine.high %v699_v40, %v703_v33  ;;  %v643_v18 = vld [vmem:[%s16564_s9 + $0x748] sm:$0xff]  ;;  %v13864_v54 = vcombine.low %v635_v4, %v639_v13  ;;  %v13928_v26 = vcombine.low %v699_v40, %v703_v33 }
 0x26b   : > { %9897 = vmatprep.subr.bf16.mxu1 %v13897_v27  ;;  %v707_v24 = vld [vmem:[%s16564_s9 + $0x948] sm:$0xff]  ;;  %v13873_v27 = vcombine.high %v643_v18, %v647_v22 }
 0x26c   : > { %9873 = vmatpush1.bf16.msra.mxu0 %v13832_v35  ;;  %v711_v25 = vld [vmem:[%s16564_s9 + $0x968] sm:$0xff] }
 0x26d   : > { %9848 = vmatmul.mubr.bf16.vlgmr.msra.gmra.mrb[24].mxu1 %v16672_v17  ;;  %9874 = vmatprep.subr.bf16.mxu0 %v13841_v7  ;;  %v13937_v29 = vcombine.high %v707_v24, %v711_v25  ;;  %v651_v31 = vld [vmem:[%s16564_s9 + $0x788] sm:$0xff]  ;;  %v13936_v7 = vcombine.low %v707_v24, %v711_v25 }
 0x26e   : > { %9898 = vmatpush1.bf16.msra.mxu1 %v13896_v1  ;;  %9929 = vmatprep.mubr.bf16.mxu1 %v16690_v28  ;;  %v655_v32 = vld [vmem:[%s16564_s9 + $0x7a8] sm:$0xff]  ;;  %v13872_v1 = vcombine.low %v643_v18, %v647_v22 }
 0x26f   : > { %9899 = vmatprep.subr.bf16.mxu1 %v13905_v39  ;;  %v715_v34 = vld [vmem:[%s16564_s9 + $0x988] sm:$0xff]  ;;  %v13881_v39 = vcombine.high %v651_v31, %v655_v32 }
 0x270   : > { %9875 = vmatpush1.bf16.msra.mxu0 %v13840_v46  ;;  %v719_v35 = vld [vmem:[%s16564_s9 + $0x9a8] sm:$0xff] }
 0x271   : > { %9876 = vmatprep.subr.bf16.mxu0 %v13849_v12  ;;  %v13945_v42 = vcombine.high %v715_v34, %v719_v35  ;;  %v659_v44 = vld [vmem:[%s16564_s9 + $0x7c8] sm:$0xff]  ;;  %v13944_v12 = vcombine.low %v715_v34, %v719_v35 }
 0x272   : > { %9900 = vmatpush1.bf16.msra.mxu1 %v13904_v47  ;;  %v663_v45 = vld [vmem:[%s16564_s9 + $0x7e8] sm:$0xff]  ;;  %v13880_v47 = vcombine.low %v651_v31, %v655_v32 }
 0x273   : > { %9901 = vmatprep.subr.bf16.mxu1 %v13913_v49  ;;  %v723_v20 = vld [vmem:[%s16564_s9 + $0x9c8] sm:$0xff]  ;;  %v13889_v49 = vcombine.high %v659_v44, %v663_v45 }
 0x274   : > { %9877 = vmatpush1.bf16.msra.mxu0 %v13848_v8  ;;  %v727_v46 = vld [vmem:[%s16564_s9 + $0x9e8] sm:$0xff] }
 0x275   : > { %9878 = vmatprep.subr.bf16.mxu0 %v13857_v63  ;;  %v13953_v51 = vcombine.high %v723_v20, %v727_v46  ;;  %v795_v56 = vld [vmem:[%s16564_s9 + $0xc08] sm:$0xff]  ;;  %v13952_v63 = vcombine.low %v723_v20, %v727_v46 }
 0x276   : > { %9902 = vmatpush1.bf16.msra.mxu1 %v13912_v62  ;;  %v799_v58 = vld [vmem:[%s16564_s9 + $0xc28] sm:$0xff]  ;;  %v13888_v62 = vcombine.low %v659_v44, %v663_v45 }
 0x277   : > { %9903 = vmatprep.subr.bf16.mxu1 %v13921_v3  ;;  %v731_v61 = vld [vmem:[%s16564_s9 + $0xa08] sm:$0xff]  ;;  %v14025_v3 = vcombine.high %v795_v56, %v799_v58 }
 0x278   : > { %9879 = vmatpush1.bf16.msra.mxu0 %v13856_v14  ;;  %v735_v8 = vld [vmem:[%s16564_s9 + $0xa28] sm:$0xff] }
 0x279   : > { %9880 = vmatprep.subr.bf16.mxu0 %v13865_v15  ;;  %v13961_v4 = vcombine.high %v731_v61, %v735_v8  ;;  %v803_v13 = vld [vmem:[%s16564_s9 + $0xc48] sm:$0xff]  ;;  %v13960_v15 = vcombine.low %v731_v61, %v735_v8 }
 0x27a   : > { %9904 = vmatpush1.bf16.msra.mxu1 %v13920_v38  ;;  %v807_v40 = vld [vmem:[%s16564_s9 + $0xc68] sm:$0xff]  ;;  %v14024_v38 = vcombine.low %v795_v56, %v799_v58 }
 0x27b   : > { %9905 = vmatprep.subr.bf16.mxu1 %v13929_v43  ;;  %v739_v33 = vld [vmem:[%s16564_s9 + $0xa48] sm:$0xff]  ;;  %v14033_v43 = vcombine.high %v803_v13, %v807_v40 }
 0x27c   : > { %9881 = vmatpush1.bf16.msra.mxu0 %v13864_v54  ;;  %v743_v14 = vld [vmem:[%s16564_s9 + $0xa68] sm:$0xff] }
 0x27d   : > { %9882 = vmatprep.subr.bf16.mxu0 %v13873_v27  ;;  %v13969_v18 = vcombine.high %v739_v33, %v743_v14  ;;  %v811_v22 = vld [vmem:[%s16564_s9 + $0xc88] sm:$0xff]  ;;  %v13968_v27 = vcombine.low %v739_v33, %v743_v14 }
 0x27e   : > { %9906 = vmatpush1.bf16.msra.mxu1 %v13928_v26  ;;  %v815_v24 = vld [vmem:[%s16564_s9 + $0xca8] sm:$0xff]  ;;  %v14032_v26 = vcombine.low %v803_v13, %v807_v40 }
 0x27f   : > { %9907 = vmatprep.subr.bf16.mxu1 %v13937_v29  ;;  %v747_v25 = vld [vmem:[%s16564_s9 + $0xa88] sm:$0xff]  ;;  %v14041_v29 = vcombine.high %v811_v22, %v815_v24 }
 0x280   : > { %9883 = vmatpush1.bf16.msra.mxu0 %v13872_v1  ;;  %v751_v54 = vld [vmem:[%s16564_s9 + $0xaa8] sm:$0xff] }
 0x281   : > { %9884 = vmatprep.subr.bf16.mxu0 %v13881_v39  ;;  %v13977_v31 = vcombine.high %v747_v25, %v751_v54  ;;  %v819_v32 = vld [vmem:[%s16564_s9 + $0xcc8] sm:$0xff]  ;;  %v13976_v39 = vcombine.low %v747_v25, %v751_v54 }
 0x282   : > { %9908 = vmatpush1.bf16.msra.mxu1 %v13936_v7  ;;  %v823_v34 = vld [vmem:[%s16564_s9 + $0xce8] sm:$0xff]  ;;  %v14040_v7 = vcombine.low %v811_v22, %v815_v24 }
 0x283   : > { %9909 = vmatprep.subr.bf16.mxu1 %v13945_v42  ;;  %v755_v35 = vld [vmem:[%s16564_s9 + $0xac8] sm:$0xff]  ;;  %v14049_v42 = vcombine.high %v819_v32, %v823_v34 }
 0x284   : > { %9885 = vmatpush1.bf16.msra.mxu0 %v13880_v47  ;;  %v759_v1 = vld [vmem:[%s16564_s9 + $0xae8] sm:$0xff] }
 0x285   : > { %9886 = vmatprep.subr.bf16.mxu0 %v13889_v49  ;;  %v13985_v44 = vcombine.high %v755_v35, %v759_v1  ;;  %v827_v45 = vld [vmem:[%s16564_s9 + $0xd08] sm:$0xff]  ;;  %v13984_v49 = vcombine.low %v755_v35, %v759_v1 }
 0x286   : > { %9910 = vmatpush1.bf16.msra.mxu1 %v13944_v12  ;;  %v831_v20 = vld [vmem:[%s16564_s9 + $0xd28] sm:$0xff]  ;;  %v14048_v12 = vcombine.low %v819_v32, %v823_v34 }
 0x287   : > { %9911 = vmatprep.subr.bf16.mxu1 %v13953_v51  ;;  %v763_v46 = vld [vmem:[%s16564_s9 + $0xb08] sm:$0xff]  ;;  %v14057_v51 = vcombine.high %v827_v45, %v831_v20 }
 0x288   : > { %9887 = vmatpush1.bf16.msra.mxu0 %v13888_v62  ;;  %v767_v47 = vld [vmem:[%s16564_s9 + $0xb28] sm:$0xff] }
 0x289   : > { %9938 = vmatprep.subr.bf16.mxu0 %v14025_v3  ;;  %v13993_v56 = vcombine.high %v763_v46, %v767_v47  ;;  %v835_v58 = vld [vmem:[%s16564_s9 + $0xd48] sm:$0xff]  ;;  %v13992_v3 = vcombine.low %v763_v46, %v767_v47 }
 0x28a   : > { %9912 = vmatpush1.bf16.msra.mxu1 %v13952_v63  ;;  %v839_v61 = vld [vmem:[%s16564_s9 + $0xd68] sm:$0xff]  ;;  %v14056_v63 = vcombine.low %v827_v45, %v831_v20 }
 0x28b   : > { %9913 = vmatprep.subr.bf16.mxu1 %v13961_v4  ;;  %9889 = vmatmul.mubr.bf16.vlgmr.msra.gmra.mrb[24].mxu0 %v16681_v21  ;;  %v771_v8 = vld [vmem:[%s16564_s9 + $0xb48] sm:$0xff]  ;;  %v14065_v4 = vcombine.high %v835_v58, %v839_v61 }
 0x28c   : > { %9939 = vmatpush1.bf16.msra.mxu0 %v14024_v38  ;;  %9970 = vmatprep.mubr.bf16.mxu0 %v16697_v30  ;;  %v775_v62 = vld [vmem:[%s16564_s9 + $0xb68] sm:$0xff] }
 0x28d   : > { %9940 = vmatprep.subr.bf16.mxu0 %v14033_v43  ;;  %v14001_v13 = vcombine.high %v771_v8, %v775_v62  ;;  %v843_v40 = vld [vmem:[%s16564_s9 + $0xd88] sm:$0xff]  ;;  %v14000_v43 = vcombine.low %v771_v8, %v775_v62 }
 0x28e   : > { %9914 = vmatpush1.bf16.msra.mxu1 %v13960_v15  ;;  %v847_v33 = vld [vmem:[%s16564_s9 + $0xda8] sm:$0xff]  ;;  %v14064_v15 = vcombine.low %v835_v58, %v839_v61 }
 0x28f   : > { %9915 = vmatprep.subr.bf16.mxu1 %v13969_v18  ;;  %v779_v14 = vld [vmem:[%s16564_s9 + $0xb88] sm:$0xff]  ;;  %v14073_v18 = vcombine.high %v843_v40, %v847_v33 }
 0x290   : > { %9941 = vmatpush1.bf16.msra.mxu0 %v14032_v26  ;;  %v783_v38 = vld [vmem:[%s16564_s9 + $0xba8] sm:$0xff] }
 0x291   : > { %9942 = vmatprep.subr.bf16.mxu0 %v14041_v29  ;;  %v14009_v24 = vcombine.high %v779_v14, %v783_v38  ;;  %v851_v25 = vld [vmem:[%s16564_s9 + $0xdc8] sm:$0xff] }
 0x292   : > { %9916 = vmatpush1.bf16.msra.mxu1 %v13968_v27  ;;  %v855_v54 = vld [vmem:[%s16564_s9 + $0xde8] sm:$0xff] }
 0x293   : > { %9917 = vmatprep.subr.bf16.mxu1 %v13977_v31  ;;  %v787_v31 = vld [vmem:[%s16564_s9 + $0xbc8] sm:$0xff]  ;;  %v14081_v45 = vcombine.high %v851_v25, %v855_v54 }
 0x294   : > { %9943 = vmatpush1.bf16.msra.mxu0 %v14040_v7  ;;  %v791_v32 = vld [vmem:[%s16564_s9 + $0xbe8] sm:$0xff]  ;;  %v14072_v7 = vcombine.low %v843_v40, %v847_v33 }
 0x295   : > { %9944 = vmatprep.subr.bf16.mxu0 %v14049_v42  ;;  %v14017_v46 = vcombine.high %v787_v31, %v791_v32  ;;  %v859_v47 = vld [vmem:[%s16564_s9 + $0xe08] sm:$0xff]  ;;  %v14016_v58 = vcombine.low %v787_v31, %v791_v32 }
 0x296   : > { %9918 = vmatpush1.bf16.msra.mxu1 %v13976_v39  ;;  %v867_v62 = vld [vmem:[%s16564_s9 + $0xe48] sm:$0xff] }
 0x297   : > { %9919 = vmatprep.subr.bf16.mxu1 %v13985_v44  ;;  %v951_v31 = vld [vmem:[%s16564_s9 + $0x10e8] sm:$0xff] }
 0x298   : > { %9945 = vmatpush1.bf16.msra.mxu0 %v14048_v12  ;;  %v863_v12 = vld [vmem:[%s16564_s9 + $0xe28] sm:$0xff] }
 0x299   : > { %9946 = vmatprep.subr.bf16.mxu0 %v14057_v51  ;;  %v927_v51 = vld [vmem:[%s16564_s9 + $0x1028] sm:$0xff]  ;;  %v14089_v61 = vcombine.high %v859_v47, %v863_v12 }
 0x29a   : > { %9920 = vmatpush1.bf16.msra.mxu1 %v13984_v49  ;;  %v923_v49 = vld [vmem:[%s16564_s9 + $0x1008] sm:$0xff] }
 0x29b   : > { %9921 = vmatprep.subr.bf16.mxu1 %v13993_v56  ;;  %v14080_v56 = vcombine.low %v851_v25, %v855_v54  ;;  %v14153_v8 = vcombine.high %v923_v49, %v927_v51  ;;  %v14152_v40 = vcombine.low %v923_v49, %v927_v51  ;;  %v903_v49 = vld [vmem:[%s16564_s9 + $0xf68] sm:$0xff] }
 0x29c   : > { %9947 = vmatpush1.bf16.msra.mxu0 %v14056_v63  ;;  %v871_v63 = vld [vmem:[%s16564_s9 + $0xe68] sm:$0xff] }
 0x29d   : > { %9948 = vmatprep.subr.bf16.mxu0 %v14065_v4  ;;  %v9603_v22 = vpop.f32.mrb[12].mxu0  ;;  %v935_v4 = vld [vmem:[%s16564_s9 + $0x1068] sm:$0xff]  ;;  %v14097_v33 = vcombine.high %v867_v62, %v871_v63 }
 0x29e   : > { %9922 = vmatpush1.bf16.msra.mxu1 %v13992_v3  ;;  %v9604_v26 = vadd.f32 %v9603_v22, %v17159_v10  ;;  %v9605_v29 = vpop.f32.mrb[13].mxu0  ;;  %v14008_v10 = vcombine.low %v779_v14, %v783_v38  ;;  %v931_v3 = vld [vmem:[%s16564_s9 + $0x1048] sm:$0xff]  ;;  %v14096_v22 = vcombine.low %v867_v62, %v871_v63 }
 0x29f   : > { %9923 = vmatprep.subr.bf16.mxu1 %v14001_v13  ;;  %v9644_v27 = vpop.f32.mrb[12].mxu1  ;;  %v9606_v34 = vadd.f32 %v9605_v29, %v17161_v52  ;;  %v9607_v1 = vpop.f32.mrb[14].mxu0  ;;  %v14088_v13 = vcombine.low %v859_v47, %v863_v12  ;;  %v14161_v14 = vcombine.high %v931_v3, %v935_v4  ;;  %v875_v38 = vld [vmem:[%s16564_s9 + $0xe88] sm:$0xff] }
 0x2a0   : > { %v9646_v35 = vpop.f32.mrb[13].mxu1  ;;  %9949 = vmatpush1.bf16.msra.mxu0 %v14064_v15  ;;  %v17233_v39 = vadd.f32 %v9644_v27, %v9604_v26  ;;  %v9608_v44 = vpop.f32.mrb[15].mxu0  ;;  %v879_v15 = vld [vmem:[%s16564_s9 + $0xea8] sm:$0xff] }
 0x2a1   : > { %v9648_v42 = vpop.f32.mrb[14].mxu1  ;;  %9950 = vmatprep.subr.bf16.mxu0 %v14073_v18  ;;  %v17235_v20 = vadd.f32 %v9646_v35, %v9606_v34  ;;  %v943_v18 = vld [vmem:[%s16564_s9 + $0x10a8] sm:$0xff]  ;;  %v14105_v25 = vcombine.high %v875_v38, %v879_v15  ;;  %v14104_v32 = vcombine.low %v875_v38, %v879_v15 }
 0x2a2   : > { %9924 = vmatpush1.bf16.msra.mxu1 %v14000_v43  ;;  %v9649_v52 = vpop.f32.mrb[15].mxu1  ;;  %v939_v43 = vld [vmem:[%s16564_s9 + $0x1088] sm:$0xff] }
 0x2a3   : > { %9925 = vmatprep.subr.bf16.mxu1 %v14009_v24  ;;  %v14160_v24 = vcombine.low %v931_v3, %v935_v4  ;;  %v14169_v54 = vcombine.high %v939_v43, %v943_v18  ;;  %v883_v26 = vld [vmem:[%s16564_s9 + $0xec8] sm:$0xff]  ;;  %v14168_v34 = vcombine.low %v939_v43, %v943_v18 }
 0x2a4   : > { %9951 = vmatpush1.bf16.msra.mxu0 %v14072_v7  ;;  %v887_v27 = vld [vmem:[%s16564_s9 + $0xee8] sm:$0xff] }
 0x2a5   : > { %9952 = vmatprep.subr.bf16.mxu0 %v14081_v45  ;;  %v947_v29 = vld [vmem:[%s16564_s9 + $0x10c8] sm:$0xff]  ;;  %v14113_v35 = vcombine.high %v883_v26, %v887_v27  ;;  %v14112_v45 = vcombine.low %v883_v26, %v887_v27 }
 0x2a6   : > { %9926 = vmatpush1.bf16.msra.mxu1 %v14008_v10  ;;  %v14177_v1 = vcombine.high %v947_v29, %v951_v31  ;;  %v891_v7 = vld [vmem:[%s16564_s9 + $0xf08] sm:$0xff]  ;;  %v14176_v52 = vcombine.low %v947_v29, %v951_v31 }
 0x2a7   : > { %9927 = vmatprep.subr.bf16.mxu1 %v14017_v46  ;;  %v895_v42 = vld [vmem:[%s16564_s9 + $0xf28] sm:$0xff] }
 0x2a8   : > { %9953 = vmatpush1.bf16.msra.mxu0 %v14080_v56  ;;  %v955_v44 = vld [vmem:[%s16564_s9 + $0x1108] sm:$0xff]  ;;  %v14121_v46 = vcombine.high %v891_v7, %v895_v42 }
 0x2a9   : > { %9954 = vmatprep.subr.bf16.mxu0 %v14089_v61  ;;  %v959_v10 = vld [vmem:[%s16564_s9 + $0x1128] sm:$0xff] }
 0x2aa   : > { %9928 = vmatpush1.bf16.msra.mxu1 %v14016_v58  ;;  %v14185_v47 = vcombine.high %v955_v44, %v959_v10  ;;  %v899_v12 = vld [vmem:[%s16564_s9 + $0xf48] sm:$0xff]  ;;  %v14120_v58 = vcombine.low %v891_v7, %v895_v42  ;;  %v14184_v61 = vcombine.low %v955_v44, %v959_v10 }
 0x2ab   : > { %9979 = vmatprep.subr.bf16.mxu1 %v14153_v8  ;;  %v963_v51 = vld [vmem:[%s16564_s9 + $0x1148] sm:$0xff]  ;;  %v14129_v8 = vcombine.high %v899_v12, %v903_v49 }
 0x2ac   : > { %9955 = vmatpush1.bf16.msra.mxu0 %v14088_v13  ;;  %v967_v56 = vld [vmem:[%s16564_s9 + $0x1168] sm:$0xff] }
 0x2ad   : > { %9930 = vmatmul.mubr.bf16.vlgmr.msra.gmra.mrb[28].mxu1 %v16762_v37  ;;  %9956 = vmatprep.subr.bf16.mxu0 %v14097_v33  ;;  %v14193_v62 = vcombine.high %v963_v51, %v967_v56  ;;  %v907_v63 = vld [vmem:[%s16564_s9 + $0xf88] sm:$0xff]  ;;  %v14192_v33 = vcombine.low %v963_v51, %v967_v56 }
 0x2ae   : > { %9980 = vmatpush1.bf16.msra.mxu1 %v14152_v40  ;;  %10011 = vmatprep.mubr.bf16.mxu1 %v16780_v48  ;;  %v911_v3 = vld [vmem:[%s16564_s9 + $0xfa8] sm:$0xff]  ;;  %v14128_v40 = vcombine.low %v899_v12, %v903_v49 }
 0x2af   : > { %9981 = vmatprep.subr.bf16.mxu1 %v14161_v14  ;;  %v971_v4 = vld [vmem:[%s16564_s9 + $0x1188] sm:$0xff]  ;;  %v14137_v14 = vcombine.high %v907_v63, %v911_v3 }
 0x2b0   : > { %9957 = vmatpush1.bf16.msra.mxu0 %v14096_v22  ;;  %v975_v13 = vld [vmem:[%s16564_s9 + $0x11a8] sm:$0xff] }
 0x2b1   : > { %9958 = vmatprep.subr.bf16.mxu0 %v14105_v25  ;;  %v14201_v38 = vcombine.high %v971_v4, %v975_v13  ;;  %v915_v15 = vld [vmem:[%s16564_s9 + $0xfc8] sm:$0xff]  ;;  %v14200_v25 = vcombine.low %v971_v4, %v975_v13 }
 0x2b2   : > { %9982 = vmatpush1.bf16.msra.mxu1 %v14160_v24  ;;  %v919_v43 = vld [vmem:[%s16564_s9 + $0xfe8] sm:$0xff]  ;;  %v14136_v24 = vcombine.low %v907_v63, %v911_v3 }
 0x2b3   : > { %9983 = vmatprep.subr.bf16.mxu1 %v14169_v54  ;;  %v979_v18 = vld [vmem:[%s16564_s9 + $0x11c8] sm:$0xff]  ;;  %v14145_v54 = vcombine.high %v915_v15, %v919_v43 }
 0x2b4   : > { %9959 = vmatpush1.bf16.msra.mxu0 %v14104_v32  ;;  %v983_v22 = vld [vmem:[%s16564_s9 + $0x11e8] sm:$0xff] }
 0x2b5   : > { %9960 = vmatprep.subr.bf16.mxu0 %v14113_v35  ;;  %v14209_v26 = vcombine.high %v979_v18, %v983_v22  ;;  %v1051_v27 = vld [vmem:[%s16564_s9 + $0x1408] sm:$0xff]  ;;  %v14208_v35 = vcombine.low %v979_v18, %v983_v22 }
 0x2b6   : > { %9984 = vmatpush1.bf16.msra.mxu1 %v14168_v34  ;;  %v1055_v29 = vld [vmem:[%s16564_s9 + $0x1428] sm:$0xff]  ;;  %v14144_v34 = vcombine.low %v915_v15, %v919_v43 }
 0x2b7   : > { %9985 = vmatprep.subr.bf16.mxu1 %v14177_v1  ;;  %v987_v31 = vld [vmem:[%s16564_s9 + $0x1208] sm:$0xff]  ;;  %v14281_v1 = vcombine.high %v1051_v27, %v1055_v29 }
 0x2b8   : > { %9961 = vmatpush1.bf16.msra.mxu0 %v14112_v45  ;;  %v991_v32 = vld [vmem:[%s16564_s9 + $0x1228] sm:$0xff] }
 0x2b9   : > { %9962 = vmatprep.subr.bf16.mxu0 %v14121_v46  ;;  %v14217_v7 = vcombine.high %v987_v31, %v991_v32  ;;  %v1059_v42 = vld [vmem:[%s16564_s9 + $0x1448] sm:$0xff]  ;;  %v14216_v46 = vcombine.low %v987_v31, %v991_v32 }
 0x2ba   : > { %9986 = vmatpush1.bf16.msra.mxu1 %v14176_v52  ;;  %v1063_v44 = vld [vmem:[%s16564_s9 + $0x1468] sm:$0xff]  ;;  %v14280_v52 = vcombine.low %v1051_v27, %v1055_v29 }
 0x2bb   : > { %9987 = vmatprep.subr.bf16.mxu1 %v14185_v47  ;;  %v995_v10 = vld [vmem:[%s16564_s9 + $0x1248] sm:$0xff]  ;;  %v14289_v47 = vcombine.high %v1059_v42, %v1063_v44 }
 0x2bc   : > { %9963 = vmatpush1.bf16.msra.mxu0 %v14120_v58  ;;  %v999_v45 = vld [vmem:[%s16564_s9 + $0x1268] sm:$0xff] }
 0x2bd   : > { %9964 = vmatprep.subr.bf16.mxu0 %v14129_v8  ;;  %v14225_v12 = vcombine.high %v995_v10, %v999_v45  ;;  %v1067_v49 = vld [vmem:[%s16564_s9 + $0x1488] sm:$0xff]  ;;  %v14224_v8 = vcombine.low %v995_v10, %v999_v45 }
 0x2be   : > { %9988 = vmatpush1.bf16.msra.mxu1 %v14184_v61  ;;  %v1071_v51 = vld [vmem:[%s16564_s9 + $0x14a8] sm:$0xff]  ;;  %v14288_v61 = vcombine.low %v1059_v42, %v1063_v44 }
 0x2bf   : > { %9989 = vmatprep.subr.bf16.mxu1 %v14193_v62  ;;  %v1003_v56 = vld [vmem:[%s16564_s9 + $0x1288] sm:$0xff]  ;;  %v14297_v62 = vcombine.high %v1067_v49, %v1071_v51 }
 0x2c0   : > { %9965 = vmatpush1.bf16.msra.mxu0 %v14128_v40  ;;  %v1007_v58 = vld [vmem:[%s16564_s9 + $0x12a8] sm:$0xff] }
 0x2c1   : > { %9966 = vmatprep.subr.bf16.mxu0 %v14137_v14  ;;  %v14233_v63 = vcombine.high %v1003_v56, %v1007_v58  ;;  %v1075_v3 = vld [vmem:[%s16564_s9 + $0x14c8] sm:$0xff]  ;;  %v14232_v14 = vcombine.low %v1003_v56, %v1007_v58 }
 0x2c2   : > { %9990 = vmatpush1.bf16.msra.mxu1 %v14192_v33  ;;  %v1079_v4 = vld [vmem:[%s16564_s9 + $0x14e8] sm:$0xff]  ;;  %v14296_v33 = vcombine.low %v1067_v49, %v1071_v51 }
 0x2c3   : > { %9991 = vmatprep.subr.bf16.mxu1 %v14201_v38  ;;  %v1011_v13 = vld [vmem:[%s16564_s9 + $0x12c8] sm:$0xff]  ;;  %v14305_v38 = vcombine.high %v1075_v3, %v1079_v4 }
 0x2c4   : > { %9967 = vmatpush1.bf16.msra.mxu0 %v14136_v24  ;;  %v1015_v40 = vld [vmem:[%s16564_s9 + $0x12e8] sm:$0xff] }
 0x2c5   : > { %9968 = vmatprep.subr.bf16.mxu0 %v14145_v54  ;;  %v14241_v15 = vcombine.high %v1011_v13, %v1015_v40  ;;  %v1083_v43 = vld [vmem:[%s16564_s9 + $0x1508] sm:$0xff]  ;;  %v14240_v54 = vcombine.low %v1011_v13, %v1015_v40 }
 0x2c6   : > { %9992 = vmatpush1.bf16.msra.mxu1 %v14200_v25  ;;  %v1087_v18 = vld [vmem:[%s16564_s9 + $0x1528] sm:$0xff]  ;;  %v14304_v25 = vcombine.low %v1075_v3, %v1079_v4 }
 0x2c7   : > { %9993 = vmatprep.subr.bf16.mxu1 %v14209_v26  ;;  %v1019_v22 = vld [vmem:[%s16564_s9 + $0x1308] sm:$0xff]  ;;  %v14313_v26 = vcombine.high %v1083_v43, %v1087_v18 }
 0x2c8   : > { %9969 = vmatpush1.bf16.msra.mxu0 %v14144_v34  ;;  %v1023_v24 = vld [vmem:[%s16564_s9 + $0x1328] sm:$0xff] }
 0x2c9   : > { %10020 = vmatprep.subr.bf16.mxu0 %v14281_v1  ;;  %v14249_v27 = vcombine.high %v1019_v22, %v1023_v24  ;;  %v1091_v29 = vld [vmem:[%s16564_s9 + $0x1548] sm:$0xff]  ;;  %v14248_v1 = vcombine.low %v1019_v22, %v1023_v24 }
 0x2ca   : > { %9994 = vmatpush1.bf16.msra.mxu1 %v14208_v35  ;;  %v1095_v31 = vld [vmem:[%s16564_s9 + $0x1568] sm:$0xff]  ;;  %v14312_v35 = vcombine.low %v1083_v43, %v1087_v18 }
 0x2cb   : > { %9995 = vmatprep.subr.bf16.mxu1 %v14217_v7  ;;  %9971 = vmatmul.mubr.bf16.vlgmr.msra.gmra.mrb[28].mxu0 %v16771_v41  ;;  %v1027_v32 = vld [vmem:[%s16564_s9 + $0x1348] sm:$0xff]  ;;  %v14321_v7 = vcombine.high %v1091_v29, %v1095_v31 }
 0x2cc   : > { %10021 = vmatpush1.bf16.msra.mxu0 %v14280_v52  ;;  %10052 = vmatprep.mubr.bf16.mxu0 %v16787_v50  ;;  %v1031_v34 = vld [vmem:[%s16564_s9 + $0x1368] sm:$0xff] }
 0x2cd   : > { %10022 = vmatprep.subr.bf16.mxu0 %v14289_v47  ;;  %v14257_v42 = vcombine.high %v1027_v32, %v1031_v34  ;;  %v1099_v44 = vld [vmem:[%s16564_s9 + $0x1588] sm:$0xff]  ;;  %v14256_v47 = vcombine.low %v1027_v32, %v1031_v34 }
 0x2ce   : > { %9996 = vmatpush1.bf16.msra.mxu1 %v14216_v46  ;;  %v1103_v10 = vld [vmem:[%s16564_s9 + $0x15a8] sm:$0xff]  ;;  %v14320_v46 = vcombine.low %v1091_v29, %v1095_v31 }
 0x2cf   : > { %9997 = vmatprep.subr.bf16.mxu1 %v14225_v12  ;;  %v1035_v45 = vld [vmem:[%s16564_s9 + $0x1388] sm:$0xff]  ;;  %v14329_v12 = vcombine.high %v1099_v44, %v1103_v10 }
 0x2d0   : > { %10023 = vmatpush1.bf16.msra.mxu0 %v14288_v61  ;;  %v1039_v52 = vld [vmem:[%s16564_s9 + $0x13a8] sm:$0xff] }
 0x2d1   : > { %10024 = vmatprep.subr.bf16.mxu0 %v14297_v62  ;;  %v14265_v51 = vcombine.high %v1035_v45, %v1039_v52  ;;  %v1107_v56 = vld [vmem:[%s16564_s9 + $0x15c8] sm:$0xff] }
 0x2d2   : > { %9998 = vmatpush1.bf16.msra.mxu1 %v14224_v8  ;;  %v1111_v58 = vld [vmem:[%s16564_s9 + $0x15e8] sm:$0xff] }
 0x2d3   : > { %9999 = vmatprep.subr.bf16.mxu1 %v14233_v63  ;;  %v1043_v63 = vld [vmem:[%s16564_s9 + $0x13c8] sm:$0xff]  ;;  %v14337_v43 = vcombine.high %v1107_v56, %v1111_v58 }
 0x2d4   : > { %10025 = vmatpush1.bf16.msra.mxu0 %v14296_v33  ;;  %v1047_v3 = vld [vmem:[%s16564_s9 + $0x13e8] sm:$0xff]  ;;  %v14328_v33 = vcombine.low %v1099_v44, %v1103_v10 }
 0x2d5   : > { %10026 = vmatprep.subr.bf16.mxu0 %v14305_v38  ;;  %v14273_v22 = vcombine.high %v1043_v63, %v1047_v3  ;;  %v1115_v24 = vld [vmem:[%s16564_s9 + $0x1608] sm:$0xff]  ;;  %v14272_v29 = vcombine.low %v1043_v63, %v1047_v3 }
 0x2d6   : > { %10000 = vmatpush1.bf16.msra.mxu1 %v14232_v14  ;;  %v1123_v34 = vld [vmem:[%s16564_s9 + $0x1648] sm:$0xff] }
 0x2d7   : > { %10001 = vmatprep.subr.bf16.mxu1 %v14241_v15  ;;  %v1207_v63 = vld [vmem:[%s16564_s9 + $0x18e8] sm:$0xff] }
 0x2d8   : > { %10027 = vmatpush1.bf16.msra.mxu0 %v14304_v25  ;;  %v1119_v25 = vld [vmem:[%s16564_s9 + $0x1628] sm:$0xff] }
 0x2d9   : > { %10028 = vmatprep.subr.bf16.mxu0 %v14313_v26  ;;  %v1183_v26 = vld [vmem:[%s16564_s9 + $0x1828] sm:$0xff]  ;;  %v14345_v31 = vcombine.high %v1115_v24, %v1119_v25 }
 0x2da   : > { %10002 = vmatpush1.bf16.msra.mxu1 %v14240_v54  ;;  %v1179_v54 = vld [vmem:[%s16564_s9 + $0x1808] sm:$0xff] }
 0x2db   : > { %10003 = vmatprep.subr.bf16.mxu1 %v14249_v27  ;;  %v14336_v27 = vcombine.low %v1107_v56, %v1111_v58  ;;  %v14409_v32 = vcombine.high %v1179_v54, %v1183_v26  ;;  %v14408_v44 = vcombine.low %v1179_v54, %v1183_v26  ;;  %v1159_v54 = vld [vmem:[%s16564_s9 + $0x1768] sm:$0xff] }
 0x2dc   : > { %10029 = vmatpush1.bf16.msra.mxu0 %v14312_v35  ;;  %v1127_v35 = vld [vmem:[%s16564_s9 + $0x1668] sm:$0xff] }
 0x2dd   : > { %10030 = vmatprep.subr.bf16.mxu0 %v14321_v7  ;;  %v1191_v7 = vld [vmem:[%s16564_s9 + $0x1868] sm:$0xff]  ;;  %v14353_v10 = vcombine.high %v1123_v34, %v1127_v35 }
 0x2de   : > { %10004 = vmatpush1.bf16.msra.mxu1 %v14248_v1  ;;  %v9685_v49 = vpop.f32.mrb[16].mxu0  ;;  %v1187_v1 = vld [vmem:[%s16564_s9 + $0x1848] sm:$0xff] }
 0x2df   : > { %10005 = vmatprep.subr.bf16.mxu1 %v14257_v42  ;;  %v9686_v61 = vadd.f32 %v9685_v49, %v17233_v39  ;;  %v9687_v62 = vpop.f32.mrb[17].mxu0  ;;  %v14264_v39 = vcombine.low %v1035_v45, %v1039_v52  ;;  %v14344_v42 = vcombine.low %v1115_v24, %v1119_v25  ;;  %v14417_v45 = vcombine.high %v1187_v1, %v1191_v7  ;;  %v1131_v52 = vld [vmem:[%s16564_s9 + $0x1688] sm:$0xff] }
 0x2e0   : > { %v9726_v8 = vpop.f32.mrb[16].mxu1  ;;  %v9688_v4 = vadd.f32 %v9687_v62, %v17235_v20  ;;  %v9689_v40 = vpop.f32.mrb[18].mxu0  ;;  %10031 = vmatpush1.bf16.msra.mxu0 %v14320_v46  ;;  %v1135_v46 = vld [vmem:[%s16564_s9 + $0x16a8] sm:$0xff]  ;;  %v14352_v49 = vcombine.low %v1123_v34, %v1127_v35 }
 0x2e1   : > { %v9728_v13 = vpop.f32.mrb[17].mxu1  ;;  %v17307_v14 = vadd.f32 %v9726_v8, %v9686_v61  ;;  %v9690_v15 = vpop.f32.mrb[19].mxu0  ;;  %10032 = vmatprep.subr.bf16.mxu0 %v14329_v12  ;;  %v1199_v12 = vld [vmem:[%s16564_s9 + $0x18a8] sm:$0xff]  ;;  %v14361_v56 = vcombine.high %v1131_v52, %v1135_v46  ;;  %v14360_v3 = vcombine.low %v1131_v52, %v1135_v46 }
 0x2e2   : > { %v9730_v38 = vpop.f32.mrb[18].mxu1  ;;  %10006 = vmatpush1.bf16.msra.mxu1 %v14256_v47  ;;  %v17309_v18 = vadd.f32 %v9728_v13, %v9688_v4  ;;  %v1195_v47 = vld [vmem:[%s16564_s9 + $0x1888] sm:$0xff] }
 0x2e3   : > { %v9731_v20 = vpop.f32.mrb[19].mxu1  ;;  %10007 = vmatprep.subr.bf16.mxu1 %v14265_v51  ;;  %v14416_v51 = vcombine.low %v1187_v1, %v1191_v7  ;;  %v14425_v58 = vcombine.high %v1195_v47, %v1199_v12  ;;  %v1139_v61 = vld [vmem:[%s16564_s9 + $0x16c8] sm:$0xff]  ;;  %v14424_v4 = vcombine.low %v1195_v47, %v1199_v12 }
 0x2e4   : > { %10033 = vmatpush1.bf16.msra.mxu0 %v14328_v33  ;;  %v1143_v8 = vld [vmem:[%s16564_s9 + $0x16e8] sm:$0xff] }
 0x2e5   : > { %10034 = vmatprep.subr.bf16.mxu0 %v14337_v43  ;;  %v1203_v62 = vld [vmem:[%s16564_s9 + $0x18c8] sm:$0xff]  ;;  %v14369_v13 = vcombine.high %v1139_v61, %v1143_v8  ;;  %v14368_v43 = vcombine.low %v1139_v61, %v1143_v8 }
 0x2e6   : > { %10008 = vmatpush1.bf16.msra.mxu1 %v14264_v39  ;;  %v14433_v40 = vcombine.high %v1203_v62, %v1207_v63  ;;  %v1147_v33 = vld [vmem:[%s16564_s9 + $0x1708] sm:$0xff]  ;;  %v14432_v20 = vcombine.low %v1203_v62, %v1207_v63 }
 0x2e7   : > { %10009 = vmatprep.subr.bf16.mxu1 %v14273_v22  ;;  %v1151_v38 = vld [vmem:[%s16564_s9 + $0x1728] sm:$0xff] }
 0x2e8   : > { %10035 = vmatpush1.bf16.msra.mxu0 %v14336_v27  ;;  %v1211_v15 = vld [vmem:[%s16564_s9 + $0x1908] sm:$0xff]  ;;  %v14377_v22 = vcombine.high %v1147_v33, %v1151_v38 }
 0x2e9   : > { %10036 = vmatprep.subr.bf16.mxu0 %v14345_v31  ;;  %v1215_v39 = vld [vmem:[%s16564_s9 + $0x1928] sm:$0xff] }
 0x2ea   : > { %10010 = vmatpush1.bf16.msra.mxu1 %v14272_v29  ;;  %v14441_v24 = vcombine.high %v1211_v15, %v1215_v39  ;;  %v1155_v25 = vld [vmem:[%s16564_s9 + $0x1748] sm:$0xff]  ;;  %v14376_v29 = vcombine.low %v1147_v33, %v1151_v38  ;;  %v14440_v31 = vcombine.low %v1211_v15, %v1215_v39 }
 0x2eb   : > { %10061 = vmatprep.subr.bf16.mxu1 %v14409_v32  ;;  %v1219_v26 = vld [vmem:[%s16564_s9 + $0x1948] sm:$0xff]  ;;  %v14385_v32 = vcombine.high %v1155_v25, %v1159_v54 }
 0x2ec   : > { %10037 = vmatpush1.bf16.msra.mxu0 %v14344_v42  ;;  %v1223_v27 = vld [vmem:[%s16564_s9 + $0x1968] sm:$0xff] }
 0x2ed   : > { %10012 = vmatmul.mubr.bf16.vlgmr.msra.gmra.mrb[32].mxu1 %v16852_v5  ;;  %10038 = vmatprep.subr.bf16.mxu0 %v14353_v10  ;;  %v14449_v34 = vcombine.high %v1219_v26, %v1223_v27  ;;  %v1163_v35 = vld [vmem:[%s16564_s9 + $0x1788] sm:$0xff]  ;;  %v14448_v10 = vcombine.low %v1219_v26, %v1223_v27 }
 0x2ee   : > { %10062 = vmatpush1.bf16.msra.mxu1 %v14408_v44  ;;  %10093 = vmatprep.mubr.bf16.mxu1 %v16870_v16  ;;  %v1167_v1 = vld [vmem:[%s16564_s9 + $0x17a8] sm:$0xff]  ;;  %v14384_v44 = vcombine.low %v1155_v25, %v1159_v54 }
 0x2ef   : > { %10063 = vmatprep.subr.bf16.mxu1 %v14417_v45  ;;  %v1227_v7 = vld [vmem:[%s16564_s9 + $0x1988] sm:$0xff]  ;;  %v14393_v45 = vcombine.high %v1163_v35, %v1167_v1 }
 0x2f0   : > { %10039 = vmatpush1.bf16.msra.mxu0 %v14352_v49  ;;  %v1231_v42 = vld [vmem:[%s16564_s9 + $0x19a8] sm:$0xff] }
 0x2f1   : > { %10040 = vmatprep.subr.bf16.mxu0 %v14361_v56  ;;  %v14457_v52 = vcombine.high %v1227_v7, %v1231_v42  ;;  %v1171_v46 = vld [vmem:[%s16564_s9 + $0x17c8] sm:$0xff]  ;;  %v14456_v8 = vcombine.low %v1227_v7, %v1231_v42 }
 0x2f2   : > { %10064 = vmatpush1.bf16.msra.mxu1 %v14416_v51  ;;  %v1175_v47 = vld [vmem:[%s16564_s9 + $0x17e8] sm:$0xff] }
 0x2f3   : > { %10065 = vmatprep.subr.bf16.mxu1 %v14425_v58  ;;  %v1235_v49 = vld [vmem:[%s16564_s9 + $0x19c8] sm:$0xff]  ;;  %v14392_v58 = vcombine.low %v1163_v35, %v1167_v1  ;;  %v14401_v62 = vcombine.high %v1171_v46, %v1175_v47  ;;  %v14400_v38 = vcombine.low %v1171_v46, %v1175_v47 }
 0x2f4   : > { %10041 = vmatpush1.bf16.msra.mxu0 %v14360_v3  ;;  %v1239_v51 = vld [vmem:[%s16564_s9 + $0x19e8] sm:$0xff] }
 0x2f5   : > { %10042 = vmatprep.subr.bf16.mxu0 %v14369_v13  ;;  %v14465_v3 = vcombine.high %v1235_v49, %v1239_v51  ;;  %v1311_v13 = vld [vmem:[%s16564_s9 + $0x1c28] sm:$0xff]  ;;  %v14464_v15 = vcombine.low %v1235_v49, %v1239_v51 }
 0x2f6   : > { %10066 = vmatpush1.bf16.msra.mxu1 %v14424_v4  ;;  %v1307_v4 = vld [vmem:[%s16564_s9 + $0x1c08] sm:$0xff] }
 0x2f7   : > { %10067 = vmatprep.subr.bf16.mxu1 %v14433_v40  ;;  %v1243_v40 = vld [vmem:[%s16564_s9 + $0x1a08] sm:$0xff]  ;;  %v14537_v39 = vcombine.high %v1307_v4, %v1311_v13  ;;  %v14536_v54 = vcombine.low %v1307_v4, %v1311_v13 }
 0x2f8   : > { %10043 = vmatpush1.bf16.msra.mxu0 %v14368_v43  ;;  %v1247_v33 = vld [vmem:[%s16564_s9 + $0x1a28] sm:$0xff] }
 0x2f9   : > { %10044 = vmatprep.subr.bf16.mxu0 %v14377_v22  ;;  %v14473_v43 = vcombine.high %v1243_v40, %v1247_v33  ;;  %v1319_v22 = vld [vmem:[%s16564_s9 + $0x1c68] sm:$0xff]  ;;  %v14472_v26 = vcombine.low %v1243_v40, %v1247_v33 }
 0x2fa   : > { %10068 = vmatpush1.bf16.msra.mxu1 %v14432_v20  ;;  %v1315_v20 = vld [vmem:[%s16564_s9 + $0x1c48] sm:$0xff] }
 0x2fb   : > { %10069 = vmatprep.subr.bf16.mxu1 %v14441_v24  ;;  %v1251_v24 = vld [vmem:[%s16564_s9 + $0x1a48] sm:$0xff]  ;;  %v14545_v27 = vcombine.high %v1315_v20, %v1319_v22  ;;  %v14544_v1 = vcombine.low %v1315_v20, %v1319_v22 }
 0x2fc   : > { %10045 = vmatpush1.bf16.msra.mxu0 %v14376_v29  ;;  %v1255_v25 = vld [vmem:[%s16564_s9 + $0x1a68] sm:$0xff] }
 0x2fd   : > { %10046 = vmatprep.subr.bf16.mxu0 %v14385_v32  ;;  %v14481_v29 = vcombine.high %v1251_v24, %v1255_v25  ;;  %v1327_v32 = vld [vmem:[%s16564_s9 + $0x1ca8] sm:$0xff]  ;;  %v14480_v7 = vcombine.low %v1251_v24, %v1255_v25 }
 0x2fe   : > { %10070 = vmatpush1.bf16.msra.mxu1 %v14440_v31  ;;  %v1323_v31 = vld [vmem:[%s16564_s9 + $0x1c88] sm:$0xff] }
 0x2ff   : > { %10071 = vmatprep.subr.bf16.mxu1 %v14449_v34  ;;  %v1259_v34 = vld [vmem:[%s16564_s9 + $0x1a88] sm:$0xff]  ;;  %v14553_v42 = vcombine.high %v1323_v31, %v1327_v32  ;;  %v14552_v47 = vcombine.low %v1323_v31, %v1327_v32 }
 0x300   : > { %v17343_v12 = vpop.f32.mrb[20].mxu1  ;;  %10047 = vmatpush1.bf16.msra.mxu0 %v14384_v44  ;;  %v1263_v35 = vld [vmem:[%s16564_s9 + $0x1aa8] sm:$0xff] }
 0x301   : > { %v17347_v56 = vpop.f32.mrb[21].mxu1  ;;  %10048 = vmatprep.subr.bf16.mxu0 %v14393_v45  ;;  %v14489_v44 = vcombine.high %v1259_v34, %v1263_v35  ;;  %v1335_v45 = vld [vmem:[%s16564_s9 + $0x1ce8] sm:$0xff]  ;;  %v14488_v49 = vcombine.low %v1259_v34, %v1263_v35 }
 0x302   : > { %v9812_v61 = vpop.f32.mrb[22].mxu1  ;;  %10072 = vmatpush1.bf16.msra.mxu1 %v14448_v10  ;;  %v1331_v10 = vld [vmem:[%s16564_s9 + $0x1cc8] sm:$0xff] }
 0x303   : > { %v9813_v63 = vpop.f32.mrb[23].mxu1  ;;  %10073 = vmatprep.subr.bf16.mxu1 %v14457_v52  ;;  %v1267_v52 = vld [vmem:[%s16564_s9 + $0x1ac8] sm:$0xff]  ;;  %v14561_v51 = vcombine.high %v1331_v10, %v1335_v45 }
 0x304   : > { %10049 = vmatpush1.bf16.msra.mxu0 %v14392_v58  ;;  %v1271_v46 = vld [vmem:[%s16564_s9 + $0x1ae8] sm:$0xff] }
 0x305   : > { %10050 = vmatprep.subr.bf16.mxu0 %v14401_v62  ;;  %v14497_v58 = vcombine.high %v1267_v52, %v1271_v46  ;;  %v1339_v61 = vld [vmem:[%s16564_s9 + $0x1d08] sm:$0xff]  ;;  %v14496_v4 = vcombine.low %v1267_v52, %v1271_v46 }
 0x306   : > { %10074 = vmatpush1.bf16.msra.mxu1 %v14456_v8  ;;  %v1343_v8 = vld [vmem:[%s16564_s9 + $0x1d28] sm:$0xff] }
 0x307   : > { %10075 = vmatprep.subr.bf16.mxu1 %v14465_v3  ;;  %v1275_v62 = vld [vmem:[%s16564_s9 + $0x1b08] sm:$0xff]  ;;  %v14560_v3 = vcombine.low %v1331_v10, %v1335_v45  ;;  %v14569_v13 = vcombine.high %v1339_v61, %v1343_v8 }
 0x308   : > { %10051 = vmatpush1.bf16.msra.mxu0 %v14400_v38  ;;  %v1279_v63 = vld [vmem:[%s16564_s9 + $0x1b28] sm:$0xff] }
 0x309   : > { %10102 = vmatprep.subr.bf16.mxu0 %v14537_v39  ;;  %v14505_v40 = vcombine.high %v1275_v62, %v1279_v63  ;;  %v1347_v33 = vld [vmem:[%s16564_s9 + $0x1d48] sm:$0xff]  ;;  %v14504_v20 = vcombine.low %v1275_v62, %v1279_v63 }
 0x30a   : > { %10076 = vmatpush1.bf16.msra.mxu1 %v14464_v15  ;;  %v1351_v38 = vld [vmem:[%s16564_s9 + $0x1d68] sm:$0xff] }
 0x30b   : > { %10077 = vmatprep.subr.bf16.mxu1 %v14473_v43  ;;  %10053 = vmatmul.mubr.bf16.vlgmr.msra.gmra.mrb[32].mxu0 %v16861_v9  ;;  %v1283_v15 = vld [vmem:[%s16564_s9 + $0x1b48] sm:$0xff]  ;;  %v14568_v43 = vcombine.low %v1339_v61, %v1343_v8  ;;  %v14577_v22 = vcombine.high %v1347_v33, %v1351_v38 }
 0x30c   : > { %10103 = vmatpush1.bf16.msra.mxu0 %v14536_v54  ;;  %10134 = vmatprep.mubr.bf16.mxu0 %v16877_v19  ;;  %v1287_v39 = vld [vmem:[%s16564_s9 + $0x1b68] sm:$0xff] }
 0x30d   : > { %10104 = vmatprep.subr.bf16.mxu0 %v14545_v27  ;;  %v14513_v24 = vcombine.high %v1283_v15, %v1287_v39  ;;  %v1355_v25 = vld [vmem:[%s16564_s9 + $0x1d88] sm:$0xff]  ;;  %v14512_v31 = vcombine.low %v1283_v15, %v1287_v39 }
 0x30e   : > { %10078 = vmatpush1.bf16.msra.mxu1 %v14472_v26  ;;  %v1359_v54 = vld [vmem:[%s16564_s9 + $0x1da8] sm:$0xff] }
 0x30f   : > { %10079 = vmatprep.subr.bf16.mxu1 %v14481_v29  ;;  %v1291_v26 = vld [vmem:[%s16564_s9 + $0x1b88] sm:$0xff]  ;;  %v14576_v29 = vcombine.low %v1347_v33, %v1351_v38  ;;  %v14585_v32 = vcombine.high %v1355_v25, %v1359_v54 }
 0x310   : > { %10105 = vmatpush1.bf16.msra.mxu0 %v14544_v1  ;;  %v1295_v27 = vld [vmem:[%s16564_s9 + $0x1ba8] sm:$0xff] }
 0x311   : > { %10106 = vmatprep.subr.bf16.mxu0 %v14553_v42  ;;  %v14521_v35 = vcombine.high %v1291_v26, %v1295_v27  ;;  %v1363_v1 = vld [vmem:[%s16564_s9 + $0x1dc8] sm:$0xff]  ;;  %v14520_v8 = vcombine.low %v1291_v26, %v1295_v27 }
 0x312   : > { %10080 = vmatpush1.bf16.msra.mxu1 %v14480_v7  ;;  %v1367_v7 = vld [vmem:[%s16564_s9 + $0x1de8] sm:$0xff] }
 0x313   : > { %10081 = vmatprep.subr.bf16.mxu1 %v14489_v44  ;;  %v1299_v10 = vld [vmem:[%s16564_s9 + $0x1bc8] sm:$0xff]  ;;  %v14592_v33 = vcombine.low %v1363_v1, %v1367_v7 }
 0x314   : > { %10107 = vmatpush1.bf16.msra.mxu0 %v14552_v47  ;;  %v1303_v45 = vld [vmem:[%s16564_s9 + $0x1be8] sm:$0xff] }
 0x315   : > { %10108 = vmatprep.subr.bf16.mxu0 %v14561_v51  ;;  %v390_v52 = vld [vmem:[#allocation2] sm:$0xff]  ;;  %v14529_v63 = vcombine.high %v1299_v10, %v1303_v45  ;;  %v14528_v38 = vcombine.low %v1299_v10, %v1303_v45 }
 0x316   : > { %10082 = vmatpush1.bf16.msra.mxu1 %v14488_v49  ;;  %v14584_v49 = vcombine.low %v1355_v25, %v1359_v54  ;;  %v1379_v39 = vld [vmem:[%s16564_s9 + $0x1e48] sm:$0xff] }
 0x317   : > { %10083 = vmatprep.subr.bf16.mxu1 %v14497_v58  ;;  %v391_v58 = vld [vmem:[#allocation2 + $0x8] sm:$0xff]  ;;  %v1387_v27 = vld [vmem:[%s16564_s9 + $0x1e88] sm:$0xff] }
 0x318   : > { %10109 = vmatpush1.bf16.msra.mxu0 %v14560_v3  ;;  %v1371_v3 = vld [vmem:[%s16564_s9 + $0x1e08] sm:$0xff] }
 0x319   : > { %10110 = vmatprep.subr.bf16.mxu0 %v14569_v13  ;;  %v1435_v13 = vld [vmem:[%s16564_s9 + $0x2008] sm:$0xff] }
 0x31a   : > { %10084 = vmatpush1.bf16.msra.mxu1 %v14496_v4  ;;  %v1459_v10 = vld [vmem:[%s16564_s9 + $0x20c8] sm:$0xff] }
 0x31b   : > { %10085 = vmatprep.subr.bf16.mxu1 %v14505_v40  ;;  %v1439_v40 = vld [vmem:[%s16564_s9 + $0x2028] sm:$0xff] }
 0x31c   : > { %10111 = vmatpush1.bf16.msra.mxu0 %v14568_v43  ;;  %v1383_v43 = vld [vmem:[%s16564_s9 + $0x1e68] sm:$0xff]  ;;  %v14664_v25 = vcombine.low %v1435_v13, %v1439_v40 }
 0x31d   : > { %10112 = vmatprep.subr.bf16.mxu0 %v14577_v22  ;;  %v1447_v22 = vld [vmem:[%s16564_s9 + $0x2068] sm:$0xff]  ;;  %v14609_v54 = vcombine.high %v1379_v39, %v1383_v43 }
 0x31e   : > { %10086 = vmatpush1.bf16.msra.mxu1 %v14504_v20  ;;  %v9767_v34 = vpop.f32.mrb[20].mxu0  ;;  %v1443_v20 = vld [vmem:[%s16564_s9 + $0x2048] sm:$0xff] }
 0x31f   : > { %10087 = vmatprep.subr.bf16.mxu1 %v14513_v24  ;;  %v9768_v42 = vadd.f32 %v9767_v34, %v17307_v14  ;;  %v9769_v44 = vpop.f32.mrb[21].mxu0  ;;  %v14593_v14 = vcombine.high %v1363_v1, %v1367_v7  ;;  %v14673_v26 = vcombine.high %v1443_v20, %v1447_v22  ;;  %v14608_v34 = vcombine.low %v1379_v39, %v1383_v43  ;;  %v1463_v45 = vld [vmem:[%s16564_s9 + $0x20e8] sm:$0xff] }
 0x320   : > { %v9770_v46 = vadd.f32 %v9769_v44, %v17309_v18  ;;  %v9771_v47 = vpop.f32.mrb[22].mxu0  ;;  %10113 = vmatpush1.bf16.msra.mxu0 %v14576_v29  ;;  %v1375_v18 = vld [vmem:[%s16564_s9 + $0x1e28] sm:$0xff] }
 0x321   : > { %v9809_v51 = vadd.f32 %v17343_v12, %v9768_v42  ;;  %v9772_v61 = vpop.f32.mrb[23].mxu0  ;;  %10114 = vmatprep.subr.bf16.mxu0 %v14585_v32  ;;  %v14601_v15 = vcombine.high %v1371_v3, %v1375_v18  ;;  %v14600_v24 = vcombine.low %v1371_v3, %v1375_v18  ;;  %v1391_v29 = vld [vmem:[%s16564_s9 + $0x1ea8] sm:$0xff] }
 0x322   : > { %10088 = vmatpush1.bf16.msra.mxu1 %v14512_v31  ;;  %v9811_v62 = vadd.f32 %v17347_v56, %v9770_v46  ;;  %v14665_v56 = vcombine.high %v1435_v13, %v1439_v40  ;;  %v1451_v31 = vld [vmem:[%s16564_s9 + $0x2088] sm:$0xff]  ;;  %v14617_v1 = vcombine.high %v1387_v27, %v1391_v29 }
 0x323   : > { %10089 = vmatprep.subr.bf16.mxu1 %v14521_v35  ;;  %v11291_v4 = vadd.f32 %v9809_v51, %v390_v52  ;;  %v1455_v32 = vld [vmem:[%s16564_s9 + $0x20a8] sm:$0xff]  ;;  %v14672_v35 = vcombine.low %v1443_v20, %v1447_v22  ;;  %v14616_v52 = vcombine.low %v1387_v27, %v1391_v29 }
 0x324   : > { %v11292_v12 = vadd.f32 %v9811_v62, %v391_v58  ;;  %10115 = vmatpush1.bf16.msra.mxu0 %v14584_v49  ;;  %v14681_v7 = vcombine.high %v1451_v31, %v1455_v32  ;;  %v1395_v42 = vld [vmem:[%s16564_s9 + $0x1ec8] sm:$0xff]  ;;  %v14680_v46 = vcombine.low %v1451_v31, %v1455_v32  ;;  %v14689_v49 = vcombine.high %v1459_v10, %v1463_v45 }
 0x325   : > { %11299 = vst [vmem:[#allocation2] sm:$0xff] %v11291_v4  ;;  %10116 = vmatprep.subr.bf16.mxu0 %v14593_v14  ;;  %v1399_v44 = vld [vmem:[%s16564_s9 + $0x1ee8] sm:$0xff]  ;;  %v14688_v62 = vcombine.low %v1459_v10, %v1463_v45 }
 0x326   : > { %10090 = vmatpush1.bf16.msra.mxu1 %v14520_v8  ;;  %11300 = vst [vmem:[#allocation2 + $0x8] sm:$0xff] %v11292_v12  ;;  %v14625_v47 = vcombine.high %v1395_v42, %v1399_v44  ;;  %v1403_v51 = vld [vmem:[%s16564_s9 + $0x1f08] sm:$0xff]  ;;  %v14624_v14 = vcombine.low %v1395_v42, %v1399_v44 }
 0x327   : > { %10091 = vmatprep.subr.bf16.mxu1 %v14529_v63  ;;  %v1407_v58 = vld [vmem:[%s16564_s9 + $0x1f28] sm:$0xff] }
 0x328   : > { %10117 = vmatpush1.bf16.msra.mxu0 %v14592_v33  ;;  %v1467_v61 = vld [vmem:[%s16564_s9 + $0x2108] sm:$0xff]  ;;  %v14633_v63 = vcombine.high %v1403_v51, %v1407_v58  ;;  %v14632_v12 = vcombine.low %v1403_v51, %v1407_v58 }
 0x329   : > { %10118 = vmatprep.subr.bf16.mxu0 %v14601_v15  ;;  %v1471_v8 = vld [vmem:[%s16564_s9 + $0x2128] sm:$0xff] }
 0x32a   : > { %10092 = vmatpush1.bf16.msra.mxu1 %v14528_v38  ;;  %v14697_v3 = vcombine.high %v1467_v61, %v1471_v8  ;;  %v1411_v18 = vld [vmem:[%s16564_s9 + $0x1f48] sm:$0xff]  ;;  %v14696_v33 = vcombine.low %v1467_v61, %v1471_v8 }
 0x32b   : > { %10143 = vmatprep.subr.bf16.mxu1 %v14665_v56  ;;  %v1415_v4 = vld [vmem:[%s16564_s9 + $0x1f68] sm:$0xff] }
 0x32c   : > { %10119 = vmatpush1.bf16.msra.mxu0 %v14600_v24  ;;  %v1475_v13 = vld [vmem:[%s16564_s9 + $0x2148] sm:$0xff]  ;;  %v14641_v38 = vcombine.high %v1411_v18, %v1415_v4  ;;  %v14640_v22 = vcombine.low %v1411_v18, %v1415_v4 }
 0x32d   : > { %10094 = vmatmul.mubr.bf16.vlgmr.msra.gmra.mrb[36].mxu1 %v16942_v23  ;;  %10120 = vmatprep.subr.bf16.mxu0 %v14609_v54  ;;  %v1479_v40 = vld [vmem:[%s16564_s9 + $0x2168] sm:$0xff] }
 0x32e   : > { %10144 = vmatpush1.bf16.msra.mxu1 %v14664_v25  ;;  %10175 = vmatprep.mubr.bf16.mxu1 %v16960_v0  ;;  %v14705_v15 = vcombine.high %v1475_v13, %v1479_v40  ;;  %v1419_v56 = vld [vmem:[%s16564_s9 + $0x1f88] sm:$0xff]  ;;  %v14704_v24 = vcombine.low %v1475_v13, %v1479_v40 }
 0x32f   : > { %10145 = vmatprep.subr.bf16.mxu1 %v14673_v26  ;;  %v1423_v39 = vld [vmem:[%s16564_s9 + $0x1fa8] sm:$0xff] }
 0x330   : > { %10121 = vmatpush1.bf16.msra.mxu0 %v14608_v34  ;;  %v1483_v43 = vld [vmem:[%s16564_s9 + $0x2188] sm:$0xff]  ;;  %v14649_v25 = vcombine.high %v1419_v56, %v1423_v39 }
 0x331   : > { %10122 = vmatprep.subr.bf16.mxu0 %v14617_v1  ;;  %v1487_v20 = vld [vmem:[%s16564_s9 + $0x21a8] sm:$0xff] }
 0x332   : > { %10146 = vmatpush1.bf16.msra.mxu1 %v14672_v35  ;;  %v14713_v54 = vcombine.high %v1483_v43, %v1487_v20  ;;  %v1427_v26 = vld [vmem:[%s16564_s9 + $0x1fc8] sm:$0xff]  ;;  %v14648_v35 = vcombine.low %v1419_v56, %v1423_v39 }
 0x333   : > { %10147 = vmatprep.subr.bf16.mxu1 %v14681_v7  ;;  %v1431_v27 = vld [vmem:[%s16564_s9 + $0x1fe8] sm:$0xff]  ;;  %v14712_v7 = vcombine.low %v1483_v43, %v1487_v20 }
 0x334   : > { %10123 = vmatpush1.bf16.msra.mxu0 %v14616_v52  ;;  %v1491_v31 = vld [vmem:[%s16564_s9 + $0x21c8] sm:$0xff]  ;;  %v14657_v42 = vcombine.high %v1427_v26, %v1431_v27 }
 0x335   : > { %10124 = vmatprep.subr.bf16.mxu0 %v14625_v47  ;;  %v1495_v32 = vld [vmem:[%s16564_s9 + $0x21e8] sm:$0xff] }
 0x336   : > { %10148 = vmatpush1.bf16.msra.mxu1 %v14680_v46  ;;  %v14721_v10 = vcombine.high %v1491_v31, %v1495_v32  ;;  %v1563_v45 = vld [vmem:[%s16564_s9 + $0x2408] sm:$0xff]  ;;  %v14720_v51 = vcombine.low %v1491_v31, %v1495_v32 }
 0x337   : > { %10149 = vmatprep.subr.bf16.mxu1 %v14689_v49  ;;  %v1567_v52 = vld [vmem:[%s16564_s9 + $0x2428] sm:$0xff]  ;;  %v14656_v49 = vcombine.low %v1427_v26, %v1431_v27 }
 0x338   : > { %10125 = vmatpush1.bf16.msra.mxu0 %v14624_v14  ;;  %v1499_v46 = vld [vmem:[%s16564_s9 + $0x2208] sm:$0xff]  ;;  %v14793_v58 = vcombine.high %v1563_v45, %v1567_v52 }
 0x339   : > { %10126 = vmatprep.subr.bf16.mxu0 %v14633_v63  ;;  %v1503_v47 = vld [vmem:[%s16564_s9 + $0x2228] sm:$0xff] }
 0x33a   : > { %10150 = vmatpush1.bf16.msra.mxu1 %v14688_v62  ;;  %v14729_v61 = vcombine.high %v1499_v46, %v1503_v47  ;;  %v1571_v8 = vld [vmem:[%s16564_s9 + $0x2448] sm:$0xff]  ;;  %v14728_v18 = vcombine.low %v1499_v46, %v1503_v47 }
 0x33b   : > { %10151 = vmatprep.subr.bf16.mxu1 %v14697_v3  ;;  %v1575_v14 = vld [vmem:[%s16564_s9 + $0x2468] sm:$0xff]  ;;  %v14792_v3 = vcombine.low %v1563_v45, %v1567_v52 }
 0x33c   : > { %10127 = vmatpush1.bf16.msra.mxu0 %v14632_v12  ;;  %v1507_v62 = vld [vmem:[%s16564_s9 + $0x2248] sm:$0xff]  ;;  %v14801_v4 = vcombine.high %v1571_v8, %v1575_v14 }
 0x33d   : > { %10128 = vmatprep.subr.bf16.mxu0 %v14641_v38  ;;  %v1511_v63 = vld [vmem:[%s16564_s9 + $0x2268] sm:$0xff] }
 0x33e   : > { %10152 = vmatpush1.bf16.msra.mxu1 %v14696_v33  ;;  %v14737_v13 = vcombine.high %v1507_v62, %v1511_v63  ;;  %v1579_v40 = vld [vmem:[%s16564_s9 + $0x2488] sm:$0xff]  ;;  %v14736_v56 = vcombine.low %v1507_v62, %v1511_v63 }
 0x33f   : > { %10153 = vmatprep.subr.bf16.mxu1 %v14705_v15  ;;  %v1583_v12 = vld [vmem:[%s16564_s9 + $0x24a8] sm:$0xff]  ;;  %v14800_v15 = vcombine.low %v1571_v8, %v1575_v14 }
 0x340   : > { %v17419_v29 = vpop.f32.mrb[24].mxu1  ;;  %10129 = vmatpush1.bf16.msra.mxu0 %v14640_v22  ;;  %v1515_v33 = vld [vmem:[%s16564_s9 + $0x2288] sm:$0xff]  ;;  %v14809_v39 = vcombine.high %v1579_v40, %v1583_v12 }
 0x341   : > { %v17423_v34 = vpop.f32.mrb[25].mxu1  ;;  %10130 = vmatprep.subr.bf16.mxu0 %v14649_v25  ;;  %v1519_v38 = vld [vmem:[%s16564_s9 + $0x22a8] sm:$0xff] }
 0x342   : > { %v9853_v1 = vpop.f32.mrb[26].mxu1  ;;  %10154 = vmatpush1.bf16.msra.mxu1 %v14704_v24  ;;  %v14745_v43 = vcombine.high %v1515_v33, %v1519_v38  ;;  %v1587_v20 = vld [vmem:[%s16564_s9 + $0x24c8] sm:$0xff]  ;;  %v14744_v26 = vcombine.low %v1515_v33, %v1519_v38 }
 0x343   : > { %v9854_v44 = vpop.f32.mrb[27].mxu1  ;;  %10155 = vmatprep.subr.bf16.mxu1 %v14713_v54  ;;  %v1591_v22 = vld [vmem:[%s16564_s9 + $0x24e8] sm:$0xff]  ;;  %v14808_v54 = vcombine.low %v1579_v40, %v1583_v12 }
 0x344   : > { %10131 = vmatpush1.bf16.msra.mxu0 %v14648_v35  ;;  %v1523_v24 = vld [vmem:[%s16564_s9 + $0x22c8] sm:$0xff]  ;;  %v14817_v27 = vcombine.high %v1587_v20, %v1591_v22 }
 0x345   : > { %10132 = vmatprep.subr.bf16.mxu0 %v14657_v42  ;;  %v1527_v25 = vld [vmem:[%s16564_s9 + $0x22e8] sm:$0xff]  ;;  %v14816_v42 = vcombine.low %v1587_v20, %v1591_v22 }
 0x346   : > { %10156 = vmatpush1.bf16.msra.mxu1 %v14712_v7  ;;  %v14753_v31 = vcombine.high %v1523_v24, %v1527_v25  ;;  %v1595_v32 = vld [vmem:[%s16564_s9 + $0x2508] sm:$0xff]  ;;  %v14752_v44 = vcombine.low %v1523_v24, %v1527_v25 }
 0x347   : > { %10157 = vmatprep.subr.bf16.mxu1 %v14721_v10  ;;  %v1599_v35 = vld [vmem:[%s16564_s9 + $0x2528] sm:$0xff] }
 0x348   : > { %10133 = vmatpush1.bf16.msra.mxu0 %v14656_v49  ;;  %v1531_v1 = vld [vmem:[%s16564_s9 + $0x2308] sm:$0xff]  ;;  %v14825_v10 = vcombine.high %v1595_v32, %v1599_v35 }
 0x349   : > { %10184 = vmatprep.subr.bf16.mxu0 %v14793_v58  ;;  %v1535_v7 = vld [vmem:[%s16564_s9 + $0x2328] sm:$0xff] }
 0x34a   : > { %10158 = vmatpush1.bf16.msra.mxu1 %v14720_v51  ;;  %v14761_v45 = vcombine.high %v1531_v1, %v1535_v7  ;;  %v1603_v52 = vld [vmem:[%s16564_s9 + $0x2548] sm:$0xff]  ;;  %v14824_v51 = vcombine.low %v1595_v32, %v1599_v35  ;;  %v14760_v58 = vcombine.low %v1531_v1, %v1535_v7 }
 0x34b   : > { %10159 = vmatprep.subr.bf16.mxu1 %v14729_v61  ;;  %10135 = vmatmul.mubr.bf16.vlgmr.msra.gmra.mrb[36].mxu0 %v16951_v53  ;;  %v1607_v46 = vld [vmem:[%s16564_s9 + $0x2568] sm:$0xff] }
 0x34c   : > { %10185 = vmatpush1.bf16.msra.mxu0 %v14792_v3  ;;  %10216 = vmatprep.mubr.bf16.mxu0 %v16967_v2  ;;  %v1539_v47 = vld [vmem:[%s16564_s9 + $0x2348] sm:$0xff]  ;;  %v14833_v61 = vcombine.high %v1603_v52, %v1607_v46 }
 0x34d   : > { %10186 = vmatprep.subr.bf16.mxu0 %v14801_v4  ;;  %v1543_v49 = vld [vmem:[%s16564_s9 + $0x2368] sm:$0xff] }
 0x34e   : > { %10160 = vmatpush1.bf16.msra.mxu1 %v14728_v18  ;;  %v14769_v8 = vcombine.high %v1539_v47, %v1543_v49  ;;  %v1611_v14 = vld [vmem:[%s16564_s9 + $0x2588] sm:$0xff]  ;;  %v14832_v18 = vcombine.low %v1603_v52, %v1607_v46  ;;  %v14768_v4 = vcombine.low %v1539_v47, %v1543_v49 }
 0x34f   : > { %10161 = vmatprep.subr.bf16.mxu1 %v14737_v13  ;;  %v1615_v62 = vld [vmem:[%s16564_s9 + $0x25a8] sm:$0xff] }
 0x350   : > { %10187 = vmatpush1.bf16.msra.mxu0 %v14800_v15  ;;  %v1547_v63 = vld [vmem:[%s16564_s9 + $0x2388] sm:$0xff]  ;;  %v14841_v13 = vcombine.high %v1611_v14, %v1615_v62  ;;  %v14840_v24 = vcombine.low %v1611_v14, %v1615_v62 }
 0x351   : > { %10188 = vmatprep.subr.bf16.mxu0 %v14809_v39  ;;  %v1551_v3 = vld [vmem:[%s16564_s9 + $0x23a8] sm:$0xff] }
 0x352   : > { %10162 = vmatpush1.bf16.msra.mxu1 %v14736_v56  ;;  %v14777_v12 = vcombine.high %v1547_v63, %v1551_v3  ;;  %v1619_v33 = vld [vmem:[%s16564_s9 + $0x25c8] sm:$0xff] }
 0x353   : > { %10163 = vmatprep.subr.bf16.mxu1 %v14745_v43  ;;  %v1623_v38 = vld [vmem:[%s16564_s9 + $0x25e8] sm:$0xff] }
 0x354   : > { %10189 = vmatpush1.bf16.msra.mxu0 %v14808_v54  ;;  %v1555_v39 = vld [vmem:[%s16564_s9 + $0x23c8] sm:$0xff]  ;;  %v14776_v54 = vcombine.low %v1547_v63, %v1551_v3 }
 0x355   : > { %10190 = vmatprep.subr.bf16.mxu0 %v14817_v27  ;;  %v1559_v43 = vld [vmem:[%s16564_s9 + $0x23e8] sm:$0xff] }
 0x356   : > { %10164 = vmatpush1.bf16.msra.mxu1 %v14744_v26  ;;  %v14849_v26 = vcombine.high %v1619_v33, %v1623_v38  ;;  %v1627_v27 = vld [vmem:[%s16564_s9 + $0x2608] sm:$0xff]  ;;  %v14784_v1 = vcombine.low %v1555_v39, %v1559_v43 }
 0x357   : > { %10165 = vmatprep.subr.bf16.mxu1 %v14753_v31  ;;  %v1631_v31 = vld [vmem:[%s16564_s9 + $0x2628] sm:$0xff] }
 0x358   : > { %10191 = vmatpush1.bf16.msra.mxu0 %v14816_v42  ;;  %v1691_v32 = vld [vmem:[%s16564_s9 + $0x2808] sm:$0xff]  ;;  %v14857_v7 = vcombine.high %v1627_v27, %v1631_v31  ;;  %v14856_v46 = vcombine.low %v1627_v27, %v1631_v31 }
 0x359   : > { %10192 = vmatprep.subr.bf16.mxu0 %v14825_v10  ;;  %v1695_v35 = vld [vmem:[%s16564_s9 + $0x2828] sm:$0xff] }
 0x35a   : > { %10166 = vmatpush1.bf16.msra.mxu1 %v14752_v44  ;;  %v14921_v42 = vcombine.high %v1691_v32, %v1695_v35  ;;  %v1635_v44 = vld [vmem:[%s16564_s9 + $0x2648] sm:$0xff]  ;;  %v14920_v47 = vcombine.low %v1691_v32, %v1695_v35 }
 0x35b   : > { %10167 = vmatprep.subr.bf16.mxu1 %v14761_v45  ;;  %v1639_v10 = vld [vmem:[%s16564_s9 + $0x2668] sm:$0xff] }
 0x35c   : > { %10193 = vmatpush1.bf16.msra.mxu0 %v14824_v51  ;;  %v1699_v45 = vld [vmem:[%s16564_s9 + $0x2848] sm:$0xff]  ;;  %v14865_v49 = vcombine.high %v1635_v44, %v1639_v10  ;;  %v14864_v62 = vcombine.low %v1635_v44, %v1639_v10 }
 0x35d   : > { %10194 = vmatprep.subr.bf16.mxu0 %v14833_v61  ;;  %v1703_v52 = vld [vmem:[%s16564_s9 + $0x2868] sm:$0xff] }
 0x35e   : > { %10168 = vmatpush1.bf16.msra.mxu1 %v14760_v58  ;;  %v9890_v40 = vpop.f32.mrb[24].mxu0  ;;  %v14929_v51 = vcombine.high %v1699_v45, %v1703_v52  ;;  %v1643_v58 = vld [vmem:[%s16564_s9 + $0x2688] sm:$0xff]  ;;  %v14928_v63 = vcombine.low %v1699_v45, %v1703_v52 }
 0x35f   : > { %10169 = vmatprep.subr.bf16.mxu1 %v14769_v8  ;;  %v17458_v15 = vadd.f32 %v9890_v40, %v17419_v29  ;;  %v9892_v56 = vpop.f32.mrb[25].mxu0  ;;  %v14785_v29 = vcombine.high %v1555_v39, %v1559_v43  ;;  %v1647_v61 = vld [vmem:[%s16564_s9 + $0x26a8] sm:$0xff] }
 0x360   : > { %v17463_v20 = vadd.f32 %v9892_v56, %v17423_v34  ;;  %v9894_v22 = vpop.f32.mrb[26].mxu0  ;;  %10195 = vmatpush1.bf16.msra.mxu0 %v14832_v18  ;;  %v14848_v34 = vcombine.low %v1619_v33, %v1623_v38  ;;  %v1707_v8 = vld [vmem:[%s16564_s9 + $0x2888] sm:$0xff]  ;;  %v14873_v3 = vcombine.high %v1643_v58, %v1647_v61  ;;  %v14872_v33 = vcombine.low %v1643_v58, %v1647_v61 }
 0x361   : > { %v9895_v25 = vpop.f32.mrb[27].mxu0  ;;  %10196 = vmatprep.subr.bf16.mxu0 %v14841_v13  ;;  %v1711_v14 = vld [vmem:[%s16564_s9 + $0x28a8] sm:$0xff] }
 0x362   : > { %10170 = vmatpush1.bf16.msra.mxu1 %v14768_v4  ;;  %v14937_v18 = vcombine.high %v1707_v8, %v1711_v14  ;;  %v1651_v4 = vld [vmem:[%s16564_s9 + $0x26c8] sm:$0xff]  ;;  %v14936_v38 = vcombine.low %v1707_v8, %v1711_v14 }
 0x363   : > { %10171 = vmatprep.subr.bf16.mxu1 %v14777_v12  ;;  %v1655_v13 = vld [vmem:[%s16564_s9 + $0x26e8] sm:$0xff] }
 0x364   : > { %10197 = vmatpush1.bf16.msra.mxu0 %v14840_v24  ;;  %v1715_v40 = vld [vmem:[%s16564_s9 + $0x28c8] sm:$0xff]  ;;  %v14881_v56 = vcombine.high %v1651_v4, %v1655_v13 }
 0x365   : > { %10198 = vmatprep.subr.bf16.mxu0 %v14849_v26  ;;  %v1719_v12 = vld [vmem:[%s16564_s9 + $0x28e8] sm:$0xff] }
 0x366   : > { %10172 = vmatpush1.bf16.msra.mxu1 %v14776_v54  ;;  %v14945_v39 = vcombine.high %v1715_v40, %v1719_v12  ;;  %v1659_v43 = vld [vmem:[%s16564_s9 + $0x2708] sm:$0xff]  ;;  %v14880_v54 = vcombine.low %v1651_v4, %v1655_v13  ;;  %v14944_v26 = vcombine.low %v1715_v40, %v1719_v12 }
 0x367   : > { %10173 = vmatprep.subr.bf16.mxu1 %v14785_v29  ;;  %v1663_v22 = vld [vmem:[%s16564_s9 + $0x2728] sm:$0xff] }
 0x368   : > { %10199 = vmatpush1.bf16.msra.mxu0 %v14848_v34  ;;  %v1723_v24 = vld [vmem:[%s16564_s9 + $0x2908] sm:$0xff]  ;;  %v14889_v29 = vcombine.high %v1659_v43, %v1663_v22 }
 0x369   : > { %10200 = vmatprep.subr.bf16.mxu0 %v14857_v7  ;;  %v1727_v25 = vld [vmem:[%s16564_s9 + $0x2928] sm:$0xff] }
 0x36a   : > { %10174 = vmatpush1.bf16.msra.mxu1 %v14784_v1  ;;  %v14953_v27 = vcombine.high %v1723_v24, %v1727_v25  ;;  %v1667_v31 = vld [vmem:[%s16564_s9 + $0x2748] sm:$0xff]  ;;  %v14888_v1 = vcombine.low %v1659_v43, %v1663_v22  ;;  %v14952_v7 = vcombine.low %v1723_v24, %v1727_v25 }
 0x36b   : > { %10225 = vmatprep.subr.bf16.mxu1 %v14921_v42  ;;  %v1671_v32 = vld [vmem:[%s16564_s9 + $0x2768] sm:$0xff] }
 0x36c   : > { %10201 = vmatpush1.bf16.msra.mxu0 %v14856_v46  ;;  %v1731_v35 = vld [vmem:[%s16564_s9 + $0x2948] sm:$0xff]  ;;  %v14897_v42 = vcombine.high %v1667_v31, %v1671_v32 }
 0x36d   : > { %10176 = vmatmul.mubr.bf16.vlgmr.msra.gmra.mrb[40].mxu1 %v17036_v11  ;;  %10202 = vmatprep.subr.bf16.mxu0 %v14865_v49  ;;  %v1735_v34 = vld [vmem:[%s16564_s9 + $0x2968] sm:$0xff] }
 0x36e   : > { %10226 = vmatpush1.bf16.msra.mxu1 %v14920_v47  ;;  %10257 = vmatprep.mubr.bf16.mxu1 %v17054_v57  ;;  %v14961_v44 = vcombine.high %v1731_v35, %v1735_v34  ;;  %v1675_v10 = vld [vmem:[%s16564_s9 + $0x2788] sm:$0xff]  ;;  %v14896_v47 = vcombine.low %v1667_v31, %v1671_v32  ;;  %v14960_v49 = vcombine.low %v1731_v35, %v1735_v34 }
 0x36f   : > { %10227 = vmatprep.subr.bf16.mxu1 %v14929_v51  ;;  %v1679_v45 = vld [vmem:[%s16564_s9 + $0x27a8] sm:$0xff] }
 0x370   : > { %10203 = vmatpush1.bf16.msra.mxu0 %v14864_v62  ;;  %v1739_v52 = vld [vmem:[%s16564_s9 + $0x2988] sm:$0xff]  ;;  %v14905_v51 = vcombine.high %v1675_v10, %v1679_v45  ;;  %v14904_v4 = vcombine.low %v1675_v10, %v1679_v45 }
 0x371   : > { %10204 = vmatprep.subr.bf16.mxu0 %v14873_v3  ;;  %v1743_v46 = vld [vmem:[%s16564_s9 + $0x29a8] sm:$0xff] }
 0x372   : > { %10228 = vmatpush1.bf16.msra.mxu1 %v14928_v63  ;;  %v14969_v58 = vcombine.high %v1739_v52, %v1743_v46  ;;  %v1683_v61 = vld [vmem:[%s16564_s9 + $0x27c8] sm:$0xff]  ;;  %v14968_v12 = vcombine.low %v1739_v52, %v1743_v46 }
 0x373   : > { %10229 = vmatprep.subr.bf16.mxu1 %v14937_v18  ;;  %v1687_v8 = vld [vmem:[%s16564_s9 + $0x27e8] sm:$0xff] }
 0x374   : > { %10205 = vmatpush1.bf16.msra.mxu0 %v14872_v33  ;;  %v1747_v62 = vld [vmem:[%s16564_s9 + $0x29c8] sm:$0xff]  ;;  %v14913_v33 = vcombine.high %v1683_v61, %v1687_v8  ;;  %v14912_v24 = vcombine.low %v1683_v61, %v1687_v8 }
 0x375   : > { %10206 = vmatprep.subr.bf16.mxu0 %v14881_v56  ;;  %v1751_v63 = vld [vmem:[%s16564_s9 + $0x29e8] sm:$0xff] }
 0x376   : > { %10230 = vmatpush1.bf16.msra.mxu1 %v14936_v38  ;;  %v14977_v56 = vcombine.high %v1747_v62, %v1751_v63  ;;  %v1755_v43 = vld [vmem:[%s16564_s9 + $0x2a08] sm:$0xff] }
 0x377   : > { %10231 = vmatprep.subr.bf16.mxu1 %v14945_v39  ;;  %v1823_v39 = vld [vmem:[%s16564_s9 + $0x2c28] sm:$0xff] }
 0x378   : > { %10207 = vmatpush1.bf16.msra.mxu0 %v14880_v54  ;;  %v1759_v22 = vld [vmem:[%s16564_s9 + $0x2a28] sm:$0xff] }
 0x379   : > { %10208 = vmatprep.subr.bf16.mxu0 %v14889_v29  ;;  %v14985_v54 = vcombine.high %v1755_v43, %v1759_v22  ;;  %v1831_v29 = vld [vmem:[%s16564_s9 + $0x2c68] sm:$0xff]  ;;  %v14984_v35 = vcombine.low %v1755_v43, %v1759_v22 }
 0x37a   : > { %10232 = vmatpush1.bf16.msra.mxu1 %v14944_v26  ;;  %v1827_v26 = vld [vmem:[%s16564_s9 + $0x2c48] sm:$0xff] }
 0x37b   : > { %10233 = vmatprep.subr.bf16.mxu1 %v14953_v27  ;;  %v1763_v27 = vld [vmem:[%s16564_s9 + $0x2a48] sm:$0xff]  ;;  %v15057_v34 = vcombine.high %v1827_v26, %v1831_v29  ;;  %v15056_v45 = vcombine.low %v1827_v26, %v1831_v29 }
 0x37c   : > { %10209 = vmatpush1.bf16.msra.mxu0 %v14888_v1  ;;  %v1767_v31 = vld [vmem:[%s16564_s9 + $0x2a68] sm:$0xff] }
 0x37d   : > { %10210 = vmatprep.subr.bf16.mxu0 %v14897_v42  ;;  %v14993_v1 = vcombine.high %v1763_v27, %v1767_v31  ;;  %v1839_v42 = vld [vmem:[%s16564_s9 + $0x2ca8] sm:$0xff]  ;;  %v14992_v52 = vcombine.low %v1763_v27, %v1767_v31 }
 0x37e   : > { %10234 = vmatpush1.bf16.msra.mxu1 %v14952_v7  ;;  %v1835_v7 = vld [vmem:[%s16564_s9 + $0x2c88] sm:$0xff] }
 0x37f   : > { %10235 = vmatprep.subr.bf16.mxu1 %v14961_v44  ;;  %v1771_v44 = vld [vmem:[%s16564_s9 + $0x2a88] sm:$0xff]  ;;  %v15065_v46 = vcombine.high %v1835_v7, %v1839_v42  ;;  %v15064_v8 = vcombine.low %v1835_v7, %v1839_v42 }
 0x380   : > { %v9931_v14 = vpop.f32.mrb[28].mxu1  ;;  %10211 = vmatpush1.bf16.msra.mxu0 %v14896_v47  ;;  %v1775_v10 = vld [vmem:[%s16564_s9 + $0x2aa8] sm:$0xff] }
 0x381   : > { %v17500_v3 = vadd.f32 %v9931_v14, %v17458_v15  ;;  %v9933_v18 = vpop.f32.mrb[29].mxu1  ;;  %10212 = vmatprep.subr.bf16.mxu0 %v14905_v51  ;;  %v1819_v15 = vld [vmem:[%s16564_s9 + $0x2c08] sm:$0xff]  ;;  %v15001_v47 = vcombine.high %v1771_v44, %v1775_v10  ;;  %v15000_v14 = vcombine.low %v1771_v44, %v1775_v10 }
 0x382   : > { %v17503_v13 = vadd.f32 %v9933_v18, %v17463_v20  ;;  %v9935_v40 = vpop.f32.mrb[30].mxu1  ;;  %10236 = vmatpush1.bf16.msra.mxu1 %v14960_v49  ;;  %v14976_v20 = vcombine.low %v1747_v62, %v1751_v63  ;;  %v15049_v25 = vcombine.high %v1819_v15, %v1823_v39  ;;  %v15048_v32 = vcombine.low %v1819_v15, %v1823_v39  ;;  %v1843_v49 = vld [vmem:[%s16564_s9 + $0x2cc8] sm:$0xff] }
 0x383   : > { %v9936_v38 = vpop.f32.mrb[31].mxu1  ;;  %10237 = vmatprep.subr.bf16.mxu1 %v14969_v58  ;;  %v1847_v51 = vld [vmem:[%s16564_s9 + $0x2ce8] sm:$0xff] }
 0x384   : > { %10213 = vmatpush1.bf16.msra.mxu0 %v14904_v4  ;;  %v1779_v58 = vld [vmem:[%s16564_s9 + $0x2ac8] sm:$0xff]  ;;  %v15073_v62 = vcombine.high %v1843_v49, %v1847_v51 }
 0x385   : > { %10214 = vmatprep.subr.bf16.mxu0 %v14913_v33  ;;  %v1783_v61 = vld [vmem:[%s16564_s9 + $0x2ae8] sm:$0xff]  ;;  %v15072_v33 = vcombine.low %v1843_v49, %v1847_v51 }
 0x386   : > { %10238 = vmatpush1.bf16.msra.mxu1 %v14968_v12  ;;  %v15009_v63 = vcombine.high %v1779_v58, %v1783_v61  ;;  %v1851_v18 = vld [vmem:[%s16564_s9 + $0x2d08] sm:$0xff]  ;;  %v15008_v38 = vcombine.low %v1779_v58, %v1783_v61 }
 0x387   : > { %10239 = vmatprep.subr.bf16.mxu1 %v14977_v56  ;;  %v1855_v4 = vld [vmem:[%s16564_s9 + $0x2d28] sm:$0xff] }
 0x388   : > { %10215 = vmatpush1.bf16.msra.mxu0 %v14912_v24  ;;  %v1787_v40 = vld [vmem:[%s16564_s9 + $0x2b08] sm:$0xff]  ;;  %v15081_v56 = vcombine.high %v1851_v18, %v1855_v4 }
 0x389   : > { %10266 = vmatprep.subr.bf16.mxu0 %v15049_v25  ;;  %v1791_v12 = vld [vmem:[%s16564_s9 + $0x2b28] sm:$0xff] }
 0x38a   : > { %10240 = vmatpush1.bf16.msra.mxu1 %v14976_v20  ;;  %v15017_v15 = vcombine.high %v1787_v40, %v1791_v12  ;;  %v1859_v39 = vld [vmem:[%s16564_s9 + $0x2d48] sm:$0xff]  ;;  %v15080_v20 = vcombine.low %v1851_v18, %v1855_v4  ;;  %v15016_v25 = vcombine.low %v1787_v40, %v1791_v12  ;;  %v540_v18 = vld [vmem:[%s16564_s9 + $0x410] sm:$0xff] }
 0x38b   : > { %10241 = vmatprep.subr.bf16.mxu1 %v14985_v54  ;;  %10217 = vmatmul.mubr.bf16.vlgmr.msra.gmra.mrb[40].mxu0 %v17042_v6  ;;  %v1863_v43 = vld [vmem:[%s16564_s9 + $0x2d68] sm:$0xff]  ;;  %v544_v4 = vld [vmem:[%s16564_s9 + $0x430] sm:$0xff] }
 0x38c   : > { %10267 = vmatpush1.bf16.msra.mxu0 %v15048_v32  ;;  %10298 = vmatprep.mubr.bf16.mxu0 %v16281_v55  ;;  %v1795_v22 = vld [vmem:[%s16564_s9 + $0x2b48] sm:$0xff]  ;;  %v15089_v54 = vcombine.high %v1859_v39, %v1863_v43 }
 0x38d   : > { %10268 = vmatprep.subr.bf16.mxu0 %v15057_v34  ;;  %v1799_v24 = vld [vmem:[%s16564_s9 + $0x2b68] sm:$0xff] }
 0x38e   : > { %10242 = vmatpush1.bf16.msra.mxu1 %v14984_v35  ;;  %v15025_v26 = vcombine.high %v1795_v22, %v1799_v24  ;;  %v1867_v29 = vld [vmem:[%s16564_s9 + $0x2d88] sm:$0xff]  ;;  %v15088_v35 = vcombine.low %v1859_v39, %v1863_v43  ;;  %v15024_v34 = vcombine.low %v1795_v22, %v1799_v24  ;;  %v552_v39 = vld [vmem:[%s16564_s9 + $0x470] sm:$0xff]  ;;  %v13770_v22 = vcombine.low %v540_v18, %v544_v4 }
 0x38f   : > { %10243 = vmatprep.subr.bf16.mxu1 %v14993_v1  ;;  %v1871_v27 = vld [vmem:[%s16564_s9 + $0x2da8] sm:$0xff] }
 0x390   : > { %10269 = vmatpush1.bf16.msra.mxu0 %v15056_v45  ;;  %v1803_v31 = vld [vmem:[%s16564_s9 + $0x2b88] sm:$0xff]  ;;  %v15097_v1 = vcombine.high %v1867_v29, %v1871_v27  ;;  %v15096_v58 = vcombine.low %v1867_v29, %v1871_v27  ;;  %v556_v29 = vld [vmem:[%s16564_s9 + $0x490] sm:$0xff] }
 0x391   : > { %10270 = vmatprep.subr.bf16.mxu0 %v15065_v46  ;;  %v1807_v32 = vld [vmem:[%s16564_s9 + $0x2ba8] sm:$0xff]  ;;  %v560_v27 = vld [vmem:[%s16564_s9 + $0x4b0] sm:$0xff] }
 0x392   : > { %10244 = vmatpush1.bf16.msra.mxu1 %v14992_v52  ;;  %v15033_v42 = vcombine.high %v1803_v31, %v1807_v32  ;;  %v1875_v44 = vld [vmem:[%s16564_s9 + $0x2dc8] sm:$0xff] }
 0x393   : > { %10245 = vmatprep.subr.bf16.mxu1 %v15001_v47  ;;  %v1879_v10 = vld [vmem:[%s16564_s9 + $0x2de8] sm:$0xff] }
 0x394   : > { %10271 = vmatpush1.bf16.msra.mxu0 %v15064_v8  ;;  %v1811_v46 = vld [vmem:[%s16564_s9 + $0x2bc8] sm:$0xff]  ;;  %v15032_v8 = vcombine.low %v1803_v31, %v1807_v32 }
 0x395   : > { %10272 = vmatprep.subr.bf16.mxu0 %v15073_v62  ;;  %v1815_v47 = vld [vmem:[%s16564_s9 + $0x2be8] sm:$0xff]  ;;  %v412_v62 = vld [vmem:[%s16564_s9 + $0x10] sm:$0xff] }
 0x396   : > { %10246 = vmatpush1.bf16.msra.mxu1 %v15000_v14  ;;  %v15105_v14 = vcombine.high %v1875_v44, %v1879_v10  ;;  %v15040_v40 = vcombine.low %v1811_v46, %v1815_v47 }
 0x397   : > { %10247 = vmatprep.subr.bf16.mxu1 %v15009_v63  ;;  %v416_v63 = vld [vmem:[%s16564_s9 + $0x30] sm:$0xff] }
 0x398   : > { %10273 = vmatpush1.bf16.msra.mxu0 %v15072_v33  ;;  %v13643_v12 = vcombine.high %v412_v62, %v416_v63  ;;  %v13771_v33 = vcombine.high %v540_v18, %v544_v4  ;;  %v13642_v43 = vcombine.low %v412_v62, %v416_v63  ;;  %v452_v18 = vld [vmem:[%s16564_s9 + $0x150] sm:$0xff] }
 0x399   : > { %10274 = vmatprep.subr.bf16.mxu0 %v15081_v56  ;;  %v424_v56 = vld [vmem:[%s16564_s9 + $0x70] sm:$0xff] }
 0x39a   : > { %10248 = vmatpush1.bf16.msra.mxu1 %v15008_v38  ;;  %v420_v38 = vld [vmem:[%s16564_s9 + $0x50] sm:$0xff] }
 0x39b   : > { %10249 = vmatprep.subr.bf16.mxu1 %v15017_v15  ;;  %v548_v15 = vld [vmem:[%s16564_s9 + $0x450] sm:$0xff]  ;;  %v13651_v24 = vcombine.high %v420_v38, %v424_v56  ;;  %v13650_v31 = vcombine.low %v420_v38, %v424_v56 }
 0x39c   : > { %10275 = vmatpush1.bf16.msra.mxu0 %v15080_v20  ;;  %v13779_v20 = vcombine.high %v548_v15, %v552_v39  ;;  %v13778_v32 = vcombine.low %v548_v15, %v552_v39  ;;  %v456_v4 = vld [vmem:[%s16564_s9 + $0x170] sm:$0xff] }
 0x39d   : > { %10276 = vmatprep.subr.bf16.mxu0 %v15089_v54  ;;  %v432_v54 = vld [vmem:[%s16564_s9 + $0xb0] sm:$0xff]  ;;  %v13683_v38 = vcombine.high %v452_v18, %v456_v4 }
 0x39e   : > { %10250 = vmatpush1.bf16.msra.mxu1 %v15016_v25  ;;  %v9972_v7 = vpop.f32.mrb[28].mxu0  ;;  %v428_v25 = vld [vmem:[%s16564_s9 + $0x90] sm:$0xff] }
 0x39f   : > { %10251 = vmatprep.subr.bf16.mxu1 %v15025_v26  ;;  %v17538_v45 = vadd.f32 %v9972_v7, %v17500_v3  ;;  %v9974_v52 = vpop.f32.mrb[29].mxu0  ;;  %v15041_v3 = vcombine.high %v1811_v46, %v1815_v47  ;;  %v15654_v26 = vld [vmem:[%s16557_s27 + $0x58] ss:$0 sps:$4 sm:$0xff]   ;;  %v440_v7 = vld [vmem:[%s16564_s9 + $0xf0] sm:$0xff] }
 0x3a0   : > { %v17543_v49 = vadd.f32 %v9974_v52, %v17503_v13  ;;  %v9976_v51 = vpop.f32.mrb[30].mxu0  ;;  %10277 = vmatpush1.bf16.msra.mxu0 %v15088_v35  ;;  %v15104_v13 = vcombine.low %v1875_v44, %v1879_v10  ;;  %v13659_v35 = vcombine.high %v428_v25, %v432_v54  ;;  %v568_v44 = vld [vmem:[%s16564_s9 + $0x4f0] sm:$0xff]  ;;  %v13658_v10 = vcombine.low %v428_v25, %v432_v54 }
 0x3a1   : > { %v9977_v61 = vpop.f32.mrb[31].mxu0  ;;  %10278 = vmatprep.subr.bf16.mxu0 %v15097_v1  ;;  %v436_v1 = vld [vmem:[%s16564_s9 + $0xd0] sm:$0xff]  ;;  %v13786_v52 = vcombine.low %v556_v29, %v560_v27 }
 0x3a2   : > { %10252 = vmatpush1.bf16.msra.mxu1 %v15024_v34  ;;  %v13787_v34 = vcombine.high %v556_v29, %v560_v27  ;;  %v13667_v46 = vcombine.high %v436_v1, %v440_v7  ;;  %v444_v51 = vld [vmem:[%s16564_s9 + $0x110] sm:$0xff] }
 0x3a3   : > { %10253 = vmatprep.subr.bf16.mxu1 %v15033_v42  ;;  %v564_v42 = vld [vmem:[%s16564_s9 + $0x4d0] sm:$0xff] }
 0x3a4   : > { %10279 = vmatpush1.bf16.msra.mxu0 %v15096_v58  ;;  %v13795_v47 = vcombine.high %v564_v42, %v568_v44  ;;  %v448_v58 = vld [vmem:[%s16564_s9 + $0x130] sm:$0xff] }
 0x3a5   : > { %10280 = vmatprep.subr.bf16.mxu0 %v15105_v14  ;;  %v572_v61 = vld [vmem:[%s16564_s9 + $0x510] sm:$0xff]  ;;  %v13666_v14 = vcombine.low %v436_v1, %v440_v7  ;;  %v13675_v62 = vcombine.high %v444_v51, %v448_v58 }
 0x3a6   : > { %10254 = vmatpush1.bf16.msra.mxu1 %v15032_v8  ;;  %v576_v8 = vld [vmem:[%s16564_s9 + $0x530] sm:$0xff] }
 0x3a7   : > { %10255 = vmatprep.subr.bf16.mxu1 %v15041_v3  ;;  %v13794_v3 = vcombine.low %v564_v42, %v568_v44  ;;  %v13803_v63 = vcombine.high %v572_v61, %v576_v8  ;;  %v460_v15 = vld [vmem:[%s16564_s9 + $0x190] sm:$0xff] }
 0x3a8   : > { %10281 = vmatpush1.bf16.msra.mxu0 %v15104_v13  ;;  %v580_v13 = vld [vmem:[%s16564_s9 + $0x550] sm:$0xff] }
 0x3a9   : > { %10307 = vmatprep.subr.bf16.mxu0 %v13643_v12  ;;  %v13674_v12 = vcombine.low %v444_v51, %v448_v58  ;;  %v464_v39 = vld [vmem:[%s16564_s9 + $0x1b0] sm:$0xff] }
 0x3aa   : > { %10256 = vmatpush1.bf16.msra.mxu1 %v15040_v40  ;;  %v584_v40 = vld [vmem:[%s16564_s9 + $0x570] sm:$0xff]  ;;  %v13691_v25 = vcombine.high %v460_v15, %v464_v39  ;;  %v13690_v1 = vcombine.low %v460_v15, %v464_v39 }
 0x3ab   : > { %10348 = vmatprep.subr.bf16.mxu1 %v13771_v33  ;;  %10299 = vmatmul.mubr.bf16.vlgmr.msra.gmra.mrb[44].mxu0 %v15654_v26  ;;  %v13802_v33 = vcombine.low %v572_v61, %v576_v8  ;;  %v13811_v56 = vcombine.high %v580_v13, %v584_v40  ;;  %v468_v26 = vld [vmem:[%s16564_s9 + $0x1d0] sm:$0xff] }
 0x3ac   : > { %10308 = vmatpush1.bf16.msra.mxu0 %v13642_v43  ;;  %10339 = vmatprep.mubr.bf16.mxu0 %v16622_v59  ;;  %v588_v43 = vld [vmem:[%s16564_s9 + $0x590] sm:$0xff] }
 0x3ad   : > { %10258 = vmatmul.mubr.bf16.vlgmr.msra.gmra.mrb[44].mxu1 %v17127_v36  ;;  %10309 = vmatprep.subr.bf16.mxu0 %v13651_v24  ;;  %v13682_v24 = vcombine.low %v452_v18, %v456_v4  ;;  %v472_v29 = vld [vmem:[%s16564_s9 + $0x1f0] sm:$0xff] }
 0x3ae   : > { %10349 = vmatpush1.bf16.msra.mxu1 %v13770_v22  ;;  %10380 = vmatprep.mubr.bf16.mxu1 %v16626_v60  ;;  %v592_v22 = vld [vmem:[%s16564_s9 + $0x5b0] sm:$0xff]  ;;  %v13698_v61 = vcombine.low %v468_v26, %v472_v29 }
 0x3af   : > { %10350 = vmatprep.subr.bf16.mxu1 %v13779_v20  ;;  %v13810_v20 = vcombine.low %v580_v13, %v584_v40  ;;  %v13819_v54 = vcombine.high %v588_v43, %v592_v22  ;;  %v13818_v44 = vcombine.low %v588_v43, %v592_v22  ;;  %v604_v51 = vld [vmem:[%s16564_s9 + $0x610] sm:$0xff] }
 0x3b0   : > { %10310 = vmatpush1.bf16.msra.mxu0 %v13650_v31  ;;  %v596_v31 = vld [vmem:[%s16564_s9 + $0x5d0] sm:$0xff] }
 0x3b1   : > { %10311 = vmatprep.subr.bf16.mxu0 %v13659_v35  ;;  %v608_v58 = vld [vmem:[%s16564_s9 + $0x630] sm:$0xff] }
 0x3b2   : > { %10351 = vmatpush1.bf16.msra.mxu1 %v13778_v32  ;;  %v600_v32 = vld [vmem:[%s16564_s9 + $0x5f0] sm:$0xff]  ;;  %v13834_v13 = vcombine.low %v604_v51, %v608_v58 }
 0x3b3   : > { %10352 = vmatprep.subr.bf16.mxu1 %v13787_v34  ;;  %v616_v18 = vld [vmem:[%s16564_s9 + $0x670] sm:$0xff] }
 0x3b4   : > { %10312 = vmatpush1.bf16.msra.mxu0 %v13658_v10  ;;  %v13699_v10 = vcombine.high %v468_v26, %v472_v29  ;;  %v624_v15 = vld [vmem:[%s16564_s9 + $0x6b0] sm:$0xff] }
 0x3b5   : > { %10313 = vmatprep.subr.bf16.mxu0 %v13667_v46  ;;  %v13827_v46 = vcombine.high %v596_v31, %v600_v32  ;;  %v632_v26 = vld [vmem:[%s16564_s9 + $0x6f0] sm:$0xff] }
 0x3b6   : > { %10353 = vmatpush1.bf16.msra.mxu1 %v13786_v52 }
 0x3b7   : > { %10354 = vmatprep.subr.bf16.mxu1 %v13795_v47  ;;  %v480_v47 = vld [vmem:[%s16564_s9 + $0x230] sm:$0xff] }
 0x3b8   : > { %10314 = vmatpush1.bf16.msra.mxu0 %v13666_v14  ;;  %v13835_v14 = vcombine.high %v604_v51, %v608_v58  ;;  %v520_v51 = vld [vmem:[%s16564_s9 + $0x370] sm:$0xff] }
 0x3b9   : > { %10315 = vmatprep.subr.bf16.mxu0 %v13675_v62  ;;  %v488_v62 = vld [vmem:[%s16564_s9 + $0x270] sm:$0xff] }
 0x3ba   : > { %10355 = vmatpush1.bf16.msra.mxu1 %v13794_v3  ;;  %v484_v3 = vld [vmem:[%s16564_s9 + $0x250] sm:$0xff] }
 0x3bb   : > { %10356 = vmatprep.subr.bf16.mxu1 %v13803_v63  ;;  %v612_v63 = vld [vmem:[%s16564_s9 + $0x650] sm:$0xff]  ;;  %v13715_v40 = vcombine.high %v484_v3, %v488_v62  ;;  %v13714_v39 = vcombine.low %v484_v3, %v488_v62 }
 0x3bc   : > { %10316 = vmatpush1.bf16.msra.mxu0 %v13674_v12  ;;  %v13843_v12 = vcombine.high %v612_v63, %v616_v18  ;;  %v13842_v43 = vcombine.low %v612_v63, %v616_v18  ;;  %v644_v58 = vld [vmem:[%s16564_s9 + $0x750] sm:$0xff] }
 0x3bd   : > { %10317 = vmatprep.subr.bf16.mxu0 %v13683_v38  ;;  %v496_v38 = vld [vmem:[%s16564_s9 + $0x2b0] sm:$0xff] }
 0x3be   : > { %10357 = vmatpush1.bf16.msra.mxu1 %v13802_v33  ;;  %v492_v33 = vld [vmem:[%s16564_s9 + $0x290] sm:$0xff] }
 0x3bf   : > { %10358 = vmatprep.subr.bf16.mxu1 %v13811_v56  ;;  %v620_v56 = vld [vmem:[%s16564_s9 + $0x690] sm:$0xff]  ;;  %v13723_v22 = vcombine.high %v492_v33, %v496_v38  ;;  %v13722_v29 = vcombine.low %v492_v33, %v496_v38 }
 0x3c0   : > { %v10013_v27 = vpop.f32.mrb[32].mxu1  ;;  %10318 = vmatpush1.bf16.msra.mxu0 %v13682_v24  ;;  %v13851_v24 = vcombine.high %v620_v56, %v624_v15  ;;  %v524_v62 = vld [vmem:[%s16564_s9 + $0x390] sm:$0xff] }
 0x3c1   : > { %v17582_v35 = vadd.f32 %v10013_v27, %v17538_v45  ;;  %v10015_v34 = vpop.f32.mrb[33].mxu1  ;;  %10319 = vmatprep.subr.bf16.mxu0 %v13691_v25  ;;  %v476_v45 = vld [vmem:[%s16564_s9 + $0x210] sm:$0xff]  ;;  %v13850_v27 = vcombine.low %v620_v56, %v624_v15 }
 0x3c2   : > { %v17585_v7 = vadd.f32 %v10015_v34, %v17543_v49  ;;  %v10017_v42 = vpop.f32.mrb[34].mxu1  ;;  %10359 = vmatpush1.bf16.msra.mxu1 %v13810_v20  ;;  %v13826_v49 = vcombine.low %v596_v31, %v600_v32  ;;  %v13707_v8 = vcombine.high %v476_v45, %v480_v47  ;;  %v13706_v4 = vcombine.low %v476_v45, %v480_v47  ;;  %v500_v20 = vld [vmem:[%s16564_s9 + $0x2d0] sm:$0xff] }
 0x3c3   : > { %v10018_v52 = vpop.f32.mrb[35].mxu1  ;;  %10360 = vmatprep.subr.bf16.mxu1 %v13819_v54  ;;  %v504_v25 = vld [vmem:[%s16564_s9 + $0x2f0] sm:$0xff] }
 0x3c4   : > { %10320 = vmatpush1.bf16.msra.mxu0 %v13690_v1  ;;  %v628_v54 = vld [vmem:[%s16564_s9 + $0x6d0] sm:$0xff]  ;;  %v13731_v31 = vcombine.high %v500_v20, %v504_v25 }
 0x3c5   : > { %10321 = vmatprep.subr.bf16.mxu0 %v13699_v10  ;;  %v13859_v32 = vcombine.high %v628_v54, %v632_v26  ;;  %v508_v34 = vld [vmem:[%s16564_s9 + $0x310] sm:$0xff]  ;;  %v13730_v10 = vcombine.low %v500_v20, %v504_v25  ;;  %v13858_v52 = vcombine.low %v628_v54, %v632_v26 }
 0x3c6   : > { %10361 = vmatpush1.bf16.msra.mxu1 %v13818_v44  ;;  %v512_v1 = vld [vmem:[%s16564_s9 + $0x330] sm:$0xff] }
 0x3c7   : > { %10362 = vmatprep.subr.bf16.mxu1 %v13827_v46  ;;  %v636_v42 = vld [vmem:[%s16564_s9 + $0x710] sm:$0xff]  ;;  %v13739_v46 = vcombine.high %v508_v34, %v512_v1 }
 0x3c8   : > { %10322 = vmatpush1.bf16.msra.mxu0 %v13698_v61  ;;  %v640_v44 = vld [vmem:[%s16564_s9 + $0x730] sm:$0xff] }
 0x3c9   : > { %10323 = vmatprep.subr.bf16.mxu0 %v13707_v8  ;;  %v13867_v45 = vcombine.high %v636_v42, %v640_v44  ;;  %v516_v47 = vld [vmem:[%s16564_s9 + $0x350] sm:$0xff]  ;;  %v13866_v8 = vcombine.low %v636_v42, %v640_v44 }
 0x3ca   : > { %10363 = vmatpush1.bf16.msra.mxu1 %v13826_v49  ;;  %v648_v61 = vld [vmem:[%s16564_s9 + $0x770] sm:$0xff]  ;;  %v13738_v49 = vcombine.low %v508_v34, %v512_v1 }
 0x3cb   : > { %10364 = vmatprep.subr.bf16.mxu1 %v13835_v14  ;;  %v13747_v14 = vcombine.high %v516_v47, %v520_v51  ;;  %v13875_v3 = vcombine.high %v644_v58, %v648_v61  ;;  %v528_v63 = vld [vmem:[%s16564_s9 + $0x3b0] sm:$0xff] }
 0x3cc   : > { %10324 = vmatpush1.bf16.msra.mxu0 %v13706_v4  ;;  %v652_v18 = vld [vmem:[%s16564_s9 + $0x790] sm:$0xff]  ;;  %v13754_v54 = vcombine.low %v524_v62, %v528_v63 }
 0x3cd   : > { %10325 = vmatprep.subr.bf16.mxu0 %v13715_v40  ;;  %v656_v4 = vld [vmem:[%s16564_s9 + $0x7b0] sm:$0xff]  ;;  %v13874_v40 = vcombine.low %v644_v58, %v648_v61 }
 0x3ce   : > { %10365 = vmatpush1.bf16.msra.mxu1 %v13834_v13  ;;  %v13746_v13 = vcombine.low %v516_v47, %v520_v51  ;;  %v13883_v38 = vcombine.high %v652_v18, %v656_v4  ;;  %v532_v56 = vld [vmem:[%s16564_s9 + $0x3d0] sm:$0xff] }
 0x3cf   : > { %10366 = vmatprep.subr.bf16.mxu1 %v13843_v12  ;;  %v13755_v12 = vcombine.high %v524_v62, %v528_v63  ;;  %v536_v15 = vld [vmem:[%s16564_s9 + $0x3f0] sm:$0xff] }
 0x3d0   : > { %10326 = vmatpush1.bf16.msra.mxu0 %v13714_v39  ;;  %v796_v34 = vld [vmem:[%s16564_s9 + $0xc10] sm:$0xff] }
 0x3d1   : > { %10327 = vmatprep.subr.bf16.mxu0 %v13723_v22  ;;  %v660_v22 = vld [vmem:[%s16564_s9 + $0x7d0] sm:$0xff] }
 0x3d2   : > { %10367 = vmatpush1.bf16.msra.mxu1 %v13842_v43  ;;  %v800_v1 = vld [vmem:[%s16564_s9 + $0xc30] sm:$0xff] }
 0x3d3   : > { %10368 = vmatprep.subr.bf16.mxu1 %v13851_v24  ;;  %v664_v24 = vld [vmem:[%s16564_s9 + $0x7f0] sm:$0xff]  ;;  %v14026_v58 = vcombine.low %v796_v34, %v800_v1 }
 0x3d4   : > { %10328 = vmatpush1.bf16.msra.mxu0 %v13722_v29  ;;  %v13882_v29 = vcombine.low %v652_v18, %v656_v4  ;;  %v13890_v42 = vcombine.low %v660_v22, %v664_v24  ;;  %v808_v47 = vld [vmem:[%s16564_s9 + $0xc70] sm:$0xff] }
 0x3d5   : > { %10329 = vmatprep.subr.bf16.mxu0 %v13731_v31  ;;  %v668_v31 = vld [vmem:[%s16564_s9 + $0x810] sm:$0xff] }
 0x3d6   : > { %10369 = vmatpush1.bf16.msra.mxu1 %v13850_v27  ;;  %v13763_v27 = vcombine.high %v532_v56, %v536_v15  ;;  %v816_v62 = vld [vmem:[%s16564_s9 + $0xcb0] sm:$0xff] }
 0x3d7   : > { %10370 = vmatprep.subr.bf16.mxu1 %v13859_v32  ;;  %v672_v32 = vld [vmem:[%s16564_s9 + $0x830] sm:$0xff] }
 0x3d8   : > { %10330 = vmatpush1.bf16.msra.mxu0 %v13730_v10  ;;  %v13899_v44 = vcombine.high %v668_v31, %v672_v32  ;;  %v14027_v10 = vcombine.high %v796_v34, %v800_v1  ;;  %v13898_v51 = vcombine.low %v668_v31, %v672_v32  ;;  %v708_v32 = vld [vmem:[%s16564_s9 + $0x950] sm:$0xff] }
 0x3d9   : > { %10331 = vmatprep.subr.bf16.mxu0 %v13739_v46  ;;  %v680_v46 = vld [vmem:[%s16564_s9 + $0x870] sm:$0xff] }
 0x3da   : > { %10371 = vmatpush1.bf16.msra.mxu1 %v13858_v52  ;;  %v676_v52 = vld [vmem:[%s16564_s9 + $0x850] sm:$0xff] }
 0x3db   : > { %10372 = vmatprep.subr.bf16.mxu1 %v13867_v45  ;;  %v804_v45 = vld [vmem:[%s16564_s9 + $0xc50] sm:$0xff]  ;;  %v13907_v61 = vcombine.high %v676_v52, %v680_v46  ;;  %v13906_v63 = vcombine.low %v676_v52, %v680_v46 }
 0x3dc   : > { %10332 = vmatpush1.bf16.msra.mxu0 %v13738_v49  ;;  %v14035_v49 = vcombine.high %v804_v45, %v808_v47  ;;  %v14034_v18 = vcombine.low %v804_v45, %v808_v47  ;;  %v712_v34 = vld [vmem:[%s16564_s9 + $0x970] sm:$0xff] }
 0x3dd   : > { %10333 = vmatprep.subr.bf16.mxu0 %v13747_v14  ;;  %v688_v14 = vld [vmem:[%s16564_s9 + $0x8b0] sm:$0xff] }
 0x3de   : > { %10373 = vmatpush1.bf16.msra.mxu1 %v13866_v8  ;;  %v10054_v33 = vpop.f32.mrb[32].mxu0  ;;  %v684_v8 = vld [vmem:[%s16564_s9 + $0x890] sm:$0xff] }
 0x3df   : > { %10374 = vmatprep.subr.bf16.mxu1 %v13875_v3  ;;  %v17618_v39 = vadd.f32 %v10054_v33, %v17582_v35  ;;  %v10056_v43 = vpop.f32.mrb[33].mxu0  ;;  %v13891_v35 = vcombine.high %v660_v22, %v664_v24  ;;  %v812_v3 = vld [vmem:[%s16564_s9 + $0xc90] sm:$0xff]  ;;  %v13915_v4 = vcombine.high %v684_v8, %v688_v14 }
 0x3e0   : > { %v17623_v20 = vadd.f32 %v10056_v43, %v17585_v7  ;;  %v10058_v25 = vpop.f32.mrb[34].mxu0  ;;  %10334 = vmatpush1.bf16.msra.mxu0 %v13746_v13  ;;  %v13762_v7 = vcombine.low %v532_v56, %v536_v15  ;;  %v14043_v13 = vcombine.high %v812_v3, %v816_v62  ;;  %v820_v33 = vld [vmem:[%s16564_s9 + $0xcd0] sm:$0xff]  ;;  %v13914_v56 = vcombine.low %v684_v8, %v688_v14 }
 0x3e1   : > { %v10059_v26 = vpop.f32.mrb[35].mxu0  ;;  %10335 = vmatprep.subr.bf16.mxu0 %v13755_v12  ;;  %v696_v12 = vld [vmem:[%s16564_s9 + $0x8f0] sm:$0xff]  ;;  %v14042_v15 = vcombine.low %v812_v3, %v816_v62 }
 0x3e2   : > { %10375 = vmatpush1.bf16.msra.mxu1 %v13874_v40  ;;  %v692_v40 = vld [vmem:[%s16564_s9 + $0x8d0] sm:$0xff] }
 0x3e3   : > { %10376 = vmatprep.subr.bf16.mxu1 %v13883_v38  ;;  %v824_v38 = vld [vmem:[%s16564_s9 + $0xcf0] sm:$0xff]  ;;  %v13923_v43 = vcombine.high %v692_v40, %v696_v12 }
 0x3e4   : > { %10336 = vmatpush1.bf16.msra.mxu0 %v13754_v54  ;;  %v14051_v22 = vcombine.high %v820_v33, %v824_v38  ;;  %v700_v24 = vld [vmem:[%s16564_s9 + $0x910] sm:$0xff] }
 0x3e5   : > { %10337 = vmatprep.subr.bf16.mxu0 %v13763_v27  ;;  %v704_v25 = vld [vmem:[%s16564_s9 + $0x930] sm:$0xff]  ;;  %v14050_v27 = vcombine.low %v820_v33, %v824_v38 }
 0x3e6   : > { %10377 = vmatpush1.bf16.msra.mxu1 %v13882_v29  ;;  %v828_v54 = vld [vmem:[%s16564_s9 + $0xd10] sm:$0xff]  ;;  %v13922_v29 = vcombine.low %v692_v40, %v696_v12 }
 0x3e7   : > { %10378 = vmatprep.subr.bf16.mxu1 %v13891_v35  ;;  %v832_v26 = vld [vmem:[%s16564_s9 + $0xd30] sm:$0xff]  ;;  %v13931_v35 = vcombine.high %v700_v24, %v704_v25 }
 0x3e8   : > { %10338 = vmatpush1.bf16.msra.mxu0 %v13762_v7  ;;  %v14059_v31 = vcombine.high %v828_v54, %v832_v26  ;;  %v836_v1 = vld [vmem:[%s16564_s9 + $0xd50] sm:$0xff] }
 0x3e9   : > { %10389 = vmatprep.subr.bf16.mxu0 %v13899_v44  ;;  %v840_v7 = vld [vmem:[%s16564_s9 + $0xd70] sm:$0xff]  ;;  %v14058_v44 = vcombine.low %v828_v54, %v832_v26 }
 0x3ea   : > { %10379 = vmatpush1.bf16.msra.mxu1 %v13890_v42  ;;  %v13930_v42 = vcombine.low %v700_v24, %v704_v25  ;;  %v14067_v52 = vcombine.high %v836_v1, %v840_v7  ;;  %v716_v46 = vld [vmem:[%s16564_s9 + $0x990] sm:$0xff] }
 0x3eb   : > { %10430 = vmatprep.subr.bf16.mxu1 %v14027_v10  ;;  %10340 = vmatmul.mubr.bf16.vlgmr.msra.gmra.mrb[48].mxu0 %v16672_v17  ;;  %v13939_v10 = vcombine.high %v708_v32, %v712_v34  ;;  %v720_v45 = vld [vmem:[%s16564_s9 + $0x9b0] sm:$0xff] }
 0x3ec   : > { %10390 = vmatpush1.bf16.msra.mxu0 %v13898_v51  ;;  %10421 = vmatprep.mubr.bf16.mxu0 %v16690_v28  ;;  %v844_v47 = vld [vmem:[%s16564_s9 + $0xd90] sm:$0xff]  ;;  %v13946_v40 = vcombine.low %v716_v46, %v720_v45 }
 0x3ed   : > { %10381 = vmatmul.mubr.bf16.vlgmr.msra.gmra.mrb[48].mxu1 %v16681_v21  ;;  %10391 = vmatprep.subr.bf16.mxu0 %v13907_v61  ;;  %v848_v51 = vld [vmem:[%s16564_s9 + $0xdb0] sm:$0xff]  ;;  %v14066_v61 = vcombine.low %v836_v1, %v840_v7 }
 0x3ee   : > { %10431 = vmatpush1.bf16.msra.mxu1 %v14026_v58  ;;  %10462 = vmatprep.mubr.bf16.mxu1 %v16697_v30  ;;  %v13938_v58 = vcombine.low %v708_v32, %v712_v34  ;;  %v14075_v8 = vcombine.high %v844_v47, %v848_v51  ;;  %v724_v14 = vld [vmem:[%s16564_s9 + $0x9d0] sm:$0xff]  ;;  %v14074_v38 = vcombine.low %v844_v47, %v848_v51 }
 0x3ef   : > { %10432 = vmatprep.subr.bf16.mxu1 %v14035_v49  ;;  %v13947_v49 = vcombine.high %v716_v46, %v720_v45  ;;  %v728_v3 = vld [vmem:[%s16564_s9 + $0x9f0] sm:$0xff] }
 0x3f0   : > { %10392 = vmatpush1.bf16.msra.mxu0 %v13906_v63  ;;  %v852_v63 = vld [vmem:[%s16564_s9 + $0xdd0] sm:$0xff]  ;;  %v13954_v54 = vcombine.low %v724_v14, %v728_v3 }
 0x3f1   : > { %10393 = vmatprep.subr.bf16.mxu0 %v13915_v4  ;;  %v860_v24 = vld [vmem:[%s16564_s9 + $0xe10] sm:$0xff] }
 0x3f2   : > { %10433 = vmatpush1.bf16.msra.mxu1 %v14034_v18  ;;  %v856_v18 = vld [vmem:[%s16564_s9 + $0xdf0] sm:$0xff] }
 0x3f3   : > { %10434 = vmatprep.subr.bf16.mxu1 %v14043_v13  ;;  %v864_v25 = vld [vmem:[%s16564_s9 + $0xe30] sm:$0xff] }
 0x3f4   : > { %10394 = vmatpush1.bf16.msra.mxu0 %v13914_v56  ;;  %v13955_v56 = vcombine.high %v724_v14, %v728_v3  ;;  %v872_v32 = vld [vmem:[%s16564_s9 + $0xe70] sm:$0xff]  ;;  %v14090_v1 = vcombine.low %v860_v24, %v864_v25 }
 0x3f5   : > { %10395 = vmatprep.subr.bf16.mxu0 %v13923_v43  ;;  %v14083_v43 = vcombine.high %v852_v63, %v856_v18  ;;  %v880_v46 = vld [vmem:[%s16564_s9 + $0xeb0] sm:$0xff] }
 0x3f6   : > { %10435 = vmatpush1.bf16.msra.mxu1 %v14042_v15  ;;  %v888_v14 = vld [vmem:[%s16564_s9 + $0xef0] sm:$0xff] }
 0x3f7   : > { %10436 = vmatprep.subr.bf16.mxu1 %v14051_v22  ;;  %v736_v22 = vld [vmem:[%s16564_s9 + $0xa30] sm:$0xff] }
 0x3f8   : > { %10396 = vmatpush1.bf16.msra.mxu0 %v13922_v29  ;;  %v14091_v29 = vcombine.high %v860_v24, %v864_v25  ;;  %v776_v24 = vld [vmem:[%s16564_s9 + $0xb70] sm:$0xff] }
 0x3f9   : > { %10397 = vmatprep.subr.bf16.mxu0 %v13931_v35  ;;  %v744_v35 = vld [vmem:[%s16564_s9 + $0xa70] sm:$0xff] }
 0x3fa   : > { %10437 = vmatpush1.bf16.msra.mxu1 %v14050_v27  ;;  %v740_v27 = vld [vmem:[%s16564_s9 + $0xa50] sm:$0xff] }
 0x3fb   : > { %10438 = vmatprep.subr.bf16.mxu1 %v14059_v31  ;;  %v868_v31 = vld [vmem:[%s16564_s9 + $0xe50] sm:$0xff]  ;;  %v13971_v7 = vcombine.high %v740_v27, %v744_v35  ;;  %v13970_v45 = vcombine.low %v740_v27, %v744_v35 }
 0x3fc   : > { %10398 = vmatpush1.bf16.msra.mxu0 %v13930_v42  ;;  %v14099_v42 = vcombine.high %v868_v31, %v872_v32  ;;  %v14098_v47 = vcombine.low %v868_v31, %v872_v32  ;;  %v900_v25 = vld [vmem:[%s16564_s9 + $0xf50] sm:$0xff] }
 0x3fd   : > { %10399 = vmatprep.subr.bf16.mxu0 %v13939_v10  ;;  %v752_v10 = vld [vmem:[%s16564_s9 + $0xab0] sm:$0xff] }
 0x3fe   : > { %10439 = vmatpush1.bf16.msra.mxu1 %v14058_v44  ;;  %v748_v44 = vld [vmem:[%s16564_s9 + $0xa90] sm:$0xff] }
 0x3ff   : > { %10440 = vmatprep.subr.bf16.mxu1 %v14067_v52  ;;  %v876_v52 = vld [vmem:[%s16564_s9 + $0xe90] sm:$0xff]  ;;  %v13979_v51 = vcombine.high %v748_v44, %v752_v10  ;;  %v13978_v3 = vcombine.low %v748_v44, %v752_v10 }
 0x400   : > { %v10095_v62 = vpop.f32.mrb[36].mxu1  ;;  %10400 = vmatpush1.bf16.msra.mxu0 %v13938_v58  ;;  %v14107_v58 = vcombine.high %v876_v52, %v880_v46  ;;  %v780_v35 = vld [vmem:[%s16564_s9 + $0xb90] sm:$0xff] }
 0x401   : > { %v17662_v4 = vadd.f32 %v10095_v62, %v17618_v39  ;;  %v10097_v13 = vpop.f32.mrb[37].mxu1  ;;  %10401 = vmatprep.subr.bf16.mxu0 %v13947_v49  ;;  %v732_v39 = vld [vmem:[%s16564_s9 + $0xa10] sm:$0xff]  ;;  %v14106_v62 = vcombine.low %v876_v52, %v880_v46 }
 0x402   : > { %v17665_v12 = vadd.f32 %v10097_v13, %v17623_v20  ;;  %v10099_v33 = vpop.f32.mrb[38].mxu1  ;;  %10441 = vmatpush1.bf16.msra.mxu1 %v14066_v61  ;;  %v14082_v20 = vcombine.low %v852_v63, %v856_v18  ;;  %v13963_v26 = vcombine.high %v732_v39, %v736_v22  ;;  %v13962_v34 = vcombine.low %v732_v39, %v736_v22  ;;  %v756_v61 = vld [vmem:[%s16564_s9 + $0xad0] sm:$0xff] }
 0x403   : > { %v10100_v15 = vpop.f32.mrb[39].mxu1  ;;  %10442 = vmatprep.subr.bf16.mxu1 %v14075_v8  ;;  %v760_v49 = vld [vmem:[%s16564_s9 + $0xaf0] sm:$0xff] }
 0x404   : > { %10402 = vmatpush1.bf16.msra.mxu0 %v13946_v40  ;;  %v884_v8 = vld [vmem:[%s16564_s9 + $0xed0] sm:$0xff]  ;;  %v13987_v63 = vcombine.high %v756_v61, %v760_v49 }
 0x405   : > { %10403 = vmatprep.subr.bf16.mxu0 %v13955_v56  ;;  %v14115_v18 = vcombine.high %v884_v8, %v888_v14  ;;  %v764_v13 = vld [vmem:[%s16564_s9 + $0xb10] sm:$0xff]  ;;  %v13986_v56 = vcombine.low %v756_v61, %v760_v49  ;;  %v14114_v15 = vcombine.low %v884_v8, %v888_v14 }
 0x406   : > { %10443 = vmatpush1.bf16.msra.mxu1 %v14074_v38  ;;  %v768_v40 = vld [vmem:[%s16564_s9 + $0xb30] sm:$0xff] }
 0x407   : > { %10444 = vmatprep.subr.bf16.mxu1 %v14083_v43  ;;  %v892_v33 = vld [vmem:[%s16564_s9 + $0xf10] sm:$0xff]  ;;  %v13995_v43 = vcombine.high %v764_v13, %v768_v40 }
 0x408   : > { %10404 = vmatpush1.bf16.msra.mxu0 %v13954_v54  ;;  %v896_v38 = vld [vmem:[%s16564_s9 + $0xf30] sm:$0xff] }
 0x409   : > { %10405 = vmatprep.subr.bf16.mxu0 %v13963_v26  ;;  %v14123_v39 = vcombine.high %v892_v33, %v896_v38  ;;  %v772_v22 = vld [vmem:[%s16564_s9 + $0xb50] sm:$0xff]  ;;  %v14122_v26 = vcombine.low %v892_v33, %v896_v38 }
 0x40a   : > { %10445 = vmatpush1.bf16.msra.mxu1 %v14082_v20  ;;  %v904_v54 = vld [vmem:[%s16564_s9 + $0xf70] sm:$0xff]  ;;  %v13994_v20 = vcombine.low %v764_v13, %v768_v40 }
 0x40b   : > { %10446 = vmatprep.subr.bf16.mxu1 %v14091_v29  ;;  %v14003_v29 = vcombine.high %v772_v22, %v776_v24  ;;  %v14131_v27 = vcombine.high %v900_v25, %v904_v54  ;;  %v784_v31 = vld [vmem:[%s16564_s9 + $0xbb0] sm:$0xff] }
 0x40c   : > { %10406 = vmatpush1.bf16.msra.mxu0 %v13962_v34  ;;  %v908_v32 = vld [vmem:[%s16564_s9 + $0xf90] sm:$0xff]  ;;  %v14010_v8 = vcombine.low %v780_v35, %v784_v31 }
 0x40d   : > { %10407 = vmatprep.subr.bf16.mxu0 %v13971_v7  ;;  %v912_v34 = vld [vmem:[%s16564_s9 + $0xfb0] sm:$0xff]  ;;  %v14130_v7 = vcombine.low %v900_v25, %v904_v54 }
 0x40e   : > { %10447 = vmatpush1.bf16.msra.mxu1 %v14090_v1  ;;  %v14002_v1 = vcombine.low %v772_v22, %v776_v24  ;;  %v14139_v10 = vcombine.high %v908_v32, %v912_v34  ;;  %v788_v52 = vld [vmem:[%s16564_s9 + $0xbd0] sm:$0xff] }
 0x40f   : > { %10448 = vmatprep.subr.bf16.mxu1 %v14099_v42  ;;  %v14011_v42 = vcombine.high %v780_v35, %v784_v31  ;;  %v792_v46 = vld [vmem:[%s16564_s9 + $0xbf0] sm:$0xff] }
 0x410   : > { %10408 = vmatpush1.bf16.msra.mxu0 %v13970_v45  ;;  %v1052_v13 = vld [vmem:[%s16564_s9 + $0x1410] sm:$0xff] }
 0x411   : > { %10409 = vmatprep.subr.bf16.mxu0 %v13979_v51  ;;  %v916_v51 = vld [vmem:[%s16564_s9 + $0xfd0] sm:$0xff] }
 0x412   : > { %10449 = vmatpush1.bf16.msra.mxu1 %v14098_v47  ;;  %v1056_v40 = vld [vmem:[%s16564_s9 + $0x1430] sm:$0xff] }
 0x413   : > { %10450 = vmatprep.subr.bf16.mxu1 %v14107_v58  ;;  %v920_v58 = vld [vmem:[%s16564_s9 + $0xff0] sm:$0xff]  ;;  %v14282_v25 = vcombine.low %v1052_v13, %v1056_v40 }
 0x414   : > { %10410 = vmatpush1.bf16.msra.mxu0 %v13978_v3  ;;  %v14138_v3 = vcombine.low %v908_v32, %v912_v34  ;;  %v14146_v33 = vcombine.low %v916_v51, %v920_v58  ;;  %v1064_v22 = vld [vmem:[%s16564_s9 + $0x1470] sm:$0xff] }
 0x415   : > { %10411 = vmatprep.subr.bf16.mxu0 %v13987_v63  ;;  %v924_v63 = vld [vmem:[%s16564_s9 + $0x1010] sm:$0xff] }
 0x416   : > { %10451 = vmatpush1.bf16.msra.mxu1 %v14106_v62  ;;  %v14019_v62 = vcombine.high %v788_v52, %v792_v46  ;;  %v1072_v35 = vld [vmem:[%s16564_s9 + $0x14b0] sm:$0xff] }
 0x417   : > { %10452 = vmatprep.subr.bf16.mxu1 %v14115_v18  ;;  %v928_v18 = vld [vmem:[%s16564_s9 + $0x1030] sm:$0xff] }
 0x418   : > { %10412 = vmatpush1.bf16.msra.mxu0 %v13986_v56  ;;  %v14155_v38 = vcombine.high %v924_v63, %v928_v18  ;;  %v14283_v56 = vcombine.high %v1052_v13, %v1056_v40  ;;  %v14154_v24 = vcombine.low %v924_v63, %v928_v18  ;;  %v964_v18 = vld [vmem:[%s16564_s9 + $0x1150] sm:$0xff] }
 0x419   : > { %10413 = vmatprep.subr.bf16.mxu0 %v13995_v43  ;;  %v936_v43 = vld [vmem:[%s16564_s9 + $0x1070] sm:$0xff] }
 0x41a   : > { %10453 = vmatpush1.bf16.msra.mxu1 %v14114_v15  ;;  %v932_v15 = vld [vmem:[%s16564_s9 + $0x1050] sm:$0xff] }
 0x41b   : > { %10454 = vmatprep.subr.bf16.mxu1 %v14123_v39  ;;  %v1060_v39 = vld [vmem:[%s16564_s9 + $0x1450] sm:$0xff]  ;;  %v14163_v54 = vcombine.high %v932_v15, %v936_v43  ;;  %v14162_v31 = vcombine.low %v932_v15, %v936_v43 }
 0x41c   : > { %10414 = vmatpush1.bf16.msra.mxu0 %v13994_v20  ;;  %v14291_v20 = vcombine.high %v1060_v39, %v1064_v22  ;;  %v14290_v32 = vcombine.low %v1060_v39, %v1064_v22  ;;  %v968_v13 = vld [vmem:[%s16564_s9 + $0x1170] sm:$0xff] }
 0x41d   : > { %10415 = vmatprep.subr.bf16.mxu0 %v14003_v29  ;;  %v944_v29 = vld [vmem:[%s16564_s9 + $0x10b0] sm:$0xff] }
 0x41e   : > { %10455 = vmatpush1.bf16.msra.mxu1 %v14122_v26  ;;  %v10136_v44 = vpop.f32.mrb[36].mxu0  ;;  %v940_v26 = vld [vmem:[%s16564_s9 + $0x1090] sm:$0xff] }
 0x41f   : > { %10456 = vmatprep.subr.bf16.mxu1 %v14131_v27  ;;  %v17698_v45 = vadd.f32 %v10136_v44, %v17662_v4  ;;  %v10138_v47 = vpop.f32.mrb[37].mxu0  ;;  %v14147_v4 = vcombine.high %v916_v51, %v920_v58  ;;  %v1068_v27 = vld [vmem:[%s16564_s9 + $0x1490] sm:$0xff]  ;;  %v14171_v34 = vcombine.high %v940_v26, %v944_v29 }
 0x420   : > { %v17703_v61 = vadd.f32 %v10138_v47, %v17665_v12  ;;  %v10140_v49 = vpop.f32.mrb[38].mxu0  ;;  %10416 = vmatpush1.bf16.msra.mxu0 %v14002_v1  ;;  %v14018_v12 = vcombine.low %v788_v52, %v792_v46  ;;  %v14299_v1 = vcombine.high %v1068_v27, %v1072_v35  ;;  %v1076_v44 = vld [vmem:[%s16564_s9 + $0x14d0] sm:$0xff]  ;;  %v14170_v52 = vcombine.low %v940_v26, %v944_v29 }
 0x421   : > { %v10141_v14 = vpop.f32.mrb[39].mxu0  ;;  %10417 = vmatprep.subr.bf16.mxu0 %v14011_v42  ;;  %v952_v42 = vld [vmem:[%s16564_s9 + $0x10f0] sm:$0xff]  ;;  %v14298_v46 = vcombine.low %v1068_v27, %v1072_v35 }
 0x422   : > { %10457 = vmatpush1.bf16.msra.mxu1 %v14130_v7  ;;  %v948_v7 = vld [vmem:[%s16564_s9 + $0x10d0] sm:$0xff] }
 0x423   : > { %10458 = vmatprep.subr.bf16.mxu1 %v14139_v10  ;;  %v1080_v10 = vld [vmem:[%s16564_s9 + $0x14f0] sm:$0xff]  ;;  %v14179_v47 = vcombine.high %v948_v7, %v952_v42 }
 0x424   : > { %10418 = vmatpush1.bf16.msra.mxu0 %v14010_v8  ;;  %v14307_v51 = vcombine.high %v1076_v44, %v1080_v10  ;;  %v956_v58 = vld [vmem:[%s16564_s9 + $0x1110] sm:$0xff] }
 0x425   : > { %10419 = vmatprep.subr.bf16.mxu0 %v14019_v62  ;;  %v960_v49 = vld [vmem:[%s16564_s9 + $0x1130] sm:$0xff]  ;;  %v14306_v62 = vcombine.low %v1076_v44, %v1080_v10 }
 0x426   : > { %10459 = vmatpush1.bf16.msra.mxu1 %v14138_v3  ;;  %v1084_v8 = vld [vmem:[%s16564_s9 + $0x1510] sm:$0xff]  ;;  %v14178_v3 = vcombine.low %v948_v7, %v952_v42 }
 0x427   : > { %10460 = vmatprep.subr.bf16.mxu1 %v14147_v4  ;;  %v1088_v14 = vld [vmem:[%s16564_s9 + $0x1530] sm:$0xff]  ;;  %v14187_v4 = vcombine.high %v956_v58, %v960_v49 }
 0x428   : > { %10420 = vmatpush1.bf16.msra.mxu0 %v14018_v12  ;;  %v14315_v63 = vcombine.high %v1084_v8, %v1088_v14  ;;  %v1092_v40 = vld [vmem:[%s16564_s9 + $0x1550] sm:$0xff] }
 0x429   : > { %10471 = vmatprep.subr.bf16.mxu0 %v14155_v38  ;;  %v1096_v12 = vld [vmem:[%s16564_s9 + $0x1570] sm:$0xff]  ;;  %v14314_v38 = vcombine.low %v1084_v8, %v1088_v14 }
 0x42a   : > { %10461 = vmatpush1.bf16.msra.mxu1 %v14146_v33  ;;  %v14186_v33 = vcombine.low %v956_v58, %v960_v49  ;;  %v14323_v15 = vcombine.high %v1092_v40, %v1096_v12  ;;  %v972_v43 = vld [vmem:[%s16564_s9 + $0x1190] sm:$0xff] }
 0x42b   : > { %10512 = vmatprep.subr.bf16.mxu1 %v14283_v56  ;;  %10422 = vmatmul.mubr.bf16.vlgmr.msra.gmra.mrb[52].mxu0 %v16762_v37  ;;  %v14195_v56 = vcombine.high %v964_v18, %v968_v13  ;;  %v976_v39 = vld [vmem:[%s16564_s9 + $0x11b0] sm:$0xff] }
 0x42c   : > { %10472 = vmatpush1.bf16.msra.mxu0 %v14154_v24  ;;  %10503 = vmatprep.mubr.bf16.mxu0 %v16780_v48  ;;  %v1100_v22 = vld [vmem:[%s16564_s9 + $0x1590] sm:$0xff]  ;;  %v14202_v7 = vcombine.low %v972_v43, %v976_v39 }
 0x42d   : > { %10463 = vmatmul.mubr.bf16.vlgmr.msra.gmra.mrb[52].mxu1 %v16771_v41  ;;  %10473 = vmatprep.subr.bf16.mxu0 %v14163_v54  ;;  %v1104_v24 = vld [vmem:[%s16564_s9 + $0x15b0] sm:$0xff]  ;;  %v14322_v54 = vcombine.low %v1092_v40, %v1096_v12 }
 0x42e   : > { %10513 = vmatpush1.bf16.msra.mxu1 %v14282_v25  ;;  %10544 = vmatprep.mubr.bf16.mxu1 %v16787_v50  ;;  %v14194_v25 = vcombine.low %v964_v18, %v968_v13  ;;  %v14331_v26 = vcombine.high %v1100_v22, %v1104_v24  ;;  %v980_v29 = vld [vmem:[%s16564_s9 + $0x11d0] sm:$0xff]  ;;  %v14330_v10 = vcombine.low %v1100_v22, %v1104_v24 }
 0x42f   : > { %10514 = vmatprep.subr.bf16.mxu1 %v14291_v20  ;;  %v14203_v20 = vcombine.high %v972_v43, %v976_v39  ;;  %v984_v27 = vld [vmem:[%s16564_s9 + $0x11f0] sm:$0xff] }
 0x430   : > { %10474 = vmatpush1.bf16.msra.mxu0 %v14162_v31  ;;  %v1108_v31 = vld [vmem:[%s16564_s9 + $0x15d0] sm:$0xff]  ;;  %v14210_v8 = vcombine.low %v980_v29, %v984_v27 }
 0x431   : > { %10475 = vmatprep.subr.bf16.mxu0 %v14171_v34  ;;  %v1116_v58 = vld [vmem:[%s16564_s9 + $0x1610] sm:$0xff] }
 0x432   : > { %10515 = vmatpush1.bf16.msra.mxu1 %v14290_v32  ;;  %v1112_v32 = vld [vmem:[%s16564_s9 + $0x15f0] sm:$0xff] }
 0x433   : > { %10516 = vmatprep.subr.bf16.mxu1 %v14299_v1  ;;  %v1120_v49 = vld [vmem:[%s16564_s9 + $0x1630] sm:$0xff] }
 0x434   : > { %10476 = vmatpush1.bf16.msra.mxu0 %v14170_v52  ;;  %v14211_v52 = vcombine.high %v980_v29, %v984_v27  ;;  %v1128_v18 = vld [vmem:[%s16564_s9 + $0x1670] sm:$0xff]  ;;  %v14346_v40 = vcombine.low %v1116_v58, %v1120_v49 }
 0x435   : > { %10477 = vmatprep.subr.bf16.mxu0 %v14179_v47  ;;  %v14339_v47 = vcombine.high %v1108_v31, %v1112_v32  ;;  %v1136_v43 = vld [vmem:[%s16564_s9 + $0x16b0] sm:$0xff] }
 0x436   : > { %10517 = vmatpush1.bf16.msra.mxu1 %v14298_v46  ;;  %v1144_v29 = vld [vmem:[%s16564_s9 + $0x16f0] sm:$0xff] }
 0x437   : > { %10518 = vmatprep.subr.bf16.mxu1 %v14307_v51  ;;  %v992_v51 = vld [vmem:[%s16564_s9 + $0x1230] sm:$0xff] }
 0x438   : > { %10478 = vmatpush1.bf16.msra.mxu0 %v14178_v3  ;;  %v14347_v3 = vcombine.high %v1116_v58, %v1120_v49  ;;  %v1032_v58 = vld [vmem:[%s16564_s9 + $0x1370] sm:$0xff] }
 0x439   : > { %10479 = vmatprep.subr.bf16.mxu0 %v14187_v4  ;;  %v1000_v4 = vld [vmem:[%s16564_s9 + $0x1270] sm:$0xff] }
 0x43a   : > { %10519 = vmatpush1.bf16.msra.mxu1 %v14306_v62  ;;  %v996_v62 = vld [vmem:[%s16564_s9 + $0x1250] sm:$0xff] }
 0x43b   : > { %10520 = vmatprep.subr.bf16.mxu1 %v14315_v63  ;;  %v1124_v63 = vld [vmem:[%s16564_s9 + $0x1650] sm:$0xff]  ;;  %v14227_v12 = vcombine.high %v996_v62, %v1000_v4  ;;  %v14226_v39 = vcombine.low %v996_v62, %v1000_v4 }
 0x43c   : > { %10480 = vmatpush1.bf16.msra.mxu0 %v14186_v33  ;;  %v14355_v33 = vcombine.high %v1124_v63, %v1128_v18  ;;  %v14354_v22 = vcombine.low %v1124_v63, %v1128_v18  ;;  %v1156_v49 = vld [vmem:[%s16564_s9 + $0x1750] sm:$0xff] }
 0x43d   : > { %10481 = vmatprep.subr.bf16.mxu0 %v14195_v56  ;;  %v1008_v56 = vld [vmem:[%s16564_s9 + $0x12b0] sm:$0xff] }
 0x43e   : > { %10521 = vmatpush1.bf16.msra.mxu1 %v14314_v38  ;;  %v1004_v38 = vld [vmem:[%s16564_s9 + $0x1290] sm:$0xff] }
 0x43f   : > { %10522 = vmatprep.subr.bf16.mxu1 %v14323_v15  ;;  %v1132_v15 = vld [vmem:[%s16564_s9 + $0x1690] sm:$0xff]  ;;  %v14235_v24 = vcombine.high %v1004_v38, %v1008_v56  ;;  %v14234_v27 = vcombine.low %v1004_v38, %v1008_v56 }
 0x440   : > { %v10177_v35 = vpop.f32.mrb[40].mxu1  ;;  %10482 = vmatpush1.bf16.msra.mxu0 %v14194_v25  ;;  %v14363_v25 = vcombine.high %v1132_v15, %v1136_v43  ;;  %v1036_v4 = vld [vmem:[%s16564_s9 + $0x1390] sm:$0xff] }
 0x441   : > { %v17742_v34 = vadd.f32 %v10177_v35, %v17698_v45  ;;  %v10179_v1 = vpop.f32.mrb[41].mxu1  ;;  %10483 = vmatprep.subr.bf16.mxu0 %v14203_v20  ;;  %v988_v45 = vld [vmem:[%s16564_s9 + $0x1210] sm:$0xff]  ;;  %v14362_v35 = vcombine.low %v1132_v15, %v1136_v43 }
 0x442   : > { %v17745_v42 = vadd.f32 %v10179_v1, %v17703_v61  ;;  %v10181_v44 = vpop.f32.mrb[42].mxu1  ;;  %10523 = vmatpush1.bf16.msra.mxu1 %v14322_v54  ;;  %v14338_v61 = vcombine.low %v1108_v31, %v1112_v32  ;;  %v14219_v14 = vcombine.high %v988_v45, %v992_v51  ;;  %v14218_v13 = vcombine.low %v988_v45, %v992_v51  ;;  %v1012_v54 = vld [vmem:[%s16564_s9 + $0x12d0] sm:$0xff] }
 0x443   : > { %v10182_v46 = vpop.f32.mrb[43].mxu1  ;;  %10524 = vmatprep.subr.bf16.mxu1 %v14331_v26  ;;  %v1016_v20 = vld [vmem:[%s16564_s9 + $0x12f0] sm:$0xff] }
 0x444   : > { %10484 = vmatpush1.bf16.msra.mxu0 %v14202_v7  ;;  %v1140_v26 = vld [vmem:[%s16564_s9 + $0x16d0] sm:$0xff]  ;;  %v14243_v31 = vcombine.high %v1012_v54, %v1016_v20 }
 0x445   : > { %10485 = vmatprep.subr.bf16.mxu0 %v14211_v52  ;;  %v14371_v32 = vcombine.high %v1140_v26, %v1144_v29  ;;  %v1020_v1 = vld [vmem:[%s16564_s9 + $0x1310] sm:$0xff]  ;;  %v14242_v52 = vcombine.low %v1012_v54, %v1016_v20  ;;  %v14370_v46 = vcombine.low %v1140_v26, %v1144_v29 }
 0x446   : > { %10525 = vmatpush1.bf16.msra.mxu1 %v14330_v10  ;;  %v1024_v7 = vld [vmem:[%s16564_s9 + $0x1330] sm:$0xff] }
 0x447   : > { %10526 = vmatprep.subr.bf16.mxu1 %v14339_v47  ;;  %v1148_v44 = vld [vmem:[%s16564_s9 + $0x1710] sm:$0xff]  ;;  %v14251_v47 = vcombine.high %v1020_v1, %v1024_v7 }
 0x448   : > { %10486 = vmatpush1.bf16.msra.mxu0 %v14210_v8  ;;  %v1152_v10 = vld [vmem:[%s16564_s9 + $0x1730] sm:$0xff] }
 0x449   : > { %10487 = vmatprep.subr.bf16.mxu0 %v14219_v14  ;;  %v14379_v45 = vcombine.high %v1148_v44, %v1152_v10  ;;  %v1028_v51 = vld [vmem:[%s16564_s9 + $0x1350] sm:$0xff]  ;;  %v14378_v14 = vcombine.low %v1148_v44, %v1152_v10 }
 0x44a   : > { %10527 = vmatpush1.bf16.msra.mxu1 %v14338_v61  ;;  %v1160_v8 = vld [vmem:[%s16564_s9 + $0x1770] sm:$0xff]  ;;  %v14250_v61 = vcombine.low %v1020_v1, %v1024_v7 }
 0x44b   : > { %10528 = vmatprep.subr.bf16.mxu1 %v14347_v3  ;;  %v14259_v3 = vcombine.high %v1028_v51, %v1032_v58  ;;  %v14387_v62 = vcombine.high %v1156_v49, %v1160_v8  ;;  %v1040_v63 = vld [vmem:[%s16564_s9 + $0x13b0] sm:$0xff] }
 0x44c   : > { %10488 = vmatpush1.bf16.msra.mxu0 %v14218_v13  ;;  %v1164_v18 = vld [vmem:[%s16564_s9 + $0x1790] sm:$0xff]  ;;  %v14266_v26 = vcombine.low %v1036_v4, %v1040_v63 }
 0x44d   : > { %10489 = vmatprep.subr.bf16.mxu0 %v14227_v12  ;;  %v1168_v13 = vld [vmem:[%s16564_s9 + $0x17b0] sm:$0xff]  ;;  %v14386_v12 = vcombine.low %v1156_v49, %v1160_v8 }
 0x44e   : > { %10529 = vmatpush1.bf16.msra.mxu1 %v14346_v40  ;;  %v14258_v40 = vcombine.low %v1028_v51, %v1032_v58  ;;  %v14395_v56 = vcombine.high %v1164_v18, %v1168_v13  ;;  %v1044_v15 = vld [vmem:[%s16564_s9 + $0x13d0] sm:$0xff] }
 0x44f   : > { %10530 = vmatprep.subr.bf16.mxu1 %v14355_v33  ;;  %v14267_v33 = vcombine.high %v1036_v4, %v1040_v63  ;;  %v1048_v43 = vld [vmem:[%s16564_s9 + $0x13f0] sm:$0xff] }
 0x450   : > { %10490 = vmatpush1.bf16.msra.mxu0 %v14226_v39  ;;  %v1308_v1 = vld [vmem:[%s16564_s9 + $0x1c10] sm:$0xff] }
 0x451   : > { %10491 = vmatprep.subr.bf16.mxu0 %v14235_v24  ;;  %v1172_v24 = vld [vmem:[%s16564_s9 + $0x17d0] sm:$0xff] }
 0x452   : > { %10531 = vmatpush1.bf16.msra.mxu1 %v14354_v22  ;;  %v1312_v7 = vld [vmem:[%s16564_s9 + $0x1c30] sm:$0xff] }
 0x453   : > { %10532 = vmatprep.subr.bf16.mxu1 %v14363_v25  ;;  %v1176_v25 = vld [vmem:[%s16564_s9 + $0x17f0] sm:$0xff]  ;;  %v14538_v49 = vcombine.low %v1308_v1, %v1312_v7 }
 0x454   : > { %10492 = vmatpush1.bf16.msra.mxu0 %v14234_v27  ;;  %v14394_v27 = vcombine.low %v1164_v18, %v1168_v13  ;;  %v14402_v44 = vcombine.low %v1172_v24, %v1176_v25  ;;  %v1320_v51 = vld [vmem:[%s16564_s9 + $0x1c70] sm:$0xff] }
 0x455   : > { %10493 = vmatprep.subr.bf16.mxu0 %v14243_v31  ;;  %v1180_v31 = vld [vmem:[%s16564_s9 + $0x1810] sm:$0xff] }
 0x456   : > { %10533 = vmatpush1.bf16.msra.mxu1 %v14362_v35  ;;  %v14275_v35 = vcombine.high %v1044_v15, %v1048_v43  ;;  %v1328_v4 = vld [vmem:[%s16564_s9 + $0x1cb0] sm:$0xff] }
 0x457   : > { %10534 = vmatprep.subr.bf16.mxu1 %v14371_v32  ;;  %v1184_v32 = vld [vmem:[%s16564_s9 + $0x1830] sm:$0xff] }
 0x458   : > { %10494 = vmatpush1.bf16.msra.mxu0 %v14242_v52  ;;  %v14411_v10 = vcombine.high %v1180_v31, %v1184_v32  ;;  %v14539_v52 = vcombine.high %v1308_v1, %v1312_v7  ;;  %v14410_v58 = vcombine.low %v1180_v31, %v1184_v32  ;;  %v1220_v32 = vld [vmem:[%s16564_s9 + $0x1950] sm:$0xff] }
 0x459   : > { %10495 = vmatprep.subr.bf16.mxu0 %v14251_v47  ;;  %v1192_v47 = vld [vmem:[%s16564_s9 + $0x1870] sm:$0xff] }
 0x45a   : > { %10535 = vmatpush1.bf16.msra.mxu1 %v14370_v46  ;;  %v1188_v46 = vld [vmem:[%s16564_s9 + $0x1850] sm:$0xff] }
 0x45b   : > { %10536 = vmatprep.subr.bf16.mxu1 %v14379_v45  ;;  %v1316_v45 = vld [vmem:[%s16564_s9 + $0x1c50] sm:$0xff]  ;;  %v14419_v8 = vcombine.high %v1188_v46, %v1192_v47  ;;  %v14418_v63 = vcombine.low %v1188_v46, %v1192_v47 }
 0x45c   : > { %10496 = vmatpush1.bf16.msra.mxu0 %v14250_v61  ;;  %v14547_v61 = vcombine.high %v1316_v45, %v1320_v51  ;;  %v14546_v18 = vcombine.low %v1316_v45, %v1320_v51  ;;  %v1224_v1 = vld [vmem:[%s16564_s9 + $0x1970] sm:$0xff] }
 0x45d   : > { %10497 = vmatprep.subr.bf16.mxu0 %v14259_v3  ;;  %v1200_v3 = vld [vmem:[%s16564_s9 + $0x18b0] sm:$0xff] }
 0x45e   : > { %10537 = vmatpush1.bf16.msra.mxu1 %v14378_v14  ;;  %v10218_v38 = vpop.f32.mrb[40].mxu0  ;;  %v1196_v14 = vld [vmem:[%s16564_s9 + $0x1890] sm:$0xff] }
 0x45f   : > { %10538 = vmatprep.subr.bf16.mxu1 %v14387_v62  ;;  %v17778_v39 = vadd.f32 %v10218_v38, %v17742_v34  ;;  %v10220_v22 = vpop.f32.mrb[41].mxu0  ;;  %v14403_v34 = vcombine.high %v1172_v24, %v1176_v25  ;;  %v1324_v62 = vld [vmem:[%s16564_s9 + $0x1c90] sm:$0xff]  ;;  %v14427_v13 = vcombine.high %v1196_v14, %v1200_v3 }
 0x460   : > { %v17783_v54 = vadd.f32 %v10220_v22, %v17745_v42  ;;  %v10222_v20 = vpop.f32.mrb[42].mxu0  ;;  %10498 = vmatpush1.bf16.msra.mxu0 %v14258_v40  ;;  %v14274_v42 = vcombine.low %v1044_v15, %v1048_v43  ;;  %v14555_v40 = vcombine.high %v1324_v62, %v1328_v4  ;;  %v1332_v38 = vld [vmem:[%s16564_s9 + $0x1cd0] sm:$0xff]  ;;  %v14426_v15 = vcombine.low %v1196_v14, %v1200_v3 }
 0x461   : > { %v10223_v29 = vpop.f32.mrb[43].mxu0  ;;  %10499 = vmatprep.subr.bf16.mxu0 %v14267_v33  ;;  %v1208_v33 = vld [vmem:[%s16564_s9 + $0x18f0] sm:$0xff]  ;;  %v14554_v43 = vcombine.low %v1324_v62, %v1328_v4 }
 0x462   : > { %10539 = vmatpush1.bf16.msra.mxu1 %v14386_v12  ;;  %v1204_v12 = vld [vmem:[%s16564_s9 + $0x18d0] sm:$0xff] }
 0x463   : > { %10540 = vmatprep.subr.bf16.mxu1 %v14395_v56  ;;  %v1336_v56 = vld [vmem:[%s16564_s9 + $0x1cf0] sm:$0xff]  ;;  %v14435_v22 = vcombine.high %v1204_v12, %v1208_v33 }
 0x464   : > { %10500 = vmatpush1.bf16.msra.mxu0 %v14266_v26  ;;  %v14563_v24 = vcombine.high %v1332_v38, %v1336_v56  ;;  %v1212_v25 = vld [vmem:[%s16564_s9 + $0x1910] sm:$0xff] }
 0x465   : > { %10501 = vmatprep.subr.bf16.mxu0 %v14275_v35  ;;  %v1216_v20 = vld [vmem:[%s16564_s9 + $0x1930] sm:$0xff]  ;;  %v14562_v35 = vcombine.low %v1332_v38, %v1336_v56 }
 0x466   : > { %10541 = vmatpush1.bf16.msra.mxu1 %v14394_v27  ;;  %v1340_v26 = vld [vmem:[%s16564_s9 + $0x1d10] sm:$0xff]  ;;  %v14434_v27 = vcombine.low %v1204_v12, %v1208_v33 }
 0x467   : > { %10542 = vmatprep.subr.bf16.mxu1 %v14403_v34  ;;  %v1344_v29 = vld [vmem:[%s16564_s9 + $0x1d30] sm:$0xff]  ;;  %v14443_v34 = vcombine.high %v1212_v25, %v1216_v20 }
 0x468   : > { %10502 = vmatpush1.bf16.msra.mxu0 %v14274_v42  ;;  %v14571_v31 = vcombine.high %v1340_v26, %v1344_v29  ;;  %v1348_v7 = vld [vmem:[%s16564_s9 + $0x1d50] sm:$0xff] }
 0x469   : > { %10553 = vmatprep.subr.bf16.mxu0 %v14411_v10  ;;  %v1352_v42 = vld [vmem:[%s16564_s9 + $0x1d70] sm:$0xff]  ;;  %v14570_v10 = vcombine.low %v1340_v26, %v1344_v29  ;;  %v393_v29 = vld [vmem:[#allocation2 + $0x18] sm:$0xff] }
 0x46a   : > { %10543 = vmatpush1.bf16.msra.mxu1 %v14402_v44  ;;  %v14442_v44 = vcombine.low %v1212_v25, %v1216_v20  ;;  %v14579_v46 = vcombine.high %v1348_v7, %v1352_v42  ;;  %v1228_v47 = vld [vmem:[%s16564_s9 + $0x1990] sm:$0xff] }
 0x46b   : > { %10594 = vmatprep.subr.bf16.mxu1 %v14539_v52  ;;  %10504 = vmatmul.mubr.bf16.vlgmr.msra.gmra.mrb[56].mxu0 %v16852_v5  ;;  %v14451_v52 = vcombine.high %v1220_v32, %v1224_v1  ;;  %v1232_v45 = vld [vmem:[%s16564_s9 + $0x19b0] sm:$0xff] }
 0x46c   : > { %10554 = vmatpush1.bf16.msra.mxu0 %v14410_v58  ;;  %10585 = vmatprep.mubr.bf16.mxu0 %v16870_v16  ;;  %v1356_v51 = vld [vmem:[%s16564_s9 + $0x1d90] sm:$0xff]  ;;  %v14458_v56 = vcombine.low %v1228_v47, %v1232_v45 }
 0x46d   : > { %10545 = vmatmul.mubr.bf16.vlgmr.msra.gmra.mrb[56].mxu1 %v16861_v9  ;;  %10555 = vmatprep.subr.bf16.mxu0 %v14419_v8  ;;  %v1360_v58 = vld [vmem:[%s16564_s9 + $0x1db0] sm:$0xff]  ;;  %v14578_v8 = vcombine.low %v1348_v7, %v1352_v42 }
 0x46e   : > { %10595 = vmatpush1.bf16.msra.mxu1 %v14538_v49  ;;  %10626 = vmatprep.mubr.bf16.mxu1 %v16877_v19  ;;  %v14450_v49 = vcombine.low %v1220_v32, %v1224_v1  ;;  %v14587_v3 = vcombine.high %v1356_v51, %v1360_v58  ;;  %v1236_v62 = vld [vmem:[%s16564_s9 + $0x19d0] sm:$0xff]  ;;  %v14586_v25 = vcombine.low %v1356_v51, %v1360_v58 }
 0x46f   : > { %10596 = vmatprep.subr.bf16.mxu1 %v14547_v61  ;;  %v14459_v61 = vcombine.high %v1228_v47, %v1232_v45  ;;  %v1240_v4 = vld [vmem:[%s16564_s9 + $0x19f0] sm:$0xff] }
 0x470   : > { %10556 = vmatpush1.bf16.msra.mxu0 %v14418_v63  ;;  %v14467_v20 = vcombine.high %v1236_v62, %v1240_v4  ;;  %v1372_v32 = vld [vmem:[%s16564_s9 + $0x1e10] sm:$0xff]  ;;  %v14466_v7 = vcombine.low %v1236_v62, %v1240_v4 }
 0x471   : > { %10557 = vmatprep.subr.bf16.mxu0 %v14427_v13  ;;  %v1364_v13 = vld [vmem:[%s16564_s9 + $0x1dd0] sm:$0xff] }
 0x472   : > { %10597 = vmatpush1.bf16.msra.mxu1 %v14546_v18  ;;  %v1256_v47 = vld [vmem:[%s16564_s9 + $0x1a70] sm:$0xff] }
 0x473   : > { %10598 = vmatprep.subr.bf16.mxu1 %v14555_v40  ;;  %v1368_v40 = vld [vmem:[%s16564_s9 + $0x1df0] sm:$0xff] }
 0x474   : > { %10558 = vmatpush1.bf16.msra.mxu0 %v14426_v15  ;;  %v392_v15 = vld [vmem:[#allocation2 + $0x10] sm:$0xff]  ;;  %v1380_v45 = vld [vmem:[%s16564_s9 + $0x1e50] sm:$0xff] }
 0x475   : > { %10559 = vmatprep.subr.bf16.mxu0 %v14435_v22  ;;  %v1384_v51 = vld [vmem:[%s16564_s9 + $0x1e70] sm:$0xff] }
 0x476   : > { %10599 = vmatpush1.bf16.msra.mxu1 %v14554_v43  ;;  %v1388_v62 = vld [vmem:[%s16564_s9 + $0x1e90] sm:$0xff] }
 0x477   : > { %10600 = vmatprep.subr.bf16.mxu1 %v14563_v24  ;;  %v1392_v4 = vld [vmem:[%s16564_s9 + $0x1eb0] sm:$0xff] }
 0x478   : > { %10560 = vmatpush1.bf16.msra.mxu0 %v14434_v27  ;;  %v14595_v27 = vcombine.high %v1364_v13, %v1368_v40 }
 0x479   : > { %10561 = vmatprep.subr.bf16.mxu0 %v14443_v34  ;;  %v1248_v34 = vld [vmem:[%s16564_s9 + $0x1a30] sm:$0xff] }
 0x47a   : > { %10601 = vmatpush1.bf16.msra.mxu1 %v14562_v35  ;;  %v1244_v35 = vld [vmem:[%s16564_s9 + $0x1a10] sm:$0xff] }
 0x47b   : > { %10602 = vmatprep.subr.bf16.mxu1 %v14571_v31  ;;  %v14474_v58 = vcombine.low %v1244_v35, %v1248_v34 }
 0x47c   : > { %10562 = vmatpush1.bf16.msra.mxu0 %v14442_v44  ;;  %v14594_v44 = vcombine.low %v1364_v13, %v1368_v40  ;;  %v14619_v40 = vcombine.high %v1388_v62, %v1392_v4 }
 0x47d   : > { %10563 = vmatprep.subr.bf16.mxu0 %v14451_v52 }
 0x47e   : > { %10603 = vmatpush1.bf16.msra.mxu1 %v14570_v10  ;;  %v10300_v14 = vpop.f32.mrb[44].mxu0  ;;  %v14475_v10 = vcombine.high %v1244_v35, %v1248_v34 }
 0x47f   : > { %10604 = vmatprep.subr.bf16.mxu1 %v14579_v46  ;;  %v10302_v18 = vpop.f32.mrb[45].mxu0  ;;  %v1252_v46 = vld [vmem:[%s16564_s9 + $0x1a50] sm:$0xff] }
 0x480   : > { %v10259_v63 = vpop.f32.mrb[44].mxu1  ;;  %v10304_v38 = vpop.f32.mrb[46].mxu0  ;;  %10564 = vmatpush1.bf16.msra.mxu0 %v14450_v49 }
 0x481   : > { %v10260_v12 = vadd.f32 %v10259_v63, %v17778_v39  ;;  %v10261_v33 = vpop.f32.mrb[45].mxu1  ;;  %v10305_v24 = vpop.f32.mrb[47].mxu0  ;;  %10565 = vmatprep.subr.bf16.mxu0 %v14459_v61  ;;  %v14611_v61 = vcombine.high %v1380_v45, %v1384_v51  ;;  %v14482_v63 = vcombine.low %v1252_v46, %v1256_v47  ;;  %v1396_v38 = vld [vmem:[%s16564_s9 + $0x1ed0] sm:$0xff] }
 0x482   : > { %v10262_v43 = vadd.f32 %v10261_v33, %v17783_v54  ;;  %v10263_v22 = vpop.f32.mrb[46].mxu1  ;;  %10605 = vmatpush1.bf16.msra.mxu1 %v14578_v8  ;;  %v1376_v54 = vld [vmem:[%s16564_s9 + $0x1e30] sm:$0xff]  ;;  %v14483_v8 = vcombine.high %v1252_v46, %v1256_v47 }
 0x483   : > { %v10301_v26 = vadd.f32 %v10300_v14, %v10260_v12  ;;  %v10264_v39 = vpop.f32.mrb[47].mxu1  ;;  %10606 = vmatprep.subr.bf16.mxu1 %v14587_v3  ;;  %v14603_v52 = vcombine.high %v1372_v32, %v1376_v54  ;;  %v14602_v49 = vcombine.low %v1372_v32, %v1376_v54  ;;  %v1260_v14 = vld [vmem:[%s16564_s9 + $0x1a90] sm:$0xff] }
 0x484   : > { %v10303_v31 = vadd.f32 %v10302_v18, %v10262_v43  ;;  %10566 = vmatpush1.bf16.msra.mxu0 %v14458_v56  ;;  %v1264_v3 = vld [vmem:[%s16564_s9 + $0x1ab0] sm:$0xff]  ;;  %v14610_v18 = vcombine.low %v1380_v45, %v1384_v51  ;;  %v14618_v43 = vcombine.low %v1388_v62, %v1392_v4 }
 0x485   : > { %v11293_v1 = vadd.f32 %v10301_v26, %v392_v15  ;;  %10567 = vmatprep.subr.bf16.mxu0 %v14467_v20  ;;  %v14491_v13 = vcombine.high %v1260_v14, %v1264_v3  ;;  %v1268_v12 = vld [vmem:[%s16564_s9 + $0x1ad0] sm:$0xff]  ;;  %v14490_v15 = vcombine.low %v1260_v14, %v1264_v3 }
 0x486   : > { %v11294_v42 = vadd.f32 %v10303_v31, %v393_v29  ;;  %10607 = vmatpush1.bf16.msra.mxu1 %v14586_v25  ;;  %v1272_v33 = vld [vmem:[%s16564_s9 + $0x1af0] sm:$0xff] }
 0x487   : > { %11301 = vst [vmem:[#allocation2 + $0x10] sm:$0xff] %v11293_v1  ;;  %10608 = vmatprep.subr.bf16.mxu1 %v14595_v27  ;;  %v1400_v56 = vld [vmem:[%s16564_s9 + $0x1ef0] sm:$0xff]  ;;  %v14499_v22 = vcombine.high %v1268_v12, %v1272_v33  ;;  %v14498_v39 = vcombine.low %v1268_v12, %v1272_v33 }
 0x488   : > { %11302 = vst [vmem:[#allocation2 + $0x18] sm:$0xff] %v11294_v42  ;;  %10568 = vmatpush1.bf16.msra.mxu0 %v14466_v7  ;;  %v14627_v24 = vcombine.high %v1396_v38, %v1400_v56  ;;  %v1276_v25 = vld [vmem:[%s16564_s9 + $0x1b10] sm:$0xff]  ;;  %v14626_v27 = vcombine.low %v1396_v38, %v1400_v56 }
 0x489   : > { %10569 = vmatprep.subr.bf16.mxu0 %v14475_v10  ;;  %v1280_v20 = vld [vmem:[%s16564_s9 + $0x1b30] sm:$0xff] }
 0x48a   : > { %10609 = vmatpush1.bf16.msra.mxu1 %v14594_v44  ;;  %v1404_v26 = vld [vmem:[%s16564_s9 + $0x1f10] sm:$0xff]  ;;  %v14507_v35 = vcombine.high %v1276_v25, %v1280_v20  ;;  %v14506_v7 = vcombine.low %v1276_v25, %v1280_v20 }
 0x48b   : > { %10610 = vmatprep.subr.bf16.mxu1 %v14603_v52  ;;  %v1408_v29 = vld [vmem:[%s16564_s9 + $0x1f30] sm:$0xff] }
 0x48c   : > { %10570 = vmatpush1.bf16.msra.mxu0 %v14474_v58  ;;  %v14635_v34 = vcombine.high %v1404_v26, %v1408_v29  ;;  %v1284_v31 = vld [vmem:[%s16564_s9 + $0x1b50] sm:$0xff]  ;;  %v14634_v42 = vcombine.low %v1404_v26, %v1408_v29 }
 0x48d   : > { %10571 = vmatprep.subr.bf16.mxu0 %v14483_v8  ;;  %v1288_v32 = vld [vmem:[%s16564_s9 + $0x1b70] sm:$0xff] }
 0x48e   : > { %10611 = vmatpush1.bf16.msra.mxu1 %v14602_v49  ;;  %v1412_v54 = vld [vmem:[%s16564_s9 + $0x1f50] sm:$0xff]  ;;  %v14515_v44 = vcombine.high %v1284_v31, %v1288_v32  ;;  %v14514_v51 = vcombine.low %v1284_v31, %v1288_v32 }
 0x48f   : > { %10612 = vmatprep.subr.bf16.mxu1 %v14611_v61  ;;  %v1416_v1 = vld [vmem:[%s16564_s9 + $0x1f70] sm:$0xff] }
 0x490   : > { %10572 = vmatpush1.bf16.msra.mxu0 %v14482_v63  ;;  %v14643_v10 = vcombine.high %v1412_v54, %v1416_v1  ;;  %v1292_v52 = vld [vmem:[%s16564_s9 + $0x1b90] sm:$0xff]  ;;  %v14642_v58 = vcombine.low %v1412_v54, %v1416_v1 }
 0x491   : > { %10573 = vmatprep.subr.bf16.mxu0 %v14491_v13  ;;  %v1296_v46 = vld [vmem:[%s16564_s9 + $0x1bb0] sm:$0xff] }
 0x492   : > { %10613 = vmatpush1.bf16.msra.mxu1 %v14610_v18  ;;  %v1420_v47 = vld [vmem:[%s16564_s9 + $0x1f90] sm:$0xff]  ;;  %v14523_v49 = vcombine.high %v1292_v52, %v1296_v46  ;;  %v14522_v4 = vcombine.low %v1292_v52, %v1296_v46 }
 0x493   : > { %10614 = vmatprep.subr.bf16.mxu1 %v14619_v40  ;;  %v1424_v45 = vld [vmem:[%s16564_s9 + $0x1fb0] sm:$0xff] }
 0x494   : > { %10574 = vmatpush1.bf16.msra.mxu0 %v14490_v15  ;;  %v14651_v8 = vcombine.high %v1420_v47, %v1424_v45  ;;  %v1300_v61 = vld [vmem:[%s16564_s9 + $0x1bd0] sm:$0xff]  ;;  %v14650_v63 = vcombine.low %v1420_v47, %v1424_v45 }
 0x495   : > { %10575 = vmatprep.subr.bf16.mxu0 %v14499_v22  ;;  %v1304_v14 = vld [vmem:[%s16564_s9 + $0x1bf0] sm:$0xff] }
 0x496   : > { %10615 = vmatpush1.bf16.msra.mxu1 %v14618_v43  ;;  %v1428_v3 = vld [vmem:[%s16564_s9 + $0x1fd0] sm:$0xff]  ;;  %v14531_v18 = vcombine.high %v1300_v61, %v1304_v14  ;;  %v14530_v56 = vcombine.low %v1300_v61, %v1304_v14 }
 0x497   : > { %10616 = vmatprep.subr.bf16.mxu1 %v14627_v24  ;;  %v1432_v62 = vld [vmem:[%s16564_s9 + $0x1ff0] sm:$0xff] }
 0x498   : > { %10576 = vmatpush1.bf16.msra.mxu0 %v14498_v39  ;;  %v14659_v13 = vcombine.high %v1428_v3, %v1432_v62  ;;  %v1436_v40 = vld [vmem:[%s16564_s9 + $0x2010] sm:$0xff]  ;;  %v14658_v15 = vcombine.low %v1428_v3, %v1432_v62 }
 0x499   : > { %10577 = vmatprep.subr.bf16.mxu0 %v14507_v35  ;;  %v1440_v12 = vld [vmem:[%s16564_s9 + $0x2030] sm:$0xff] }
 0x49a   : > { %10617 = vmatpush1.bf16.msra.mxu1 %v14626_v27  ;;  %v1564_v33 = vld [vmem:[%s16564_s9 + $0x2410] sm:$0xff]  ;;  %v14667_v43 = vcombine.high %v1436_v40, %v1440_v12  ;;  %v14666_v29 = vcombine.low %v1436_v40, %v1440_v12 }
 0x49b   : > { %10618 = vmatprep.subr.bf16.mxu1 %v14635_v34  ;;  %v1568_v38 = vld [vmem:[%s16564_s9 + $0x2430] sm:$0xff] }
 0x49c   : > { %10578 = vmatpush1.bf16.msra.mxu0 %v14506_v7  ;;  %v14795_v22 = vcombine.high %v1564_v33, %v1568_v38  ;;  %v1444_v24 = vld [vmem:[%s16564_s9 + $0x2050] sm:$0xff]  ;;  %v14794_v39 = vcombine.low %v1564_v33, %v1568_v38 }
 0x49d   : > { %10579 = vmatprep.subr.bf16.mxu0 %v14515_v44  ;;  %v1448_v25 = vld [vmem:[%s16564_s9 + $0x2070] sm:$0xff] }
 0x49e   : > { %10619 = vmatpush1.bf16.msra.mxu1 %v14634_v42  ;;  %v1572_v20 = vld [vmem:[%s16564_s9 + $0x2450] sm:$0xff]  ;;  %v14675_v27 = vcombine.high %v1444_v24, %v1448_v25  ;;  %v14674_v1 = vcombine.low %v1444_v24, %v1448_v25 }
 0x49f   : > { %10620 = vmatprep.subr.bf16.mxu1 %v14643_v10  ;;  %v1576_v26 = vld [vmem:[%s16564_s9 + $0x2470] sm:$0xff] }
 0x4a0   : > { %10580 = vmatpush1.bf16.msra.mxu0 %v14514_v51  ;;  %v14803_v35 = vcombine.high %v1572_v20, %v1576_v26  ;;  %v1452_v34 = vld [vmem:[%s16564_s9 + $0x2090] sm:$0xff]  ;;  %v14802_v7 = vcombine.low %v1572_v20, %v1576_v26 }
 0x4a1   : > { %10581 = vmatprep.subr.bf16.mxu0 %v14523_v49  ;;  %v1456_v31 = vld [vmem:[%s16564_s9 + $0x20b0] sm:$0xff] }
 0x4a2   : > { %10621 = vmatpush1.bf16.msra.mxu1 %v14642_v58  ;;  %v1580_v32 = vld [vmem:[%s16564_s9 + $0x2490] sm:$0xff]  ;;  %v14683_v42 = vcombine.high %v1452_v34, %v1456_v31  ;;  %v14682_v45 = vcombine.low %v1452_v34, %v1456_v31 }
 0x4a3   : > { %10622 = vmatprep.subr.bf16.mxu1 %v14651_v8  ;;  %v1584_v54 = vld [vmem:[%s16564_s9 + $0x24b0] sm:$0xff] }
 0x4a4   : > { %10582 = vmatpush1.bf16.msra.mxu0 %v14522_v4  ;;  %v14811_v44 = vcombine.high %v1580_v32, %v1584_v54  ;;  %v1460_v10 = vld [vmem:[%s16564_s9 + $0x20d0] sm:$0xff]  ;;  %v14810_v51 = vcombine.low %v1580_v32, %v1584_v54 }
 0x4a5   : > { %10583 = vmatprep.subr.bf16.mxu0 %v14531_v18  ;;  %v1464_v52 = vld [vmem:[%s16564_s9 + $0x20f0] sm:$0xff] }
 0x4a6   : > { %10623 = vmatpush1.bf16.msra.mxu1 %v14650_v63  ;;  %v1588_v46 = vld [vmem:[%s16564_s9 + $0x24d0] sm:$0xff]  ;;  %v14691_v58 = vcombine.high %v1460_v10, %v1464_v52  ;;  %v14690_v62 = vcombine.low %v1460_v10, %v1464_v52 }
 0x4a7   : > { %10624 = vmatprep.subr.bf16.mxu1 %v14659_v13  ;;  %v1592_v47 = vld [vmem:[%s16564_s9 + $0x24f0] sm:$0xff] }
 0x4a8   : > { %10584 = vmatpush1.bf16.msra.mxu0 %v14530_v56  ;;  %v14819_v49 = vcombine.high %v1588_v46, %v1592_v47  ;;  %v1468_v8 = vld [vmem:[%s16564_s9 + $0x2110] sm:$0xff]  ;;  %v14818_v4 = vcombine.low %v1588_v46, %v1592_v47 }
 0x4a9   : > { %10635 = vmatprep.subr.bf16.mxu0 %v14667_v43  ;;  %v1472_v61 = vld [vmem:[%s16564_s9 + $0x2130] sm:$0xff] }
 0x4aa   : > { %10625 = vmatpush1.bf16.msra.mxu1 %v14658_v15  ;;  %v1596_v14 = vld [vmem:[%s16564_s9 + $0x2510] sm:$0xff]  ;;  %v14699_v63 = vcombine.high %v1468_v8, %v1472_v61  ;;  %v14698_v38 = vcombine.low %v1468_v8, %v1472_v61 }
 0x4ab   : > { %10676 = vmatprep.subr.bf16.mxu1 %v14795_v22  ;;  %10586 = vmatmul.mubr.bf16.vlgmr.msra.gmra.mrb[60].mxu0 %v16942_v23  ;;  %v1600_v3 = vld [vmem:[%s16564_s9 + $0x2530] sm:$0xff] }
 0x4ac   : > { %10636 = vmatpush1.bf16.msra.mxu0 %v14666_v29  ;;  %10667 = vmatprep.mubr.bf16.mxu0 %v16960_v0  ;;  %v14827_v18 = vcombine.high %v1596_v14, %v1600_v3  ;;  %v1476_v13 = vld [vmem:[%s16564_s9 + $0x2150] sm:$0xff]  ;;  %v14826_v56 = vcombine.low %v1596_v14, %v1600_v3 }
 0x4ad   : > { %10627 = vmatmul.mubr.bf16.vlgmr.msra.gmra.mrb[60].mxu1 %v16951_v53  ;;  %10637 = vmatprep.subr.bf16.mxu0 %v14675_v27  ;;  %v1480_v40 = vld [vmem:[%s16564_s9 + $0x2170] sm:$0xff] }
 0x4ae   : > { %10677 = vmatpush1.bf16.msra.mxu1 %v14794_v39  ;;  %10708 = vmatprep.mubr.bf16.mxu1 %v16967_v2  ;;  %v1604_v12 = vld [vmem:[%s16564_s9 + $0x2550] sm:$0xff]  ;;  %v14707_v15 = vcombine.high %v1476_v13, %v1480_v40  ;;  %v14706_v26 = vcombine.low %v1476_v13, %v1480_v40 }
 0x4af   : > { %10678 = vmatprep.subr.bf16.mxu1 %v14803_v35  ;;  %v1608_v33 = vld [vmem:[%s16564_s9 + $0x2570] sm:$0xff] }
 0x4b0   : > { %10638 = vmatpush1.bf16.msra.mxu0 %v14674_v1  ;;  %v14835_v43 = vcombine.high %v1604_v12, %v1608_v33  ;;  %v1484_v22 = vld [vmem:[%s16564_s9 + $0x2190] sm:$0xff]  ;;  %v14834_v29 = vcombine.low %v1604_v12, %v1608_v33 }
 0x4b1   : > { %10639 = vmatprep.subr.bf16.mxu0 %v14683_v42  ;;  %v1488_v24 = vld [vmem:[%s16564_s9 + $0x21b0] sm:$0xff] }
 0x4b2   : > { %10679 = vmatpush1.bf16.msra.mxu1 %v14802_v7  ;;  %v1612_v25 = vld [vmem:[%s16564_s9 + $0x2590] sm:$0xff]  ;;  %v14715_v39 = vcombine.high %v1484_v22, %v1488_v24  ;;  %v14714_v52 = vcombine.low %v1484_v22, %v1488_v24 }
 0x4b3   : > { %10680 = vmatprep.subr.bf16.mxu1 %v14811_v44  ;;  %v1616_v20 = vld [vmem:[%s16564_s9 + $0x25b0] sm:$0xff] }
 0x4b4   : > { %10640 = vmatpush1.bf16.msra.mxu0 %v14682_v45  ;;  %v14843_v35 = vcombine.high %v1612_v25, %v1616_v20  ;;  %v1492_v34 = vld [vmem:[%s16564_s9 + $0x21d0] sm:$0xff] }
 0x4b5   : > { %10641 = vmatprep.subr.bf16.mxu0 %v14691_v58  ;;  %v1496_v31 = vld [vmem:[%s16564_s9 + $0x21f0] sm:$0xff] }
 0x4b6   : > { %10681 = vmatpush1.bf16.msra.mxu1 %v14810_v51  ;;  %v1620_v1 = vld [vmem:[%s16564_s9 + $0x25d0] sm:$0xff]  ;;  %v14842_v51 = vcombine.low %v1612_v25, %v1616_v20  ;;  %v14723_v58 = vcombine.high %v1492_v34, %v1496_v31 }
 0x4b7   : > { %10682 = vmatprep.subr.bf16.mxu1 %v14819_v49  ;;  %v1624_v7 = vld [vmem:[%s16564_s9 + $0x25f0] sm:$0xff] }
 0x4b8   : > { %10642 = vmatpush1.bf16.msra.mxu0 %v14690_v62  ;;  %v14851_v8 = vcombine.high %v1620_v1, %v1624_v7  ;;  %v1500_v61 = vld [vmem:[%s16564_s9 + $0x2210] sm:$0xff] }
 0x4b9   : > { %10643 = vmatprep.subr.bf16.mxu0 %v14699_v63  ;;  %v1504_v14 = vld [vmem:[%s16564_s9 + $0x2230] sm:$0xff]  ;;  %v14850_v63 = vcombine.low %v1620_v1, %v1624_v7 }
 0x4ba   : > { %10683 = vmatpush1.bf16.msra.mxu1 %v14818_v4  ;;  %v1628_v3 = vld [vmem:[%s16564_s9 + $0x2610] sm:$0xff]  ;;  %v14722_v4 = vcombine.low %v1492_v34, %v1496_v31 }
 0x4bb   : > { %10684 = vmatprep.subr.bf16.mxu1 %v14827_v18  ;;  %v1632_v62 = vld [vmem:[%s16564_s9 + $0x2630] sm:$0xff]  ;;  %v14731_v18 = vcombine.high %v1500_v61, %v1504_v14 }
 0x4bc   : > { %10644 = vmatpush1.bf16.msra.mxu0 %v14698_v38  ;;  %v14859_v13 = vcombine.high %v1628_v3, %v1632_v62  ;;  %v1508_v40 = vld [vmem:[%s16564_s9 + $0x2250] sm:$0xff] }
 0x4bd   : > { %10645 = vmatprep.subr.bf16.mxu0 %v14707_v15  ;;  %v1512_v12 = vld [vmem:[%s16564_s9 + $0x2270] sm:$0xff]  ;;  %v14858_v15 = vcombine.low %v1628_v3, %v1632_v62 }
 0x4be   : > { %10685 = vmatpush1.bf16.msra.mxu1 %v14826_v56  ;;  %v10341_v27 = vpop.f32.mrb[48].mxu0  ;;  %v1636_v33 = vld [vmem:[%s16564_s9 + $0x2650] sm:$0xff]  ;;  %v14730_v56 = vcombine.low %v1500_v61, %v1504_v14 }
 0x4bf   : > { %10686 = vmatprep.subr.bf16.mxu1 %v14835_v43  ;;  %v10343_v54 = vpop.f32.mrb[49].mxu0  ;;  %v1640_v38 = vld [vmem:[%s16564_s9 + $0x2670] sm:$0xff]  ;;  %v14739_v43 = vcombine.high %v1508_v40, %v1512_v12 }
 0x4c0   : > { %v10382_v32 = vpop.f32.mrb[48].mxu1  ;;  %v10345_v10 = vpop.f32.mrb[50].mxu0  ;;  %10646 = vmatpush1.bf16.msra.mxu0 %v14706_v26  ;;  %v14867_v22 = vcombine.high %v1636_v33, %v1640_v38  ;;  %v1516_v24 = vld [vmem:[%s16564_s9 + $0x2290] sm:$0xff] }
 0x4c1   : > { %v17891_v42 = vadd.f32 %v10382_v32, %v10341_v27  ;;  %v10384_v44 = vpop.f32.mrb[49].mxu1  ;;  %v10346_v45 = vpop.f32.mrb[51].mxu0  ;;  %10647 = vmatprep.subr.bf16.mxu0 %v14715_v39  ;;  %v1520_v25 = vld [vmem:[%s16564_s9 + $0x22b0] sm:$0xff]  ;;  %v14866_v39 = vcombine.low %v1636_v33, %v1640_v38 }
 0x4c2   : > { %v17893_v46 = vadd.f32 %v10384_v44, %v10343_v54  ;;  %v10386_v47 = vpop.f32.mrb[50].mxu1  ;;  %10687 = vmatpush1.bf16.msra.mxu1 %v14834_v29  ;;  %v1644_v20 = vld [vmem:[%s16564_s9 + $0x2690] sm:$0xff]  ;;  %v14738_v29 = vcombine.low %v1508_v40, %v1512_v12  ;;  %v14747_v27 = vcombine.high %v1516_v24, %v1520_v25  ;;  %v14746_v1 = vcombine.low %v1516_v24, %v1520_v25 }
 0x4c3   : > { %v10387_v49 = vpop.f32.mrb[51].mxu1  ;;  %10688 = vmatprep.subr.bf16.mxu1 %v14843_v35  ;;  %v1648_v26 = vld [vmem:[%s16564_s9 + $0x26b0] sm:$0xff] }
 0x4c4   : > { %10648 = vmatpush1.bf16.msra.mxu0 %v14714_v52  ;;  %v14875_v35 = vcombine.high %v1644_v20, %v1648_v26  ;;  %v1524_v34 = vld [vmem:[%s16564_s9 + $0x22d0] sm:$0xff]  ;;  %v14874_v7 = vcombine.low %v1644_v20, %v1648_v26 }
 0x4c5   : > { %10649 = vmatprep.subr.bf16.mxu0 %v14723_v58  ;;  %v1528_v31 = vld [vmem:[%s16564_s9 + $0x22f0] sm:$0xff] }
 0x4c6   : > { %10689 = vmatpush1.bf16.msra.mxu1 %v14842_v51  ;;  %v1652_v32 = vld [vmem:[%s16564_s9 + $0x26d0] sm:$0xff]  ;;  %v14755_v44 = vcombine.high %v1524_v34, %v1528_v31  ;;  %v14754_v58 = vcombine.low %v1524_v34, %v1528_v31 }
 0x4c7   : > { %10690 = vmatprep.subr.bf16.mxu1 %v14851_v8  ;;  %v1656_v54 = vld [vmem:[%s16564_s9 + $0x26f0] sm:$0xff] }
 0x4c8   : > { %10650 = vmatpush1.bf16.msra.mxu0 %v14722_v4  ;;  %v14883_v10 = vcombine.high %v1652_v32, %v1656_v54  ;;  %v1532_v52 = vld [vmem:[%s16564_s9 + $0x2310] sm:$0xff]  ;;  %v14882_v49 = vcombine.low %v1652_v32, %v1656_v54 }
 0x4c9   : > { %10651 = vmatprep.subr.bf16.mxu0 %v14731_v18  ;;  %v1536_v47 = vld [vmem:[%s16564_s9 + $0x2330] sm:$0xff] }
 0x4ca   : > { %10691 = vmatpush1.bf16.msra.mxu1 %v14850_v63  ;;  %v1660_v45 = vld [vmem:[%s16564_s9 + $0x2710] sm:$0xff]  ;;  %v14763_v8 = vcombine.high %v1532_v52, %v1536_v47  ;;  %v14762_v63 = vcombine.low %v1532_v52, %v1536_v47 }
 0x4cb   : > { %10692 = vmatprep.subr.bf16.mxu1 %v14859_v13  ;;  %v1664_v51 = vld [vmem:[%s16564_s9 + $0x2730] sm:$0xff] }
 0x4cc   : > { %10652 = vmatpush1.bf16.msra.mxu0 %v14730_v56  ;;  %v14891_v61 = vcombine.high %v1660_v45, %v1664_v51  ;;  %v1540_v14 = vld [vmem:[%s16564_s9 + $0x2350] sm:$0xff]  ;;  %v14890_v18 = vcombine.low %v1660_v45, %v1664_v51 }
 0x4cd   : > { %10653 = vmatprep.subr.bf16.mxu0 %v14739_v43  ;;  %v1544_v3 = vld [vmem:[%s16564_s9 + $0x2370] sm:$0xff] }
 0x4ce   : > { %10693 = vmatpush1.bf16.msra.mxu1 %v14858_v15  ;;  %v1668_v62 = vld [vmem:[%s16564_s9 + $0x2750] sm:$0xff]  ;;  %v14771_v13 = vcombine.high %v1540_v14, %v1544_v3  ;;  %v14770_v15 = vcombine.low %v1540_v14, %v1544_v3 }
 0x4cf   : > { %10694 = vmatprep.subr.bf16.mxu1 %v14867_v22  ;;  %v1672_v4 = vld [vmem:[%s16564_s9 + $0x2770] sm:$0xff] }
 0x4d0   : > { %10654 = vmatpush1.bf16.msra.mxu0 %v14738_v29  ;;  %v14899_v40 = vcombine.high %v1668_v62, %v1672_v4  ;;  %v1548_v12 = vld [vmem:[%s16564_s9 + $0x2390] sm:$0xff]  ;;  %v14898_v43 = vcombine.low %v1668_v62, %v1672_v4 }
 0x4d1   : > { %10655 = vmatprep.subr.bf16.mxu0 %v14747_v27  ;;  %v1552_v33 = vld [vmem:[%s16564_s9 + $0x23b0] sm:$0xff] }
 0x4d2   : > { %10695 = vmatpush1.bf16.msra.mxu1 %v14866_v39  ;;  %v1676_v38 = vld [vmem:[%s16564_s9 + $0x2790] sm:$0xff]  ;;  %v14779_v22 = vcombine.high %v1548_v12, %v1552_v33  ;;  %v14778_v39 = vcombine.low %v1548_v12, %v1552_v33 }
 0x4d3   : > { %10696 = vmatprep.subr.bf16.mxu1 %v14875_v35  ;;  %v1680_v56 = vld [vmem:[%s16564_s9 + $0x27b0] sm:$0xff] }
 0x4d4   : > { %10656 = vmatpush1.bf16.msra.mxu0 %v14746_v1  ;;  %v14907_v24 = vcombine.high %v1676_v38, %v1680_v56  ;;  %v1556_v25 = vld [vmem:[%s16564_s9 + $0x23d0] sm:$0xff]  ;;  %v14906_v27 = vcombine.low %v1676_v38, %v1680_v56 }
 0x4d5   : > { %10657 = vmatprep.subr.bf16.mxu0 %v14755_v44  ;;  %v1560_v20 = vld [vmem:[%s16564_s9 + $0x23f0] sm:$0xff] }
 0x4d6   : > { %10697 = vmatpush1.bf16.msra.mxu1 %v14874_v7  ;;  %v1684_v26 = vld [vmem:[%s16564_s9 + $0x27d0] sm:$0xff]  ;;  %v14787_v35 = vcombine.high %v1556_v25, %v1560_v20  ;;  %v14786_v7 = vcombine.low %v1556_v25, %v1560_v20 }
 0x4d7   : > { %10698 = vmatprep.subr.bf16.mxu1 %v14883_v10  ;;  %v1688_v29 = vld [vmem:[%s16564_s9 + $0x27f0] sm:$0xff] }
 0x4d8   : > { %10658 = vmatpush1.bf16.msra.mxu0 %v14754_v58  ;;  %v14915_v34 = vcombine.high %v1684_v26, %v1688_v29  ;;  %v1692_v31 = vld [vmem:[%s16564_s9 + $0x2810] sm:$0xff]  ;;  %v14914_v44 = vcombine.low %v1684_v26, %v1688_v29 }
 0x4d9   : > { %10659 = vmatprep.subr.bf16.mxu0 %v14763_v8  ;;  %v1696_v32 = vld [vmem:[%s16564_s9 + $0x2830] sm:$0xff] }
 0x4da   : > { %10699 = vmatpush1.bf16.msra.mxu1 %v14882_v49  ;;  %v1820_v54 = vld [vmem:[%s16564_s9 + $0x2c10] sm:$0xff]  ;;  %v14923_v10 = vcombine.high %v1692_v31, %v1696_v32  ;;  %v14922_v49 = vcombine.low %v1692_v31, %v1696_v32 }
 0x4db   : > { %10700 = vmatprep.subr.bf16.mxu1 %v14891_v61  ;;  %v1824_v1 = vld [vmem:[%s16564_s9 + $0x2c30] sm:$0xff] }
 0x4dc   : > { %10660 = vmatpush1.bf16.msra.mxu0 %v14762_v63  ;;  %v15051_v52 = vcombine.high %v1820_v54, %v1824_v1  ;;  %v1700_v47 = vld [vmem:[%s16564_s9 + $0x2850] sm:$0xff]  ;;  %v15050_v8 = vcombine.low %v1820_v54, %v1824_v1 }
 0x4dd   : > { %10661 = vmatprep.subr.bf16.mxu0 %v14771_v13  ;;  %v1704_v45 = vld [vmem:[%s16564_s9 + $0x2870] sm:$0xff] }
 0x4de   : > { %10701 = vmatpush1.bf16.msra.mxu1 %v14890_v18  ;;  %v1828_v51 = vld [vmem:[%s16564_s9 + $0x2c50] sm:$0xff]  ;;  %v14931_v61 = vcombine.high %v1700_v47, %v1704_v45  ;;  %v14930_v18 = vcombine.low %v1700_v47, %v1704_v45 }
 0x4df   : > { %10702 = vmatprep.subr.bf16.mxu1 %v14899_v40  ;;  %v1832_v58 = vld [vmem:[%s16564_s9 + $0x2c70] sm:$0xff] }
 0x4e0   : > { %10662 = vmatpush1.bf16.msra.mxu0 %v14770_v15  ;;  %v15059_v14 = vcombine.high %v1828_v51, %v1832_v58  ;;  %v1708_v3 = vld [vmem:[%s16564_s9 + $0x2890] sm:$0xff]  ;;  %v15058_v13 = vcombine.low %v1828_v51, %v1832_v58 }
 0x4e1   : > { %10663 = vmatprep.subr.bf16.mxu0 %v14779_v22  ;;  %v1712_v62 = vld [vmem:[%s16564_s9 + $0x28b0] sm:$0xff] }
 0x4e2   : > { %10703 = vmatpush1.bf16.msra.mxu1 %v14898_v43  ;;  %v1836_v4 = vld [vmem:[%s16564_s9 + $0x2c90] sm:$0xff]  ;;  %v14939_v40 = vcombine.high %v1708_v3, %v1712_v62  ;;  %v14938_v43 = vcombine.low %v1708_v3, %v1712_v62 }
 0x4e3   : > { %10704 = vmatprep.subr.bf16.mxu1 %v14907_v24  ;;  %v1840_v63 = vld [vmem:[%s16564_s9 + $0x2cb0] sm:$0xff] }
 0x4e4   : > { %10664 = vmatpush1.bf16.msra.mxu0 %v14778_v39  ;;  %v15067_v12 = vcombine.high %v1836_v4, %v1840_v63  ;;  %v1716_v33 = vld [vmem:[%s16564_s9 + $0x28d0] sm:$0xff]  ;;  %v15066_v22 = vcombine.low %v1836_v4, %v1840_v63 }
 0x4e5   : > { %10665 = vmatprep.subr.bf16.mxu0 %v14787_v35  ;;  %v1720_v38 = vld [vmem:[%s16564_s9 + $0x28f0] sm:$0xff] }
 0x4e6   : > { %10705 = vmatpush1.bf16.msra.mxu1 %v14906_v27  ;;  %v1844_v56 = vld [vmem:[%s16564_s9 + $0x2cd0] sm:$0xff]  ;;  %v14947_v24 = vcombine.high %v1716_v33, %v1720_v38  ;;  %v14946_v27 = vcombine.low %v1716_v33, %v1720_v38 }
 0x4e7   : > { %10706 = vmatprep.subr.bf16.mxu1 %v14915_v34  ;;  %v1848_v15 = vld [vmem:[%s16564_s9 + $0x2cf0] sm:$0xff] }
 0x4e8   : > { %10666 = vmatpush1.bf16.msra.mxu0 %v14786_v7  ;;  %v15075_v25 = vcombine.high %v1844_v56, %v1848_v15  ;;  %v1724_v20 = vld [vmem:[%s16564_s9 + $0x2910] sm:$0xff]  ;;  %v15074_v35 = vcombine.low %v1844_v56, %v1848_v15 }
 0x4e9   : > { %10717 = vmatprep.subr.bf16.mxu0 %v14923_v10  ;;  %v1728_v26 = vld [vmem:[%s16564_s9 + $0x2930] sm:$0xff] }
 0x4ea   : > { %10707 = vmatpush1.bf16.msra.mxu1 %v14914_v44  ;;  %v1852_v29 = vld [vmem:[%s16564_s9 + $0x2d10] sm:$0xff]  ;;  %v14955_v34 = vcombine.high %v1724_v20, %v1728_v26  ;;  %v14954_v44 = vcombine.low %v1724_v20, %v1728_v26 }
 0x4eb   : > { %10758 = vmatprep.subr.bf16.mxu1 %v15051_v52  ;;  %10668 = vmatmul.mubr.bf16.vlgmr.msra.gmra.mrb[64].mxu0 %v17036_v11  ;;  %v1856_v39 = vld [vmem:[%s16564_s9 + $0x2d30] sm:$0xff] }
 0x4ec   : > { %10718 = vmatpush1.bf16.msra.mxu0 %v14922_v49  ;;  %10749 = vmatprep.mubr.bf16.mxu0 %v17054_v57  ;;  %v15083_v31 = vcombine.high %v1852_v29, %v1856_v39  ;;  %v1732_v32 = vld [vmem:[%s16564_s9 + $0x2950] sm:$0xff]  ;;  %v15082_v10 = vcombine.low %v1852_v29, %v1856_v39 }
 0x4ed   : > { %10709 = vmatmul.mubr.bf16.vlgmr.msra.gmra.mrb[64].mxu1 %v17042_v6  ;;  %10719 = vmatprep.subr.bf16.mxu0 %v14931_v61  ;;  %v1736_v54 = vld [vmem:[%s16564_s9 + $0x2970] sm:$0xff] }
 0x4ee   : > { %10759 = vmatpush1.bf16.msra.mxu1 %v15050_v8  ;;  %10790 = vmatprep.mubr.bf16.mxu1 %v16281_v55  ;;  %v1860_v1 = vld [vmem:[%s16564_s9 + $0x2d50] sm:$0xff]  ;;  %v14963_v52 = vcombine.high %v1732_v32, %v1736_v54  ;;  %v14962_v8 = vcombine.low %v1732_v32, %v1736_v54 }
 0x4ef   : > { %10760 = vmatprep.subr.bf16.mxu1 %v15059_v14  ;;  %v1864_v7 = vld [vmem:[%s16564_s9 + $0x2d70] sm:$0xff] }
 0x4f0   : > { %10720 = vmatpush1.bf16.msra.mxu0 %v14930_v18  ;;  %v15091_v47 = vcombine.high %v1860_v1, %v1864_v7  ;;  %v1740_v45 = vld [vmem:[%s16564_s9 + $0x2990] sm:$0xff]  ;;  %v15090_v61 = vcombine.low %v1860_v1, %v1864_v7 }
 0x4f1   : > { %10721 = vmatprep.subr.bf16.mxu0 %v14939_v40  ;;  %v1744_v51 = vld [vmem:[%s16564_s9 + $0x29b0] sm:$0xff] }
 0x4f2   : > { %10761 = vmatpush1.bf16.msra.mxu1 %v15058_v13  ;;  %v1868_v58 = vld [vmem:[%s16564_s9 + $0x2d90] sm:$0xff]  ;;  %v14971_v14 = vcombine.high %v1740_v45, %v1744_v51 }
 0x4f3   : > { %10762 = vmatprep.subr.bf16.mxu1 %v15067_v12  ;;  %v1872_v49 = vld [vmem:[%s16564_s9 + $0x2db0] sm:$0xff] }
 0x4f4   : > { %10722 = vmatpush1.bf16.msra.mxu0 %v14938_v43  ;;  %v15099_v62 = vcombine.high %v1868_v58, %v1872_v49  ;;  %v1748_v4 = vld [vmem:[%s16564_s9 + $0x29d0] sm:$0xff]  ;;  %v14970_v43 = vcombine.low %v1740_v45, %v1744_v51 }
 0x4f5   : > { %10723 = vmatprep.subr.bf16.mxu0 %v14947_v24  ;;  %v1752_v63 = vld [vmem:[%s16564_s9 + $0x29f0] sm:$0xff] }
 0x4f6   : > { %10763 = vmatpush1.bf16.msra.mxu1 %v15066_v22  ;;  %v1876_v12 = vld [vmem:[%s16564_s9 + $0x2dd0] sm:$0xff]  ;;  %v14979_v20 = vcombine.high %v1748_v4, %v1752_v63 }
 0x4f7   : > { %10764 = vmatprep.subr.bf16.mxu1 %v15075_v25  ;;  %v1880_v33 = vld [vmem:[%s16564_s9 + $0x2df0] sm:$0xff] }
 0x4f8   : > { %10724 = vmatpush1.bf16.msra.mxu0 %v14946_v27  ;;  %v15107_v29 = vcombine.high %v1876_v12, %v1880_v33  ;;  %v1756_v39 = vld [vmem:[%s16564_s9 + $0x2a10] sm:$0xff]  ;;  %v15106_v32 = vcombine.low %v1876_v12, %v1880_v33  ;;  %v437_v12 = vld [vmem:[%s16564_s9 + $0xd8] sm:$0xff] }
 0x4f9   : > { %10725 = vmatprep.subr.bf16.mxu0 %v14955_v34  ;;  %v1760_v27 = vld [vmem:[%s16564_s9 + $0x2a30] sm:$0xff]  ;;  %v417_v34 = vld [vmem:[%s16564_s9 + $0x38] sm:$0xff] }
 0x4fa   : > { %10765 = vmatpush1.bf16.msra.mxu1 %v15074_v35  ;;  %v413_v35 = vld [vmem:[%s16564_s9 + $0x18] sm:$0xff]  ;;  %v14987_v54 = vcombine.high %v1756_v39, %v1760_v27  ;;  %v1764_v7 = vld [vmem:[%s16564_s9 + $0x2a50] sm:$0xff] }
 0x4fb   : > { %10766 = vmatprep.subr.bf16.mxu1 %v15083_v31  ;;  %v14978_v31 = vcombine.low %v1748_v4, %v1752_v63  ;;  %v13645_v1 = vcombine.high %v413_v35, %v417_v34  ;;  %v13644_v45 = vcombine.low %v413_v35, %v417_v34  ;;  %v441_v33 = vld [vmem:[%s16564_s9 + $0xf8] sm:$0xff]  ;;  %v1800_v35 = vld [vmem:[%s16564_s9 + $0x2b70] sm:$0xff] }
 0x4fc   : > { %10726 = vmatpush1.bf16.msra.mxu0 %v14954_v44  ;;  %v1768_v44 = vld [vmem:[%s16564_s9 + $0x2a70] sm:$0xff]  ;;  %v453_v34 = vld [vmem:[%s16564_s9 + $0x158] sm:$0xff] }
 0x4fd   : > { %10727 = vmatprep.subr.bf16.mxu0 %v14963_v52  ;;  %v425_v52 = vld [vmem:[%s16564_s9 + $0x78] sm:$0xff]  ;;  %v14995_v51 = vcombine.high %v1764_v7, %v1768_v44 }
 0x4fe   : > { %10767 = vmatpush1.bf16.msra.mxu1 %v15082_v10  ;;  %v10423_v3 = vpop.f32.mrb[52].mxu0  ;;  %v421_v10 = vld [vmem:[%s16564_s9 + $0x58] sm:$0xff] }
 0x4ff   : > { %10768 = vmatprep.subr.bf16.mxu1 %v15091_v47  ;;  %v10424_v18 = vadd.f32 %v10423_v3, %v17891_v42  ;;  %v10425_v40 = vpop.f32.mrb[53].mxu0  ;;  %v15098_v42 = vcombine.low %v1868_v58, %v1872_v49  ;;  %v14986_v47 = vcombine.low %v1756_v39, %v1760_v27  ;;  %v13653_v58 = vcombine.high %v421_v10, %v425_v52  ;;  %v1772_v49 = vld [vmem:[%s16564_s9 + $0x2a90] sm:$0xff]  ;;  %v15655_v3 = vld [vmem:[%s16557_s27 + $0x58] ss:$0 sps:$4 sm:$0xff]  }
 0x500   : > { %v10464_v13 = vpop.f32.mrb[52].mxu1  ;;  %v10426_v38 = vadd.f32 %v10425_v40, %v17893_v46  ;;  %v10427_v15 = vpop.f32.mrb[54].mxu0  ;;  %10728 = vmatpush1.bf16.msra.mxu0 %v14962_v8  ;;  %v1776_v8 = vld [vmem:[%s16564_s9 + $0x2ab0] sm:$0xff]  ;;  %v13652_v4 = vcombine.low %v421_v10, %v425_v52  ;;  %v461_v52 = vld [vmem:[%s16564_s9 + $0x198] sm:$0xff] }
 0x501   : > { %v10466_v56 = vpop.f32.mrb[53].mxu1  ;;  %v17965_v22 = vadd.f32 %v10464_v13, %v10424_v18  ;;  %v10428_v25 = vpop.f32.mrb[55].mxu0  ;;  %10729 = vmatprep.subr.bf16.mxu0 %v14971_v14  ;;  %v433_v14 = vld [vmem:[%s16564_s9 + $0xb8] sm:$0xff]  ;;  %v15003_v63 = vcombine.high %v1772_v49, %v1776_v8  ;;  %v1780_v13 = vld [vmem:[%s16564_s9 + $0x2ad0] sm:$0xff] }
 0x502   : > { %v10468_v24 = vpop.f32.mrb[54].mxu1  ;;  %10769 = vmatpush1.bf16.msra.mxu1 %v15090_v61  ;;  %v17967_v26 = vadd.f32 %v10466_v56, %v10426_v38  ;;  %v429_v61 = vld [vmem:[%s16564_s9 + $0x98] sm:$0xff]  ;;  %v1784_v40 = vld [vmem:[%s16564_s9 + $0x2af0] sm:$0xff]  ;;  %v15002_v38 = vcombine.low %v1772_v49, %v1776_v8 }
 0x503   : > { %v10469_v46 = vpop.f32.mrb[55].mxu1  ;;  %10770 = vmatprep.subr.bf16.mxu1 %v15099_v62  ;;  %v14994_v62 = vcombine.low %v1764_v7, %v1768_v44  ;;  %v13661_v18 = vcombine.high %v429_v61, %v433_v14  ;;  %v13660_v56 = vcombine.low %v429_v61, %v433_v14  ;;  %v15011_v15 = vcombine.high %v1780_v13, %v1784_v40  ;;  %v1788_v24 = vld [vmem:[%s16564_s9 + $0x2b10] sm:$0xff]  ;;  %v469_v14 = vld [vmem:[%s16564_s9 + $0x1d8] sm:$0xff] }
 0x504   : > { %10730 = vmatpush1.bf16.msra.mxu0 %v14970_v43  ;;  %v13669_v43 = vcombine.high %v437_v12, %v441_v33  ;;  %v1792_v25 = vld [vmem:[%s16564_s9 + $0x2b30] sm:$0xff]  ;;  %v13668_v46 = vcombine.low %v437_v12, %v441_v33  ;;  %v477_v12 = vld [vmem:[%s16564_s9 + $0x218] sm:$0xff] }
 0x505   : > { %10731 = vmatprep.subr.bf16.mxu0 %v14979_v20  ;;  %v449_v20 = vld [vmem:[%s16564_s9 + $0x138] sm:$0xff]  ;;  %v1796_v27 = vld [vmem:[%s16564_s9 + $0x2b50] sm:$0xff] }
 0x506   : > { %10771 = vmatpush1.bf16.msra.mxu1 %v15098_v42  ;;  %v445_v42 = vld [vmem:[%s16564_s9 + $0x118] sm:$0xff]  ;;  %v1804_v44 = vld [vmem:[%s16564_s9 + $0x2b90] sm:$0xff] }
 0x507   : > { %10772 = vmatprep.subr.bf16.mxu1 %v15107_v29  ;;  %v15019_v29 = vcombine.high %v1788_v24, %v1792_v25  ;;  %v13677_v39 = vcombine.high %v445_v42, %v449_v20  ;;  %v1808_v10 = vld [vmem:[%s16564_s9 + $0x2bb0] sm:$0xff]  ;;  %v481_v33 = vld [vmem:[%s16564_s9 + $0x238] sm:$0xff] }
 0x508   : > { %10732 = vmatpush1.bf16.msra.mxu0 %v14978_v31  ;;  %v457_v31 = vld [vmem:[%s16564_s9 + $0x178] sm:$0xff]  ;;  %v1812_v8 = vld [vmem:[%s16564_s9 + $0x2bd0] sm:$0xff] }
 0x509   : > { %10733 = vmatprep.subr.bf16.mxu0 %v14987_v54  ;;  %v13676_v54 = vcombine.low %v445_v42, %v449_v20  ;;  %v13685_v7 = vcombine.high %v453_v34, %v457_v31  ;;  %v1816_v61 = vld [vmem:[%s16564_s9 + $0x2bf0] sm:$0xff]  ;;  %v485_v42 = vld [vmem:[%s16564_s9 + $0x258] sm:$0xff] }
 0x50a   : > { %10773 = vmatpush1.bf16.msra.mxu1 %v15106_v32  ;;  %v15018_v32 = vcombine.low %v1788_v24, %v1792_v25  ;;  %v549_v24 = vld [vmem:[%s16564_s9 + $0x458] sm:$0xff] }
 0x50b   : > { %10799 = vmatprep.subr.bf16.mxu1 %v13645_v1  ;;  %v15027_v1 = vcombine.high %v1796_v27, %v1800_v35  ;;  %v553_v25 = vld [vmem:[%s16564_s9 + $0x478] sm:$0xff] }
 0x50c   : > { %10734 = vmatpush1.bf16.msra.mxu0 %v14986_v47  ;;  %v465_v47 = vld [vmem:[%s16564_s9 + $0x1b8] sm:$0xff] }
 0x50d   : > { %10791 = vmatmul.mubr.bf16.vlgmr.msra.gmra.mrb[68].mxu1 %v15655_v3  ;;  %10735 = vmatprep.subr.bf16.mxu0 %v14995_v51  ;;  %v13684_v51 = vcombine.low %v453_v34, %v457_v31  ;;  %v13693_v49 = vcombine.high %v461_v52, %v465_v47  ;;  %v473_v3 = vld [vmem:[%s16564_s9 + $0x1f8] sm:$0xff] }
 0x50e   : > { %10800 = vmatpush1.bf16.msra.mxu1 %v13644_v45  ;;  %10831 = vmatprep.mubr.bf16.mxu1 %v16622_v59  ;;  %v15010_v59 = vcombine.low %v1780_v13, %v1784_v40  ;;  %v15026_v45 = vcombine.low %v1796_v27, %v1800_v35  ;;  %v541_v13 = vld [vmem:[%s16564_s9 + $0x418] sm:$0xff] }
 0x50f   : > { %10801 = vmatprep.subr.bf16.mxu1 %v13653_v58  ;;  %v15035_v58 = vcombine.high %v1804_v44, %v1808_v10  ;;  %v545_v40 = vld [vmem:[%s16564_s9 + $0x438] sm:$0xff] }
 0x510   : > { %10736 = vmatpush1.bf16.msra.mxu0 %v14994_v62  ;;  %v15034_v62 = vcombine.low %v1804_v44, %v1808_v10  ;;  %v489_v20 = vld [vmem:[%s16564_s9 + $0x278] sm:$0xff] }
 0x511   : > { %10737 = vmatprep.subr.bf16.mxu0 %v15003_v63  ;;  %v15043_v63 = vcombine.high %v1812_v8, %v1816_v61  ;;  %v557_v27 = vld [vmem:[%s16564_s9 + $0x498] sm:$0xff] }
 0x512   : > { %10802 = vmatpush1.bf16.msra.mxu1 %v13652_v4  ;;  %v13692_v4 = vcombine.low %v461_v52, %v465_v47  ;;  %v561_v35 = vld [vmem:[%s16564_s9 + $0x4b8] sm:$0xff] }
 0x513   : > { %10803 = vmatprep.subr.bf16.mxu1 %v13661_v18  ;;  %v13701_v18 = vcombine.high %v469_v14, %v473_v3  ;;  %v493_v34 = vld [vmem:[%s16564_s9 + $0x298] sm:$0xff] }
 0x514   : > { %10738 = vmatpush1.bf16.msra.mxu0 %v15002_v38  ;;  %v15042_v38 = vcombine.low %v1812_v8, %v1816_v61  ;;  %v497_v31 = vld [vmem:[%s16564_s9 + $0x2b8] sm:$0xff] }
 0x515   : > { %10739 = vmatprep.subr.bf16.mxu0 %v15011_v15  ;;  %v13773_v15 = vcombine.high %v541_v13, %v545_v40  ;;  %v565_v44 = vld [vmem:[%s16564_s9 + $0x4d8] sm:$0xff] }
 0x516   : > { %10804 = vmatpush1.bf16.msra.mxu1 %v13660_v56  ;;  %v13700_v56 = vcombine.low %v469_v14, %v473_v3  ;;  %v569_v10 = vld [vmem:[%s16564_s9 + $0x4f8] sm:$0xff] }
 0x517   : > { %10805 = vmatprep.subr.bf16.mxu1 %v13669_v43  ;;  %v13709_v43 = vcombine.high %v477_v12, %v481_v33  ;;  %v501_v52 = vld [vmem:[%s16564_s9 + $0x2d8] sm:$0xff]  ;;  %v13796_v3 = vcombine.low %v565_v44, %v569_v10 }
 0x518   : > { %10740 = vmatpush1.bf16.msra.mxu0 %v15010_v59  ;;  %v13772_v59 = vcombine.low %v541_v13, %v545_v40  ;;  %v505_v47 = vld [vmem:[%s16564_s9 + $0x2f8] sm:$0xff] }
 0x519   : > { %10741 = vmatprep.subr.bf16.mxu0 %v15019_v29  ;;  %v13781_v29 = vcombine.high %v549_v24, %v553_v25  ;;  %v577_v8 = vld [vmem:[%s16564_s9 + $0x538] sm:$0xff] }
 0x51a   : > { %10806 = vmatpush1.bf16.msra.mxu1 %v13668_v46  ;;  %v13708_v46 = vcombine.low %v477_v12, %v481_v33  ;;  %v509_v61 = vld [vmem:[%s16564_s9 + $0x318] sm:$0xff] }
 0x51b   : > { %10807 = vmatprep.subr.bf16.mxu1 %v13677_v39  ;;  %v13717_v39 = vcombine.high %v485_v42, %v489_v20  ;;  %v513_v14 = vld [vmem:[%s16564_s9 + $0x338] sm:$0xff] }
 0x51c   : > { %10742 = vmatpush1.bf16.msra.mxu0 %v15018_v32  ;;  %v13780_v32 = vcombine.low %v549_v24, %v553_v25  ;;  %v585_v13 = vld [vmem:[%s16564_s9 + $0x578] sm:$0xff] }
 0x51d   : > { %10743 = vmatprep.subr.bf16.mxu0 %v15027_v1  ;;  %v13789_v1 = vcombine.high %v557_v27, %v561_v35  ;;  %v517_v40 = vld [vmem:[%s16564_s9 + $0x358] sm:$0xff] }
 0x51e   : > { %10808 = vmatpush1.bf16.msra.mxu1 %v13676_v54  ;;  %v13716_v54 = vcombine.low %v485_v42, %v489_v20  ;;  %v521_v12 = vld [vmem:[%s16564_s9 + $0x378] sm:$0xff] }
 0x51f   : > { %10809 = vmatprep.subr.bf16.mxu1 %v13685_v7  ;;  %v13725_v7 = vcombine.high %v493_v34, %v497_v31  ;;  %v593_v24 = vld [vmem:[%s16564_s9 + $0x5b8] sm:$0xff] }
 0x520   : > { %10744 = vmatpush1.bf16.msra.mxu0 %v15026_v45  ;;  %v13788_v45 = vcombine.low %v557_v27, %v561_v35  ;;  %v525_v25 = vld [vmem:[%s16564_s9 + $0x398] sm:$0xff] }
 0x521   : > { %10745 = vmatprep.subr.bf16.mxu0 %v15035_v58  ;;  %v13733_v58 = vcombine.high %v501_v52, %v505_v47  ;;  %v529_v42 = vld [vmem:[%s16564_s9 + $0x3b8] sm:$0xff] }
 0x522   : > { %10810 = vmatpush1.bf16.msra.mxu1 %v13684_v51  ;;  %v13724_v51 = vcombine.low %v493_v34, %v497_v31  ;;  %v597_v27 = vld [vmem:[%s16564_s9 + $0x5d8] sm:$0xff] }
 0x523   : > { %10811 = vmatprep.subr.bf16.mxu1 %v13693_v49  ;;  %v573_v49 = vld [vmem:[%s16564_s9 + $0x518] sm:$0xff] }
 0x524   : > { %10746 = vmatpush1.bf16.msra.mxu0 %v15034_v62  ;;  %v13732_v62 = vcombine.low %v501_v52, %v505_v47  ;;  %v13804_v33 = vcombine.low %v573_v49, %v577_v8  ;;  %v601_v35 = vld [vmem:[%s16564_s9 + $0x5f8] sm:$0xff] }
 0x525   : > { %10747 = vmatprep.subr.bf16.mxu0 %v15043_v63  ;;  %v13741_v63 = vcombine.high %v509_v61, %v513_v14 }
 0x526   : > { %10812 = vmatpush1.bf16.msra.mxu1 %v13692_v4  ;;  %v13805_v4 = vcombine.high %v573_v49, %v577_v8  ;;  %v605_v8 = vld [vmem:[%s16564_s9 + $0x618] sm:$0xff] }
 0x527   : > { %10813 = vmatprep.subr.bf16.mxu1 %v13701_v18  ;;  %v581_v18 = vld [vmem:[%s16564_s9 + $0x558] sm:$0xff] }
 0x528   : > { %10748 = vmatpush1.bf16.msra.mxu0 %v15042_v38  ;;  %v13740_v38 = vcombine.low %v509_v61, %v513_v14  ;;  %v13812_v20 = vcombine.low %v581_v18, %v585_v13  ;;  %v609_v61 = vld [vmem:[%s16564_s9 + $0x638] sm:$0xff] }
 0x529   : > { %10840 = vmatprep.subr.bf16.mxu0 %v13773_v15  ;;  %v13749_v15 = vcombine.high %v517_v40, %v521_v12  ;;  %v669_v14 = vld [vmem:[%s16564_s9 + $0x818] sm:$0xff] }
 0x52a   : > { %10814 = vmatpush1.bf16.msra.mxu1 %v13700_v56  ;;  %v13813_v56 = vcombine.high %v581_v18, %v585_v13  ;;  %v613_v13 = vld [vmem:[%s16564_s9 + $0x658] sm:$0xff] }
 0x52b   : > { %10815 = vmatprep.subr.bf16.mxu1 %v13709_v43  ;;  %10750 = vmatmul.mubr.bf16.vlgmr.msra.gmra.mrb[68].mxu0 %v17127_v36  ;;  %v589_v43 = vld [vmem:[%s16564_s9 + $0x598] sm:$0xff] }
 0x52c   : > { %10841 = vmatpush1.bf16.msra.mxu0 %v13772_v59  ;;  %10872 = vmatprep.mubr.bf16.mxu0 %v16626_v60  ;;  %v13797_v60 = vcombine.high %v565_v44, %v569_v10  ;;  %v13748_v59 = vcombine.low %v517_v40, %v521_v12  ;;  %v13820_v52 = vcombine.low %v589_v43, %v593_v24  ;;  %v617_v40 = vld [vmem:[%s16564_s9 + $0x678] sm:$0xff] }
 0x52d   : > { %10842 = vmatprep.subr.bf16.mxu0 %v13781_v29  ;;  %v677_v12 = vld [vmem:[%s16564_s9 + $0x858] sm:$0xff] }
 0x52e   : > { %10816 = vmatpush1.bf16.msra.mxu1 %v13708_v46  ;;  %v13821_v46 = vcombine.high %v589_v43, %v593_v24  ;;  %v621_v24 = vld [vmem:[%s16564_s9 + $0x698] sm:$0xff] }
 0x52f   : > { %10817 = vmatprep.subr.bf16.mxu1 %v13717_v39  ;;  %v13757_v39 = vcombine.high %v525_v25, %v529_v42 }
 0x530   : > { %10843 = vmatpush1.bf16.msra.mxu0 %v13780_v32 }
 0x531   : > { %10844 = vmatprep.subr.bf16.mxu0 %v13789_v1  ;;  %v537_v1 = vld [vmem:[%s16564_s9 + $0x3f8] sm:$0xff] }
 0x532   : > { %10818 = vmatpush1.bf16.msra.mxu1 %v13716_v54  ;;  %v533_v54 = vld [vmem:[%s16564_s9 + $0x3d8] sm:$0xff] }
 0x533   : > { %10819 = vmatprep.subr.bf16.mxu1 %v13725_v7  ;;  %v13765_v49 = vcombine.high %v533_v54, %v537_v1 }
 0x534   : > { %10845 = vmatpush1.bf16.msra.mxu0 %v13788_v45 }
 0x535   : > { %10846 = vmatprep.subr.bf16.mxu0 %v13797_v60  ;;  %v13829_v60 = vcombine.high %v597_v27, %v601_v35 }
 0x536   : > { %10820 = vmatpush1.bf16.msra.mxu1 %v13724_v51 }
 0x537   : > { %10821 = vmatprep.subr.bf16.mxu1 %v13733_v58 }
 0x538   : > { %10847 = vmatpush1.bf16.msra.mxu0 %v13796_v3  ;;  %v673_v3 = vld [vmem:[%s16564_s9 + $0x838] sm:$0xff] }
 0x539   : > { %10848 = vmatprep.subr.bf16.mxu0 %v13805_v4  ;;  %v13764_v4 = vcombine.low %v533_v54, %v537_v1  ;;  %v13901_v18 = vcombine.high %v669_v14, %v673_v3 }
 0x53a   : > { %10822 = vmatpush1.bf16.msra.mxu1 %v13732_v62  ;;  %v13828_v62 = vcombine.low %v597_v27, %v601_v35  ;;  %v629_v27 = vld [vmem:[%s16564_s9 + $0x6d8] sm:$0xff] }
 0x53b   : > { %10823 = vmatprep.subr.bf16.mxu1 %v13741_v63  ;;  %v13837_v63 = vcombine.high %v605_v8, %v609_v61  ;;  %v633_v35 = vld [vmem:[%s16564_s9 + $0x6f8] sm:$0xff] }
 0x53c   : > { %10849 = vmatpush1.bf16.msra.mxu0 %v13804_v33  ;;  %v681_v33 = vld [vmem:[%s16564_s9 + $0x878] sm:$0xff]  ;;  %v13861_v54 = vcombine.high %v629_v27, %v633_v35 }
 0x53d   : > { %10850 = vmatprep.subr.bf16.mxu0 %v13813_v56  ;;  %v13900_v56 = vcombine.low %v669_v14, %v673_v3  ;;  %v13909_v43 = vcombine.high %v677_v12, %v681_v33 }
 0x53e   : > { %10824 = vmatpush1.bf16.msra.mxu1 %v13740_v38  ;;  %v10505_v29 = vpop.f32.mrb[56].mxu0  ;;  %v13836_v38 = vcombine.low %v605_v8, %v609_v61  ;;  %v713_v8 = vld [vmem:[%s16564_s9 + $0x978] sm:$0xff] }
 0x53f   : > { %10825 = vmatprep.subr.bf16.mxu1 %v13749_v15  ;;  %v10506_v34 = vadd.f32 %v10505_v29, %v17965_v22  ;;  %v10507_v32 = vpop.f32.mrb[57].mxu0  ;;  %v13756_v22 = vcombine.low %v525_v25, %v529_v42  ;;  %v13845_v15 = vcombine.high %v613_v13, %v617_v40  ;;  %v625_v25 = vld [vmem:[%s16564_s9 + $0x6b8] sm:$0xff] }
 0x540   : > { %v10546_v31 = vpop.f32.mrb[56].mxu1  ;;  %v10508_v7 = vadd.f32 %v10507_v32, %v17967_v26  ;;  %v10509_v10 = vpop.f32.mrb[58].mxu0  ;;  %10851 = vmatpush1.bf16.msra.mxu0 %v13812_v20  ;;  %v685_v42 = vld [vmem:[%s16564_s9 + $0x898] sm:$0xff]  ;;  %v13853_v29 = vcombine.high %v621_v24, %v625_v25 }
 0x541   : > { %v10548_v44 = vpop.f32.mrb[57].mxu1  ;;  %v18039_v47 = vadd.f32 %v10546_v31, %v10506_v34  ;;  %v10510_v51 = vpop.f32.mrb[59].mxu0  ;;  %10852 = vmatprep.subr.bf16.mxu0 %v13821_v46  ;;  %v689_v20 = vld [vmem:[%s16564_s9 + $0x8b8] sm:$0xff]  ;;  %v13908_v46 = vcombine.low %v677_v12, %v681_v33 }
 0x542   : > { %v10550_v45 = vpop.f32.mrb[58].mxu1  ;;  %10826 = vmatpush1.bf16.msra.mxu1 %v13748_v59  ;;  %v18041_v58 = vadd.f32 %v10548_v44, %v10508_v7  ;;  %v13844_v59 = vcombine.low %v613_v13, %v617_v40  ;;  %v693_v34 = vld [vmem:[%s16564_s9 + $0x8d8] sm:$0xff]  ;;  %v13916_v32 = vcombine.low %v685_v42, %v689_v20 }
 0x543   : > { %v10551_v26 = vpop.f32.mrb[59].mxu1  ;;  %10827 = vmatprep.subr.bf16.mxu1 %v13757_v39  ;;  %v13917_v39 = vcombine.high %v685_v42, %v689_v20  ;;  %v697_v31 = vld [vmem:[%s16564_s9 + $0x8f8] sm:$0xff] }
 0x544   : > { %10853 = vmatpush1.bf16.msra.mxu0 %v13820_v52  ;;  %v13925_v1 = vcombine.high %v693_v34, %v697_v31  ;;  %v637_v7 = vld [vmem:[%s16564_s9 + $0x718] sm:$0xff]  ;;  %v13924_v45 = vcombine.low %v693_v34, %v697_v31 }
 0x545   : > { %10854 = vmatprep.subr.bf16.mxu0 %v13829_v60  ;;  %v641_v44 = vld [vmem:[%s16564_s9 + $0x738] sm:$0xff] }
 0x546   : > { %10828 = vmatpush1.bf16.msra.mxu1 %v13756_v22  ;;  %v701_v10 = vld [vmem:[%s16564_s9 + $0x918] sm:$0xff]  ;;  %v13869_v51 = vcombine.high %v637_v7, %v641_v44  ;;  %v13868_v61 = vcombine.low %v637_v7, %v641_v44 }
 0x547   : > { %10829 = vmatprep.subr.bf16.mxu1 %v13765_v49  ;;  %v705_v52 = vld [vmem:[%s16564_s9 + $0x938] sm:$0xff] }
 0x548   : > { %10855 = vmatpush1.bf16.msra.mxu0 %v13828_v62  ;;  %v13933_v22 = vcombine.high %v701_v10, %v705_v52  ;;  %v645_v60 = vld [vmem:[%s16564_s9 + $0x758] sm:$0xff]  ;;  %v13932_v14 = vcombine.low %v701_v10, %v705_v52 }
 0x549   : > { %10856 = vmatprep.subr.bf16.mxu0 %v13837_v63  ;;  %v649_v26 = vld [vmem:[%s16564_s9 + $0x778] sm:$0xff] }
 0x54a   : > { %10830 = vmatpush1.bf16.msra.mxu1 %v13764_v4  ;;  %v709_v49 = vld [vmem:[%s16564_s9 + $0x958] sm:$0xff]  ;;  %v13877_v3 = vcombine.high %v645_v60, %v649_v26  ;;  %v13876_v40 = vcombine.low %v645_v60, %v649_v26 }
 0x54b   : > { %10881 = vmatprep.subr.bf16.mxu1 %v13901_v18  ;;  %v13941_v62 = vcombine.high %v709_v49, %v713_v8  ;;  %v653_v4 = vld [vmem:[%s16564_s9 + $0x798] sm:$0xff]  ;;  %v13940_v12 = vcombine.low %v709_v49, %v713_v8 }
 0x54c   : > { %10857 = vmatpush1.bf16.msra.mxu0 %v13836_v38  ;;  %v657_v63 = vld [vmem:[%s16564_s9 + $0x7b8] sm:$0xff] }
 0x54d   : > { %10832 = vmatmul.mubr.bf16.vlgmr.msra.gmra.mrb[72].mxu1 %v16672_v17  ;;  %10858 = vmatprep.subr.bf16.mxu0 %v13845_v15  ;;  %v13852_v17 = vcombine.low %v621_v24, %v625_v25  ;;  %v717_v18 = vld [vmem:[%s16564_s9 + $0x998] sm:$0xff]  ;;  %v13885_v33 = vcombine.high %v653_v4, %v657_v63  ;;  %v13884_v25 = vcombine.low %v653_v4, %v657_v63 }
 0x54e   : > { %10882 = vmatpush1.bf16.msra.mxu1 %v13900_v56  ;;  %10913 = vmatprep.mubr.bf16.mxu1 %v16690_v28  ;;  %v13860_v28 = vcombine.low %v629_v27, %v633_v35  ;;  %v721_v13 = vld [vmem:[%s16564_s9 + $0x9b8] sm:$0xff] }
 0x54f   : > { %10883 = vmatprep.subr.bf16.mxu1 %v13909_v43  ;;  %v13949_v38 = vcombine.high %v717_v18, %v721_v13  ;;  %v661_v56 = vld [vmem:[%s16564_s9 + $0x7d8] sm:$0xff]  ;;  %v13948_v42 = vcombine.low %v717_v18, %v721_v13 }
 0x550   : > { %10859 = vmatpush1.bf16.msra.mxu0 %v13844_v59  ;;  %v665_v15 = vld [vmem:[%s16564_s9 + $0x7f8] sm:$0xff] }
 0x551   : > { %10860 = vmatprep.subr.bf16.mxu0 %v13853_v29  ;;  %v725_v43 = vld [vmem:[%s16564_s9 + $0x9d8] sm:$0xff]  ;;  %v13893_v20 = vcombine.high %v661_v56, %v665_v15  ;;  %v13892_v35 = vcombine.low %v661_v56, %v665_v15 }
 0x552   : > { %10884 = vmatpush1.bf16.msra.mxu1 %v13908_v46  ;;  %v729_v24 = vld [vmem:[%s16564_s9 + $0x9f8] sm:$0xff] }
 0x553   : > { %10885 = vmatprep.subr.bf16.mxu1 %v13917_v39  ;;  %v13957_v59 = vcombine.high %v725_v43, %v729_v24  ;;  %v797_v46 = vld [vmem:[%s16564_s9 + $0xc18] sm:$0xff]  ;;  %v13956_v34 = vcombine.low %v725_v43, %v729_v24 }
 0x554   : > { %10861 = vmatpush1.bf16.msra.mxu0 %v13852_v17  ;;  %v801_v29 = vld [vmem:[%s16564_s9 + $0xc38] sm:$0xff] }
 0x555   : > { %10862 = vmatprep.subr.bf16.mxu0 %v13861_v54  ;;  %v733_v39 = vld [vmem:[%s16564_s9 + $0xa18] sm:$0xff]  ;;  %v14029_v31 = vcombine.high %v797_v46, %v801_v29  ;;  %v14028_v44 = vcombine.low %v797_v46, %v801_v29 }
 0x556   : > { %10886 = vmatpush1.bf16.msra.mxu1 %v13916_v32  ;;  %v737_v27 = vld [vmem:[%s16564_s9 + $0xa38] sm:$0xff] }
 0x557   : > { %10887 = vmatprep.subr.bf16.mxu1 %v13925_v1  ;;  %v13965_v17 = vcombine.high %v733_v39, %v737_v27  ;;  %v805_v32 = vld [vmem:[%s16564_s9 + $0xc58] sm:$0xff]  ;;  %v13964_v10 = vcombine.low %v733_v39, %v737_v27 }
 0x558   : > { %10863 = vmatpush1.bf16.msra.mxu0 %v13860_v28  ;;  %v809_v54 = vld [vmem:[%s16564_s9 + $0xc78] sm:$0xff] }
 0x559   : > { %10864 = vmatprep.subr.bf16.mxu0 %v13869_v51  ;;  %v741_v1 = vld [vmem:[%s16564_s9 + $0xa58] sm:$0xff]  ;;  %v14037_v52 = vcombine.high %v805_v32, %v809_v54  ;;  %v14036_v26 = vcombine.low %v805_v32, %v809_v54 }
 0x55a   : > { %10888 = vmatpush1.bf16.msra.mxu1 %v13924_v45  ;;  %v745_v7 = vld [vmem:[%s16564_s9 + $0xa78] sm:$0xff] }
 0x55b   : > { %10889 = vmatprep.subr.bf16.mxu1 %v13933_v22  ;;  %v13973_v28 = vcombine.high %v741_v1, %v745_v7  ;;  %v813_v45 = vld [vmem:[%s16564_s9 + $0xc98] sm:$0xff]  ;;  %v13972_v49 = vcombine.low %v741_v1, %v745_v7 }
 0x55c   : > { %10865 = vmatpush1.bf16.msra.mxu0 %v13868_v61  ;;  %v817_v51 = vld [vmem:[%s16564_s9 + $0xcb8] sm:$0xff] }
 0x55d   : > { %10866 = vmatprep.subr.bf16.mxu0 %v13877_v3  ;;  %v749_v22 = vld [vmem:[%s16564_s9 + $0xa98] sm:$0xff]  ;;  %v14045_v8 = vcombine.high %v813_v45, %v817_v51  ;;  %v14044_v4 = vcombine.low %v813_v45, %v817_v51 }
 0x55e   : > { %10890 = vmatpush1.bf16.msra.mxu1 %v13932_v14  ;;  %v753_v60 = vld [vmem:[%s16564_s9 + $0xab8] sm:$0xff] }
 0x55f   : > { %10891 = vmatprep.subr.bf16.mxu1 %v13941_v62  ;;  %v13981_v61 = vcombine.high %v749_v22, %v753_v60  ;;  %v821_v14 = vld [vmem:[%s16564_s9 + $0xcd8] sm:$0xff]  ;;  %v13980_v63 = vcombine.low %v749_v22, %v753_v60 }
 0x560   : > { %10867 = vmatpush1.bf16.msra.mxu0 %v13876_v40  ;;  %v825_v3 = vld [vmem:[%s16564_s9 + $0xcf8] sm:$0xff] }
 0x561   : > { %10868 = vmatprep.subr.bf16.mxu0 %v13885_v33  ;;  %v757_v62 = vld [vmem:[%s16564_s9 + $0xad8] sm:$0xff] }
 0x562   : > { %10892 = vmatpush1.bf16.msra.mxu1 %v13940_v12  ;;  %v829_v13 = vld [vmem:[%s16564_s9 + $0xd18] sm:$0xff] }
 0x563   : > { %10893 = vmatprep.subr.bf16.mxu1 %v13949_v38  ;;  %v833_v40 = vld [vmem:[%s16564_s9 + $0xd38] sm:$0xff]  ;;  %v14052_v38 = vcombine.low %v821_v14, %v825_v3 }
 0x564   : > { %10869 = vmatpush1.bf16.msra.mxu0 %v13884_v25  ;;  %v765_v12 = vld [vmem:[%s16564_s9 + $0xb18] sm:$0xff]  ;;  %v14061_v15 = vcombine.high %v829_v13, %v833_v40 }
 0x565   : > { %10870 = vmatprep.subr.bf16.mxu0 %v13893_v20  ;;  %v769_v33 = vld [vmem:[%s16564_s9 + $0xb38] sm:$0xff] }
 0x566   : > { %10894 = vmatpush1.bf16.msra.mxu1 %v13948_v42  ;;  %v13997_v43 = vcombine.high %v765_v12, %v769_v33  ;;  %v837_v24 = vld [vmem:[%s16564_s9 + $0xd58] sm:$0xff]  ;;  %v13996_v46 = vcombine.low %v765_v12, %v769_v33 }
 0x567   : > { %10895 = vmatprep.subr.bf16.mxu1 %v13957_v59  ;;  %v841_v25 = vld [vmem:[%s16564_s9 + $0xd78] sm:$0xff]  ;;  %v14060_v59 = vcombine.low %v829_v13, %v833_v40 }
 0x568   : > { %10871 = vmatpush1.bf16.msra.mxu0 %v13892_v35  ;;  %v773_v42 = vld [vmem:[%s16564_s9 + $0xb58] sm:$0xff]  ;;  %v14069_v29 = vcombine.high %v837_v24, %v841_v25 }
 0x569   : > { %10922 = vmatprep.subr.bf16.mxu0 %v14029_v31  ;;  %v777_v20 = vld [vmem:[%s16564_s9 + $0xb78] sm:$0xff] }
 0x56a   : > { %10896 = vmatpush1.bf16.msra.mxu1 %v13956_v34  ;;  %v14005_v39 = vcombine.high %v773_v42, %v777_v20  ;;  %v845_v27 = vld [vmem:[%s16564_s9 + $0xd98] sm:$0xff]  ;;  %v14004_v32 = vcombine.low %v773_v42, %v777_v20 }
 0x56b   : > { %10897 = vmatprep.subr.bf16.mxu1 %v13965_v17  ;;  %10873 = vmatmul.mubr.bf16.vlgmr.msra.gmra.mrb[72].mxu0 %v16681_v21  ;;  %v761_v21 = vld [vmem:[%s16564_s9 + $0xaf8] sm:$0xff]  ;;  %v14068_v17 = vcombine.low %v837_v24, %v841_v25 }
 0x56c   : > { %10923 = vmatpush1.bf16.msra.mxu0 %v14028_v44  ;;  %10954 = vmatprep.mubr.bf16.mxu0 %v16697_v30  ;;  %v14053_v30 = vcombine.high %v821_v14, %v825_v3  ;;  %v13989_v18 = vcombine.high %v757_v62, %v761_v21  ;;  %v13988_v56 = vcombine.low %v757_v62, %v761_v21  ;;  %v849_v35 = vld [vmem:[%s16564_s9 + $0xdb8] sm:$0xff] }
 0x56d   : > { %10924 = vmatprep.subr.bf16.mxu0 %v14037_v52  ;;  %v781_v34 = vld [vmem:[%s16564_s9 + $0xb98] sm:$0xff]  ;;  %v14077_v54 = vcombine.high %v845_v27, %v849_v35 }
 0x56e   : > { %10898 = vmatpush1.bf16.msra.mxu1 %v13964_v10  ;;  %v785_v31 = vld [vmem:[%s16564_s9 + $0xbb8] sm:$0xff] }
 0x56f   : > { %10899 = vmatprep.subr.bf16.mxu1 %v13973_v28  ;;  %v14013_v7 = vcombine.high %v781_v34, %v785_v31  ;;  %v853_v44 = vld [vmem:[%s16564_s9 + $0xdd8] sm:$0xff] }
 0x570   : > { %10925 = vmatpush1.bf16.msra.mxu0 %v14036_v26  ;;  %v857_v10 = vld [vmem:[%s16564_s9 + $0xdf8] sm:$0xff] }
 0x571   : > { %10926 = vmatprep.subr.bf16.mxu0 %v14045_v8  ;;  %v789_v51 = vld [vmem:[%s16564_s9 + $0xbd8] sm:$0xff]  ;;  %v14076_v8 = vcombine.low %v845_v27, %v849_v35  ;;  %v14085_v62 = vcombine.high %v853_v44, %v857_v10  ;;  %v14084_v40 = vcombine.low %v853_v44, %v857_v10 }
 0x572   : > { %10900 = vmatpush1.bf16.msra.mxu1 %v13972_v49  ;;  %v793_v22 = vld [vmem:[%s16564_s9 + $0xbf8] sm:$0xff] }
 0x573   : > { %10901 = vmatprep.subr.bf16.mxu1 %v13981_v61  ;;  %v929_v13 = vld [vmem:[%s16564_s9 + $0x1038] sm:$0xff]  ;;  %v14020_v12 = vcombine.low %v789_v51, %v793_v22 }
 0x574   : > { %10927 = vmatpush1.bf16.msra.mxu0 %v14044_v4  ;;  %v14021_v4 = vcombine.high %v789_v51, %v793_v22  ;;  %v937_v24 = vld [vmem:[%s16564_s9 + $0x1078] sm:$0xff] }
 0x575   : > { %10928 = vmatprep.subr.bf16.mxu0 %v14053_v30  ;;  %v865_v30 = vld [vmem:[%s16564_s9 + $0xe38] sm:$0xff] }
 0x576   : > { %10902 = vmatpush1.bf16.msra.mxu1 %v13980_v63  ;;  %v861_v63 = vld [vmem:[%s16564_s9 + $0xe18] sm:$0xff] }
 0x577   : > { %10903 = vmatprep.subr.bf16.mxu1 %v13989_v18  ;;  %v925_v18 = vld [vmem:[%s16564_s9 + $0x1018] sm:$0xff]  ;;  %v14093_v33 = vcombine.high %v861_v63, %v865_v30  ;;  %v14092_v25 = vcombine.low %v861_v63, %v865_v30 }
 0x578   : > { %10929 = vmatpush1.bf16.msra.mxu0 %v14052_v38  ;;  %v14157_v38 = vcombine.high %v925_v18, %v929_v13  ;;  %v14156_v42 = vcombine.low %v925_v18, %v929_v13  ;;  %v945_v27 = vld [vmem:[%s16564_s9 + $0x10b8] sm:$0xff] }
 0x579   : > { %10930 = vmatprep.subr.bf16.mxu0 %v14061_v15  ;;  %v873_v15 = vld [vmem:[%s16564_s9 + $0xe78] sm:$0xff] }
 0x57a   : > { %10904 = vmatpush1.bf16.msra.mxu1 %v13988_v56  ;;  %v869_v56 = vld [vmem:[%s16564_s9 + $0xe58] sm:$0xff] }
 0x57b   : > { %10905 = vmatprep.subr.bf16.mxu1 %v13997_v43  ;;  %v933_v43 = vld [vmem:[%s16564_s9 + $0x1058] sm:$0xff]  ;;  %v14101_v20 = vcombine.high %v869_v56, %v873_v15  ;;  %v14100_v35 = vcombine.low %v869_v56, %v873_v15 }
 0x57c   : > { %10931 = vmatpush1.bf16.msra.mxu0 %v14060_v59  ;;  %v14165_v59 = vcombine.high %v933_v43, %v937_v24  ;;  %v957_v51 = vld [vmem:[%s16564_s9 + $0x1118] sm:$0xff] }
 0x57d   : > { %10932 = vmatprep.subr.bf16.mxu0 %v14069_v29  ;;  %v881_v29 = vld [vmem:[%s16564_s9 + $0xeb8] sm:$0xff] }
 0x57e   : > { %10906 = vmatpush1.bf16.msra.mxu1 %v13996_v46  ;;  %v10587_v1 = vpop.f32.mrb[60].mxu0  ;;  %v877_v46 = vld [vmem:[%s16564_s9 + $0xe98] sm:$0xff] }
 0x57f   : > { %10907 = vmatprep.subr.bf16.mxu1 %v14005_v39  ;;  %v10588_v52 = vadd.f32 %v10587_v1, %v18039_v47  ;;  %v10589_v45 = vpop.f32.mrb[61].mxu0  ;;  %v14012_v47 = vcombine.low %v781_v34, %v785_v31  ;;  %v941_v39 = vld [vmem:[%s16564_s9 + $0x1098] sm:$0xff]  ;;  %v14164_v34 = vcombine.low %v933_v43, %v937_v24  ;;  %v14109_v31 = vcombine.high %v877_v46, %v881_v29 }
 0x580   : > { %v10628_v28 = vpop.f32.mrb[60].mxu1  ;;  %v10590_v60 = vadd.f32 %v10589_v45, %v18041_v58  ;;  %v10591_v49 = vpop.f32.mrb[62].mxu0  ;;  %10933 = vmatpush1.bf16.msra.mxu0 %v14068_v17  ;;  %v14173_v17 = vcombine.high %v941_v39, %v945_v27  ;;  %v949_v1 = vld [vmem:[%s16564_s9 + $0x10d8] sm:$0xff]  ;;  %v14172_v44 = vcombine.low %v941_v39, %v945_v27 }
 0x581   : > { %v10630_v26 = vpop.f32.mrb[61].mxu1  ;;  %v18113_v61 = vadd.f32 %v10628_v28, %v10588_v52  ;;  %v10592_v3 = vpop.f32.mrb[63].mxu0  ;;  %10934 = vmatprep.subr.bf16.mxu0 %v14077_v54  ;;  %v889_v54 = vld [vmem:[%s16564_s9 + $0xef8] sm:$0xff] }
 0x582   : > { %v10632_v14 = vpop.f32.mrb[62].mxu1  ;;  %10908 = vmatpush1.bf16.msra.mxu1 %v14004_v32  ;;  %v18115_v21 = vadd.f32 %v10630_v26, %v10590_v60  ;;  %v885_v32 = vld [vmem:[%s16564_s9 + $0xed8] sm:$0xff] }
 0x583   : > { %v10633_v58 = vpop.f32.mrb[63].mxu1  ;;  %10909 = vmatprep.subr.bf16.mxu1 %v14013_v7  ;;  %v953_v7 = vld [vmem:[%s16564_s9 + $0x10f8] sm:$0xff]  ;;  %v14117_v10 = vcombine.high %v885_v32, %v889_v54 }
 0x584   : > { %10935 = vmatpush1.bf16.msra.mxu0 %v14076_v8  ;;  %v14181_v52 = vcombine.high %v949_v1, %v953_v7  ;;  %v893_v28 = vld [vmem:[%s16564_s9 + $0xf18] sm:$0xff]  ;;  %v14180_v60 = vcombine.low %v949_v1, %v953_v7 }
 0x585   : > { %10936 = vmatprep.subr.bf16.mxu0 %v14085_v62  ;;  %v897_v45 = vld [vmem:[%s16564_s9 + $0xf38] sm:$0xff] }
 0x586   : > { %10910 = vmatpush1.bf16.msra.mxu1 %v14012_v47  ;;  %v961_v22 = vld [vmem:[%s16564_s9 + $0x1138] sm:$0xff]  ;;  %v14125_v26 = vcombine.high %v893_v28, %v897_v45  ;;  %v14124_v62 = vcombine.low %v893_v28, %v897_v45 }
 0x587   : > { %10911 = vmatprep.subr.bf16.mxu1 %v14021_v4  ;;  %v14189_v49 = vcombine.high %v957_v51, %v961_v22  ;;  %v901_v8 = vld [vmem:[%s16564_s9 + $0xf58] sm:$0xff]  ;;  %v14188_v58 = vcombine.low %v957_v51, %v961_v22 }
 0x588   : > { %10937 = vmatpush1.bf16.msra.mxu0 %v14084_v40  ;;  %v905_v14 = vld [vmem:[%s16564_s9 + $0xf78] sm:$0xff] }
 0x589   : > { %10938 = vmatprep.subr.bf16.mxu0 %v14093_v33  ;;  %v965_v3 = vld [vmem:[%s16564_s9 + $0x1158] sm:$0xff]  ;;  %v14133_v4 = vcombine.high %v901_v8, %v905_v14 }
 0x58a   : > { %10912 = vmatpush1.bf16.msra.mxu1 %v14020_v12  ;;  %v969_v47 = vld [vmem:[%s16564_s9 + $0x1178] sm:$0xff]  ;;  %v14132_v12 = vcombine.low %v901_v8, %v905_v14 }
 0x58b   : > { %10963 = vmatprep.subr.bf16.mxu1 %v14157_v38  ;;  %v14197_v63 = vcombine.high %v965_v3, %v969_v47  ;;  %v909_v30 = vld [vmem:[%s16564_s9 + $0xf98] sm:$0xff]  ;;  %v14196_v33 = vcombine.low %v965_v3, %v969_v47 }
 0x58c   : > { %10939 = vmatpush1.bf16.msra.mxu0 %v14092_v25  ;;  %v913_v18 = vld [vmem:[%s16564_s9 + $0xfb8] sm:$0xff] }
 0x58d   : > { %10914 = vmatmul.mubr.bf16.vlgmr.msra.gmra.mrb[76].mxu1 %v16762_v37  ;;  %10940 = vmatprep.subr.bf16.mxu0 %v14101_v20  ;;  %v14108_v37 = vcombine.low %v877_v46, %v881_v29  ;;  %v973_v13 = vld [vmem:[%s16564_s9 + $0x1198] sm:$0xff]  ;;  %v14141_v38 = vcombine.high %v909_v30, %v913_v18 }
 0x58e   : > { %10964 = vmatpush1.bf16.msra.mxu1 %v14156_v42  ;;  %10995 = vmatprep.mubr.bf16.mxu1 %v16780_v48  ;;  %v14116_v48 = vcombine.low %v885_v32, %v889_v54  ;;  %v977_v40 = vld [vmem:[%s16564_s9 + $0x11b8] sm:$0xff]  ;;  %v14140_v42 = vcombine.low %v909_v30, %v913_v18 }
 0x58f   : > { %10965 = vmatprep.subr.bf16.mxu1 %v14165_v59  ;;  %v14205_v56 = vcombine.high %v973_v13, %v977_v40  ;;  %v917_v15 = vld [vmem:[%s16564_s9 + $0xfd8] sm:$0xff]  ;;  %v14204_v20 = vcombine.low %v973_v13, %v977_v40 }
 0x590   : > { %10941 = vmatpush1.bf16.msra.mxu0 %v14100_v35  ;;  %v921_v43 = vld [vmem:[%s16564_s9 + $0xff8] sm:$0xff] }
 0x591   : > { %10942 = vmatprep.subr.bf16.mxu0 %v14109_v31  ;;  %v981_v24 = vld [vmem:[%s16564_s9 + $0x11d8] sm:$0xff]  ;;  %v14149_v59 = vcombine.high %v917_v15, %v921_v43 }
 0x592   : > { %10966 = vmatpush1.bf16.msra.mxu1 %v14164_v34  ;;  %v985_v25 = vld [vmem:[%s16564_s9 + $0x11f8] sm:$0xff]  ;;  %v14148_v34 = vcombine.low %v917_v15, %v921_v43 }
 0x593   : > { %10967 = vmatprep.subr.bf16.mxu1 %v14173_v17  ;;  %v14213_v46 = vcombine.high %v981_v24, %v985_v25  ;;  %v1053_v29 = vld [vmem:[%s16564_s9 + $0x1418] sm:$0xff]  ;;  %v14212_v31 = vcombine.low %v981_v24, %v985_v25 }
 0x594   : > { %10943 = vmatpush1.bf16.msra.mxu0 %v14108_v37  ;;  %v1057_v39 = vld [vmem:[%s16564_s9 + $0x1438] sm:$0xff] }
 0x595   : > { %10944 = vmatprep.subr.bf16.mxu0 %v14117_v10  ;;  %v989_v27 = vld [vmem:[%s16564_s9 + $0x1218] sm:$0xff]  ;;  %v14285_v17 = vcombine.high %v1053_v29, %v1057_v39 }
 0x596   : > { %10968 = vmatpush1.bf16.msra.mxu1 %v14172_v44  ;;  %v993_v35 = vld [vmem:[%s16564_s9 + $0x1238] sm:$0xff]  ;;  %v14284_v44 = vcombine.low %v1053_v29, %v1057_v39 }
 0x597   : > { %10969 = vmatprep.subr.bf16.mxu1 %v14181_v52  ;;  %v14221_v32 = vcombine.high %v989_v27, %v993_v35  ;;  %v1061_v54 = vld [vmem:[%s16564_s9 + $0x1458] sm:$0xff]  ;;  %v14220_v10 = vcombine.low %v989_v27, %v993_v35 }
 0x598   : > { %10945 = vmatpush1.bf16.msra.mxu0 %v14116_v48  ;;  %v1065_v1 = vld [vmem:[%s16564_s9 + $0x1478] sm:$0xff] }
 0x599   : > { %10946 = vmatprep.subr.bf16.mxu0 %v14125_v26  ;;  %v997_v7 = vld [vmem:[%s16564_s9 + $0x1258] sm:$0xff]  ;;  %v14293_v52 = vcombine.high %v1061_v54, %v1065_v1 }
 0x59a   : > { %10970 = vmatpush1.bf16.msra.mxu1 %v14180_v60  ;;  %v1001_v37 = vld [vmem:[%s16564_s9 + $0x1278] sm:$0xff]  ;;  %v14292_v60 = vcombine.low %v1061_v54, %v1065_v1 }
 0x59b   : > { %10971 = vmatprep.subr.bf16.mxu1 %v14189_v49  ;;  %v14229_v28 = vcombine.high %v997_v7, %v1001_v37  ;;  %v1069_v45 = vld [vmem:[%s16564_s9 + $0x1498] sm:$0xff]  ;;  %v14228_v26 = vcombine.low %v997_v7, %v1001_v37 }
 0x59c   : > { %10947 = vmatpush1.bf16.msra.mxu0 %v14124_v62  ;;  %v1073_v51 = vld [vmem:[%s16564_s9 + $0x14b8] sm:$0xff] }
 0x59d   : > { %10948 = vmatprep.subr.bf16.mxu0 %v14133_v4  ;;  %v1005_v22 = vld [vmem:[%s16564_s9 + $0x1298] sm:$0xff]  ;;  %v14301_v49 = vcombine.high %v1069_v45, %v1073_v51  ;;  %v14300_v62 = vcombine.low %v1069_v45, %v1073_v51 }
 0x59e   : > { %10972 = vmatpush1.bf16.msra.mxu1 %v14188_v58  ;;  %v1009_v48 = vld [vmem:[%s16564_s9 + $0x12b8] sm:$0xff] }
 0x59f   : > { %10973 = vmatprep.subr.bf16.mxu1 %v14197_v63  ;;  %v14237_v8 = vcombine.high %v1005_v22, %v1009_v48  ;;  %v1077_v14 = vld [vmem:[%s16564_s9 + $0x14d8] sm:$0xff]  ;;  %v14236_v58 = vcombine.low %v1005_v22, %v1009_v48 }
 0x5a0   : > { %10949 = vmatpush1.bf16.msra.mxu0 %v14132_v12  ;;  %v1081_v3 = vld [vmem:[%s16564_s9 + $0x14f8] sm:$0xff] }
 0x5a1   : > { %10950 = vmatprep.subr.bf16.mxu0 %v14141_v38  ;;  %v1013_v47 = vld [vmem:[%s16564_s9 + $0x12d8] sm:$0xff]  ;;  %v14308_v40 = vcombine.low %v1077_v14, %v1081_v3 }
 0x5a2   : > { %10974 = vmatpush1.bf16.msra.mxu1 %v14196_v33  ;;  %v1085_v63 = vld [vmem:[%s16564_s9 + $0x1518] sm:$0xff] }
 0x5a3   : > { %10975 = vmatprep.subr.bf16.mxu1 %v14205_v56  ;;  %v1089_v30 = vld [vmem:[%s16564_s9 + $0x1538] sm:$0xff] }
 0x5a4   : > { %10951 = vmatpush1.bf16.msra.mxu0 %v14140_v42  ;;  %v1021_v18 = vld [vmem:[%s16564_s9 + $0x1318] sm:$0xff]  ;;  %v14317_v33 = vcombine.high %v1085_v63, %v1089_v30  ;;  %v14316_v25 = vcombine.low %v1085_v63, %v1089_v30 }
 0x5a5   : > { %10952 = vmatprep.subr.bf16.mxu0 %v14149_v59  ;;  %v1025_v13 = vld [vmem:[%s16564_s9 + $0x1338] sm:$0xff] }
 0x5a6   : > { %10976 = vmatpush1.bf16.msra.mxu1 %v14204_v20  ;;  %v14253_v38 = vcombine.high %v1021_v18, %v1025_v13  ;;  %v1093_v56 = vld [vmem:[%s16564_s9 + $0x1558] sm:$0xff]  ;;  %v14252_v42 = vcombine.low %v1021_v18, %v1025_v13 }
 0x5a7   : > { %10977 = vmatprep.subr.bf16.mxu1 %v14213_v46  ;;  %v1097_v15 = vld [vmem:[%s16564_s9 + $0x1578] sm:$0xff] }
 0x5a8   : > { %10953 = vmatpush1.bf16.msra.mxu0 %v14148_v34  ;;  %v1029_v43 = vld [vmem:[%s16564_s9 + $0x1358] sm:$0xff]  ;;  %v14325_v20 = vcombine.high %v1093_v56, %v1097_v15  ;;  %v14324_v35 = vcombine.low %v1093_v56, %v1097_v15 }
 0x5a9   : > { %11004 = vmatprep.subr.bf16.mxu0 %v14285_v17  ;;  %v1033_v24 = vld [vmem:[%s16564_s9 + $0x1378] sm:$0xff] }
 0x5aa   : > { %10978 = vmatpush1.bf16.msra.mxu1 %v14212_v31  ;;  %v14261_v59 = vcombine.high %v1029_v43, %v1033_v24  ;;  %v1101_v46 = vld [vmem:[%s16564_s9 + $0x1598] sm:$0xff]  ;;  %v14260_v34 = vcombine.low %v1029_v43, %v1033_v24 }
 0x5ab   : > { %10979 = vmatprep.subr.bf16.mxu1 %v14221_v32  ;;  %10955 = vmatmul.mubr.bf16.vlgmr.msra.gmra.mrb[76].mxu0 %v16771_v41  ;;  %v1017_v41 = vld [vmem:[%s16564_s9 + $0x12f8] sm:$0xff] }
 0x5ac   : > { %11005 = vmatpush1.bf16.msra.mxu0 %v14284_v44  ;;  %11036 = vmatprep.mubr.bf16.mxu0 %v16787_v50  ;;  %v14309_v50 = vcombine.high %v1077_v14, %v1081_v3  ;;  %v14245_v4 = vcombine.high %v1013_v47, %v1017_v41  ;;  %v14244_v12 = vcombine.low %v1013_v47, %v1017_v41  ;;  %v1105_v29 = vld [vmem:[%s16564_s9 + $0x15b8] sm:$0xff] }
 0x5ad   : > { %11006 = vmatprep.subr.bf16.mxu0 %v14293_v52  ;;  %v1037_v39 = vld [vmem:[%s16564_s9 + $0x1398] sm:$0xff]  ;;  %v14333_v31 = vcombine.high %v1101_v46, %v1105_v29  ;;  %v14332_v22 = vcombine.low %v1101_v46, %v1105_v29 }
 0x5ae   : > { %10980 = vmatpush1.bf16.msra.mxu1 %v14220_v10  ;;  %v1041_v27 = vld [vmem:[%s16564_s9 + $0x13b8] sm:$0xff] }
 0x5af   : > { %10981 = vmatprep.subr.bf16.mxu1 %v14229_v28  ;;  %v14269_v32 = vcombine.high %v1037_v39, %v1041_v27  ;;  %v1109_v54 = vld [vmem:[%s16564_s9 + $0x15d8] sm:$0xff] }
 0x5b0   : > { %11007 = vmatpush1.bf16.msra.mxu0 %v14292_v60  ;;  %v1113_v1 = vld [vmem:[%s16564_s9 + $0x15f8] sm:$0xff] }
 0x5b1   : > { %11008 = vmatprep.subr.bf16.mxu0 %v14301_v49  ;;  %v1045_v10 = vld [vmem:[%s16564_s9 + $0x13d8] sm:$0xff]  ;;  %v14341_v49 = vcombine.high %v1109_v54, %v1113_v1 }
 0x5b2   : > { %10982 = vmatpush1.bf16.msra.mxu1 %v14228_v26  ;;  %v1049_v52 = vld [vmem:[%s16564_s9 + $0x13f8] sm:$0xff] }
 0x5b3   : > { %10983 = vmatprep.subr.bf16.mxu1 %v14237_v8  ;;  %v14277_v14 = vcombine.high %v1045_v10, %v1049_v52  ;;  %v1117_v3 = vld [vmem:[%s16564_s9 + $0x1618] sm:$0xff] }
 0x5b4   : > { %11009 = vmatpush1.bf16.msra.mxu0 %v14300_v62  ;;  %v1121_v47 = vld [vmem:[%s16564_s9 + $0x1638] sm:$0xff] }
 0x5b5   : > { %11010 = vmatprep.subr.bf16.mxu0 %v14309_v50  ;;  %v1181_v41 = vld [vmem:[%s16564_s9 + $0x1818] sm:$0xff]  ;;  %v14276_v50 = vcombine.low %v1045_v10, %v1049_v52 }
 0x5b6   : > { %10984 = vmatpush1.bf16.msra.mxu1 %v14236_v58  ;;  %v1185_v62 = vld [vmem:[%s16564_s9 + $0x1838] sm:$0xff]  ;;  %v14340_v58 = vcombine.low %v1109_v54, %v1113_v1 }
 0x5b7   : > { %10985 = vmatprep.subr.bf16.mxu1 %v14245_v4  ;;  %v14349_v4 = vcombine.high %v1117_v3, %v1121_v47  ;;  %v14413_v63 = vcombine.high %v1181_v41, %v1185_v62  ;;  %v1125_v30 = vld [vmem:[%s16564_s9 + $0x1658] sm:$0xff] }
 0x5b8   : > { %11011 = vmatpush1.bf16.msra.mxu0 %v14308_v40  ;;  %v1129_v18 = vld [vmem:[%s16564_s9 + $0x1678] sm:$0xff] }
 0x5b9   : > { %11012 = vmatprep.subr.bf16.mxu0 %v14317_v33  ;;  %v1189_v13 = vld [vmem:[%s16564_s9 + $0x1858] sm:$0xff]  ;;  %v14412_v33 = vcombine.low %v1181_v41, %v1185_v62 }
 0x5ba   : > { %10986 = vmatpush1.bf16.msra.mxu1 %v14244_v12  ;;  %v1193_v40 = vld [vmem:[%s16564_s9 + $0x1878] sm:$0xff]  ;;  %v14348_v12 = vcombine.low %v1117_v3, %v1121_v47 }
 0x5bb   : > { %10987 = vmatprep.subr.bf16.mxu1 %v14253_v38  ;;  %v14357_v38 = vcombine.high %v1125_v30, %v1129_v18  ;;  %v14421_v56 = vcombine.high %v1189_v13, %v1193_v40  ;;  %v1133_v15 = vld [vmem:[%s16564_s9 + $0x1698] sm:$0xff] }
 0x5bc   : > { %11013 = vmatpush1.bf16.msra.mxu0 %v14316_v25  ;;  %v1137_v43 = vld [vmem:[%s16564_s9 + $0x16b8] sm:$0xff] }
 0x5bd   : > { %11014 = vmatprep.subr.bf16.mxu0 %v14325_v20  ;;  %v1197_v24 = vld [vmem:[%s16564_s9 + $0x1898] sm:$0xff]  ;;  %v14420_v20 = vcombine.low %v1189_v13, %v1193_v40 }
 0x5be   : > { %10988 = vmatpush1.bf16.msra.mxu1 %v14252_v42  ;;  %v10669_v17 = vpop.f32.mrb[64].mxu0  ;;  %v1201_v25 = vld [vmem:[%s16564_s9 + $0x18b8] sm:$0xff]  ;;  %v14356_v42 = vcombine.low %v1125_v30, %v1129_v18 }
 0x5bf   : > { %10989 = vmatprep.subr.bf16.mxu1 %v14261_v59  ;;  %v10670_v7 = vadd.f32 %v10669_v17, %v18113_v61  ;;  %v10671_v44 = vpop.f32.mrb[65].mxu0  ;;  %v14268_v61 = vcombine.low %v1037_v39, %v1041_v27  ;;  %v14365_v59 = vcombine.high %v1133_v15, %v1137_v43  ;;  %v14429_v46 = vcombine.high %v1197_v24, %v1201_v25  ;;  %v1141_v29 = vld [vmem:[%s16564_s9 + $0x16d8] sm:$0xff] }
 0x5c0   : > { %v10710_v37 = vpop.f32.mrb[64].mxu1  ;;  %v10672_v28 = vadd.f32 %v10671_v44, %v18115_v21  ;;  %v10673_v51 = vpop.f32.mrb[66].mxu0  ;;  %11015 = vmatpush1.bf16.msra.mxu0 %v14324_v35  ;;  %v1145_v39 = vld [vmem:[%s16564_s9 + $0x16f8] sm:$0xff] }
 0x5c1   : > { %v10712_v45 = vpop.f32.mrb[65].mxu1  ;;  %v18187_v48 = vadd.f32 %v10710_v37, %v10670_v7  ;;  %v10674_v26 = vpop.f32.mrb[67].mxu0  ;;  %11016 = vmatprep.subr.bf16.mxu0 %v14333_v31  ;;  %v1205_v27 = vld [vmem:[%s16564_s9 + $0x18d8] sm:$0xff]  ;;  %v14373_v31 = vcombine.high %v1141_v29, %v1145_v39 }
 0x5c2   : > { %v10714_v60 = vpop.f32.mrb[66].mxu1  ;;  %10990 = vmatpush1.bf16.msra.mxu1 %v14260_v34  ;;  %v18189_v8 = vadd.f32 %v10712_v45, %v10672_v28  ;;  %v1209_v35 = vld [vmem:[%s16564_s9 + $0x18f8] sm:$0xff]  ;;  %v14428_v34 = vcombine.low %v1197_v24, %v1201_v25 }
 0x5c3   : > { %v10715_v21 = vpop.f32.mrb[67].mxu1  ;;  %10991 = vmatprep.subr.bf16.mxu1 %v14269_v32  ;;  %v14437_v17 = vcombine.high %v1205_v27, %v1209_v35  ;;  %v1149_v32 = vld [vmem:[%s16564_s9 + $0x1718] sm:$0xff]  ;;  %v14436_v37 = vcombine.low %v1205_v27, %v1209_v35 }
 0x5c4   : > { %11017 = vmatpush1.bf16.msra.mxu0 %v14332_v22  ;;  %v1153_v54 = vld [vmem:[%s16564_s9 + $0x1738] sm:$0xff] }
 0x5c5   : > { %11018 = vmatprep.subr.bf16.mxu0 %v14341_v49  ;;  %v1213_v1 = vld [vmem:[%s16564_s9 + $0x1918] sm:$0xff]  ;;  %v14381_v44 = vcombine.high %v1149_v32, %v1153_v54  ;;  %v14380_v22 = vcombine.low %v1149_v32, %v1153_v54 }
 0x5c6   : > { %10992 = vmatpush1.bf16.msra.mxu1 %v14268_v61  ;;  %v1217_v7 = vld [vmem:[%s16564_s9 + $0x1938] sm:$0xff] }
 0x5c7   : > { %10993 = vmatprep.subr.bf16.mxu1 %v14277_v14  ;;  %v14445_v10 = vcombine.high %v1213_v1, %v1217_v7  ;;  %v1157_v52 = vld [vmem:[%s16564_s9 + $0x1758] sm:$0xff]  ;;  %v14444_v60 = vcombine.low %v1213_v1, %v1217_v7 }
 0x5c8   : > { %11019 = vmatpush1.bf16.msra.mxu0 %v14340_v58  ;;  %v1161_v28 = vld [vmem:[%s16564_s9 + $0x1778] sm:$0xff] }
 0x5c9   : > { %11020 = vmatprep.subr.bf16.mxu0 %v14349_v4  ;;  %v1221_v45 = vld [vmem:[%s16564_s9 + $0x1958] sm:$0xff]  ;;  %v14389_v26 = vcombine.high %v1157_v52, %v1161_v28  ;;  %v14388_v47 = vcombine.low %v1157_v52, %v1161_v28 }
 0x5ca   : > { %10994 = vmatpush1.bf16.msra.mxu1 %v14276_v50  ;;  %v1225_v51 = vld [vmem:[%s16564_s9 + $0x1978] sm:$0xff] }
 0x5cb   : > { %11045 = vmatprep.subr.bf16.mxu1 %v14413_v63  ;;  %v14453_v61 = vcombine.high %v1221_v45, %v1225_v51  ;;  %v1165_v49 = vld [vmem:[%s16564_s9 + $0x1798] sm:$0xff]  ;;  %v14452_v41 = vcombine.low %v1221_v45, %v1225_v51 }
 0x5cc   : > { %11021 = vmatpush1.bf16.msra.mxu0 %v14348_v12  ;;  %v1169_v21 = vld [vmem:[%s16564_s9 + $0x17b8] sm:$0xff] }
 0x5cd   : > { %10996 = vmatmul.mubr.bf16.vlgmr.msra.gmra.mrb[80].mxu1 %v16852_v5  ;;  %11022 = vmatprep.subr.bf16.mxu0 %v14357_v38  ;;  %v14364_v5 = vcombine.low %v1133_v15, %v1137_v43  ;;  %v1229_v14 = vld [vmem:[%s16564_s9 + $0x1998] sm:$0xff]  ;;  %v14397_v62 = vcombine.high %v1165_v49, %v1169_v21  ;;  %v14396_v40 = vcombine.low %v1165_v49, %v1169_v21 }
 0x5ce   : > { %11046 = vmatpush1.bf16.msra.mxu1 %v14412_v33  ;;  %11077 = vmatprep.mubr.bf16.mxu1 %v16870_v16  ;;  %v14372_v16 = vcombine.low %v1141_v29, %v1145_v39  ;;  %v1233_v3 = vld [vmem:[%s16564_s9 + $0x19b8] sm:$0xff] }
 0x5cf   : > { %11047 = vmatprep.subr.bf16.mxu1 %v14421_v56  ;;  %v14461_v58 = vcombine.high %v1229_v14, %v1233_v3  ;;  %v1173_v50 = vld [vmem:[%s16564_s9 + $0x17d8] sm:$0xff]  ;;  %v14460_v33 = vcombine.low %v1229_v14, %v1233_v3 }
 0x5d0   : > { %11023 = vmatpush1.bf16.msra.mxu0 %v14356_v42  ;;  %v1177_v4 = vld [vmem:[%s16564_s9 + $0x17f8] sm:$0xff] }
 0x5d1   : > { %11024 = vmatprep.subr.bf16.mxu0 %v14365_v59  ;;  %v1237_v30 = vld [vmem:[%s16564_s9 + $0x19d8] sm:$0xff]  ;;  %v14405_v38 = vcombine.high %v1173_v50, %v1177_v4 }
 0x5d2   : > { %11048 = vmatpush1.bf16.msra.mxu1 %v14420_v20  ;;  %v1241_v18 = vld [vmem:[%s16564_s9 + $0x19f8] sm:$0xff]  ;;  %v14404_v20 = vcombine.low %v1173_v50, %v1177_v4 }
 0x5d3   : > { %11049 = vmatprep.subr.bf16.mxu1 %v14429_v46  ;;  %v14469_v15 = vcombine.high %v1237_v30, %v1241_v18  ;;  %v1309_v43 = vld [vmem:[%s16564_s9 + $0x1c18] sm:$0xff]  ;;  %v14468_v59 = vcombine.low %v1237_v30, %v1241_v18 }
 0x5d4   : > { %11025 = vmatpush1.bf16.msra.mxu0 %v14364_v5  ;;  %v1313_v24 = vld [vmem:[%s16564_s9 + $0x1c38] sm:$0xff] }
 0x5d5   : > { %11026 = vmatprep.subr.bf16.mxu0 %v14373_v31  ;;  %v1245_v25 = vld [vmem:[%s16564_s9 + $0x1a18] sm:$0xff]  ;;  %v14541_v46 = vcombine.high %v1309_v43, %v1313_v24 }
 0x5d6   : > { %11050 = vmatpush1.bf16.msra.mxu1 %v14428_v34  ;;  %v1249_v42 = vld [vmem:[%s16564_s9 + $0x1a38] sm:$0xff]  ;;  %v14540_v34 = vcombine.low %v1309_v43, %v1313_v24 }
 0x5d7   : > { %11051 = vmatprep.subr.bf16.mxu1 %v14437_v17  ;;  %v14477_v29 = vcombine.high %v1245_v25, %v1249_v42  ;;  %v1317_v39 = vld [vmem:[%s16564_s9 + $0x1c58] sm:$0xff]  ;;  %v14476_v31 = vcombine.low %v1245_v25, %v1249_v42 }
 0x5d8   : > { %11027 = vmatpush1.bf16.msra.mxu0 %v14372_v16  ;;  %v1321_v27 = vld [vmem:[%s16564_s9 + $0x1c78] sm:$0xff] }
 0x5d9   : > { %11028 = vmatprep.subr.bf16.mxu0 %v14381_v44  ;;  %v1253_v35 = vld [vmem:[%s16564_s9 + $0x1a58] sm:$0xff]  ;;  %v14549_v17 = vcombine.high %v1317_v39, %v1321_v27 }
 0x5da   : > { %11052 = vmatpush1.bf16.msra.mxu1 %v14436_v37  ;;  %v1257_v5 = vld [vmem:[%s16564_s9 + $0x1a78] sm:$0xff]  ;;  %v14548_v37 = vcombine.low %v1317_v39, %v1321_v27 }
 0x5db   : > { %11053 = vmatprep.subr.bf16.mxu1 %v14445_v10  ;;  %v14485_v32 = vcombine.high %v1253_v35, %v1257_v5  ;;  %v1325_v54 = vld [vmem:[%s16564_s9 + $0x1c98] sm:$0xff]  ;;  %v14484_v44 = vcombine.low %v1253_v35, %v1257_v5 }
 0x5dc   : > { %11029 = vmatpush1.bf16.msra.mxu0 %v14380_v22  ;;  %v1329_v1 = vld [vmem:[%s16564_s9 + $0x1cb8] sm:$0xff] }
 0x5dd   : > { %11030 = vmatprep.subr.bf16.mxu0 %v14389_v26  ;;  %v1261_v7 = vld [vmem:[%s16564_s9 + $0x1a98] sm:$0xff]  ;;  %v14557_v10 = vcombine.high %v1325_v54, %v1329_v1  ;;  %v14556_v22 = vcombine.low %v1325_v54, %v1329_v1  ;;  %v395_v1 = vld [vmem:[#allocation2 + $0x28] sm:$0xff] }
 0x5de   : > { %11054 = vmatpush1.bf16.msra.mxu1 %v14444_v60  ;;  %v1265_v16 = vld [vmem:[%s16564_s9 + $0x1ab8] sm:$0xff] }
 0x5df   : > { %11055 = vmatprep.subr.bf16.mxu1 %v14453_v61  ;;  %v14493_v52 = vcombine.high %v1261_v7, %v1265_v16  ;;  %v1333_v28 = vld [vmem:[%s16564_s9 + $0x1cd8] sm:$0xff]  ;;  %v14492_v60 = vcombine.low %v1261_v7, %v1265_v16 }
 0x5e0   : > { %v18223_v63 = vpop.f32.mrb[68].mxu1  ;;  %11031 = vmatpush1.bf16.msra.mxu0 %v14388_v47  ;;  %v1337_v45 = vld [vmem:[%s16564_s9 + $0x1cf8] sm:$0xff] }
 0x5e1   : > { %v18227_v13 = vpop.f32.mrb[69].mxu1  ;;  %11032 = vmatprep.subr.bf16.mxu0 %v14397_v62  ;;  %v1269_v51 = vld [vmem:[%s16564_s9 + $0x1ad8] sm:$0xff]  ;;  %v14564_v3 = vcombine.low %v1333_v28, %v1337_v45 }
 0x5e2   : > { %v10796_v12 = vpop.f32.mrb[70].mxu1  ;;  %11056 = vmatpush1.bf16.msra.mxu1 %v14452_v41  ;;  %v1341_v61 = vld [vmem:[%s16564_s9 + $0x1d18] sm:$0xff] }
 0x5e3   : > { %v10797_v56 = vpop.f32.mrb[71].mxu1  ;;  %11057 = vmatprep.subr.bf16.mxu1 %v14461_v58  ;;  %v1345_v49 = vld [vmem:[%s16564_s9 + $0x1d38] sm:$0xff] }
 0x5e4   : > { %11033 = vmatpush1.bf16.msra.mxu0 %v14396_v40  ;;  %v1277_v21 = vld [vmem:[%s16564_s9 + $0x1b18] sm:$0xff]  ;;  %v14573_v41 = vcombine.high %v1341_v61, %v1345_v49  ;;  %v14572_v18 = vcombine.low %v1341_v61, %v1345_v49 }
 0x5e5   : > { %11034 = vmatprep.subr.bf16.mxu0 %v14405_v38  ;;  %v1281_v14 = vld [vmem:[%s16564_s9 + $0x1b38] sm:$0xff] }
 0x5e6   : > { %11058 = vmatpush1.bf16.msra.mxu1 %v14460_v33  ;;  %v14509_v62 = vcombine.high %v1277_v21, %v1281_v14  ;;  %v1349_v58 = vld [vmem:[%s16564_s9 + $0x1d58] sm:$0xff]  ;;  %v14508_v40 = vcombine.low %v1277_v21, %v1281_v14 }
 0x5e7   : > { %11059 = vmatprep.subr.bf16.mxu1 %v14469_v15  ;;  %v1353_v50 = vld [vmem:[%s16564_s9 + $0x1d78] sm:$0xff] }
 0x5e8   : > { %11035 = vmatpush1.bf16.msra.mxu0 %v14404_v20  ;;  %v1285_v4 = vld [vmem:[%s16564_s9 + $0x1b58] sm:$0xff]  ;;  %v14581_v12 = vcombine.high %v1349_v58, %v1353_v50  ;;  %v14580_v24 = vcombine.low %v1349_v58, %v1353_v50 }
 0x5e9   : > { %11086 = vmatprep.subr.bf16.mxu0 %v14541_v46  ;;  %v1289_v30 = vld [vmem:[%s16564_s9 + $0x1b78] sm:$0xff] }
 0x5ea   : > { %11060 = vmatpush1.bf16.msra.mxu1 %v14468_v59  ;;  %v14517_v33 = vcombine.high %v1285_v4, %v1289_v30  ;;  %v1357_v38 = vld [vmem:[%s16564_s9 + $0x1d98] sm:$0xff]  ;;  %v14516_v25 = vcombine.low %v1285_v4, %v1289_v30 }
 0x5eb   : > { %11061 = vmatprep.subr.bf16.mxu1 %v14477_v29  ;;  %11037 = vmatmul.mubr.bf16.vlgmr.msra.gmra.mrb[80].mxu0 %v16861_v9  ;;  %v1273_v9 = vld [vmem:[%s16564_s9 + $0x1af8] sm:$0xff] }
 0x5ec   : > { %11087 = vmatpush1.bf16.msra.mxu0 %v14540_v34  ;;  %11118 = vmatprep.mubr.bf16.mxu0 %v16877_v19  ;;  %v14565_v19 = vcombine.high %v1333_v28, %v1337_v45  ;;  %v14501_v26 = vcombine.high %v1269_v51, %v1273_v9  ;;  %v14500_v47 = vcombine.low %v1269_v51, %v1273_v9  ;;  %v1361_v56 = vld [vmem:[%s16564_s9 + $0x1db8] sm:$0xff]  ;;  %v394_v34 = vld [vmem:[#allocation2 + $0x20] sm:$0xff] }
 0x5ed   : > { %11088 = vmatprep.subr.bf16.mxu0 %v14549_v17  ;;  %v1293_v15 = vld [vmem:[%s16564_s9 + $0x1b98] sm:$0xff]  ;;  %v14589_v42 = vcombine.high %v1357_v38, %v1361_v56 }
 0x5ee   : > { %11062 = vmatpush1.bf16.msra.mxu1 %v14476_v31  ;;  %v1297_v43 = vld [vmem:[%s16564_s9 + $0x1bb8] sm:$0xff] }
 0x5ef   : > { %11063 = vmatprep.subr.bf16.mxu1 %v14485_v32  ;;  %v14525_v59 = vcombine.high %v1293_v15, %v1297_v43  ;;  %v1365_v46 = vld [vmem:[%s16564_s9 + $0x1dd8] sm:$0xff]  ;;  %v14588_v32 = vcombine.low %v1357_v38, %v1361_v56  ;;  %v14524_v16 = vcombine.low %v1293_v15, %v1297_v43 }
 0x5f0   : > { %11089 = vmatpush1.bf16.msra.mxu0 %v14548_v37  ;;  %v1369_v29 = vld [vmem:[%s16564_s9 + $0x1df8] sm:$0xff] }
 0x5f1   : > { %11090 = vmatprep.subr.bf16.mxu0 %v14557_v10  ;;  %v1301_v35 = vld [vmem:[%s16564_s9 + $0x1bd8] sm:$0xff]  ;;  %v14596_v51 = vcombine.low %v1365_v46, %v1369_v29 }
 0x5f2   : > { %11064 = vmatpush1.bf16.msra.mxu1 %v14484_v44  ;;  %v1305_v5 = vld [vmem:[%s16564_s9 + $0x1bf8] sm:$0xff] }
 0x5f3   : > { %11065 = vmatprep.subr.bf16.mxu1 %v14493_v52  ;;  %v14533_v44 = vcombine.high %v1301_v35, %v1305_v5  ;;  %v1373_v10 = vld [vmem:[%s16564_s9 + $0x1e18] sm:$0xff]  ;;  %v14532_v9 = vcombine.low %v1301_v35, %v1305_v5 }
 0x5f4   : > { %11091 = vmatpush1.bf16.msra.mxu0 %v14556_v22  ;;  %v1437_v28 = vld [vmem:[%s16564_s9 + $0x2018] sm:$0xff] }
 0x5f5   : > { %11092 = vmatprep.subr.bf16.mxu0 %v14565_v19  ;;  %v1441_v45 = vld [vmem:[%s16564_s9 + $0x2038] sm:$0xff] }
 0x5f6   : > { %11066 = vmatpush1.bf16.msra.mxu1 %v14492_v60  ;;  %v1381_v60 = vld [vmem:[%s16564_s9 + $0x1e58] sm:$0xff]  ;;  %v14668_v21 = vcombine.low %v1437_v28, %v1441_v45 }
 0x5f7   : > { %11067 = vmatprep.subr.bf16.mxu1 %v14501_v26  ;;  %v1385_v19 = vld [vmem:[%s16564_s9 + $0x1e78] sm:$0xff] }
 0x5f8   : > { %11093 = vmatpush1.bf16.msra.mxu0 %v14564_v3  ;;  %v1445_v26 = vld [vmem:[%s16564_s9 + $0x2058] sm:$0xff]  ;;  %v14613_v14 = vcombine.high %v1381_v60, %v1385_v19  ;;  %v14612_v50 = vcombine.low %v1381_v60, %v1385_v19 }
 0x5f9   : > { %11094 = vmatprep.subr.bf16.mxu0 %v14573_v41  ;;  %v1449_v61 = vld [vmem:[%s16564_s9 + $0x2078] sm:$0xff] }
 0x5fa   : > { %11068 = vmatpush1.bf16.msra.mxu1 %v14500_v47  ;;  %v14677_v3 = vcombine.high %v1445_v26, %v1449_v61  ;;  %v1389_v47 = vld [vmem:[%s16564_s9 + $0x1e98] sm:$0xff]  ;;  %v14676_v4 = vcombine.low %v1445_v26, %v1449_v61 }
 0x5fb   : > { %11069 = vmatprep.subr.bf16.mxu1 %v14509_v62  ;;  %v1393_v41 = vld [vmem:[%s16564_s9 + $0x1eb8] sm:$0xff] }
 0x5fc   : > { %11095 = vmatpush1.bf16.msra.mxu0 %v14572_v18  ;;  %v1453_v62 = vld [vmem:[%s16564_s9 + $0x2098] sm:$0xff]  ;;  %v14621_v30 = vcombine.high %v1389_v47, %v1393_v41 }
 0x5fd   : > { %11096 = vmatprep.subr.bf16.mxu0 %v14581_v12  ;;  %v1457_v58 = vld [vmem:[%s16564_s9 + $0x20b8] sm:$0xff] }
 0x5fe   : > { %11070 = vmatpush1.bf16.msra.mxu1 %v14508_v40  ;;  %v10751_v20 = vpop.f32.mrb[68].mxu0  ;;  %v14685_v18 = vcombine.high %v1453_v62, %v1457_v58  ;;  %v1397_v40 = vld [vmem:[%s16564_s9 + $0x1ed8] sm:$0xff]  ;;  %v14684_v56 = vcombine.low %v1453_v62, %v1457_v58 }
 0x5ff   : > { %11071 = vmatprep.subr.bf16.mxu1 %v14517_v33  ;;  %v10752_v39 = vadd.f32 %v10751_v20, %v18187_v48  ;;  %v10753_v27 = vpop.f32.mrb[69].mxu0  ;;  %v14597_v48 = vcombine.high %v1365_v46, %v1369_v29  ;;  %v1401_v12 = vld [vmem:[%s16564_s9 + $0x1ef8] sm:$0xff] }
 0x600   : > { %v10754_v31 = vadd.f32 %v10753_v27, %v18189_v8  ;;  %v10755_v17 = vpop.f32.mrb[70].mxu0  ;;  %11097 = vmatpush1.bf16.msra.mxu0 %v14580_v24  ;;  %v1377_v8 = vld [vmem:[%s16564_s9 + $0x1e38] sm:$0xff]  ;;  %v14629_v15 = vcombine.high %v1397_v40, %v1401_v12 }
 0x601   : > { %v10793_v54 = vadd.f32 %v18223_v63, %v10752_v39  ;;  %v10756_v7 = vpop.f32.mrb[71].mxu0  ;;  %11098 = vmatprep.subr.bf16.mxu0 %v14589_v42  ;;  %v14605_v22 = vcombine.high %v1373_v10, %v1377_v8  ;;  %v14604_v49 = vcombine.low %v1373_v10, %v1377_v8  ;;  %v1461_v33 = vld [vmem:[%s16564_s9 + $0x20d8] sm:$0xff] }
 0x602   : > { %11072 = vmatpush1.bf16.msra.mxu1 %v14516_v25  ;;  %v10795_v37 = vadd.f32 %v18227_v13, %v10754_v31  ;;  %v14669_v13 = vcombine.high %v1437_v28, %v1441_v45  ;;  %v1465_v38 = vld [vmem:[%s16564_s9 + $0x20f8] sm:$0xff] }
 0x603   : > { %11073 = vmatprep.subr.bf16.mxu1 %v14525_v59  ;;  %v11295_v52 = vadd.f32 %v10793_v54, %v394_v34  ;;  %v14693_v43 = vcombine.high %v1461_v33, %v1465_v38  ;;  %v1405_v24 = vld [vmem:[%s16564_s9 + $0x1f18] sm:$0xff]  ;;  %v14692_v59 = vcombine.low %v1461_v33, %v1465_v38 }
 0x604   : > { %v11296_v63 = vadd.f32 %v10795_v37, %v395_v1  ;;  %11099 = vmatpush1.bf16.msra.mxu0 %v14588_v32  ;;  %v1409_v25 = vld [vmem:[%s16564_s9 + $0x1f38] sm:$0xff] }
 0x605   : > { %11303 = vst [vmem:[#allocation2 + $0x20] sm:$0xff] %v11295_v52  ;;  %11100 = vmatprep.subr.bf16.mxu0 %v14597_v48  ;;  %v1469_v42 = vld [vmem:[%s16564_s9 + $0x2118] sm:$0xff]  ;;  %v14637_v46 = vcombine.high %v1405_v24, %v1409_v25  ;;  %v14636_v34 = vcombine.low %v1405_v24, %v1409_v25 }
 0x606   : > { %11074 = vmatpush1.bf16.msra.mxu1 %v14524_v16  ;;  %11304 = vst [vmem:[#allocation2 + $0x28] sm:$0xff] %v11296_v63  ;;  %v1473_v20 = vld [vmem:[%s16564_s9 + $0x2138] sm:$0xff] }
 0x607   : > { %11075 = vmatprep.subr.bf16.mxu1 %v14533_v44  ;;  %v14701_v29 = vcombine.high %v1469_v42, %v1473_v20  ;;  %v1413_v39 = vld [vmem:[%s16564_s9 + $0x1f58] sm:$0xff]  ;;  %v14700_v31 = vcombine.low %v1469_v42, %v1473_v20 }
 0x608   : > { %11101 = vmatpush1.bf16.msra.mxu0 %v14596_v51  ;;  %v1417_v27 = vld [vmem:[%s16564_s9 + $0x1f78] sm:$0xff] }
 0x609   : > { %11102 = vmatprep.subr.bf16.mxu0 %v14605_v22  ;;  %v1477_v35 = vld [vmem:[%s16564_s9 + $0x2158] sm:$0xff]  ;;  %v14645_v17 = vcombine.high %v1413_v39, %v1417_v27  ;;  %v14644_v48 = vcombine.low %v1413_v39, %v1417_v27 }
 0x60a   : > { %11076 = vmatpush1.bf16.msra.mxu1 %v14532_v9  ;;  %v1481_v5 = vld [vmem:[%s16564_s9 + $0x2178] sm:$0xff] }
 0x60b   : > { %11127 = vmatprep.subr.bf16.mxu1 %v14669_v13  ;;  %v14709_v32 = vcombine.high %v1477_v35, %v1481_v5  ;;  %v1421_v54 = vld [vmem:[%s16564_s9 + $0x1f98] sm:$0xff]  ;;  %v14708_v37 = vcombine.low %v1477_v35, %v1481_v5 }
 0x60c   : > { %11103 = vmatpush1.bf16.msra.mxu0 %v14604_v49  ;;  %v1425_v1 = vld [vmem:[%s16564_s9 + $0x1fb8] sm:$0xff] }
 0x60d   : > { %11078 = vmatmul.mubr.bf16.vlgmr.msra.gmra.mrb[84].mxu1 %v16942_v23  ;;  %11104 = vmatprep.subr.bf16.mxu0 %v14613_v14  ;;  %v14620_v23 = vcombine.low %v1389_v47, %v1393_v41  ;;  %v1485_v7 = vld [vmem:[%s16564_s9 + $0x2198] sm:$0xff]  ;;  %v14653_v44 = vcombine.high %v1421_v54, %v1425_v1  ;;  %v14652_v9 = vcombine.low %v1421_v54, %v1425_v1 }
 0x60e   : > { %11128 = vmatpush1.bf16.msra.mxu1 %v14668_v21  ;;  %11159 = vmatprep.mubr.bf16.mxu1 %v16960_v0  ;;  %v14628_v0 = vcombine.low %v1397_v40, %v1401_v12  ;;  %v1489_v16 = vld [vmem:[%s16564_s9 + $0x21b8] sm:$0xff] }
 0x60f   : > { %11129 = vmatprep.subr.bf16.mxu1 %v14677_v3  ;;  %v14717_v10 = vcombine.high %v1485_v7, %v1489_v16  ;;  %v1429_v8 = vld [vmem:[%s16564_s9 + $0x1fd8] sm:$0xff]  ;;  %v14716_v13 = vcombine.low %v1485_v7, %v1489_v16 }
 0x610   : > { %11105 = vmatpush1.bf16.msra.mxu0 %v14612_v50  ;;  %v1433_v52 = vld [vmem:[%s16564_s9 + $0x1ff8] sm:$0xff] }
 0x611   : > { %11106 = vmatprep.subr.bf16.mxu0 %v14621_v30  ;;  %v1493_v45 = vld [vmem:[%s16564_s9 + $0x21d8] sm:$0xff]  ;;  %v14661_v60 = vcombine.high %v1429_v8, %v1433_v52  ;;  %v14660_v3 = vcombine.low %v1429_v8, %v1433_v52 }
 0x612   : > { %11130 = vmatpush1.bf16.msra.mxu1 %v14676_v4  ;;  %v1497_v63 = vld [vmem:[%s16564_s9 + $0x21f8] sm:$0xff] }
 0x613   : > { %11131 = vmatprep.subr.bf16.mxu1 %v14685_v18  ;;  %v14725_v26 = vcombine.high %v1493_v45, %v1497_v63  ;;  %v1565_v61 = vld [vmem:[%s16564_s9 + $0x2418] sm:$0xff]  ;;  %v14724_v47 = vcombine.low %v1493_v45, %v1497_v63 }
 0x614   : > { %11107 = vmatpush1.bf16.msra.mxu0 %v14620_v23  ;;  %v1569_v49 = vld [vmem:[%s16564_s9 + $0x2438] sm:$0xff] }
 0x615   : > { %11108 = vmatprep.subr.bf16.mxu0 %v14629_v15  ;;  %v1501_v21 = vld [vmem:[%s16564_s9 + $0x2218] sm:$0xff]  ;;  %v14797_v41 = vcombine.high %v1565_v61, %v1569_v49  ;;  %v14796_v18 = vcombine.low %v1565_v61, %v1569_v49 }
 0x616   : > { %11132 = vmatpush1.bf16.msra.mxu1 %v14684_v56  ;;  %v1505_v14 = vld [vmem:[%s16564_s9 + $0x2238] sm:$0xff] }
 0x617   : > { %11133 = vmatprep.subr.bf16.mxu1 %v14693_v43  ;;  %v14733_v62 = vcombine.high %v1501_v21, %v1505_v14  ;;  %v1573_v58 = vld [vmem:[%s16564_s9 + $0x2458] sm:$0xff]  ;;  %v14732_v40 = vcombine.low %v1501_v21, %v1505_v14 }
 0x618   : > { %11109 = vmatpush1.bf16.msra.mxu0 %v14628_v0  ;;  %v1577_v50 = vld [vmem:[%s16564_s9 + $0x2478] sm:$0xff] }
 0x619   : > { %11110 = vmatprep.subr.bf16.mxu0 %v14637_v46  ;;  %v1509_v4 = vld [vmem:[%s16564_s9 + $0x2258] sm:$0xff]  ;;  %v14805_v12 = vcombine.high %v1573_v58, %v1577_v50  ;;  %v14804_v43 = vcombine.low %v1573_v58, %v1577_v50 }
 0x61a   : > { %11134 = vmatpush1.bf16.msra.mxu1 %v14692_v59  ;;  %v1513_v30 = vld [vmem:[%s16564_s9 + $0x2278] sm:$0xff] }
 0x61b   : > { %11135 = vmatprep.subr.bf16.mxu1 %v14701_v29  ;;  %v14741_v33 = vcombine.high %v1509_v4, %v1513_v30  ;;  %v1581_v38 = vld [vmem:[%s16564_s9 + $0x2498] sm:$0xff]  ;;  %v14740_v24 = vcombine.low %v1509_v4, %v1513_v30 }
 0x61c   : > { %11111 = vmatpush1.bf16.msra.mxu0 %v14636_v34  ;;  %v1585_v23 = vld [vmem:[%s16564_s9 + $0x24b8] sm:$0xff] }
 0x61d   : > { %11112 = vmatprep.subr.bf16.mxu0 %v14645_v17  ;;  %v1517_v56 = vld [vmem:[%s16564_s9 + $0x2298] sm:$0xff]  ;;  %v14813_v25 = vcombine.high %v1581_v38, %v1585_v23  ;;  %v14812_v46 = vcombine.low %v1581_v38, %v1585_v23 }
 0x61e   : > { %11136 = vmatpush1.bf16.msra.mxu1 %v14700_v31  ;;  %v1521_v15 = vld [vmem:[%s16564_s9 + $0x22b8] sm:$0xff] }
 0x61f   : > { %11137 = vmatprep.subr.bf16.mxu1 %v14709_v32  ;;  %v14749_v42 = vcombine.high %v1517_v56, %v1521_v15  ;;  %v1589_v20 = vld [vmem:[%s16564_s9 + $0x24d8] sm:$0xff]  ;;  %v14748_v29 = vcombine.low %v1517_v56, %v1521_v15 }
 0x620   : > { %v18299_v28 = vpop.f32.mrb[72].mxu1  ;;  %11113 = vmatpush1.bf16.msra.mxu0 %v14644_v48  ;;  %v1593_v0 = vld [vmem:[%s16564_s9 + $0x24f8] sm:$0xff] }
 0x621   : > { %v18303_v51 = vpop.f32.mrb[73].mxu1  ;;  %11114 = vmatprep.subr.bf16.mxu0 %v14653_v44  ;;  %v1525_v59 = vld [vmem:[%s16564_s9 + $0x22d8] sm:$0xff]  ;;  %v14820_v31 = vcombine.low %v1589_v20, %v1593_v0 }
 0x622   : > { %v10837_v22 = vpop.f32.mrb[74].mxu1  ;;  %11138 = vmatpush1.bf16.msra.mxu1 %v14708_v37  ;;  %v1597_v27 = vld [vmem:[%s16564_s9 + $0x2518] sm:$0xff] }
 0x623   : > { %v10838_v19 = vpop.f32.mrb[75].mxu1  ;;  %11139 = vmatprep.subr.bf16.mxu1 %v14717_v10  ;;  %v1601_v35 = vld [vmem:[%s16564_s9 + $0x2538] sm:$0xff] }
 0x624   : > { %11115 = vmatpush1.bf16.msra.mxu0 %v14652_v9  ;;  %v1533_v5 = vld [vmem:[%s16564_s9 + $0x2318] sm:$0xff]  ;;  %v14829_v32 = vcombine.high %v1597_v27, %v1601_v35  ;;  %v14828_v37 = vcombine.low %v1597_v27, %v1601_v35 }
 0x625   : > { %11116 = vmatprep.subr.bf16.mxu0 %v14661_v60  ;;  %v1537_v34 = vld [vmem:[%s16564_s9 + $0x2338] sm:$0xff] }
 0x626   : > { %11140 = vmatpush1.bf16.msra.mxu1 %v14716_v13  ;;  %v14765_v54 = vcombine.high %v1533_v5, %v1537_v34  ;;  %v1605_v1 = vld [vmem:[%s16564_s9 + $0x2558] sm:$0xff]  ;;  %v14764_v44 = vcombine.low %v1533_v5, %v1537_v34 }
 0x627   : > { %11141 = vmatprep.subr.bf16.mxu1 %v14725_v26  ;;  %v1609_v7 = vld [vmem:[%s16564_s9 + $0x2578] sm:$0xff] }
 0x628   : > { %11117 = vmatpush1.bf16.msra.mxu0 %v14660_v3  ;;  %v1541_v16 = vld [vmem:[%s16564_s9 + $0x2358] sm:$0xff]  ;;  %v14837_v10 = vcombine.high %v1605_v1, %v1609_v7  ;;  %v14836_v22 = vcombine.low %v1605_v1, %v1609_v7 }
 0x629   : > { %11168 = vmatprep.subr.bf16.mxu0 %v14797_v41  ;;  %v1545_v48 = vld [vmem:[%s16564_s9 + $0x2378] sm:$0xff] }
 0x62a   : > { %11142 = vmatpush1.bf16.msra.mxu1 %v14724_v47  ;;  %v14773_v8 = vcombine.high %v1541_v16, %v1545_v48  ;;  %v1613_v52 = vld [vmem:[%s16564_s9 + $0x2598] sm:$0xff]  ;;  %v14772_v13 = vcombine.low %v1541_v16, %v1545_v48 }
 0x62b   : > { %11143 = vmatprep.subr.bf16.mxu1 %v14733_v62  ;;  %11119 = vmatmul.mubr.bf16.vlgmr.msra.gmra.mrb[84].mxu0 %v16951_v53  ;;  %v1529_v53 = vld [vmem:[%s16564_s9 + $0x22f8] sm:$0xff] }
 0x62c   : > { %11169 = vmatpush1.bf16.msra.mxu0 %v14796_v18  ;;  %11200 = vmatprep.mubr.bf16.mxu0 %v16967_v2  ;;  %v14821_v2 = vcombine.high %v1589_v20, %v1593_v0  ;;  %v14757_v39 = vcombine.high %v1525_v59, %v1529_v53  ;;  %v14756_v17 = vcombine.low %v1525_v59, %v1529_v53  ;;  %v1617_v45 = vld [vmem:[%s16564_s9 + $0x25b8] sm:$0xff] }
 0x62d   : > { %11170 = vmatprep.subr.bf16.mxu0 %v14805_v12  ;;  %v1549_v63 = vld [vmem:[%s16564_s9 + $0x2398] sm:$0xff]  ;;  %v14845_v60 = vcombine.high %v1613_v52, %v1617_v45  ;;  %v14844_v58 = vcombine.low %v1613_v52, %v1617_v45 }
 0x62e   : > { %11144 = vmatpush1.bf16.msra.mxu1 %v14732_v40  ;;  %v1553_v9 = vld [vmem:[%s16564_s9 + $0x23b8] sm:$0xff] }
 0x62f   : > { %11145 = vmatprep.subr.bf16.mxu1 %v14741_v33  ;;  %v14781_v26 = vcombine.high %v1549_v63, %v1553_v9  ;;  %v1621_v61 = vld [vmem:[%s16564_s9 + $0x25d8] sm:$0xff]  ;;  %v14780_v4 = vcombine.low %v1549_v63, %v1553_v9 }
 0x630   : > { %11171 = vmatpush1.bf16.msra.mxu0 %v14804_v43  ;;  %v1625_v49 = vld [vmem:[%s16564_s9 + $0x25f8] sm:$0xff] }
 0x631   : > { %11172 = vmatprep.subr.bf16.mxu0 %v14813_v25  ;;  %v1557_v3 = vld [vmem:[%s16564_s9 + $0x23d8] sm:$0xff]  ;;  %v14853_v30 = vcombine.high %v1621_v61, %v1625_v49 }
 0x632   : > { %11146 = vmatpush1.bf16.msra.mxu1 %v14740_v24  ;;  %v1561_v47 = vld [vmem:[%s16564_s9 + $0x23f8] sm:$0xff] }
 0x633   : > { %11147 = vmatprep.subr.bf16.mxu1 %v14749_v42  ;;  %v1629_v18 = vld [vmem:[%s16564_s9 + $0x2618] sm:$0xff]  ;;  %v14788_v38 = vcombine.low %v1557_v3, %v1561_v47 }
 0x634   : > { %11173 = vmatpush1.bf16.msra.mxu0 %v14812_v46  ;;  %v1633_v40 = vld [vmem:[%s16564_s9 + $0x2638] sm:$0xff] }
 0x635   : > { %11174 = vmatprep.subr.bf16.mxu0 %v14821_v2  ;;  %v1693_v12 = vld [vmem:[%s16564_s9 + $0x2818] sm:$0xff]  ;;  %v14861_v23 = vcombine.high %v1629_v18, %v1633_v40  ;;  %v14860_v42 = vcombine.low %v1629_v18, %v1633_v40 }
 0x636   : > { %11148 = vmatpush1.bf16.msra.mxu1 %v14748_v29  ;;  %v1697_v33 = vld [vmem:[%s16564_s9 + $0x2838] sm:$0xff] }
 0x637   : > { %11149 = vmatprep.subr.bf16.mxu1 %v14757_v39  ;;  %v14925_v56 = vcombine.high %v1693_v12, %v1697_v33  ;;  %v1637_v15 = vld [vmem:[%s16564_s9 + $0x2658] sm:$0xff]  ;;  %v14924_v20 = vcombine.low %v1693_v12, %v1697_v33 }
 0x638   : > { %11175 = vmatpush1.bf16.msra.mxu0 %v14820_v31  ;;  %v1641_v43 = vld [vmem:[%s16564_s9 + $0x2678] sm:$0xff] }
 0x639   : > { %11176 = vmatprep.subr.bf16.mxu0 %v14829_v32  ;;  %v1701_v24 = vld [vmem:[%s16564_s9 + $0x2858] sm:$0xff]  ;;  %v14869_v0 = vcombine.high %v1637_v15, %v1641_v43  ;;  %v14868_v39 = vcombine.low %v1637_v15, %v1641_v43 }
 0x63a   : > { %11150 = vmatpush1.bf16.msra.mxu1 %v14756_v17  ;;  %v1705_v25 = vld [vmem:[%s16564_s9 + $0x2878] sm:$0xff] }
 0x63b   : > { %11151 = vmatprep.subr.bf16.mxu1 %v14765_v54  ;;  %v14933_v59 = vcombine.high %v1701_v24, %v1705_v25  ;;  %v1645_v53 = vld [vmem:[%s16564_s9 + $0x2698] sm:$0xff]  ;;  %v14932_v27 = vcombine.low %v1701_v24, %v1705_v25 }
 0x63c   : > { %11177 = vmatpush1.bf16.msra.mxu0 %v14828_v37  ;;  %v1649_v46 = vld [vmem:[%s16564_s9 + $0x26b8] sm:$0xff] }
 0x63d   : > { %11178 = vmatprep.subr.bf16.mxu0 %v14837_v10  ;;  %v1709_v29 = vld [vmem:[%s16564_s9 + $0x2898] sm:$0xff]  ;;  %v14877_v35 = vcombine.high %v1645_v53, %v1649_v46 }
 0x63e   : > { %11152 = vmatpush1.bf16.msra.mxu1 %v14764_v44  ;;  %v10874_v19 = vpop.f32.mrb[72].mxu0  ;;  %v1713_v2 = vld [vmem:[%s16564_s9 + $0x28b8] sm:$0xff] }
 0x63f   : > { %11153 = vmatprep.subr.bf16.mxu1 %v14773_v8  ;;  %v18338_v21 = vadd.f32 %v10874_v19, %v18299_v28  ;;  %v10876_v14 = vpop.f32.mrb[73].mxu0  ;;  %v14789_v28 = vcombine.high %v1557_v3, %v1561_v47  ;;  %v14941_v5 = vcombine.high %v1709_v29, %v1713_v2  ;;  %v1653_v34 = vld [vmem:[%s16564_s9 + $0x26d8] sm:$0xff]  ;;  %v14940_v54 = vcombine.low %v1709_v29, %v1713_v2 }
 0x640   : > { %v18343_v41 = vadd.f32 %v10876_v14, %v18303_v51  ;;  %v10878_v62 = vpop.f32.mrb[74].mxu0  ;;  %11179 = vmatpush1.bf16.msra.mxu0 %v14836_v22  ;;  %v14852_v51 = vcombine.low %v1621_v61, %v1625_v49  ;;  %v1657_v31 = vld [vmem:[%s16564_s9 + $0x26f8] sm:$0xff] }
 0x641   : > { %v10879_v50 = vpop.f32.mrb[75].mxu0  ;;  %11180 = vmatprep.subr.bf16.mxu0 %v14845_v60  ;;  %v1717_v17 = vld [vmem:[%s16564_s9 + $0x28d8] sm:$0xff]  ;;  %v14885_v1 = vcombine.high %v1653_v34, %v1657_v31 }
 0x642   : > { %11154 = vmatpush1.bf16.msra.mxu1 %v14772_v13  ;;  %v1721_v32 = vld [vmem:[%s16564_s9 + $0x28f8] sm:$0xff] }
 0x643   : > { %11155 = vmatprep.subr.bf16.mxu1 %v14781_v26  ;;  %v14949_v7 = vcombine.high %v1717_v17, %v1721_v32  ;;  %v1661_v16 = vld [vmem:[%s16564_s9 + $0x2718] sm:$0xff]  ;;  %v14948_v10 = vcombine.low %v1717_v17, %v1721_v32 }
 0x644   : > { %11181 = vmatpush1.bf16.msra.mxu0 %v14844_v58  ;;  %v1665_v48 = vld [vmem:[%s16564_s9 + $0x2738] sm:$0xff] }
 0x645   : > { %11182 = vmatprep.subr.bf16.mxu0 %v14853_v30  ;;  %v1725_v37 = vld [vmem:[%s16564_s9 + $0x2918] sm:$0xff]  ;;  %v14893_v8 = vcombine.high %v1661_v16, %v1665_v48  ;;  %v14892_v13 = vcombine.low %v1661_v16, %v1665_v48 }
 0x646   : > { %11156 = vmatpush1.bf16.msra.mxu1 %v14780_v4  ;;  %v1729_v44 = vld [vmem:[%s16564_s9 + $0x2938] sm:$0xff] }
 0x647   : > { %11157 = vmatprep.subr.bf16.mxu1 %v14789_v28  ;;  %v14957_v52 = vcombine.high %v1725_v37, %v1729_v44  ;;  %v1669_v45 = vld [vmem:[%s16564_s9 + $0x2758] sm:$0xff]  ;;  %v14956_v60 = vcombine.low %v1725_v37, %v1729_v44 }
 0x648   : > { %11183 = vmatpush1.bf16.msra.mxu0 %v14852_v51  ;;  %v1673_v63 = vld [vmem:[%s16564_s9 + $0x2778] sm:$0xff] }
 0x649   : > { %11184 = vmatprep.subr.bf16.mxu0 %v14861_v23  ;;  %v1733_v9 = vld [vmem:[%s16564_s9 + $0x2958] sm:$0xff]  ;;  %v14901_v19 = vcombine.high %v1669_v45, %v1673_v63  ;;  %v14900_v47 = vcombine.low %v1669_v45, %v1673_v63 }
 0x64a   : > { %11158 = vmatpush1.bf16.msra.mxu1 %v14788_v38  ;;  %v1737_v22 = vld [vmem:[%s16564_s9 + $0x2978] sm:$0xff] }
 0x64b   : > { %11209 = vmatprep.subr.bf16.mxu1 %v14925_v56  ;;  %v14965_v26 = vcombine.high %v1733_v9, %v1737_v22  ;;  %v1677_v61 = vld [vmem:[%s16564_s9 + $0x2798] sm:$0xff]  ;;  %v14964_v62 = vcombine.low %v1733_v9, %v1737_v22 }
 0x64c   : > { %11185 = vmatpush1.bf16.msra.mxu0 %v14860_v42  ;;  %v1681_v49 = vld [vmem:[%s16564_s9 + $0x27b8] sm:$0xff] }
 0x64d   : > { %11160 = vmatmul.mubr.bf16.vlgmr.msra.gmra.mrb[88].mxu1 %v17036_v11  ;;  %11186 = vmatprep.subr.bf16.mxu0 %v14869_v0  ;;  %v14876_v11 = vcombine.low %v1645_v53, %v1649_v46  ;;  %v1741_v14 = vld [vmem:[%s16564_s9 + $0x2998] sm:$0xff]  ;;  %v14909_v58 = vcombine.high %v1677_v61, %v1681_v49  ;;  %v14908_v51 = vcombine.low %v1677_v61, %v1681_v49 }
 0x64e   : > { %11210 = vmatpush1.bf16.msra.mxu1 %v14924_v20  ;;  %11241 = vmatprep.mubr.bf16.mxu1 %v17054_v57  ;;  %v14884_v57 = vcombine.low %v1653_v34, %v1657_v31  ;;  %v1745_v3 = vld [vmem:[%s16564_s9 + $0x29b8] sm:$0xff] }
 0x64f   : > { %11211 = vmatprep.subr.bf16.mxu1 %v14933_v59  ;;  %v14973_v50 = vcombine.high %v1741_v14, %v1745_v3  ;;  %v1685_v4 = vld [vmem:[%s16564_s9 + $0x27d8] sm:$0xff]  ;;  %v14972_v56 = vcombine.low %v1741_v14, %v1745_v3 }
 0x650   : > { %11187 = vmatpush1.bf16.msra.mxu0 %v14868_v39  ;;  %v1689_v30 = vld [vmem:[%s16564_s9 + $0x27f8] sm:$0xff] }
 0x651   : > { %11188 = vmatprep.subr.bf16.mxu0 %v14877_v35  ;;  %v1749_v18 = vld [vmem:[%s16564_s9 + $0x29d8] sm:$0xff]  ;;  %v14917_v15 = vcombine.high %v1685_v4, %v1689_v30  ;;  %v14916_v0 = vcombine.low %v1685_v4, %v1689_v30 }
 0x652   : > { %11212 = vmatpush1.bf16.msra.mxu1 %v14932_v27  ;;  %v1753_v40 = vld [vmem:[%s16564_s9 + $0x29f8] sm:$0xff] }
 0x653   : > { %11213 = vmatprep.subr.bf16.mxu1 %v14941_v5  ;;  %v14981_v24 = vcombine.high %v1749_v18, %v1753_v40  ;;  %v1825_v25 = vld [vmem:[%s16564_s9 + $0x2c38] sm:$0xff] }
 0x654   : > { %11189 = vmatpush1.bf16.msra.mxu0 %v14876_v11  ;;  %v1757_v42 = vld [vmem:[%s16564_s9 + $0x2a18] sm:$0xff] }
 0x655   : > { %11190 = vmatprep.subr.bf16.mxu0 %v14885_v1  ;;  %v1761_v20 = vld [vmem:[%s16564_s9 + $0x2a38] sm:$0xff] }
 0x656   : > { %11214 = vmatpush1.bf16.msra.mxu1 %v14940_v54  ;;  %v14989_v53 = vcombine.high %v1757_v42, %v1761_v20  ;;  %v1829_v46 = vld [vmem:[%s16564_s9 + $0x2c58] sm:$0xff]  ;;  %v14988_v35 = vcombine.low %v1757_v42, %v1761_v20 }
 0x657   : > { %11215 = vmatprep.subr.bf16.mxu1 %v14949_v7  ;;  %v1833_v29 = vld [vmem:[%s16564_s9 + $0x2c78] sm:$0xff] }
 0x658   : > { %11191 = vmatpush1.bf16.msra.mxu0 %v14884_v57  ;;  %v1765_v2 = vld [vmem:[%s16564_s9 + $0x2a58] sm:$0xff]  ;;  %v15061_v5 = vcombine.high %v1829_v46, %v1833_v29  ;;  %v15060_v54 = vcombine.low %v1829_v46, %v1833_v29 }
 0x659   : > { %11192 = vmatprep.subr.bf16.mxu0 %v14893_v8  ;;  %v1769_v39 = vld [vmem:[%s16564_s9 + $0x2a78] sm:$0xff] }
 0x65a   : > { %11216 = vmatpush1.bf16.msra.mxu1 %v14948_v10  ;;  %v14997_v34 = vcombine.high %v1765_v2, %v1769_v39  ;;  %v1837_v31 = vld [vmem:[%s16564_s9 + $0x2c98] sm:$0xff]  ;;  %v14996_v1 = vcombine.low %v1765_v2, %v1769_v39 }
 0x65b   : > { %11217 = vmatprep.subr.bf16.mxu1 %v14957_v52  ;;  %v1841_v17 = vld [vmem:[%s16564_s9 + $0x2cb8] sm:$0xff] }
 0x65c   : > { %11193 = vmatpush1.bf16.msra.mxu0 %v14892_v13  ;;  %v1773_v32 = vld [vmem:[%s16564_s9 + $0x2a98] sm:$0xff]  ;;  %v15069_v7 = vcombine.high %v1837_v31, %v1841_v17  ;;  %v15068_v57 = vcombine.low %v1837_v31, %v1841_v17 }
 0x65d   : > { %11194 = vmatprep.subr.bf16.mxu0 %v14901_v19  ;;  %v1777_v11 = vld [vmem:[%s16564_s9 + $0x2ab8] sm:$0xff] }
 0x65e   : > { %11218 = vmatpush1.bf16.msra.mxu1 %v14956_v60  ;;  %v15005_v16 = vcombine.high %v1773_v32, %v1777_v11  ;;  %v1845_v48 = vld [vmem:[%s16564_s9 + $0x2cd8] sm:$0xff]  ;;  %v15004_v10 = vcombine.low %v1773_v32, %v1777_v11 }
 0x65f   : > { %11219 = vmatprep.subr.bf16.mxu1 %v14965_v26  ;;  %v1849_v37 = vld [vmem:[%s16564_s9 + $0x2cf8] sm:$0xff] }
 0x660   : > { %v10915_v28 = vpop.f32.mrb[76].mxu1  ;;  %11195 = vmatpush1.bf16.msra.mxu0 %v14900_v47  ;;  %v1781_v44 = vld [vmem:[%s16564_s9 + $0x2ad8] sm:$0xff]  ;;  %v15076_v22 = vcombine.low %v1845_v48, %v1849_v37 }
 0x661   : > { %v18380_v12 = vadd.f32 %v10915_v28, %v18338_v21  ;;  %v10917_v33 = vpop.f32.mrb[77].mxu1  ;;  %11196 = vmatprep.subr.bf16.mxu0 %v14909_v58  ;;  %v1821_v21 = vld [vmem:[%s16564_s9 + $0x2c18] sm:$0xff] }
 0x662   : > { %v18383_v38 = vadd.f32 %v10917_v33, %v18343_v41  ;;  %v10919_v23 = vpop.f32.mrb[78].mxu1  ;;  %11220 = vmatpush1.bf16.msra.mxu1 %v14964_v62  ;;  %v14980_v41 = vcombine.low %v1749_v18, %v1753_v40  ;;  %v15053_v59 = vcombine.high %v1821_v21, %v1825_v25  ;;  %v15052_v27 = vcombine.low %v1821_v21, %v1825_v25  ;;  %v1853_v52 = vld [vmem:[%s16564_s9 + $0x2d18] sm:$0xff] }
 0x663   : > { %v10920_v43 = vpop.f32.mrb[79].mxu1  ;;  %11221 = vmatprep.subr.bf16.mxu1 %v14973_v50  ;;  %v1857_v45 = vld [vmem:[%s16564_s9 + $0x2d38] sm:$0xff] }
 0x664   : > { %11197 = vmatpush1.bf16.msra.mxu0 %v14908_v51  ;;  %v1789_v63 = vld [vmem:[%s16564_s9 + $0x2b18] sm:$0xff]  ;;  %v15085_v60 = vcombine.high %v1853_v52, %v1857_v45  ;;  %v15084_v3 = vcombine.low %v1853_v52, %v1857_v45 }
 0x665   : > { %11198 = vmatprep.subr.bf16.mxu0 %v14917_v15  ;;  %v1793_v9 = vld [vmem:[%s16564_s9 + $0x2b38] sm:$0xff] }
 0x666   : > { %11222 = vmatpush1.bf16.msra.mxu1 %v14972_v56  ;;  %v15021_v19 = vcombine.high %v1789_v63, %v1793_v9  ;;  %v1861_v26 = vld [vmem:[%s16564_s9 + $0x2d58] sm:$0xff]  ;;  %v15020_v47 = vcombine.low %v1789_v63, %v1793_v9 }
 0x667   : > { %11223 = vmatprep.subr.bf16.mxu1 %v14981_v24  ;;  %v1865_v61 = vld [vmem:[%s16564_s9 + $0x2d78] sm:$0xff] }
 0x668   : > { %11199 = vmatpush1.bf16.msra.mxu0 %v14916_v0  ;;  %v1797_v49 = vld [vmem:[%s16564_s9 + $0x2b58] sm:$0xff]  ;;  %v15093_v62 = vcombine.high %v1861_v26, %v1865_v61  ;;  %v15092_v18 = vcombine.low %v1861_v26, %v1865_v61 }
 0x669   : > { %11250 = vmatprep.subr.bf16.mxu0 %v15053_v59  ;;  %v1801_v14 = vld [vmem:[%s16564_s9 + $0x2b78] sm:$0xff] }
 0x66a   : > { %11224 = vmatpush1.bf16.msra.mxu1 %v14980_v41  ;;  %v15029_v58 = vcombine.high %v1797_v49, %v1801_v14  ;;  %v1869_v50 = vld [vmem:[%s16564_s9 + $0x2d98] sm:$0xff]  ;;  %v15028_v40 = vcombine.low %v1797_v49, %v1801_v14 }
 0x66b   : > { %11225 = vmatprep.subr.bf16.mxu1 %v14989_v53  ;;  %11201 = vmatmul.mubr.bf16.vlgmr.msra.gmra.mrb[88].mxu0 %v17042_v6  ;;  %v1785_v6 = vld [vmem:[%s16564_s9 + $0x2af8] sm:$0xff] }
 0x66c   : > { %11251 = vmatpush1.bf16.msra.mxu0 %v15052_v27  ;;  %11282 = vmatprep.mubr.bf16.mxu0 %v16281_v55  ;;  %v15077_v55 = vcombine.high %v1845_v48, %v1849_v37  ;;  %v15013_v8 = vcombine.high %v1781_v44, %v1785_v6  ;;  %v15012_v13 = vcombine.low %v1781_v44, %v1785_v6  ;;  %v1873_v4 = vld [vmem:[%s16564_s9 + $0x2db8] sm:$0xff] }
 0x66d   : > { %11252 = vmatprep.subr.bf16.mxu0 %v15061_v5  ;;  %v1805_v30 = vld [vmem:[%s16564_s9 + $0x2b98] sm:$0xff]  ;;  %v15101_v33 = vcombine.high %v1869_v50, %v1873_v4  ;;  %v15100_v0 = vcombine.low %v1869_v50, %v1873_v4 }
 0x66e   : > { %11226 = vmatpush1.bf16.msra.mxu1 %v14988_v35  ;;  %v1809_v28 = vld [vmem:[%s16564_s9 + $0x2bb8] sm:$0xff] }
 0x66f   : > { %11227 = vmatprep.subr.bf16.mxu1 %v14997_v34  ;;  %v15037_v23 = vcombine.high %v1805_v30, %v1809_v28  ;;  %v1877_v56 = vld [vmem:[%s16564_s9 + $0x2dd8] sm:$0xff]  ;;  %v15036_v59 = vcombine.low %v1805_v30, %v1809_v28 }
 0x670   : > { %11253 = vmatpush1.bf16.msra.mxu0 %v15060_v54  ;;  %v1881_v15 = vld [vmem:[%s16564_s9 + $0x2df8] sm:$0xff] }
 0x671   : > { %11254 = vmatprep.subr.bf16.mxu0 %v15069_v7  ;;  %v1813_v21 = vld [vmem:[%s16564_s9 + $0x2bd8] sm:$0xff]  ;;  %v15109_v53 = vcombine.high %v1877_v56, %v1881_v15  ;;  %v15108_v29 = vcombine.low %v1877_v56, %v1881_v15 }
 0x672   : > { %11228 = vmatpush1.bf16.msra.mxu1 %v14996_v1  ;;  %v1817_v25 = vld [vmem:[%s16564_s9 + $0x2bf8] sm:$0xff] }
 0x673   : > { %11229 = vmatprep.subr.bf16.mxu1 %v15005_v16  ;;  %v15045_v46 = vcombine.high %v1813_v21, %v1817_v25  ;;  %v396_v28 = vld [vmem:[#allocation2 + $0x30] sm:$0xff] }
 0x674   : > { %11255 = vmatpush1.bf16.msra.mxu0 %v15068_v57 }
 0x675   : > { %11256 = vmatprep.subr.bf16.mxu0 %v15077_v55 }
 0x676   : > { %11230 = vmatpush1.bf16.msra.mxu1 %v15004_v10 }
 0x677   : > { %11231 = vmatprep.subr.bf16.mxu1 %v15013_v8 }
 0x678   : > { %11257 = vmatpush1.bf16.msra.mxu0 %v15076_v22 }
 0x679   : > { %11258 = vmatprep.subr.bf16.mxu0 %v15085_v60 }
 0x67a   : > { %11232 = vmatpush1.bf16.msra.mxu1 %v15012_v13 }
 0x67b   : > { %11233 = vmatprep.subr.bf16.mxu1 %v15021_v19 }
 0x67c   : > { %11259 = vmatpush1.bf16.msra.mxu0 %v15084_v3 }
 0x67d   : > { %11260 = vmatprep.subr.bf16.mxu0 %v15093_v62 }
 0x67e   : > { %11234 = vmatpush1.bf16.msra.mxu1 %v15020_v47  ;;  %v10956_v51 = vpop.f32.mrb[76].mxu0 }
 0x67f   : > { %11235 = vmatprep.subr.bf16.mxu1 %v15029_v58  ;;  %v10957_v43 = vadd.f32 %v10956_v51, %v18380_v12  ;;  %v10958_v24 = vpop.f32.mrb[77].mxu0  ;;  %v15044_v12 = vcombine.low %v1813_v21, %v1817_v25  ;;  %v15657_v21 = vld [vmem:[#allocation8 + $0x4] ss:$16 sps:$4 sm:$0xff] (!%p15110_p7)   ;;  %v15659_v25 = vld [vmem:[#allocation8 + $0xc] ss:$16 sps:$4 sm:$0xff] (!%p15110_p7)  }
 0x680   : > { %v10959_v42 = vadd.f32 %v10958_v24, %v18383_v38  ;;  %v10960_v20 = vpop.f32.mrb[78].mxu0  ;;  %11261 = vmatpush1.bf16.msra.mxu0 %v15092_v18  ;;  %v15656_v38 = vld [vmem:[%s16557_s27 + $0x58] ss:$0 sps:$4 sm:$0xff]  }
 0x681   : > { %v10961_v41 = vpop.f32.mrb[79].mxu0  ;;  %11262 = vmatprep.subr.bf16.mxu0 %v15101_v33  ;;  %v15662_v20 = vld [vmem:[#allocation8 + $0x8] ss:$16 sps:$4 sm:$0xff] (!%p15110_p7)  }
 0x682   : > { %11236 = vmatpush1.bf16.msra.mxu1 %v15028_v40  ;;  %v15665_v41 = vld [vmem:[#allocation8 + $0x2c] ss:$16 sps:$4 sm:$0xff] (!%p15110_p7)  }
 0x683   : > { %11237 = vmatprep.subr.bf16.mxu1 %v15037_v23  ;;  %v397_v23 = vld [vmem:[#allocation2 + $0x38] sm:$0xff] }
 0x684   : > { %11263 = vmatpush1.bf16.msra.mxu0 %v15100_v0  ;;  %v15663_v0 = vld [vmem:[#allocation8 + $0x24] ss:$16 sps:$4 sm:$0xff] (!%p15110_p7)  }
 0x685   : > { %11264 = vmatprep.subr.bf16.mxu0 %v15109_v53  ;;  %v15668_v53 = vld [vmem:[#allocation8 + $0x28] ss:$16 sps:$4 sm:$0xff] (!%p15110_p7)  }
 0x686   : > { %11238 = vmatpush1.bf16.msra.mxu1 %v15036_v59  ;;  %v15667_v59 = vld [vmem:[#allocation8 + $0x20] ss:$16 sps:$4 sm:$0xff] (!%p15110_p7)  }
 0x687   : > { %11239 = vmatprep.subr.bf16.mxu1 %v15045_v46  ;;  %v15669_v46 = vld [vmem:[#allocation8 + $0x44] ss:$16 sps:$4 sm:$0xff] (!%p15110_p7)  }
 0x688   : > { %11265 = vmatpush1.bf16.msra.mxu0 %v15108_v29  ;;  %v15671_v29 = vld [vmem:[#allocation8 + $0x4c] ss:$16 sps:$4 sm:$0xff] (!%p15110_p7)  }
 0x689   : > { %12943 = vmatprep.subr.bf16.mxu0 (!%p15110_p7), %v15657_v21  ;;  %v15739_v21 = vld [vmem:[#allocation8 + $0x1a0] ss:$16 sps:$4 sm:$0xff] (!%p15110_p7)  }
 0x68a   : > { %11240 = vmatpush1.bf16.msra.mxu1 %v15044_v12  ;;  %v15673_v12 = vld [vmem:[#allocation8 + $0x40] ss:$16 sps:$4 sm:$0xff] (!%p15110_p7)  }
 0x68b   : > { %11283 = vmatmul.mubr.bf16.vlgmr.msra.gmra.mrb[92].mxu0 %v15656_v38  ;;  %13107 = vmatprep.subr.bf16.mxu1 (!%p15110_p7), %v15659_v25  ;;  %v15674_v38 = vld [vmem:[#allocation8 + $0x48] ss:$16 sps:$4 sm:$0xff] (!%p15110_p7)  }
 0x68c   : > { %v15740_v25 = vld [vmem:[#allocation8 + $0x1a8] ss:$16 sps:$4 sm:$0xff] (!%p15110_p7)  }
 0x68d   : > { %11242 = vmatmul.mubr.bf16.vlgmr.msra.gmra.mrb[92].mxu1 %v17127_v36 }
 0x68e   : > { %13108 = vmatpush1.bf16.msra.mxu1 (!%p15110_p7), %v15662_v20  ;;  %v15741_v20 = vld [vmem:[#allocation8 + $0x1c4] ss:$16 sps:$4 sm:$0xff] (!%p15110_p7)  }
 0x68f   : > { %13109 = vmatprep.subr.bf16.mxu1 (!%p15110_p7), %v15665_v41  ;;  %v15743_v41 = vld [vmem:[#allocation8 + $0x1cc] ss:$16 sps:$4 sm:$0xff] (!%p15110_p7)  }
 0x692   : > { %13110 = vmatpush1.bf16.msra.mxu1 (!%p15110_p7), %v15668_v53 }
 0x693   : > { %13111 = vmatprep.subr.bf16.mxu1 (!%p15110_p7), %v15671_v29  ;;  %v15747_v29 = vld [vmem:[#allocation8 + $0x1e4] ss:$16 sps:$4 sm:$0xff] (!%p15110_p7)  }
 0x696   : > { %13112 = vmatpush1.bf16.msra.mxu1 (!%p15110_p7), %v15674_v38  ;;  %v15751_v38 = vld [vmem:[#allocation8 + $0x1e0] ss:$16 sps:$4 sm:$0xff] (!%p15110_p7)  }
 0x6a0   : > { %v10997_v2 = vpop.f32.mrb[80].mxu1 }
 0x6a1   : > { %v10998_v39 = vadd.f32 %v10997_v2, %v10957_v43  ;;  %v10999_v27 = vpop.f32.mrb[81].mxu1  ;;  %v15675_v2 = vld [vmem:[#allocation8 + $0x64] ss:$16 sps:$4 sm:$0xff] (!%p15110_p7)  }
 0x6a2   : > { %v11000_v35 = vadd.f32 %v10999_v27, %v10959_v42  ;;  %v11001_v5 = vpop.f32.mrb[82].mxu1  ;;  %v15661_v42 = vld [vmem:[#allocation8] ss:$16 sps:$4 sm:$0xff] (!%p15110_p7)  }
 0x6a3   : > { %v11002_v34 = vpop.f32.mrb[83].mxu1  ;;  %12944 = vmatpush1.bf16.msra.mxu0 (!%p15110_p7), %v15661_v42  ;;  %v15679_v27 = vld [vmem:[#allocation8 + $0x60] ss:$16 sps:$4 sm:$0xff] (!%p15110_p7)   ;;  %v15681_v5 = vld [vmem:[#allocation8 + $0x84] ss:$16 sps:$4 sm:$0xff] (!%p15110_p7)  }
 0x6a4   : > { %12945 = vmatprep.subr.bf16.mxu0 (!%p15110_p7), %v15663_v0  ;;  %v15683_v34 = vld [vmem:[#allocation8 + $0x8c] ss:$16 sps:$4 sm:$0xff] (!%p15110_p7)   ;;  %v11311_v0 = vld [vmem:[#allocation2] sm:$0xff] (!%p15110_p7) }
 0x6a7   : > { %12946 = vmatpush1.bf16.msra.mxu0 (!%p15110_p7), %v15667_v59  ;;  %v15745_v59 = vld [vmem:[#allocation8 + $0x1c0] ss:$16 sps:$4 sm:$0xff] (!%p15110_p7)  }
 0x6a8   : > { %12947 = vmatprep.subr.bf16.mxu0 (!%p15110_p7), %v15669_v46  ;;  %v15746_v46 = vld [vmem:[#allocation8 + $0x1c8] ss:$16 sps:$4 sm:$0xff] (!%p15110_p7)  }
 0x6ab   : > { %12948 = vmatpush1.bf16.msra.mxu0 (!%p15110_p7), %v15673_v12  ;;  %v15749_v12 = vld [vmem:[#allocation8 + $0x1ec] ss:$16 sps:$4 sm:$0xff] (!%p15110_p7)  }
 0x6ac   : > { %12949 = vmatprep.subr.bf16.mxu0 (!%p15110_p7), %v15675_v2 }
 0x6af   : > { %12950 = vmatpush1.bf16.msra.mxu0 (!%p15110_p7), %v15679_v27  ;;  %v15755_v27 = vld [vmem:[#allocation8 + $0x204] ss:$16 sps:$4 sm:$0xff] (!%p15110_p7)  }
 0x6b0   : > { %12951 = vmatprep.subr.bf16.mxu0 (!%p15110_p7), %v15681_v5  ;;  %v15753_v5 = vld [vmem:[#allocation8 + $0x200] ss:$16 sps:$4 sm:$0xff] (!%p15110_p7)  }
 0x6be   : > { %v11038_v31 = vpop.f32.mrb[80].mxu0 }
 0x6bf   : > { %v11039_v17 = vadd.f32 %v11038_v31, %v10998_v39  ;;  %v11040_v32 = vpop.f32.mrb[81].mxu0  ;;  %v15677_v39 = vld [vmem:[#allocation8 + $0x6c] ss:$16 sps:$4 sm:$0xff] (!%p15110_p7)   ;;  %v15685_v31 = vld [vmem:[#allocation8 + $0x80] ss:$16 sps:$4 sm:$0xff] (!%p15110_p7)  }
 0x6c0   : > { %v11041_v11 = vadd.f32 %v11040_v32, %v11000_v35  ;;  %v11042_v54 = vpop.f32.mrb[82].mxu0  ;;  %v15680_v35 = vld [vmem:[#allocation8 + $0x68] ss:$16 sps:$4 sm:$0xff] (!%p15110_p7)   ;;  %13113 = vmatprep.subr.bf16.mxu1 (!%p15110_p7), %v15677_v39  ;;  %v15687_v32 = vld [vmem:[#allocation8 + $0xa4] ss:$16 sps:$4 sm:$0xff] (!%p15110_p7)   ;;  %12952 = vmatpush1.bf16.msra.mxu0 (!%p15110_p7), %v15685_v31 }
 0x6c1   : > { %v11043_v1 = vpop.f32.mrb[83].mxu0  ;;  %13114 = vmatpush1.bf16.msra.mxu1 (!%p15110_p7), %v15680_v35  ;;  %v15691_v54 = vld [vmem:[#allocation8 + $0xa0] ss:$16 sps:$4 sm:$0xff] (!%p15110_p7)   ;;  %12953 = vmatprep.subr.bf16.mxu0 (!%p15110_p7), %v15687_v32  ;;  %v15752_v39 = vld [vmem:[#allocation8 + $0x1e8] ss:$16 sps:$4 sm:$0xff] (!%p15110_p7)  }
 0x6c2   : > { %13115 = vmatprep.subr.bf16.mxu1 (!%p15110_p7), %v15683_v34  ;;  %v15692_v1 = vld [vmem:[#allocation8 + $0xa8] ss:$16 sps:$4 sm:$0xff] (!%p15110_p7)   ;;  %v15758_v35 = vld [vmem:[#allocation8 + $0x20c] ss:$16 sps:$4 sm:$0xff] (!%p15110_p7)  }
 0x6c3   : > { %v15756_v31 = vld [vmem:[#allocation8 + $0x208] ss:$16 sps:$4 sm:$0xff] (!%p15110_p7)   ;;  %v15764_v32 = vld [vmem:[#allocation8 + $0x22c] ss:$16 sps:$4 sm:$0xff] (!%p15110_p7)  }
 0x6c4   : > { %12954 = vmatpush1.bf16.msra.mxu0 (!%p15110_p7), %v15691_v54  ;;  %v15762_v54 = vld [vmem:[#allocation8 + $0x228] ss:$16 sps:$4 sm:$0xff] (!%p15110_p7)  }
 0x6e0   : > { %v11079_v7 = vpop.f32.mrb[84].mxu1 }
 0x6e1   : > { %v11080_v16 = vadd.f32 %v11079_v7, %v11039_v17  ;;  %v11081_v48 = vpop.f32.mrb[85].mxu1  ;;  %v15686_v17 = vld [vmem:[#allocation8 + $0x88] ss:$16 sps:$4 sm:$0xff] (!%p15110_p7)   ;;  %v15693_v7 = vld [vmem:[#allocation8 + $0xc4] ss:$16 sps:$4 sm:$0xff] (!%p15110_p7)  }
 0x6e2   : > { %v11082_v37 = vadd.f32 %v11081_v48, %v11041_v11  ;;  %v11083_v44 = vpop.f32.mrb[86].mxu1  ;;  %v15689_v11 = vld [vmem:[#allocation8 + $0xac] ss:$16 sps:$4 sm:$0xff] (!%p15110_p7)   ;;  %13116 = vmatpush1.bf16.msra.mxu1 (!%p15110_p7), %v15686_v17  ;;  %v15697_v48 = vld [vmem:[#allocation8 + $0xc0] ss:$16 sps:$4 sm:$0xff] (!%p15110_p7)   ;;  %12955 = vmatprep.subr.bf16.mxu0 (!%p15110_p7), %v15693_v7 }
 0x6e3   : > { %v11084_v6 = vpop.f32.mrb[87].mxu1  ;;  %13117 = vmatprep.subr.bf16.mxu1 (!%p15110_p7), %v15689_v11  ;;  %v15699_v44 = vld [vmem:[#allocation8 + $0xe4] ss:$16 sps:$4 sm:$0xff] (!%p15110_p7)   ;;  %12956 = vmatpush1.bf16.msra.mxu0 (!%p15110_p7), %v15697_v48  ;;  %v15759_v11 = vld [vmem:[#allocation8 + $0x220] ss:$16 sps:$4 sm:$0xff] (!%p15110_p7)  }
 0x6e4   : > { %v15701_v6 = vld [vmem:[#allocation8 + $0xec] ss:$16 sps:$4 sm:$0xff] (!%p15110_p7)   ;;  %12957 = vmatprep.subr.bf16.mxu0 (!%p15110_p7), %v15699_v44  ;;  %v15761_v17 = vld [vmem:[#allocation8 + $0x224] ss:$16 sps:$4 sm:$0xff] (!%p15110_p7)   ;;  %v15768_v48 = vld [vmem:[#allocation8 + $0x248] ss:$16 sps:$4 sm:$0xff] (!%p15110_p7)  }
 0x6e5   : > { %v15770_v7 = vld [vmem:[#allocation8 + $0x24c] ss:$16 sps:$4 sm:$0xff] (!%p15110_p7)  }
 0x6e6   : > { %13118 = vmatpush1.bf16.msra.mxu1 (!%p15110_p7), %v15692_v1  ;;  %v15767_v1 = vld [vmem:[#allocation8 + $0x244] ss:$16 sps:$4 sm:$0xff] (!%p15110_p7)   ;;  %v15776_v44 = vld [vmem:[#allocation8 + $0x26c] ss:$16 sps:$4 sm:$0xff] (!%p15110_p7)  }
 0x6fe   : > { %v11120_v57 = vpop.f32.mrb[84].mxu0 }
 0x6ff   : > { %v11121_v36 = vadd.f32 %v11120_v57, %v11080_v16  ;;  %v11122_v10 = vpop.f32.mrb[85].mxu0  ;;  %v15695_v16 = vld [vmem:[#allocation8 + $0xcc] ss:$16 sps:$4 sm:$0xff] (!%p15110_p7)   ;;  %v15703_v57 = vld [vmem:[#allocation8 + $0xe0] ss:$16 sps:$4 sm:$0xff] (!%p15110_p7)  }
 0x700   : > { %v11123_v55 = vadd.f32 %v11122_v10, %v11082_v37  ;;  %v11124_v8 = vpop.f32.mrb[86].mxu0  ;;  %v15698_v37 = vld [vmem:[#allocation8 + $0xc8] ss:$16 sps:$4 sm:$0xff] (!%p15110_p7)   ;;  %13119 = vmatprep.subr.bf16.mxu1 (!%p15110_p7), %v15695_v16  ;;  %v15705_v10 = vld [vmem:[#allocation8 + $0x104] ss:$16 sps:$4 sm:$0xff] (!%p15110_p7)   ;;  %12958 = vmatpush1.bf16.msra.mxu0 (!%p15110_p7), %v15703_v57 }
 0x701   : > { %v11125_v52 = vpop.f32.mrb[87].mxu0  ;;  %13120 = vmatpush1.bf16.msra.mxu1 (!%p15110_p7), %v15698_v37  ;;  %v15709_v8 = vld [vmem:[#allocation8 + $0x100] ss:$16 sps:$4 sm:$0xff] (!%p15110_p7)   ;;  %12959 = vmatprep.subr.bf16.mxu0 (!%p15110_p7), %v15705_v10  ;;  %v15773_v37 = vld [vmem:[#allocation8 + $0x264] ss:$16 sps:$4 sm:$0xff] (!%p15110_p7)  }
 0x702   : > { %13121 = vmatprep.subr.bf16.mxu1 (!%p15110_p7), %v15701_v6  ;;  %v15710_v52 = vld [vmem:[#allocation8 + $0x108] ss:$16 sps:$4 sm:$0xff] (!%p15110_p7)   ;;  %v15765_v16 = vld [vmem:[#allocation8 + $0x240] ss:$16 sps:$4 sm:$0xff] (!%p15110_p7)   ;;  %v15782_v10 = vld [vmem:[#allocation8 + $0x28c] ss:$16 sps:$4 sm:$0xff] (!%p15110_p7)  }
 0x703   : > { %v15771_v6 = vld [vmem:[#allocation8 + $0x260] ss:$16 sps:$4 sm:$0xff] (!%p15110_p7)   ;;  %v15774_v57 = vld [vmem:[#allocation8 + $0x268] ss:$16 sps:$4 sm:$0xff] (!%p15110_p7)  }
 0x704   : > { %12960 = vmatpush1.bf16.msra.mxu0 (!%p15110_p7), %v15709_v8 }
 0x720   : > { %v11161_v45 = vpop.f32.mrb[88].mxu1 }
 0x721   : > { %v11162_v63 = vadd.f32 %v11161_v45, %v11121_v36  ;;  %v11163_v9 = vpop.f32.mrb[89].mxu1  ;;  %v15704_v36 = vld [vmem:[#allocation8 + $0xe8] ss:$16 sps:$4 sm:$0xff] (!%p15110_p7)   ;;  %v15711_v45 = vld [vmem:[#allocation8 + $0x124] ss:$16 sps:$4 sm:$0xff] (!%p15110_p7)  }
 0x722   : > { %v11164_v22 = vadd.f32 %v11163_v9, %v11123_v55  ;;  %v11165_v13 = vpop.f32.mrb[90].mxu1  ;;  %v15707_v55 = vld [vmem:[#allocation8 + $0x10c] ss:$16 sps:$4 sm:$0xff] (!%p15110_p7)   ;;  %13122 = vmatpush1.bf16.msra.mxu1 (!%p15110_p7), %v15704_v36  ;;  %12961 = vmatprep.subr.bf16.mxu0 (!%p15110_p7), %v15711_v45  ;;  %v15779_v36 = vld [vmem:[#allocation8 + $0x284] ss:$16 sps:$4 sm:$0xff] (!%p15110_p7)  }
 0x723   : > { %v11166_v60 = vpop.f32.mrb[91].mxu1  ;;  %13123 = vmatprep.subr.bf16.mxu1 (!%p15110_p7), %v15707_v55  ;;  %v15713_v9 = vld [vmem:[#allocation8 + $0x12c] ss:$16 sps:$4 sm:$0xff] (!%p15110_p7)   ;;  %v15716_v13 = vld [vmem:[#allocation8 + $0x128] ss:$16 sps:$4 sm:$0xff] (!%p15110_p7)  }
 0x724   : > { %v15717_v60 = vld [vmem:[#allocation8 + $0x144] ss:$16 sps:$4 sm:$0xff] (!%p15110_p7)   ;;  %v15777_v55 = vld [vmem:[#allocation8 + $0x280] ss:$16 sps:$4 sm:$0xff] (!%p15110_p7)  }
 0x725   : > { %v15785_v45 = vld [vmem:[#allocation8 + $0x2a4] ss:$16 sps:$4 sm:$0xff] (!%p15110_p7)  }
 0x726   : > { %13124 = vmatpush1.bf16.msra.mxu1 (!%p15110_p7), %v15710_v52  ;;  %v15780_v52 = vld [vmem:[#allocation8 + $0x288] ss:$16 sps:$4 sm:$0xff] (!%p15110_p7)  }
 0x727   : > { %13125 = vmatprep.subr.bf16.mxu1 (!%p15110_p7), %v15713_v9  ;;  %v15783_v9 = vld [vmem:[#allocation8 + $0x2a0] ss:$16 sps:$4 sm:$0xff] (!%p15110_p7)  }
 0x72a   : > { %13126 = vmatpush1.bf16.msra.mxu1 (!%p15110_p7), %v15716_v13  ;;  %v15786_v13 = vld [vmem:[#allocation8 + $0x2a8] ss:$16 sps:$4 sm:$0xff] (!%p15110_p7)  }
 0x73e   : > { %v11202_v19 = vpop.f32.mrb[88].mxu0 }
 0x73f   : > { %v11203_v26 = vadd.f32 %v11202_v19, %v11162_v63  ;;  %v11204_v61 = vpop.f32.mrb[89].mxu0  ;;  %v11321_v63 = vlaneseq (!%p15110_p7) }
 0x740   : > { %v11205_v49 = vadd.f32 %v11204_v61, %v11164_v22  ;;  %v11206_v14 = vpop.f32.mrb[90].mxu0  ;;  %v15715_v22 = vld [vmem:[#allocation8 + $0x120] ss:$16 sps:$4 sm:$0xff] (!%p15110_p7)  }
 0x741   : > { %v11207_v3 = vpop.f32.mrb[91].mxu0  ;;  %v18424_v19 = vshrl.u32 (!%p15110_p7), %v11321_v63, 7  ;;  %v15721_v61 = vld [vmem:[#allocation8 + $0x140] ss:$16 sps:$4 sm:$0xff] (!%p15110_p7)   ;;  %12962 = vmatpush1.bf16.msra.mxu0 (!%p15110_p7), %v15715_v22  ;;  %v15723_v14 = vld [vmem:[#allocation8 + $0x164] ss:$16 sps:$4 sm:$0xff] (!%p15110_p7)  }
 0x742   : > { %12963 = vmatprep.subr.bf16.mxu0 (!%p15110_p7), %v15717_v60  ;;  %v15788_v63 = vld [vmem:[#allocation8 + $0x2ac] ss:$16 sps:$4 sm:$0xff] (!%p15110_p7)   ;;  %v15791_v60 = vld [vmem:[#allocation8 + $0x2c4] ss:$16 sps:$4 sm:$0xff] (!%p15110_p7)  }
 0x743   : > { %v11327_v3 = vsub.s32 (!%p15110_p7), 1, %v18424_v19  ;;  %v11335_v8 = vsub.s32 (!%p15110_p7), 3, %v18424_v19 }
 0x745   : > { %12964 = vmatpush1.bf16.msra.mxu0 (!%p15110_p7), %v15721_v61  ;;  %v11314_v61 = vld [vmem:[#allocation2 + $0x18] sm:$0xff] (!%p15110_p7) }
 0x746   : > { %12965 = vmatprep.subr.bf16.mxu0 (!%p15110_p7), %v15723_v14 }
 0x75e   : > { %v11284_v47 = vpop.f32.mrb[92].mxu0 }
 0x75f   : > { %v11286_v58 = vpop.f32.mrb[93].mxu0 }
 0x760   : > { %v11243_v62 = vpop.f32.mrb[92].mxu1  ;;  %v11288_v30 = vpop.f32.mrb[94].mxu0 }
 0x761   : > { %v11244_v50 = vadd.f32 %v11243_v62, %v11203_v26  ;;  %v11245_v4 = vpop.f32.mrb[93].mxu1  ;;  %v11289_v33 = vpop.f32.mrb[95].mxu0  ;;  %v15719_v26 = vld [vmem:[#allocation8 + $0x14c] ss:$16 sps:$4 sm:$0xff] (!%p15110_p7)  }
 0x762   : > { %v11246_v18 = vadd.f32 %v11245_v4, %v11205_v49  ;;  %v11247_v40 = vpop.f32.mrb[94].mxu1  ;;  %11310 = sbr.rel (%p15110_p7) target bundleno = 2856 (0xb28), region = 80  ;;  %v15722_v49 = vld [vmem:[#allocation8 + $0x148] ss:$16 sps:$4 sm:$0xff] (!%p15110_p7)   ;;  %13127 = vmatprep.subr.bf16.mxu1 (!%p15110_p7), %v15719_v26  ;;  %v15733_v33 = vld [vmem:[#allocation8 + $0x180] ss:$16 sps:$4 sm:$0xff] (!%p15110_p7)  }
 0x763   : > { %v11285_v51 = vadd.f32 %v11284_v47, %v11244_v50  ;;  %v11248_v56 = vpop.f32.mrb[95].mxu1  ;;  %v15725_v47 = vld [vmem:[#allocation8 + $0x16c] ss:$16 sps:$4 sm:$0xff] (!%p15110_p7)   ;;  %13128 = vmatpush1.bf16.msra.mxu1 (!%p15110_p7), %v15722_v49  ;;  %v15727_v50 = vld [vmem:[#allocation8 + $0x160] ss:$16 sps:$4 sm:$0xff] (!%p15110_p7)  }
 0x764   : > { %v11287_v15 = vadd.f32 %v11286_v58, %v11246_v18  ;;  %v11312_v62 = vld [vmem:[#allocation2 + $0x8] sm:$0xff] (!%p15110_p7)  ;;  %v18427_v58 = vld [vmem:[#allocation7] sm:$0xff] (!%p15110_p7)  ;;  %13129 = vmatprep.subr.bf16.mxu1 (!%p15110_p7), %v15725_v47  ;;  %12966 = vmatpush1.bf16.msra.mxu0 (!%p15110_p7), %v15727_v50  ;;  %v15735_v56 = vld [vmem:[#allocation8 + $0x1a4] ss:$16 sps:$4 sm:$0xff] (!%p15110_p7)  }
 0x765   : > { %v11297_v43 = vadd.f32 %v11285_v51, %v396_v28  ;;  %v15728_v4 = vld [vmem:[#allocation8 + $0x168] ss:$16 sps:$4 sm:$0xff] (!%p15110_p7)   ;;  %v11328_v30 = vrot.slane (!%p15110_p7), %v18427_v58, %v11327_v3  ;;  %v15729_v28 = vld [vmem:[#allocation8 + $0x184] ss:$16 sps:$4 sm:$0xff] (!%p15110_p7)   ;;  %v15731_v18 = vld [vmem:[#allocation8 + $0x18c] ss:$16 sps:$4 sm:$0xff] (!%p15110_p7)   ;;  %v11336_v22 = vrot.slane (!%p15110_p7), %v18427_v58, %v11335_v8 }
 0x766   : > { %v11298_v24 = vadd.f32 %v11287_v15, %v397_v23  ;;  %v11323_v51 = vsub.s32 (!%p15110_p7), 0, %v18424_v19  ;;  %v15734_v23 = vld [vmem:[#allocation8 + $0x188] ss:$16 sps:$4 sm:$0xff] (!%p15110_p7)   ;;  %12967 = vmatprep.subr.bf16.mxu0 (!%p15110_p7), %v15729_v28  ;;  %v15794_v26 = vld [vmem:[#allocation8 + $0x2cc] ss:$16 sps:$4 sm:$0xff] (!%p15110_p7)  }
 0x767   : > { %11305 = vst [vmem:[#allocation2 + $0x30] sm:$0xff] %v11297_v43  ;;  %v11362_v40 = vadd.f32 (!%p15110_p7), %v11328_v30, %v11312_v62  ;;  %13130 = vmatpush1.bf16.msra.mxu1 (!%p15110_p7), %v15728_v4  ;;  %v15737_v43 = vld [vmem:[#allocation8 + $0x1ac] ss:$16 sps:$4 sm:$0xff] (!%p15110_p7)   ;;  %v15789_v49 = vld [vmem:[#allocation8 + $0x2c0] ss:$16 sps:$4 sm:$0xff] (!%p15110_p7)   ;;  %v11364_v14 = vadd.f32 (!%p15110_p7), %v11336_v22, %v11314_v61 }
 0x768   : > { %11306 = vst [vmem:[#allocation2 + $0x38] sm:$0xff] %v11298_v24  ;;  %13131 = vmatprep.subr.bf16.mxu1 (!%p15110_p7), %v15731_v18  ;;  %v11324_v42 = vrot.slane (!%p15110_p7), %v18427_v58, %v11323_v51  ;;  %12968 = vmatpush1.bf16.msra.mxu0 (!%p15110_p7), %v15733_v33  ;;  %v15792_v47 = vld [vmem:[#allocation8 + $0x2c8] ss:$16 sps:$4 sm:$0xff] (!%p15110_p7)   ;;  %v15797_v62 = vld [vmem:[#allocation8 + $0x2e4] ss:$16 sps:$4 sm:$0xff] (!%p15110_p7)  }
 0x769   : > { %v11370_v15 = vmax.f32 %v11362_v40, 0.0  ;;  %12969 = vmatprep.subr.bf16.mxu0 %v15735_v56  ;;  %v15800_v50 = vld [vmem:[#allocation8 + $0x2ec] ss:$16 sps:$4 sm:$0xff]   ;;  %v11372_v4 = vmax.f32 %v11364_v14, 0.0  ;;  %v15795_v30 = vld [vmem:[#allocation8 + $0x2e0] ss:$16 sps:$4 sm:$0xff]  }
 0x76a   : > { %v11361_v53 = vadd.f32 %v11324_v42, %v11311_v0  ;;  %v15798_v18 = vld [vmem:[#allocation8 + $0x2e8] ss:$16 sps:$4 sm:$0xff]   ;;  %v15803_v40 = vld [vmem:[#allocation8 + $0x304] ss:$16 sps:$4 sm:$0xff]   ;;  %v15806_v33 = vld [vmem:[#allocation8 + $0x30c] ss:$16 sps:$4 sm:$0xff]  }
 0x76b   : > { %v11378_v24 = vpack.c.bf16 %v11370_v15, %v11370_v15  ;;  %13132 = vmatpush1.bf16.msra.mxu1 %v15734_v23  ;;  %v11380_v28 = vpack.c.bf16 %v11372_v4, %v11372_v4  ;;  %v15801_v23 = vld [vmem:[#allocation8 + $0x300] ss:$16 sps:$4 sm:$0xff]   ;;  %v15804_v56 = vld [vmem:[#allocation8 + $0x308] ss:$16 sps:$4 sm:$0xff]   ;;  %v15809_v15 = vld [vmem:[#allocation8 + $0x324] ss:$16 sps:$4 sm:$0xff]  }
 0x76c   : > { %13133 = vmatprep.subr.bf16.mxu1 %v15737_v43  ;;  %12970 = vmatpush1.bf16.msra.mxu0 %v15739_v21  ;;  %v11369_v2 = vmax.f32 %v11361_v53, 0.0  ;;  %v15812_v43 = vld [vmem:[#allocation8 + $0x32c] ss:$16 sps:$4 sm:$0xff]   ;;  %v15810_v21 = vld [vmem:[#allocation8 + $0x328] ss:$16 sps:$4 sm:$0xff]  }
 0x76d   : > { %12975 = vmatprep.mubr.bf16.mxu0 %v11378_v24  ;;  %13139 = vmatprep.mubr.bf16.mxu1 %v11378_v24  ;;  %v15807_v24 = vld [vmem:[#allocation8 + $0x320] ss:$16 sps:$4 sm:$0xff]   ;;  %v15818_v42 = vld [vmem:[#allocation8 + $0x34c] ss:$16 sps:$4 sm:$0xff]   ;;  %v15816_v0 = vld [vmem:[#allocation8 + $0x348] ss:$16 sps:$4 sm:$0xff]  }
 0x76e   : > { %12971 = vmatprep.subr.bf16.mxu0 %v15741_v20  ;;  %v11377_v34 = vpack.c.bf16 %v11369_v2, %v11369_v2  ;;  %v15813_v20 = vld [vmem:[#allocation8 + $0x340] ss:$16 sps:$4 sm:$0xff]   ;;  %v11331_v2 = vsub.s32 2, %v18424_v19  ;;  %v15860_v22 = vld [vmem:[#allocation8 + $0x42c] ss:$16 sps:$4 sm:$0xff]  }
 0x76f   : > { %13134 = vmatpush1.bf16.msra.mxu1 %v15740_v25  ;;  %v15815_v25 = vld [vmem:[#allocation8 + $0x344] ss:$16 sps:$4 sm:$0xff]   ;;  %v15819_v53 = vld [vmem:[#allocation8 + $0x360] ss:$16 sps:$4 sm:$0xff]   ;;  %v15858_v61 = vld [vmem:[#allocation8 + $0x428] ss:$16 sps:$4 sm:$0xff]  }
 0x770   : > { %13135 = vmatprep.subr.bf16.mxu1 %v15743_v41  ;;  %12972 = vmatpush1.bf16.msra.mxu0 %v15745_v59  ;;  %v15821_v41 = vld [vmem:[#allocation8 + $0x364] ss:$16 sps:$4 sm:$0xff]   ;;  %v15824_v59 = vld [vmem:[#allocation8 + $0x36c] ss:$16 sps:$4 sm:$0xff]   ;;  %v15864_v4 = vld [vmem:[#allocation8 + $0x448] ss:$16 sps:$4 sm:$0xff]  }
 0x771   : > { %12973 = vmatprep.subr.bf16.mxu0 %v15747_v29  ;;  %v15827_v29 = vld [vmem:[#allocation8 + $0x384] ss:$16 sps:$4 sm:$0xff]  }
 0x773   : > { %13136 = vmatpush1.bf16.msra.mxu1 %v15746_v46  ;;  %v15822_v46 = vld [vmem:[#allocation8 + $0x368] ss:$16 sps:$4 sm:$0xff]  }
 0x774   : > { %13137 = vmatprep.subr.bf16.mxu1 %v15749_v12  ;;  %12974 = vmatpush1.bf16.msra.mxu0 %v15751_v38  ;;  %v15830_v12 = vld [vmem:[#allocation8 + $0x38c] ss:$16 sps:$4 sm:$0xff]   ;;  %v15825_v38 = vld [vmem:[#allocation8 + $0x380] ss:$16 sps:$4 sm:$0xff]  }
 0x775   : > { %12984 = vmatprep.subr.bf16.mxu0 %v15755_v27  ;;  %v15833_v27 = vld [vmem:[#allocation8 + $0x3a4] ss:$16 sps:$4 sm:$0xff]  }
 0x777   : > { %13138 = vmatpush1.bf16.msra.mxu1 %v15752_v39  ;;  %12976 = vmatmul.mubr.bf16.vlgmr.msra.gmra.mrb[0].mxu0 %v11377_v34  ;;  %v15828_v39 = vld [vmem:[#allocation8 + $0x388] ss:$16 sps:$4 sm:$0xff]  }
 0x778   : > { %13148 = vmatprep.subr.bf16.mxu1 %v15758_v35  ;;  %12985 = vmatpush1.bf16.msra.mxu0 %v15753_v5  ;;  %v15836_v35 = vld [vmem:[#allocation8 + $0x3ac] ss:$16 sps:$4 sm:$0xff]   ;;  %v15831_v5 = vld [vmem:[#allocation8 + $0x3a0] ss:$16 sps:$4 sm:$0xff]  }
 0x779   : > { %12986 = vmatprep.subr.bf16.mxu0 %v15761_v17  ;;  %13016 = vmatprep.mubr.bf16.mxu0 %v11380_v28  ;;  %v11313_v17 = vld [vmem:[#allocation2 + $0x10] sm:$0xff] }
 0x77a   : > { %13140 = vmatmul.mubr.bf16.vlgmr.msra.gmra.mrb[0].mxu1 %v11377_v34  ;;  %v15834_v34 = vld [vmem:[#allocation8 + $0x3a8] ss:$16 sps:$4 sm:$0xff]  }
 0x77b   : > { %13149 = vmatpush1.bf16.msra.mxu1 %v15756_v31  ;;  %13180 = vmatprep.mubr.bf16.mxu1 %v11380_v28  ;;  %v11332_v31 = vrot.slane %v18427_v58, %v11331_v2  ;;  %v15872_v28 = vld [vmem:[#allocation8 + $0x46c] ss:$16 sps:$4 sm:$0xff]  }
 0x77c   : > { %13150 = vmatprep.subr.bf16.mxu1 %v15764_v32  ;;  %12987 = vmatpush1.bf16.msra.mxu0 %v15759_v11  ;;  %v15839_v32 = vld [vmem:[#allocation8 + $0x3c4] ss:$16 sps:$4 sm:$0xff]   ;;  %v15842_v11 = vld [vmem:[#allocation8 + $0x3cc] ss:$16 sps:$4 sm:$0xff]  }
 0x77d   : > { %12988 = vmatprep.subr.bf16.mxu0 %v15767_v1  ;;  %v11363_v1 = vadd.f32 %v11332_v31, %v11313_v17  ;;  %v15906_v31 = vld [vmem:[#allocation8 + $0x528] ss:$16 sps:$4 sm:$0xff]   ;;  %v15911_v17 = vld [vmem:[#allocation8 + $0x544] ss:$16 sps:$4 sm:$0xff]  }
 0x77f   : > { %13151 = vmatpush1.bf16.msra.mxu1 %v15762_v54  ;;  %v15837_v54 = vld [vmem:[#allocation8 + $0x3c0] ss:$16 sps:$4 sm:$0xff]  }
 0x780   : > { %13152 = vmatprep.subr.bf16.mxu1 %v15770_v7  ;;  %12989 = vmatpush1.bf16.msra.mxu0 %v15765_v16  ;;  %v15840_v7 = vld [vmem:[#allocation8 + $0x3c8] ss:$16 sps:$4 sm:$0xff]   ;;  %v15845_v16 = vld [vmem:[#allocation8 + $0x3e4] ss:$16 sps:$4 sm:$0xff]  }
 0x781   : > { %12990 = vmatprep.subr.bf16.mxu0 %v15773_v37  ;;  %v11343_v37 = vsub.s32 5, %v18424_v19 }
 0x783   : > { %13153 = vmatpush1.bf16.msra.mxu1 %v15768_v48  ;;  %v15848_v48 = vld [vmem:[#allocation8 + $0x3ec] ss:$16 sps:$4 sm:$0xff]  }
 0x784   : > { %13154 = vmatprep.subr.bf16.mxu1 %v15776_v44  ;;  %12991 = vmatpush1.bf16.msra.mxu0 %v15771_v6  ;;  %v15843_v44 = vld [vmem:[#allocation8 + $0x3e0] ss:$16 sps:$4 sm:$0xff]   ;;  %v11371_v6 = vmax.f32 %v11363_v1, 0.0  ;;  %v15917_v1 = vld [vmem:[#allocation8 + $0x564] ss:$16 sps:$4 sm:$0xff]  }
 0x785   : > { %12992 = vmatprep.subr.bf16.mxu0 %v15779_v36  ;;  %v15851_v36 = vld [vmem:[#allocation8 + $0x404] ss:$16 sps:$4 sm:$0xff]  }
 0x787   : > { %13155 = vmatpush1.bf16.msra.mxu1 %v15774_v57  ;;  %v15846_v57 = vld [vmem:[#allocation8 + $0x3e8] ss:$16 sps:$4 sm:$0xff]  }
 0x788   : > { %13156 = vmatprep.subr.bf16.mxu1 %v15782_v10  ;;  %12993 = vmatpush1.bf16.msra.mxu0 %v15777_v55  ;;  %v15854_v10 = vld [vmem:[#allocation8 + $0x40c] ss:$16 sps:$4 sm:$0xff]   ;;  %v11344_v55 = vrot.slane %v18427_v58, %v11343_v37  ;;  %v15923_v37 = vld [vmem:[#allocation8 + $0x584] ss:$16 sps:$4 sm:$0xff]  }
 0x789   : > { %12994 = vmatprep.subr.bf16.mxu0 %v15785_v45  ;;  %v11379_v45 = vpack.c.bf16 %v11371_v6, %v11371_v6  ;;  %v11339_v6 = vsub.s32 4, %v18424_v19 }
 0x78b   : > { %13157 = vmatpush1.bf16.msra.mxu1 %v15780_v52  ;;  %v15849_v52 = vld [vmem:[#allocation8 + $0x400] ss:$16 sps:$4 sm:$0xff]  }
 0x78c   : > { %13158 = vmatprep.subr.bf16.mxu1 %v15788_v63  ;;  %12995 = vmatpush1.bf16.msra.mxu0 %v15783_v9  ;;  %v15852_v63 = vld [vmem:[#allocation8 + $0x408] ss:$16 sps:$4 sm:$0xff]   ;;  %v15857_v9 = vld [vmem:[#allocation8 + $0x424] ss:$16 sps:$4 sm:$0xff]  }
 0x78d   : > { %12996 = vmatprep.subr.bf16.mxu0 %v15791_v60 }
 0x78f   : > { %13159 = vmatpush1.bf16.msra.mxu1 %v15786_v13  ;;  %v11316_v13 = vld [vmem:[#allocation2 + $0x28] sm:$0xff] }
 0x790   : > { %13160 = vmatprep.subr.bf16.mxu1 %v15794_v26  ;;  %12997 = vmatpush1.bf16.msra.mxu0 %v15789_v49  ;;  %v11366_v60 = vadd.f32 %v11344_v55, %v11316_v13  ;;  %v15855_v26 = vld [vmem:[#allocation8 + $0x420] ss:$16 sps:$4 sm:$0xff]   ;;  %v15863_v49 = vld [vmem:[#allocation8 + $0x444] ss:$16 sps:$4 sm:$0xff]   ;;  %v15932_v55 = vld [vmem:[#allocation8 + $0x5ac] ss:$16 sps:$4 sm:$0xff]  }
 0x791   : > { %12998 = vmatprep.subr.bf16.mxu0 %v15797_v62  ;;  %v15935_v13 = vld [vmem:[#allocation8 + $0x5c4] ss:$16 sps:$4 sm:$0xff]  }
 0x792   : > { %v11374_v14 = vmax.f32 %v11366_v60, 0.0  ;;  %v15938_v60 = vld [vmem:[#allocation8 + $0x5cc] ss:$16 sps:$4 sm:$0xff]  }
 0x793   : > { %13161 = vmatpush1.bf16.msra.mxu1 %v15792_v47  ;;  %v15866_v47 = vld [vmem:[#allocation8 + $0x44c] ss:$16 sps:$4 sm:$0xff]  }
 0x794   : > { %13162 = vmatprep.subr.bf16.mxu1 %v15800_v50  ;;  %12999 = vmatpush1.bf16.msra.mxu0 %v15795_v30  ;;  %v11382_v62 = vpack.c.bf16 %v11374_v14, %v11374_v14  ;;  %v15861_v50 = vld [vmem:[#allocation8 + $0x440] ss:$16 sps:$4 sm:$0xff]   ;;  %v15869_v30 = vld [vmem:[#allocation8 + $0x464] ss:$16 sps:$4 sm:$0xff]   ;;  %v11318_v14 = vld [vmem:[#allocation2 + $0x38] sm:$0xff] }
 0x795   : > { %13000 = vmatprep.subr.bf16.mxu0 %v15803_v40  ;;  %v15870_v40 = vld [vmem:[#allocation8 + $0x468] ss:$16 sps:$4 sm:$0xff]  }
 0x797   : > { %13163 = vmatpush1.bf16.msra.mxu1 %v15798_v18  ;;  %v15867_v18 = vld [vmem:[#allocation8 + $0x460] ss:$16 sps:$4 sm:$0xff]  }
 0x798   : > { %13164 = vmatprep.subr.bf16.mxu1 %v15806_v33  ;;  %13001 = vmatpush1.bf16.msra.mxu0 %v15801_v23  ;;  %v15875_v33 = vld [vmem:[#allocation8 + $0x484] ss:$16 sps:$4 sm:$0xff]   ;;  %v15878_v23 = vld [vmem:[#allocation8 + $0x48c] ss:$16 sps:$4 sm:$0xff]  }
 0x799   : > { %13002 = vmatprep.subr.bf16.mxu0 %v15809_v15  ;;  %v15876_v15 = vld [vmem:[#allocation8 + $0x488] ss:$16 sps:$4 sm:$0xff]  }
 0x79b   : > { %13165 = vmatpush1.bf16.msra.mxu1 %v15804_v56  ;;  %v15873_v56 = vld [vmem:[#allocation8 + $0x480] ss:$16 sps:$4 sm:$0xff]  }
 0x79c   : > { %13166 = vmatprep.subr.bf16.mxu1 %v15812_v43  ;;  %13003 = vmatpush1.bf16.msra.mxu0 %v15807_v24  ;;  %v15881_v43 = vld [vmem:[#allocation8 + $0x4a4] ss:$16 sps:$4 sm:$0xff]   ;;  %v15884_v24 = vld [vmem:[#allocation8 + $0x4ac] ss:$16 sps:$4 sm:$0xff]  }
 0x79d   : > { %13004 = vmatprep.subr.bf16.mxu0 %v15815_v25  ;;  %v15882_v25 = vld [vmem:[#allocation8 + $0x4a8] ss:$16 sps:$4 sm:$0xff]  }
 0x79f   : > { %13167 = vmatpush1.bf16.msra.mxu1 %v15810_v21  ;;  %v15879_v21 = vld [vmem:[#allocation8 + $0x4a0] ss:$16 sps:$4 sm:$0xff]  }
 0x7a0   : > { %13168 = vmatprep.subr.bf16.mxu1 %v15818_v42  ;;  %13005 = vmatpush1.bf16.msra.mxu0 %v15813_v20  ;;  %v15887_v42 = vld [vmem:[#allocation8 + $0x4c4] ss:$16 sps:$4 sm:$0xff]   ;;  %v15890_v20 = vld [vmem:[#allocation8 + $0x4cc] ss:$16 sps:$4 sm:$0xff]  }
 0x7a1   : > { %13006 = vmatprep.subr.bf16.mxu0 %v15821_v41  ;;  %v15888_v41 = vld [vmem:[#allocation8 + $0x4c8] ss:$16 sps:$4 sm:$0xff]  }
 0x7a3   : > { %13169 = vmatpush1.bf16.msra.mxu1 %v15816_v0  ;;  %v15885_v0 = vld [vmem:[#allocation8 + $0x4c0] ss:$16 sps:$4 sm:$0xff]  }
 0x7a4   : > { %13170 = vmatprep.subr.bf16.mxu1 %v15824_v59  ;;  %13007 = vmatpush1.bf16.msra.mxu0 %v15819_v53  ;;  %v15893_v59 = vld [vmem:[#allocation8 + $0x4e4] ss:$16 sps:$4 sm:$0xff]   ;;  %v15896_v53 = vld [vmem:[#allocation8 + $0x4ec] ss:$16 sps:$4 sm:$0xff]  }
 0x7a5   : > { %13008 = vmatprep.subr.bf16.mxu0 %v15827_v29  ;;  %v15894_v29 = vld [vmem:[#allocation8 + $0x4e8] ss:$16 sps:$4 sm:$0xff]  }
 0x7a7   : > { %13171 = vmatpush1.bf16.msra.mxu1 %v15822_v46  ;;  %v15891_v46 = vld [vmem:[#allocation8 + $0x4e0] ss:$16 sps:$4 sm:$0xff]  }
 0x7a8   : > { %13172 = vmatprep.subr.bf16.mxu1 %v15830_v12  ;;  %13009 = vmatpush1.bf16.msra.mxu0 %v15825_v38  ;;  %v15899_v12 = vld [vmem:[#allocation8 + $0x504] ss:$16 sps:$4 sm:$0xff]   ;;  %v15902_v38 = vld [vmem:[#allocation8 + $0x50c] ss:$16 sps:$4 sm:$0xff]  }
 0x7a9   : > { %13010 = vmatprep.subr.bf16.mxu0 %v15833_v27  ;;  %v15900_v27 = vld [vmem:[#allocation8 + $0x508] ss:$16 sps:$4 sm:$0xff]  }
 0x7ab   : > { %13173 = vmatpush1.bf16.msra.mxu1 %v15828_v39  ;;  %v15897_v39 = vld [vmem:[#allocation8 + $0x500] ss:$16 sps:$4 sm:$0xff]  }
 0x7ac   : > { %13174 = vmatprep.subr.bf16.mxu1 %v15836_v35  ;;  %13011 = vmatpush1.bf16.msra.mxu0 %v15831_v5  ;;  %v15905_v35 = vld [vmem:[#allocation8 + $0x524] ss:$16 sps:$4 sm:$0xff]   ;;  %v15908_v5 = vld [vmem:[#allocation8 + $0x52c] ss:$16 sps:$4 sm:$0xff]  }
 0x7ad   : > { %13012 = vmatprep.subr.bf16.mxu0 %v15839_v32  ;;  %v15914_v32 = vld [vmem:[#allocation8 + $0x54c] ss:$16 sps:$4 sm:$0xff]  }
 0x7af   : > { %13175 = vmatpush1.bf16.msra.mxu1 %v15834_v34  ;;  %v15903_v34 = vld [vmem:[#allocation8 + $0x520] ss:$16 sps:$4 sm:$0xff]  }
 0x7b0   : > { %13176 = vmatprep.subr.bf16.mxu1 %v15842_v11  ;;  %13013 = vmatpush1.bf16.msra.mxu0 %v15837_v54  ;;  %v15909_v11 = vld [vmem:[#allocation8 + $0x540] ss:$16 sps:$4 sm:$0xff]   ;;  %v15912_v54 = vld [vmem:[#allocation8 + $0x548] ss:$16 sps:$4 sm:$0xff]  }
 0x7b1   : > { %13014 = vmatprep.subr.bf16.mxu0 %v15845_v16  ;;  %v15915_v16 = vld [vmem:[#allocation8 + $0x560] ss:$16 sps:$4 sm:$0xff]  }
 0x7b3   : > { %13177 = vmatpush1.bf16.msra.mxu1 %v15840_v7  ;;  %v15920_v7 = vld [vmem:[#allocation8 + $0x56c] ss:$16 sps:$4 sm:$0xff]  }
 0x7b4   : > { %13178 = vmatprep.subr.bf16.mxu1 %v15848_v48  ;;  %13015 = vmatpush1.bf16.msra.mxu0 %v15843_v44  ;;  %v15918_v48 = vld [vmem:[#allocation8 + $0x568] ss:$16 sps:$4 sm:$0xff]   ;;  %v15926_v44 = vld [vmem:[#allocation8 + $0x58c] ss:$16 sps:$4 sm:$0xff]  }
 0x7b5   : > { %13025 = vmatprep.subr.bf16.mxu0 %v15851_v36  ;;  %v15924_v36 = vld [vmem:[#allocation8 + $0x588] ss:$16 sps:$4 sm:$0xff]  }
 0x7b7   : > { %13179 = vmatpush1.bf16.msra.mxu1 %v15846_v57  ;;  %13017 = vmatmul.mubr.bf16.vlgmr.msra.gmra.mrb[0].mxu0 %v11379_v45  ;;  %v15921_v57 = vld [vmem:[#allocation8 + $0x580] ss:$16 sps:$4 sm:$0xff]  }
 0x7b8   : > { %13189 = vmatprep.subr.bf16.mxu1 %v15854_v10  ;;  %13026 = vmatpush1.bf16.msra.mxu0 %v15849_v52  ;;  %v15929_v10 = vld [vmem:[#allocation8 + $0x5a4] ss:$16 sps:$4 sm:$0xff]   ;;  %v11351_v52 = vsub.s32 7, %v18424_v19 }
 0x7b9   : > { %13027 = vmatprep.subr.bf16.mxu0 %v15857_v9  ;;  %13057 = vmatprep.mubr.bf16.mxu0 %v11382_v62  ;;  %v15930_v9 = vld [vmem:[#allocation8 + $0x5a8] ss:$16 sps:$4 sm:$0xff]  }
 0x7ba   : > { %13181 = vmatmul.mubr.bf16.vlgmr.msra.gmra.mrb[0].mxu1 %v11379_v45  ;;  %v11340_v45 = vrot.slane %v18427_v58, %v11339_v6  ;;  %v15941_v58 = vld [vmem:[#allocation8 + $0x5e4] ss:$16 sps:$4 sm:$0xff]  }
 0x7bb   : > { %13190 = vmatpush1.bf16.msra.mxu1 %v15852_v63  ;;  %13221 = vmatprep.mubr.bf16.mxu1 %v11382_v62  ;;  %v15927_v63 = vld [vmem:[#allocation8 + $0x5a0] ss:$16 sps:$4 sm:$0xff]   ;;  %v15936_v62 = vld [vmem:[#allocation8 + $0x5c8] ss:$16 sps:$4 sm:$0xff]   ;;  %v15995_v6 = vld [vmem:[#allocation8 + $0x704] ss:$16 sps:$4 sm:$0xff]  }
 0x7bc   : > { %13191 = vmatprep.subr.bf16.mxu1 %v15860_v22  ;;  %13028 = vmatpush1.bf16.msra.mxu0 %v15855_v26  ;;  %v11315_v22 = vld [vmem:[#allocation2 + $0x20] sm:$0xff]  ;;  %v18449_v26 = vld [vmem:[#allocation7] sm:$0xff] }
 0x7bd   : > { %13029 = vmatprep.subr.bf16.mxu0 %v15863_v49  ;;  %v11365_v49 = vadd.f32 %v11340_v45, %v11315_v22  ;;  %v15999_v45 = vld [vmem:[#allocation8 + $0x720] ss:$16 sps:$4 sm:$0xff]   ;;  %v16010_v22 = vld [vmem:[#allocation8 + $0x74c] ss:$16 sps:$4 sm:$0xff]  }
 0x7bf   : > { %13192 = vmatpush1.bf16.msra.mxu1 %v15858_v61  ;;  %v11352_v61 = vrot.slane %v18449_v26, %v11351_v52  ;;  %v16004_v52 = vld [vmem:[#allocation8 + $0x72c] ss:$16 sps:$4 sm:$0xff]  }
 0x7c0   : > { %13193 = vmatprep.subr.bf16.mxu1 %v15866_v47  ;;  %13030 = vmatpush1.bf16.msra.mxu0 %v15861_v50  ;;  %v15933_v47 = vld [vmem:[#allocation8 + $0x5c0] ss:$16 sps:$4 sm:$0xff]   ;;  %v15944_v50 = vld [vmem:[#allocation8 + $0x5ec] ss:$16 sps:$4 sm:$0xff]  }
 0x7c1   : > { %13031 = vmatprep.subr.bf16.mxu0 %v15869_v30  ;;  %v11373_v30 = vmax.f32 %v11365_v49, 0.0  ;;  %v16016_v49 = vld [vmem:[#allocation8 + $0x76c] ss:$16 sps:$4 sm:$0xff]  }
 0x7c3   : > { %13194 = vmatpush1.bf16.msra.mxu1 %v15864_v4  ;;  %v11368_v4 = vadd.f32 %v11352_v61, %v11318_v14  ;;  %v16013_v61 = vld [vmem:[#allocation8 + $0x764] ss:$16 sps:$4 sm:$0xff]   ;;  %v16011_v14 = vld [vmem:[#allocation8 + $0x760] ss:$16 sps:$4 sm:$0xff]  }
 0x7c4   : > { %13195 = vmatprep.subr.bf16.mxu1 %v15872_v28  ;;  %13032 = vmatpush1.bf16.msra.mxu0 %v15867_v18  ;;  %v15939_v28 = vld [vmem:[#allocation8 + $0x5e0] ss:$16 sps:$4 sm:$0xff]   ;;  %v15942_v18 = vld [vmem:[#allocation8 + $0x5e8] ss:$16 sps:$4 sm:$0xff]  }
 0x7c5   : > { %13033 = vmatprep.subr.bf16.mxu0 %v15875_v33  ;;  %v15950_v33 = vld [vmem:[#allocation8 + $0x60c] ss:$16 sps:$4 sm:$0xff]  }
 0x7c7   : > { %13196 = vmatpush1.bf16.msra.mxu1 %v15870_v40  ;;  %v15947_v40 = vld [vmem:[#allocation8 + $0x604] ss:$16 sps:$4 sm:$0xff]  }
 0x7c8   : > { %13197 = vmatprep.subr.bf16.mxu1 %v15878_v23  ;;  %13034 = vmatpush1.bf16.msra.mxu0 %v15873_v56  ;;  %v11376_v23 = vmax.f32 %v11368_v4, 0.0  ;;  %v11381_v56 = vpack.c.bf16 %v11373_v30, %v11373_v30  ;;  %v16017_v4 = vld [vmem:[#allocation8 + $0x780] ss:$16 sps:$4 sm:$0xff]   ;;  %v16020_v30 = vld [vmem:[#allocation8 + $0x788] ss:$16 sps:$4 sm:$0xff]  }
 0x7c9   : > { %13035 = vmatprep.subr.bf16.mxu0 %v15881_v43  ;;  %v15948_v43 = vld [vmem:[#allocation8 + $0x608] ss:$16 sps:$4 sm:$0xff]  }
 0x7cb   : > { %13198 = vmatpush1.bf16.msra.mxu1 %v15876_v15  ;;  %v15945_v15 = vld [vmem:[#allocation8 + $0x600] ss:$16 sps:$4 sm:$0xff]  }
 0x7cc   : > { %13199 = vmatprep.subr.bf16.mxu1 %v15884_v24  ;;  %13036 = vmatpush1.bf16.msra.mxu0 %v15879_v21  ;;  %v15953_v24 = vld [vmem:[#allocation8 + $0x624] ss:$16 sps:$4 sm:$0xff]   ;;  %v15956_v21 = vld [vmem:[#allocation8 + $0x62c] ss:$16 sps:$4 sm:$0xff]  }
 0x7cd   : > { %13037 = vmatprep.subr.bf16.mxu0 %v15887_v42  ;;  %v15951_v42 = vld [vmem:[#allocation8 + $0x620] ss:$16 sps:$4 sm:$0xff]  }
 0x7cf   : > { %13200 = vmatpush1.bf16.msra.mxu1 %v15882_v25  ;;  %v11384_v25 = vpack.c.bf16 %v11376_v23, %v11376_v23  ;;  %v16026_v23 = vld [vmem:[#allocation8 + $0x7a8] ss:$16 sps:$4 sm:$0xff]  }
 0x7d0   : > { %13201 = vmatprep.subr.bf16.mxu1 %v15890_v20  ;;  %13038 = vmatpush1.bf16.msra.mxu0 %v15885_v0  ;;  %v15954_v20 = vld [vmem:[#allocation8 + $0x628] ss:$16 sps:$4 sm:$0xff]   ;;  %v15959_v0 = vld [vmem:[#allocation8 + $0x644] ss:$16 sps:$4 sm:$0xff]  }
 0x7d1   : > { %13039 = vmatprep.subr.bf16.mxu0 %v15893_v59  ;;  %v15957_v59 = vld [vmem:[#allocation8 + $0x640] ss:$16 sps:$4 sm:$0xff]  }
 0x7d3   : > { %13202 = vmatpush1.bf16.msra.mxu1 %v15888_v41  ;;  %v15962_v41 = vld [vmem:[#allocation8 + $0x64c] ss:$16 sps:$4 sm:$0xff]  }
 0x7d4   : > { %13203 = vmatprep.subr.bf16.mxu1 %v15896_v53  ;;  %13040 = vmatpush1.bf16.msra.mxu0 %v15891_v46  ;;  %v15960_v53 = vld [vmem:[#allocation8 + $0x648] ss:$16 sps:$4 sm:$0xff]   ;;  %v15965_v46 = vld [vmem:[#allocation8 + $0x664] ss:$16 sps:$4 sm:$0xff]  }
 0x7d5   : > { %13041 = vmatprep.subr.bf16.mxu0 %v15899_v12  ;;  %v15963_v12 = vld [vmem:[#allocation8 + $0x660] ss:$16 sps:$4 sm:$0xff]  }
 0x7d7   : > { %13204 = vmatpush1.bf16.msra.mxu1 %v15894_v29  ;;  %v15968_v29 = vld [vmem:[#allocation8 + $0x66c] ss:$16 sps:$4 sm:$0xff]  }
 0x7d8   : > { %13205 = vmatprep.subr.bf16.mxu1 %v15902_v38  ;;  %13042 = vmatpush1.bf16.msra.mxu0 %v15897_v39  ;;  %v15966_v38 = vld [vmem:[#allocation8 + $0x668] ss:$16 sps:$4 sm:$0xff]   ;;  %v15971_v39 = vld [vmem:[#allocation8 + $0x684] ss:$16 sps:$4 sm:$0xff]  }
 0x7d9   : > { %13043 = vmatprep.subr.bf16.mxu0 %v15905_v35  ;;  %v15969_v35 = vld [vmem:[#allocation8 + $0x680] ss:$16 sps:$4 sm:$0xff]  }
 0x7db   : > { %13206 = vmatpush1.bf16.msra.mxu1 %v15900_v27  ;;  %v15974_v27 = vld [vmem:[#allocation8 + $0x68c] ss:$16 sps:$4 sm:$0xff]  }
 0x7dc   : > { %13207 = vmatprep.subr.bf16.mxu1 %v15908_v5  ;;  %13044 = vmatpush1.bf16.msra.mxu0 %v15903_v34  ;;  %v15972_v5 = vld [vmem:[#allocation8 + $0x688] ss:$16 sps:$4 sm:$0xff]   ;;  %v15977_v34 = vld [vmem:[#allocation8 + $0x6a4] ss:$16 sps:$4 sm:$0xff]  }
 0x7dd   : > { %13045 = vmatprep.subr.bf16.mxu0 %v15911_v17  ;;  %v15975_v17 = vld [vmem:[#allocation8 + $0x6a0] ss:$16 sps:$4 sm:$0xff]  }
 0x7df   : > { %13208 = vmatpush1.bf16.msra.mxu1 %v15906_v31  ;;  %v15980_v31 = vld [vmem:[#allocation8 + $0x6ac] ss:$16 sps:$4 sm:$0xff]  }
 0x7e0   : > { %13209 = vmatprep.subr.bf16.mxu1 %v15914_v32  ;;  %13046 = vmatpush1.bf16.msra.mxu0 %v15909_v11  ;;  %v15978_v32 = vld [vmem:[#allocation8 + $0x6a8] ss:$16 sps:$4 sm:$0xff]   ;;  %v15983_v11 = vld [vmem:[#allocation8 + $0x6c4] ss:$16 sps:$4 sm:$0xff]  }
 0x7e1   : > { %13047 = vmatprep.subr.bf16.mxu0 %v15917_v1  ;;  %v15981_v1 = vld [vmem:[#allocation8 + $0x6c0] ss:$16 sps:$4 sm:$0xff]  }
 0x7e3   : > { %13210 = vmatpush1.bf16.msra.mxu1 %v15912_v54  ;;  %v15986_v54 = vld [vmem:[#allocation8 + $0x6cc] ss:$16 sps:$4 sm:$0xff]  }
 0x7e4   : > { %13211 = vmatprep.subr.bf16.mxu1 %v15920_v7  ;;  %13048 = vmatpush1.bf16.msra.mxu0 %v15915_v16  ;;  %v15984_v7 = vld [vmem:[#allocation8 + $0x6c8] ss:$16 sps:$4 sm:$0xff]   ;;  %v15989_v16 = vld [vmem:[#allocation8 + $0x6e4] ss:$16 sps:$4 sm:$0xff]  }
 0x7e5   : > { %13049 = vmatprep.subr.bf16.mxu0 %v15923_v37  ;;  %v15987_v37 = vld [vmem:[#allocation8 + $0x6e0] ss:$16 sps:$4 sm:$0xff]  }
 0x7e7   : > { %13212 = vmatpush1.bf16.msra.mxu1 %v15918_v48  ;;  %v15992_v48 = vld [vmem:[#allocation8 + $0x6ec] ss:$16 sps:$4 sm:$0xff]  }
 0x7e8   : > { %13213 = vmatprep.subr.bf16.mxu1 %v15926_v44  ;;  %13050 = vmatpush1.bf16.msra.mxu0 %v15921_v57  ;;  %v15990_v44 = vld [vmem:[#allocation8 + $0x6e8] ss:$16 sps:$4 sm:$0xff]   ;;  %v15998_v57 = vld [vmem:[#allocation8 + $0x70c] ss:$16 sps:$4 sm:$0xff]  }
 0x7e9   : > { %13051 = vmatprep.subr.bf16.mxu0 %v15929_v10  ;;  %v15996_v10 = vld [vmem:[#allocation8 + $0x708] ss:$16 sps:$4 sm:$0xff]  }
 0x7eb   : > { %13214 = vmatpush1.bf16.msra.mxu1 %v15924_v36  ;;  %v15993_v36 = vld [vmem:[#allocation8 + $0x700] ss:$16 sps:$4 sm:$0xff]  }
 0x7ec   : > { %13215 = vmatprep.subr.bf16.mxu1 %v15932_v55  ;;  %13052 = vmatpush1.bf16.msra.mxu0 %v15927_v63  ;;  %v16001_v55 = vld [vmem:[#allocation8 + $0x724] ss:$16 sps:$4 sm:$0xff]   ;;  %v16002_v63 = vld [vmem:[#allocation8 + $0x728] ss:$16 sps:$4 sm:$0xff]  }
 0x7ed   : > { %13053 = vmatprep.subr.bf16.mxu0 %v15935_v13  ;;  %v16005_v13 = vld [vmem:[#allocation8 + $0x740] ss:$16 sps:$4 sm:$0xff]  }
 0x7ef   : > { %13216 = vmatpush1.bf16.msra.mxu1 %v15930_v9  ;;  %v16007_v9 = vld [vmem:[#allocation8 + $0x744] ss:$16 sps:$4 sm:$0xff]  }
 0x7f0   : > { %13217 = vmatprep.subr.bf16.mxu1 %v15938_v60  ;;  %13054 = vmatpush1.bf16.msra.mxu0 %v15933_v47  ;;  %v16008_v60 = vld [vmem:[#allocation8 + $0x748] ss:$16 sps:$4 sm:$0xff]  }
 0x7f1   : > { %13055 = vmatprep.subr.bf16.mxu0 %v15941_v58  ;;  %v16014_v47 = vld [vmem:[#allocation8 + $0x768] ss:$16 sps:$4 sm:$0xff]   ;;  %v16022_v58 = vld [vmem:[#allocation8 + $0x78c] ss:$16 sps:$4 sm:$0xff]  }
 0x7f3   : > { %13218 = vmatpush1.bf16.msra.mxu1 %v15936_v62  ;;  %v16019_v62 = vld [vmem:[#allocation8 + $0x784] ss:$16 sps:$4 sm:$0xff]  }
 0x7f4   : > { %13219 = vmatprep.subr.bf16.mxu1 %v15944_v50  ;;  %13056 = vmatpush1.bf16.msra.mxu0 %v15939_v28  ;;  %v11347_v50 = vsub.s32 6, %v18424_v19  ;;  %v16025_v28 = vld [vmem:[#allocation8 + $0x7a4] ss:$16 sps:$4 sm:$0xff]  }
 0x7f5   : > { %13066 = vmatprep.subr.bf16.mxu0 %v15947_v40 }
 0x7f6   : > { %v11348_v40 = vrot.slane %v18449_v26, %v11347_v50  ;;  %v13291_v26 = vld [vmem:[%s18675_s5 + $0x80] sm:$0xff] }
 0x7f7   : > { %13220 = vmatpush1.bf16.msra.mxu1 %v15942_v18  ;;  %13058 = vmatmul.mubr.bf16.vlgmr.msra.gmra.mrb[0].mxu0 %v11381_v56  ;;  %v16028_v18 = vld [vmem:[#allocation8 + $0x7ac] ss:$16 sps:$4 sm:$0xff]  }
 0x7f8   : > { %13230 = vmatprep.subr.bf16.mxu1 %v15950_v33  ;;  %13067 = vmatpush1.bf16.msra.mxu0 %v15945_v15  ;;  %v16023_v33 = vld [vmem:[#allocation8 + $0x7a0] ss:$16 sps:$4 sm:$0xff]   ;;  %v16031_v15 = vld [vmem:[#allocation8 + $0x7c4] ss:$16 sps:$4 sm:$0xff]  }
 0x7f9   : > { %13068 = vmatprep.subr.bf16.mxu0 %v15953_v24  ;;  %13098 = vmatprep.mubr.bf16.mxu0 %v11384_v25 }
 0x7fa   : > { %13222 = vmatmul.mubr.bf16.vlgmr.msra.gmra.mrb[0].mxu1 %v11381_v56  ;;  %v11317_v56 = vld [vmem:[#allocation2 + $0x30] sm:$0xff] }
 0x7fb   : > { %13231 = vmatpush1.bf16.msra.mxu1 %v15948_v43  ;;  %13262 = vmatprep.mubr.bf16.mxu1 %v11384_v25  ;;  %v16034_v43 = vld [vmem:[#allocation8 + $0x7cc] ss:$16 sps:$4 sm:$0xff]   ;;  %v11367_v24 = vadd.f32 %v11348_v40, %v11317_v56  ;;  %v16032_v25 = vld [vmem:[#allocation8 + $0x7c8] ss:$16 sps:$4 sm:$0xff]   ;;  %v13313_v40 = vld [vmem:[%s18675_s5 + $0x130] sm:$0xff] }
 0x7fc   : > { %13232 = vmatprep.subr.bf16.mxu1 %v15956_v21  ;;  %13069 = vmatpush1.bf16.msra.mxu0 %v15951_v42  ;;  %v16029_v21 = vld [vmem:[#allocation8 + $0x7c0] ss:$16 sps:$4 sm:$0xff]   ;;  %v16037_v42 = vld [vmem:[#allocation8 + $0x7e4] ss:$16 sps:$4 sm:$0xff]   ;;  %v13300_v56 = vld [vmem:[%s18675_s5 + $0xc8] sm:$0xff] }
 0x7fd   : > { %13070 = vmatprep.subr.bf16.mxu0 %v15959_v0  ;;  %v13292_v0 = vld [vmem:[%s18675_s5 + $0x88] sm:$0xff] }
 0x7ff   : > { %13233 = vmatpush1.bf16.msra.mxu1 %v15954_v20  ;;  %v16040_v20 = vld [vmem:[#allocation8 + $0x7ec] ss:$16 sps:$4 sm:$0xff]  }
 0x800   : > { %13234 = vmatprep.subr.bf16.mxu1 %v15962_v41  ;;  %13071 = vmatpush1.bf16.msra.mxu0 %v15957_v59  ;;  %v13323_v41 = vld [vmem:[%s18675_s5 + $0x180] sm:$0xff]  ;;  %v13324_v59 = vld [vmem:[%s18675_s5 + $0x188] sm:$0xff] }
 0x801   : > { %13072 = vmatprep.subr.bf16.mxu0 %v15965_v46  ;;  %v11375_v46 = vmax.f32 %v11367_v24, 0.0 }
 0x803   : > { %13235 = vmatpush1.bf16.msra.mxu1 %v15960_v53  ;;  %v16035_v53 = vld [vmem:[#allocation8 + $0x7e0] ss:$16 sps:$4 sm:$0xff]  }
 0x804   : > { %13236 = vmatprep.subr.bf16.mxu1 %v15968_v29  ;;  %13073 = vmatpush1.bf16.msra.mxu0 %v15963_v12  ;;  %v16038_v29 = vld [vmem:[#allocation8 + $0x7e8] ss:$16 sps:$4 sm:$0xff]   ;;  %v13275_v12 = vld [vmem:[%s18675_s5] sm:$0xff] }
 0x805   : > { %13074 = vmatprep.subr.bf16.mxu0 %v15971_v39  ;;  %v15444_v39 = vpack.c.bf16 %v13292_v0, %v13291_v26  ;;  %v13315_v0 = vld [vmem:[%s18675_s5 + $0x140] sm:$0xff] }
 0x807   : > { %13237 = vmatpush1.bf16.msra.mxu1 %v15966_v38  ;;  %v13276_v38 = vld [vmem:[%s18675_s5 + $0x8] sm:$0xff] }
 0x808   : > { %13238 = vmatprep.subr.bf16.mxu1 %v15974_v27  ;;  %13075 = vmatpush1.bf16.msra.mxu0 %v15969_v35  ;;  %v15476_v27 = vpack.c.bf16 %v13324_v59, %v13323_v41  ;;  %v13307_v35 = vld [vmem:[%s18675_s5 + $0x100] sm:$0xff]  ;;  %v13316_v41 = vld [vmem:[%s18675_s5 + $0x148] sm:$0xff]  ;;  %v13301_v59 = vld [vmem:[%s18675_s5 + $0xd0] sm:$0xff] }
 0x809   : > { %13076 = vmatprep.subr.bf16.mxu0 %v15977_v34  ;;  %v13293_v34 = vld [vmem:[%s18675_s5 + $0x90] sm:$0xff] }
 0x80b   : > { %13239 = vmatpush1.bf16.msra.mxu1 %v15972_v5  ;;  %v13308_v5 = vld [vmem:[%s18675_s5 + $0x108] sm:$0xff] }
 0x80c   : > { %13240 = vmatprep.subr.bf16.mxu1 %v15980_v31  ;;  %13077 = vmatpush1.bf16.msra.mxu0 %v15975_v17  ;;  %v13294_v31 = vld [vmem:[%s18675_s5 + $0x98] sm:$0xff]  ;;  %v13325_v17 = vld [vmem:[%s18675_s5 + $0x190] sm:$0xff] }
 0x80d   : > { %13078 = vmatprep.subr.bf16.mxu0 %v15983_v11  ;;  %v11383_v11 = vpack.c.bf16 %v11375_v46, %v11375_v46  ;;  %v13333_v46 = vld [vmem:[%s18675_s5 + $0x1d0] sm:$0xff] }
 0x80f   : > { %13241 = vmatpush1.bf16.msra.mxu1 %v15978_v32  ;;  %v13326_v32 = vld [vmem:[%s18675_s5 + $0x198] sm:$0xff] }
 0x810   : > { %13242 = vmatprep.subr.bf16.mxu1 %v15986_v54  ;;  %13079 = vmatpush1.bf16.msra.mxu0 %v15981_v1  ;;  %v15446_v54 = vpack.c.bf16 %v13276_v38, %v13275_v12  ;;  %v15478_v1 = vpack.c.bf16 %v13308_v5, %v13307_v35  ;;  %v15494_v38 = vpack.c.bf16 %v13316_v41, %v13315_v0 }
 0x811   : > { %13080 = vmatprep.subr.bf16.mxu0 %v15989_v16  ;;  %v13278_v16 = vld [vmem:[%s18675_s5 + $0x18] sm:$0xff] }
 0x813   : > { %13243 = vmatpush1.bf16.msra.mxu1 %v15984_v7  ;;  %v13277_v7 = vld [vmem:[%s18675_s5 + $0x10] sm:$0xff] }
 0x814   : > { %13244 = vmatprep.subr.bf16.mxu1 %v15992_v48  ;;  %13081 = vmatpush1.bf16.msra.mxu0 %v15987_v37  ;;  %v15448_v48 = vpack.c.bf16 %v13294_v31, %v13293_v34  ;;  %v15480_v37 = vpack.c.bf16 %v13326_v32, %v13325_v17  ;;  %v13317_v34 = vld [vmem:[%s18675_s5 + $0x150] sm:$0xff]  ;;  %v13318_v31 = vld [vmem:[%s18675_s5 + $0x158] sm:$0xff]  ;;  %v13303_v17 = vld [vmem:[%s18675_s5 + $0xe0] sm:$0xff] }
 0x815   : > { %13082 = vmatprep.subr.bf16.mxu0 %v15995_v6  ;;  %v13310_v6 = vld [vmem:[%s18675_s5 + $0x118] sm:$0xff]  ;;  %v13304_v32 = vld [vmem:[%s18675_s5 + $0xe8] sm:$0xff] }
 0x817   : > { %13245 = vmatpush1.bf16.msra.mxu1 %v15990_v44  ;;  %v13309_v44 = vld [vmem:[%s18675_s5 + $0x110] sm:$0xff] }
 0x818   : > { %13246 = vmatprep.subr.bf16.mxu1 %v15998_v57  ;;  %13083 = vmatpush1.bf16.msra.mxu0 %v15993_v36  ;;  %v13295_v57 = vld [vmem:[%s18675_s5 + $0xa0] sm:$0xff]  ;;  %v13296_v36 = vld [vmem:[%s18675_s5 + $0xa8] sm:$0xff] }
 0x819   : > { %13084 = vmatprep.subr.bf16.mxu0 %v16001_v55  ;;  %v13328_v55 = vld [vmem:[%s18675_s5 + $0x1a8] sm:$0xff] }
 0x81b   : > { %13247 = vmatpush1.bf16.msra.mxu1 %v15996_v10  ;;  %v13327_v10 = vld [vmem:[%s18675_s5 + $0x1a0] sm:$0xff] }
 0x81c   : > { %13248 = vmatprep.subr.bf16.mxu1 %v16004_v52  ;;  %13085 = vmatpush1.bf16.msra.mxu0 %v15999_v45  ;;  %v15450_v52 = vpack.c.bf16 %v13278_v16, %v13277_v7  ;;  %v15482_v45 = vpack.c.bf16 %v13310_v6, %v13309_v44  ;;  %v15498_v7 = vpack.c.bf16 %v13318_v31, %v13317_v34  ;;  %v13288_v44 = vld [vmem:[%s18675_s5 + $0x68] sm:$0xff]  ;;  %v13319_v6 = vld [vmem:[%s18675_s5 + $0x160] sm:$0xff] }
 0x81d   : > { %13086 = vmatprep.subr.bf16.mxu0 %v16007_v9  ;;  %v13280_v9 = vld [vmem:[%s18675_s5 + $0x28] sm:$0xff]  ;;  %v15468_v16 = vpack.c.bf16 %v13304_v32, %v13303_v17 }
 0x81f   : > { %13249 = vmatpush1.bf16.msra.mxu1 %v16002_v63  ;;  %v13279_v63 = vld [vmem:[%s18675_s5 + $0x20] sm:$0xff] }
 0x820   : > { %13250 = vmatprep.subr.bf16.mxu1 %v16010_v22  ;;  %13087 = vmatpush1.bf16.msra.mxu0 %v16005_v13  ;;  %v15452_v22 = vpack.c.bf16 %v13296_v36, %v13295_v57  ;;  %v15484_v13 = vpack.c.bf16 %v13328_v55, %v13327_v10  ;;  %v13320_v36 = vld [vmem:[%s18675_s5 + $0x168] sm:$0xff]  ;;  %v13305_v55 = vld [vmem:[%s18675_s5 + $0xf0] sm:$0xff] }
 0x821   : > { %13088 = vmatprep.subr.bf16.mxu0 %v16013_v61  ;;  %v13312_v61 = vld [vmem:[%s18675_s5 + $0x128] sm:$0xff]  ;;  %v15502_v10 = vpack.c.bf16 %v13320_v36, %v13319_v6 }
 0x823   : > { %13251 = vmatpush1.bf16.msra.mxu1 %v16008_v60  ;;  %v13311_v60 = vld [vmem:[%s18675_s5 + $0x120] sm:$0xff] }
 0x824   : > { %13252 = vmatprep.subr.bf16.mxu1 %v16016_v49  ;;  %13089 = vmatpush1.bf16.msra.mxu0 %v16011_v14  ;;  %v13297_v49 = vld [vmem:[%s18675_s5 + $0xb0] sm:$0xff]  ;;  %v13298_v14 = vld [vmem:[%s18675_s5 + $0xb8] sm:$0xff]  ;;  %v15486_v50 = vpack.c.bf16 %v13312_v61, %v13311_v60 }
 0x825   : > { %13090 = vmatprep.subr.bf16.mxu0 %v16019_v62  ;;  %v13330_v62 = vld [vmem:[%s18675_s5 + $0x1b8] sm:$0xff] }
 0x827   : > { %13253 = vmatpush1.bf16.msra.mxu1 %v16014_v47  ;;  %v13329_v47 = vld [vmem:[%s18675_s5 + $0x1b0] sm:$0xff] }
 0x828   : > { %13254 = vmatprep.subr.bf16.mxu1 %v16022_v58  ;;  %13091 = vmatpush1.bf16.msra.mxu0 %v16017_v4  ;;  %v15454_v58 = vpack.c.bf16 %v13280_v9, %v13279_v63  ;;  %v13281_v4 = vld [vmem:[%s18675_s5 + $0x30] sm:$0xff]  ;;  %v13338_v9 = vld [vmem:[%s18675_s5 + $0x1f8] sm:$0xff] }
 0x829   : > { %13092 = vmatprep.subr.bf16.mxu0 %v16025_v28  ;;  %v15456_v28 = vpack.c.bf16 %v13298_v14, %v13297_v49  ;;  %v13321_v49 = vld [vmem:[%s18675_s5 + $0x170] sm:$0xff]  ;;  %v13322_v14 = vld [vmem:[%s18675_s5 + $0x178] sm:$0xff] }
 0x82b   : > { %13255 = vmatpush1.bf16.msra.mxu1 %v16020_v30  ;;  %v13282_v30 = vld [vmem:[%s18675_s5 + $0x38] sm:$0xff] }
 0x82c   : > { %13256 = vmatprep.subr.bf16.mxu1 %v16028_v18  ;;  %13093 = vmatpush1.bf16.msra.mxu0 %v16023_v33  ;;  %v15488_v18 = vpack.c.bf16 %v13330_v62, %v13329_v47  ;;  %v13314_v33 = vld [vmem:[%s18675_s5 + $0x138] sm:$0xff]  ;;  %v15458_v24 = vpack.c.bf16 %v13282_v30, %v13281_v4  ;;  %v15506_v47 = vpack.c.bf16 %v13322_v14, %v13321_v49  ;;  %v11641_v62 = vld [vmem:[#allocation10] sm:$0xf] }
 0x82d   : > { %13094 = vmatprep.subr.bf16.mxu0 %v16031_v15  ;;  %v13331_v15 = vld [vmem:[%s18675_s5 + $0x1c0] sm:$0xff]  ;;  %v11650_v4 = vrot.slane %v11641_v62, %v11327_v3  ;;  %v11658_v30 = vrot.slane %v11641_v62, %v11335_v8 }
 0x82e   : > { %v15367_v8 = vld [vmem:[#allocation11] ss:$0 sm:$0xff] }
 0x82f   : > { %13257 = vmatpush1.bf16.msra.mxu1 %v16026_v23  ;;  %v13299_v23 = vld [vmem:[%s18675_s5 + $0xc0] sm:$0xff] }
 0x830   : > { %13258 = vmatprep.subr.bf16.mxu1 %v16034_v43  ;;  %13095 = vmatpush1.bf16.msra.mxu0 %v16029_v21  ;;  %v13332_v43 = vld [vmem:[%s18675_s5 + $0x1c8] sm:$0xff]  ;;  %v15490_v21 = vpack.c.bf16 %v13314_v33, %v13313_v40 }
 0x831   : > { %13096 = vmatprep.subr.bf16.mxu0 %v16037_v42  ;;  %v13284_v42 = vld [vmem:[%s18675_s5 + $0x48] sm:$0xff]  ;;  %v15492_v26 = vpack.c.bf16 %v13332_v43, %v13331_v15 }
 0x833   : > { %13259 = vmatpush1.bf16.msra.mxu1 %v16032_v25  ;;  %v13283_v25 = vld [vmem:[%s18675_s5 + $0x40] sm:$0xff] }
 0x834   : > { %13260 = vmatprep.subr.bf16.mxu1 %v16040_v20  ;;  %13097 = vmatpush1.bf16.msra.mxu0 %v16035_v53  ;;  %v15460_v20 = vpack.c.bf16 %v13300_v56, %v13299_v23  ;;  %v13302_v53 = vld [vmem:[%s18675_s5 + $0xd8] sm:$0xff]  ;;  %v15462_v12 = vpack.c.bf16 %v13284_v42, %v13283_v25 }
 0x835   : > { %15445 = vmatprep.subr.bf16.mxu0 %v15444_v39  ;;  %v13285_v39 = vld [vmem:[%s18675_s5 + $0x50] sm:$0xff]  ;;  %v15464_v35 = vpack.c.bf16 %v13302_v53, %v13301_v59 }
 0x837   : > { %13261 = vmatpush1.bf16.msra.mxu1 %v16038_v29  ;;  %13099 = vmatmul.mubr.bf16.vlgmr.msra.gmra.mrb[0].mxu0 %v11383_v11  ;;  %v13334_v29 = vld [vmem:[%s18675_s5 + $0x1d8] sm:$0xff] }
 0x838   : > { %15477 = vmatprep.subr.bf16.mxu1 %v15476_v27  ;;  %15447 = vmatpush3.bf16.msra.mxu0 %v15446_v54  ;;  %v13286_v27 = vld [vmem:[%s18675_s5 + $0x58] sm:$0xff]  ;;  %v15496_v5 = vpack.c.bf16 %v13334_v29, %v13333_v46  ;;  %v13336_v54 = vld [vmem:[%s18675_s5 + $0x1e8] sm:$0xff] }
 0x839   : > { %15449 = vmatprep.subr.bf16.mxu0 %v15448_v48 }
 0x83a   : > { %13263 = vmatmul.mubr.bf16.vlgmr.msra.gmra.mrb[0].mxu1 %v11383_v11  ;;  %v13335_v11 = vld [vmem:[%s18675_s5 + $0x1e0] sm:$0xff] }
 0x83b   : > { %15479 = vmatpush3.bf16.msra.mxu1 %v15478_v1  ;;  %v15466_v1 = vpack.c.bf16 %v13286_v27, %v13285_v39  ;;  %v15500_v48 = vpack.c.bf16 %v13336_v54, %v13335_v11 }
 0x83c   : > { %15481 = vmatprep.subr.bf16.mxu1 %v15480_v37  ;;  %15451 = vmatpush3.bf16.msra.mxu0 %v15450_v52  ;;  %v13287_v37 = vld [vmem:[%s18675_s5 + $0x60] sm:$0xff]  ;;  %v13306_v52 = vld [vmem:[%s18675_s5 + $0xf8] sm:$0xff] }
 0x83d   : > { %15453 = vmatprep.subr.bf16.mxu0 %v15452_v22  ;;  %v15470_v57 = vpack.c.bf16 %v13288_v44, %v13287_v37  ;;  %v15472_v63 = vpack.c.bf16 %v13306_v52, %v13305_v55  ;;  %v13289_v22 = vld [vmem:[%s18675_s5 + $0x70] sm:$0xff] }
 0x83f   : > { %15483 = vmatpush3.bf16.msra.mxu1 %v15482_v45  ;;  %v13337_v45 = vld [vmem:[%s18675_s5 + $0x1f0] sm:$0xff] }
 0x840   : > { %15485 = vmatprep.subr.bf16.mxu1 %v15484_v13  ;;  %15455 = vmatpush3.bf16.msra.mxu0 %v15454_v58  ;;  %v13290_v13 = vld [vmem:[%s18675_s5 + $0x78] sm:$0xff]  ;;  %v15504_v60 = vpack.c.bf16 %v13338_v9, %v13337_v45  ;;  %v11646_v58 = vrot.slane %v11641_v62, %v11323_v51 }
 0x841   : > { %15457 = vmatprep.subr.bf16.mxu0 %v15456_v28  ;;  %v15474_v61 = vpack.c.bf16 %v13290_v13, %v13289_v22 }
 0x843   : > { %15487 = vmatpush3.bf16.msra.mxu1 %v15486_v50  ;;  %v11654_v50 = vrot.slane %v11641_v62, %v11331_v2 }
 0x844   : > { %15489 = vmatprep.subr.bf16.mxu1 %v15488_v18  ;;  %15459 = vmatpush3.bf16.msra.mxu0 %v15458_v24 }
 0x845   : > { %15461 = vmatprep.subr.bf16.mxu0 %v15460_v20 }
 0x847   : > { %15491 = vmatpush3.bf16.msra.mxu1 %v15490_v21 }
 0x848   : > { %15493 = vmatprep.subr.bf16.mxu1 %v15492_v26  ;;  %15463 = vmatpush3.bf16.msra.mxu0 %v15462_v12 }
 0x849   : > { %15465 = vmatprep.subr.bf16.mxu0 %v15464_v35 }
 0x84b   : > { %15495 = vmatpush3.bf16.msra.mxu1 %v15494_v38 }
 0x84c   : > { %15497 = vmatprep.subr.bf16.mxu1 %v15496_v5  ;;  %15467 = vmatpush3.bf16.msra.mxu0 %v15466_v1 }
 0x84d   : > { %15469 = vmatprep.subr.bf16.mxu0 %v15468_v16 }
 0x84f   : > { %15499 = vmatpush3.bf16.msra.mxu1 %v15498_v7 }
 0x850   : > { %15501 = vmatprep.subr.bf16.mxu1 %v15500_v48  ;;  %15471 = vmatpush3.bf16.msra.mxu0 %v15470_v57 }
 0x851   : > { %15473 = vmatprep.subr.bf16.mxu0 %v15472_v63 }
 0x853   : > { %15503 = vmatpush3.bf16.msra.mxu1 %v15502_v10 }
 0x854   : > { %15505 = vmatprep.subr.bf16.mxu1 %v15504_v60  ;;  %15475 = vmatpush3.bf16.msra.mxu0 %v15474_v61 }
 0x857   : > { %15507 = vmatpush3.bf16.msra.mxu1 %v15506_v47 }
 0x90a   : > { %v13100_v28 = vpop.f32.mrb[0].mxu0 }
 0x90b   : > { %v15508_v40 = vadd.f32 %v13100_v28, %v11646_v58  ;;  %v13102_v23 = vpop.f32.mrb[1].mxu0 }
 0x90c   : > { %v15509_v15 = vadd.f32 %v13102_v23, %v11650_v4  ;;  %v13104_v24 = vpop.f32.mrb[2].mxu0 }
 0x90d   : > { %v13264_v18 = vpop.f32.mrb[0].mxu1  ;;  %v13105_v51 = vpop.f32.mrb[3].mxu0  ;;  %v13271_v20 = vmax.f32 %v15508_v40, 0.0 }
 0x90e   : > { %v15510_v33 = vadd.f32 %v13264_v18, %v11654_v50  ;;  %v13266_v56 = vpop.f32.mrb[1].mxu1  ;;  %v13272_v42 = vmax.f32 %v15509_v15, 0.0 }
 0x90f   : > { %v15511_v43 = vadd.f32 %v13266_v56, %v11658_v30  ;;  %v13268_v21 = vpop.f32.mrb[2].mxu1 }
 0x910   : > { %v13269_v25 = vpop.f32.mrb[3].mxu1  ;;  %v13273_v26 = vmax.f32 %v15510_v33, 0.0  ;;  %13410 = vmatprep.mubr.f32.mxu0 %v13272_v42 }
 0x911   : > { %v13274_v2 = vmax.f32 %v15511_v43, 0.0  ;;  %13411 = vmatmul.mubr.f32.vlgmr.msra.gmra.mrb[4].mxu0 %v13271_v20 }
 0x913   : > { %13480 = vmatprep.mubr.f32.mxu1 %v13274_v2 }
 0x914   : > { %13481 = vmatmul.mubr.f32.vlgmr.msra.gmra.mrb[4].mxu1 %v13273_v26 }
 0x9e4   : > { %v15406_v19 = vpop.f32.mrb[4].mxu0 }
 0x9e5   : > { %v15407_v0 = vpop.f32.mrb[5].mxu0 }
 0x9e6   : > { %v15408_v59 = vadd.f32 %v15407_v0, %v15406_v19 }
 0x9e7   : > { %v15441_v3 = vpop.f32.mrb[4].mxu1 }
 0x9e8   : > { %v15442_v41 = vpop.f32.mrb[5].mxu1  ;;  %v13413_v46 = vadd.f32 %v15408_v59, %v15367_v8 }
 0x9e9   : > { %v15443_v53 = vadd.f32 %v15442_v41, %v15441_v3 }
 0x9eb   : > { %v13483_v29 = vadd.f32 %v15443_v53, %v13413_v46 }
 0x9ed   : > { %v13487_v12 = vsel %vm13486_vm0, %v13483_v29, -inf }
 0x9ee   : > { %13488 = vmax.xlane.f32.xlu0 %v13487_v12 }
 0xa7b   : > { %v13489_v38 = vpop.xlane.xlu0 %13488 }
 0xa7c   : > { %v13490_v39 = vsub.f32 %v13483_v29, %v13489_v38 }
 0xa7e   : > { %v13491_v27 = vmul.f32 1.442695, %v13490_v39 }
 0xa80   : > { %16041 = vpow2.f32 %v13491_v27 }
 0xa8a   : > { %v16042_v35 = vpop.eup %16041 }
 0xa8b   : > { %v13493_v5 = vsel %vm13486_vm0, %v16042_v35, 0.0 }
 0xa8c   : > { %13494 = vadd.xlane.f32.xlu0 %v13493_v5 }
 0xb19   : > { %v13495_v34 = vpop.xlane.xlu0 %13494 }
 0xb1a   : > { %16043 = vrcp.f32 %v13495_v34 }
 0xb24   : > { %v16044_v31 = vpop.eup %16043 }
 0xb25   : > { %v13497_v17 = vmul.f32 %v16044_v31, %v16042_v35 }
 0xb27   : > { %13498 = vst.msk [vmem:[%s18677_s7] sm:$0xff] %vm13486_vm0, %v13497_v17 }
 0xb28 PF: > { %p22_p2 = scmp.ge.s32.totalorder %s16454_s19, 4   ;;  %s18694_s24 = smov %s16260_s25 }
 0xb29   : > { %s18695_s25 = smov %s16264_s26  ;;  %s18696_s26 = smov %s16466_s29 }
 0xb2a   : > { %s18697_s27 = smov %s16454_s19  ;;  %24 = sbr.rel (!%p22_p2) target bundleno = 7 (0x7), region = 121 }
 0xb31   :  { %13510 = vsyncpa [#allocation4], 1 }
 0xb32   :  { %13512 = vsyncpa [#allocation4 + $0x1], 1 }
 0xb33   :  { %13513 = vsyncpa [#allocation6], 1 }
 0xb34   :  { %13515 = vsyncpa [#allocation6 + $0x1], 1 }
 0xb35   :  { %13516 = vsyncpa [#allocation9], 1 }
 0xb36   :  { %13517 = vsyncpa [#allocation12], 1 }

</bundles_post_ra>
